<compile_context>
chip_gen: v7x
topology: tpu7x:2x2x1
jax: 0.10.0
libtpu: 0.0.40
codegen_flags: <defaults>
</compile_context>

<pallas_src>
import functools

import jax
import jax.numpy as jnp
import numpy as np
from jax.experimental import pallas as pl
from jax.experimental.pallas import tpu as pltpu

_TM_CAP = 512    # row tile cap
_TN_CAP = 512    # output-channel (lane) tile cap
_TK_CAP = 1024   # reduction tile cap

_LAYER_ACTS = ("relu", "relu", "relu", "relu", "tanh")


def _round_up(x, m):
    return ((x + m - 1) // m) * m


def _cdiv(a, b):
    return -(-a // b)


def _pick_tile(n, cap):
    """Largest multiple of 128 that divides n and is <= cap (n % 128 == 0)."""
    t = min(cap, n)
    while n % t:
        t -= 128
    return t


def _pick_row_tile(m, cap):
    """Row tile: multiple of 8, <= cap, chosen to minimise padding of m."""
    g = _cdiv(m, cap)                 # number of row tiles at the cap
    return _round_up(_cdiv(m, g), 8)  # spread m evenly over g tiles


# ----------------------------------------------------------------------------
# Pallas kernel: act(A @ B) with K-tiled f32 accumulation.
#   A tile (tm, tk) bf16, B tile (tk, tn) bf16, out tile (tm, tn) out_dtype.
# ----------------------------------------------------------------------------
def _matmul_act_kernel(a_ref, b_ref, o_ref, acc_ref, *, act):
    @pl.when(pl.program_id(2) == 0)
    def _init():
        acc_ref[...] = jnp.zeros_like(acc_ref)

    acc_ref[...] += jnp.dot(a_ref[...], b_ref[...],
                            preferred_element_type=jnp.float32)

    @pl.when(pl.program_id(2) == pl.num_programs(2) - 1)
    def _finalize():
        acc = acc_ref[...]
        if act == "relu":
            acc = jnp.maximum(acc, 0.0)
        elif act == "tanh":
            acc = jnp.tanh(acc)
        o_ref[...] = acc.astype(o_ref.dtype)


def pallas_matmul_act(a, b, act, out_dtype):
    """activation(a @ b).  a: (M, K), b: (K, N), K % 128 == N % 128 == 0."""
    M, K = a.shape
    K2, N = b.shape
    assert K == K2 and K % 128 == 0 and N % 128 == 0

    tm = _pick_row_tile(M, _TM_CAP)
    Mp = tm * _cdiv(M, tm)
    tn = _pick_tile(N, _TN_CAP)
    tk = _pick_tile(K, _TK_CAP)

    a = a.astype(jnp.bfloat16)
    if Mp != M:
        # Fuses with the (XLA-side) patch construction that produces `a`, so
        # this is layout padding, not an extra materialisation.
        a = jnp.pad(a, ((0, Mp - M), (0, 0)))
    b = b.astype(jnp.bfloat16)

    out_bytes = jnp.dtype(out_dtype).itemsize
    cost = pl.CostEstimate(
        flops=2 * Mp * K * N,
        transcendentals=Mp * N if act == "tanh" else 0,
        bytes_accessed=Mp * K * 2 + K * N * 2 + Mp * N * out_bytes,
    )

    out = pl.pallas_call(
        functools.partial(_matmul_act_kernel, act=act),
        out_shape=jax.ShapeDtypeStruct((Mp, N), out_dtype),
        grid=(Mp // tm, N // tn, K // tk),
        in_specs=[
            pl.BlockSpec((tm, tk), lambda i, j, k: (i, k)),
            pl.BlockSpec((tk, tn), lambda i, j, k: (k, j)),
        ],
        out_specs=pl.BlockSpec((tm, tn), lambda i, j, k: (i, j)),
        scratch_shapes=[pltpu.VMEM((tm, tn), jnp.float32)],
        compiler_params=pltpu.CompilerParams(
            dimension_semantics=("parallel", "parallel", "arbitrary")),
        cost_estimate=cost,
    )(a, b)
    return out if Mp == M else out[:M]


# ----------------------------------------------------------------------------
# One-time weight preprocessing (outside jit): PyTorch ConvTranspose2d weights
# (Cin, Cout, 4, 4) -> matmul-ready, channel-padded, bf16 matrices.
#
# cout is padded to a multiple of 32 so that 4*cout_p (the matmul lane dim and
# the next layer's 4*cin_p reduction dim) is a multiple of 128.  cin of layer
# i (> 0) is padded identically to the previous layer's cout, so the padded
# channels line up across the whole stack; only the latent dim is padded to
# 128 (it is the K of the first matmul).
# ----------------------------------------------------------------------------
def prepare_generator_params(torch_weights):
    mats = []
    for li, w in enumerate(torch_weights):
        w = jnp.asarray(w, jnp.float32)
        cin, cout, k, k2 = w.shape
        assert k == 4 and k2 == 4
        cout_p = _round_up(cout, 32)
        if li == 0:
            # stride 1, pad 0, 1x1 latent: dense projection; cols ordered (y, x, co).
            cin_p = _round_up(cin, 128)
            m = jnp.transpose(w, (0, 2, 3, 1))                     # (ci, y, x, co)
            m = jnp.pad(m, ((0, cin_p - cin), (0, 0), (0, 0), (0, cout_p - cout)))
            m = m.reshape(cin_p, 16 * cout_p)
        else:
            # stride 2, pad 1: sub-pixel weight; rows (a, b, ci), cols (py, px, co)
            # with W[(a,b,ci),(py,px,co)] = w[ci, co, 3-(py+2a), 3-(px+2b)].
            cin_p = _round_up(cin, 32)                             # == prev cout_p
            wf = w[:, :, ::-1, ::-1]                               # (ci, co, dy, dx) flipped
            wf = wf.reshape(cin, cout, 2, 2, 2, 2)                 # (ci, co, a, py, b, px)
            wf = jnp.transpose(wf, (2, 4, 0, 3, 5, 1))             # (a, b, ci, py, px, co)
            wf = jnp.pad(wf, ((0, 0), (0, 0), (0, cin_p - cin),
                              (0, 0), (0, 0), (0, cout_p - cout)))
            m = wf.reshape(4 * cin_p, 4 * cout_p)
        mats.append(m.astype(jnp.bfloat16))
    return tuple(mats)


# ----------------------------------------------------------------------------
# ConvTranspose2d(k=4, s=2, p=1, bias=False) + activation via sub-pixel conv.
# ----------------------------------------------------------------------------
def _sub_pixel_convt(h, w_mat, act, out_dtype):
    n, hh, ww, cp = h.shape
    assert w_mat.shape[0] == 4 * cp
    co_p = w_mat.shape[1] // 4

    # 2x2 stride-1 conv over the (1,1)-padded input: dense patches, no zeros.
    xp = jnp.pad(h, ((0, 0), (1, 1), (1, 1), (0, 0)))
    cols = [xp[:, a:a + hh + 1, b:b + ww + 1, :] for a in (0, 1) for b in (0, 1)]
    patches = jnp.concatenate(cols, axis=-1)
    patches = patches.reshape(n * (hh + 1) * (ww + 1), 4 * cp)

    z = pallas_matmul_act(patches, w_mat, act, out_dtype)
    z = z.reshape(n, hh + 1, ww + 1, 2, 2, co_p)

    # Parity interleave: out[2i+py, 2j+px] = z[i+py, j+px, py, px].
    rows = []
    for py in (0, 1):
        c = [z[:, py:py + hh, px:px + ww, py, px, :] for px in (0, 1)]
        rows.append(jnp.stack(c, axis=3))                          # (n, H, W, 2, co)
    y = jnp.stack(rows, axis=2)                                    # (n, H, 2, W, 2, co)
    return y.reshape(n, 2 * hh, 2 * ww, co_p)


@functools.partial(jax.jit, static_argnames=("color_channels",))
def generator_forward(x_nchw, mats, color_channels):
    n, num_z, h, w = x_nchw.shape
    if (h, w) != (1, 1):
        # TODO(synk): general spatial input for the stride-1 first layer; the
        # DCGAN generator always feeds a (N, numZ, 1, 1) latent.
        raise ValueError("expected a (N, numZ, 1, 1) latent input")
    cin_p = mats[0].shape[0]
    cout16 = mats[0].shape[1]

    x = x_nchw.reshape(n, num_z).astype(jnp.bfloat16)
    x = jnp.pad(x, ((0, 0), (0, cin_p - num_z)))

    y = pallas_matmul_act(x, mats[0], "relu", jnp.bfloat16)        # layer 1
    hmap = y.reshape(n, 4, 4, cout16 // 16)

    for w_mat, act in zip(mats[1:], _LAYER_ACTS[1:]):              # layers 2..5
        out_dtype = jnp.float32 if act == "tanh" else jnp.bfloat16
        hmap = _sub_pixel_convt(hmap, w_mat, act, out_dtype)

    out = hmap[..., :color_channels]                               # drop channel padding
    return jnp.transpose(out, (0, 3, 1, 2))                        # NHWC -> NCHW


# ----------------------------------------------------------------------------
# Pure-JAX f32 reference (lax conv with lhs_dilation) for the sanity check.
# ----------------------------------------------------------------------------
_LAYER_CFG = [(1, 0), (2, 1), (2, 1), (2, 1), (2, 1)]   # (stride, padding)


def _convt_ref(x_nchw, w_torch, stride, padding):
    k = w_torch.shape[-1]
    pad = k - 1 - padding
    w_oihw = jnp.transpose(w_torch[:, :, ::-1, ::-1], (1, 0, 2, 3))
    return jax.lax.conv_general_dilated(
        x_nchw, w_oihw, window_strides=(1, 1),
        padding=((pad, pad), (pad, pad)), lhs_dilation=(stride, stride),
        dimension_numbers=("NCHW", "OIHW", "NCHW"))


def generator_reference(x_nchw, weights):
    x = x_nchw
    for w, (s, p), act in zip(weights, _LAYER_CFG, _LAYER_ACTS):
        x = _convt_ref(x, w, s, p)
        x = jnp.maximum(x, 0.0) if act == "relu" else jnp.tanh(x)
    return x


# ----------------------------------------------------------------------------
if __name__ == "__main__":
    # Small but shape-consistent config (module default is numZ=100, F=64, C=1).
    # F=32 exercises multi-step K accumulation (layer 2: K = 2048 -> 2 steps),
    # multi-tile M (layer 5: M = 2178 rows -> 5 row tiles of 440), and the
    # 32-padded small-channel path (layer 4 cout=64, layer 5 cout=1).
    num_z, feat, color_c, batch = 16, 32, 1, 2

    key = jax.random.PRNGKey(0)
    keys = jax.random.split(key, 6)
    weight_shapes = [
        (num_z,     feat * 16, 4, 4),
        (feat * 16, feat * 8,  4, 4),
        (feat * 8,  feat * 4,  4, 4),
        (feat * 4,  feat * 2,  4, 4),
        (feat * 2,  color_c,   4, 4),
    ]
    weights = [0.02 * jax.random.normal(k, s, jnp.float32)
               for k, s in zip(keys[:5], weight_shapes)]
    x = jax.random.normal(keys[5], (batch, num_z, 1, 1), jnp.float32)

    mats = prepare_generator_params(weights)     # one-time weight prep (outside jit)

    out = jax.block_until_ready(generator_forward(x, mats, color_c))
    assert out.shape == (batch, color_c, 64, 64), out.shape

    ref = jax.block_until_ready(generator_reference(x, weights))
    np.testing.assert_allclose(np.asarray(out), np.asarray(ref),
                               rtol=2e-2, atol=2e-2)

    print("KERNEL_OK")
</pallas_src>

<mosaic_0001>
module attributes {stable_mosaic.version = 11 : i64} {
  func.func @_matmul_act_kernel(%arg0: i32, %arg1: i32, %arg2: i32, %arg3: memref<8x128xbf16, #tpu.memory_space<vmem>>, %arg4: memref<128x512xbf16, #tpu.memory_space<vmem>>, %arg5: memref<8x512xbf16, #tpu.memory_space<vmem>>, %arg6: memref<8x512xf32, #tpu.memory_space<vmem>>) attributes {dimension_semantics = [#tpu.dimension_semantics<parallel>, #tpu.dimension_semantics<parallel>, #tpu.dimension_semantics<arbitrary>], iteration_bounds = array<i64: 1, 16, 1>, scalar_prefetch = 0 : i64, scratch_operands = 1 : i64, tpu.core_type = #tpu.core_type<tc>, window_params = [{transform_indices = @transform_0, window_bounds = array<i64: 8, 128>}, {transform_indices = @transform_1, window_bounds = array<i64: 128, 512>}, {transform_indices = @transform_2, window_bounds = array<i64: 8, 512>}]} {
    %c0_i32 = arith.constant 0 : i32
    %0 = arith.cmpi eq, %arg2, %c0_i32 : i32
    %1 = arith.extui %0 : i1 to i32
    %c0_i32_0 = arith.constant 0 : i32
    %2 = arith.cmpi ne, %1, %c0_i32_0 : i32
    scf.if %2 {
      %cst_10 = arith.constant 0.000000e+00 : f32
      %12 = vector.broadcast %cst_10 : f32 to vector<8x512xf32>
      %c0_11 = arith.constant 0 : index
      %c0_12 = arith.constant 0 : index
      %13 = vector.load %arg6[%c0_11, %c0_12] : memref<8x512xf32, #tpu.memory_space<vmem>>, vector<8x512xf32>
      tpu.vector_store %arg6[%c0_11, %c0_12], %12 {strides = array<i32>} : memref<8x512xf32, #tpu.memory_space<vmem>>, vector<8x512xf32>,
    } else {
    }
    %c0 = arith.constant 0 : index
    %c0_1 = arith.constant 0 : index
    %3 = vector.load %arg6[%c0, %c0_1] : memref<8x512xf32, #tpu.memory_space<vmem>>, vector<8x512xf32>
    %c0_2 = arith.constant 0 : index
    %c0_3 = arith.constant 0 : index
    %4 = vector.load %arg3[%c0_2, %c0_3] : memref<8x128xbf16, #tpu.memory_space<vmem>>, vector<8x128xbf16>
    %c0_4 = arith.constant 0 : index
    %c0_5 = arith.constant 0 : index
    %5 = vector.load %arg4[%c0_4, %c0_5] : memref<128x512xbf16, #tpu.memory_space<vmem>>, vector<128x512xbf16>
    %cst = arith.constant dense<0.000000e+00> : vector<8x512xf32>
    %6 = tpu.matmul %4, %5, %cst {dimension_numbers = #tpu.dot_dimension_numbers<[1], [0], [0], [1], [0, 0, 1, 1], [], []>} : vector<8x128xbf16>, vector<128x512xbf16>, vector<8x512xf32> -> vector<8x512xf32>
    %7 = arith.addf %3, %6 : vector<8x512xf32>
    %c0_6 = arith.constant 0 : index
    %c0_7 = arith.constant 0 : index
    %8 = vector.load %arg6[%c0_6, %c0_7] : memref<8x512xf32, #tpu.memory_space<vmem>>, vector<8x512xf32>
    tpu.vector_store %arg6[%c0_6, %c0_7], %7 {strides = array<i32>} : memref<8x512xf32, #tpu.memory_space<vmem>>, vector<8x512xf32>,
    %c0_i32_8 = arith.constant 0 : i32
    %9 = arith.cmpi eq, %arg2, %c0_i32_8 : i32
    %10 = arith.extui %9 : i1 to i32
    %c0_i32_9 = arith.constant 0 : i32
    %11 = arith.cmpi ne, %10, %c0_i32_9 : i32
    scf.if %11 {
      %c0_10 = arith.constant 0 : index
      %c0_11 = arith.constant 0 : index
      %12 = vector.load %arg6[%c0_10, %c0_11] : memref<8x512xf32, #tpu.memory_space<vmem>>, vector<8x512xf32>
      %cst_12 = arith.constant 0.000000e+00 : f32
      %13 = vector.broadcast %cst_12 : f32 to vector<8x512xf32>
      %14 = arith.maximumf %12, %13 : vector<8x512xf32>
      %15 = arith.truncf %14 : vector<8x512xf32> to vector<8x512xbf16>
      %c0_13 = arith.constant 0 : index
      %c0_14 = arith.constant 0 : index
      %16 = vector.load %arg5[%c0_13, %c0_14] : memref<8x512xbf16, #tpu.memory_space<vmem>>, vector<8x512xbf16>
      tpu.vector_store %arg5[%c0_13, %c0_14], %15 {strides = array<i32>} : memref<8x512xbf16, #tpu.memory_space<vmem>>, vector<8x512xbf16>,
    } else {
    }
    return
  }
  func.func @transform_0(%arg0: i32, %arg1: i32, %arg2: i32) -> (i32, i32) {
    %c0_i32 = arith.constant 0 : i32
    return %arg0, %arg2 : i32, i32
  }
  func.func @transform_1(%arg0: i32, %arg1: i32, %arg2: i32) -> (i32, i32) {
    %c0_i32 = arith.constant 0 : i32
    return %arg2, %arg1 : i32, i32
  }
  func.func @transform_2(%arg0: i32, %arg1: i32, %arg2: i32) -> (i32, i32) {
    %c0_i32 = arith.constant 0 : i32
    return %arg0, %arg1 : i32, i32
  }
}

module attributes {stable_mosaic.version = 11 : i64} {
  func.func @_matmul_act_kernel(%arg0: i32, %arg1: i32, %arg2: i32, %arg3: memref<56x1024xbf16, #tpu.memory_space<vmem>>, %arg4: memref<1024x512xbf16, #tpu.memory_space<vmem>>, %arg5: memref<56x512xbf16, #tpu.memory_space<vmem>>, %arg6: memref<56x512xf32, #tpu.memory_space<vmem>>) attributes {dimension_semantics = [#tpu.dimension_semantics<parallel>, #tpu.dimension_semantics<parallel>, #tpu.dimension_semantics<arbitrary>], iteration_bounds = array<i64: 1, 2, 2>, scalar_prefetch = 0 : i64, scratch_operands = 1 : i64, tpu.core_type = #tpu.core_type<tc>, window_params = [{transform_indices = @transform_0, window_bounds = array<i64: 56, 1024>}, {transform_indices = @transform_1, window_bounds = array<i64: 1024, 512>}, {transform_indices = @transform_2, window_bounds = array<i64: 56, 512>}]} {
    %c0_i32 = arith.constant 0 : i32
    %0 = arith.cmpi eq, %arg2, %c0_i32 : i32
    %1 = arith.extui %0 : i1 to i32
    %c0_i32_0 = arith.constant 0 : i32
    %2 = arith.cmpi ne, %1, %c0_i32_0 : i32
    scf.if %2 {
      %cst_9 = arith.constant 0.000000e+00 : f32
      %12 = vector.broadcast %cst_9 : f32 to vector<56x512xf32>
      %c0_10 = arith.constant 0 : index
      %c0_11 = arith.constant 0 : index
      %13 = vector.load %arg6[%c0_10, %c0_11] : memref<56x512xf32, #tpu.memory_space<vmem>>, vector<56x512xf32>
      tpu.vector_store %arg6[%c0_10, %c0_11], %12 {strides = array<i32>} : memref<56x512xf32, #tpu.memory_space<vmem>>, vector<56x512xf32>,
    } else {
    }
    %c0 = arith.constant 0 : index
    %c0_1 = arith.constant 0 : index
    %3 = vector.load %arg6[%c0, %c0_1] : memref<56x512xf32, #tpu.memory_space<vmem>>, vector<56x512xf32>
    %c0_2 = arith.constant 0 : index
    %c0_3 = arith.constant 0 : index
    %4 = vector.load %arg3[%c0_2, %c0_3] : memref<56x1024xbf16, #tpu.memory_space<vmem>>, vector<56x1024xbf16>
    %c0_4 = arith.constant 0 : index
    %c0_5 = arith.constant 0 : index
    %5 = vector.load %arg4[%c0_4, %c0_5] : memref<1024x512xbf16, #tpu.memory_space<vmem>>, vector<1024x512xbf16>
    %cst = arith.constant dense<0.000000e+00> : vector<56x512xf32>
    %6 = tpu.matmul %4, %5, %cst {dimension_numbers = #tpu.dot_dimension_numbers<[1], [0], [0], [1], [0, 0, 1, 1], [], []>} : vector<56x1024xbf16>, vector<1024x512xbf16>, vector<56x512xf32> -> vector<56x512xf32>
    %7 = arith.addf %3, %6 : vector<56x512xf32>
    %c0_6 = arith.constant 0 : index
    %c0_7 = arith.constant 0 : index
    %8 = vector.load %arg6[%c0_6, %c0_7] : memref<56x512xf32, #tpu.memory_space<vmem>>, vector<56x512xf32>
    tpu.vector_store %arg6[%c0_6, %c0_7], %7 {strides = array<i32>} : memref<56x512xf32, #tpu.memory_space<vmem>>, vector<56x512xf32>,
    %c1_i32 = arith.constant 1 : i32
    %9 = arith.cmpi eq, %arg2, %c1_i32 : i32
    %10 = arith.extui %9 : i1 to i32
    %c0_i32_8 = arith.constant 0 : i32
    %11 = arith.cmpi ne, %10, %c0_i32_8 : i32
    scf.if %11 {
      %c0_9 = arith.constant 0 : index
      %c0_10 = arith.constant 0 : index
      %12 = vector.load %arg6[%c0_9, %c0_10] : memref<56x512xf32, #tpu.memory_space<vmem>>, vector<56x512xf32>
      %cst_11 = arith.constant 0.000000e+00 : f32
      %13 = vector.broadcast %cst_11 : f32 to vector<56x512xf32>
      %14 = arith.maximumf %12, %13 : vector<56x512xf32>
      %15 = arith.truncf %14 : vector<56x512xf32> to vector<56x512xbf16>
      %c0_12 = arith.constant 0 : index
      %c0_13 = arith.constant 0 : index
      %16 = vector.load %arg5[%c0_12, %c0_13] : memref<56x512xbf16, #tpu.memory_space<vmem>>, vector<56x512xbf16>
      tpu.vector_store %arg5[%c0_12, %c0_13], %15 {strides = array<i32>} : memref<56x512xbf16, #tpu.memory_space<vmem>>, vector<56x512xbf16>,
    } else {
    }
    return
  }
  func.func @transform_0(%arg0: i32, %arg1: i32, %arg2: i32) -> (i32, i32) {
    %c0_i32 = arith.constant 0 : i32
    return %arg0, %arg2 : i32, i32
  }
  func.func @transform_1(%arg0: i32, %arg1: i32, %arg2: i32) -> (i32, i32) {
    %c0_i32 = arith.constant 0 : i32
    return %arg2, %arg1 : i32, i32
  }
  func.func @transform_2(%arg0: i32, %arg1: i32, %arg2: i32) -> (i32, i32) {
    %c0_i32 = arith.constant 0 : i32
    return %arg0, %arg1 : i32, i32
  }
}

module attributes {stable_mosaic.version = 11 : i64} {
  func.func @_matmul_act_kernel(%arg0: i32, %arg1: i32, %arg2: i32, %arg3: memref<168x1024xbf16, #tpu.memory_space<vmem>>, %arg4: memref<1024x512xbf16, #tpu.memory_space<vmem>>, %arg5: memref<168x512xbf16, #tpu.memory_space<vmem>>, %arg6: memref<168x512xf32, #tpu.memory_space<vmem>>) attributes {dimension_semantics = [#tpu.dimension_semantics<parallel>, #tpu.dimension_semantics<parallel>, #tpu.dimension_semantics<arbitrary>], iteration_bounds = array<i64: 1, 1, 1>, scalar_prefetch = 0 : i64, scratch_operands = 1 : i64, tpu.core_type = #tpu.core_type<tc>, window_params = [{transform_indices = @transform_0, window_bounds = array<i64: 168, 1024>}, {transform_indices = @transform_1, window_bounds = array<i64: 1024, 512>}, {transform_indices = @transform_2, window_bounds = array<i64: 168, 512>}]} {
    %c0_i32 = arith.constant 0 : i32
    %0 = arith.cmpi eq, %arg2, %c0_i32 : i32
    %1 = arith.extui %0 : i1 to i32
    %c0_i32_0 = arith.constant 0 : i32
    %2 = arith.cmpi ne, %1, %c0_i32_0 : i32
    scf.if %2 {
      %cst_10 = arith.constant 0.000000e+00 : f32
      %12 = vector.broadcast %cst_10 : f32 to vector<168x512xf32>
      %c0_11 = arith.constant 0 : index
      %c0_12 = arith.constant 0 : index
      %13 = vector.load %arg6[%c0_11, %c0_12] : memref<168x512xf32, #tpu.memory_space<vmem>>, vector<168x512xf32>
      tpu.vector_store %arg6[%c0_11, %c0_12], %12 {strides = array<i32>} : memref<168x512xf32, #tpu.memory_space<vmem>>, vector<168x512xf32>,
    } else {
    }
    %c0 = arith.constant 0 : index
    %c0_1 = arith.constant 0 : index
    %3 = vector.load %arg6[%c0, %c0_1] : memref<168x512xf32, #tpu.memory_space<vmem>>, vector<168x512xf32>
    %c0_2 = arith.constant 0 : index
    %c0_3 = arith.constant 0 : index
    %4 = vector.load %arg3[%c0_2, %c0_3] : memref<168x1024xbf16, #tpu.memory_space<vmem>>, vector<168x1024xbf16>
    %c0_4 = arith.constant 0 : index
    %c0_5 = arith.constant 0 : index
    %5 = vector.load %arg4[%c0_4, %c0_5] : memref<1024x512xbf16, #tpu.memory_space<vmem>>, vector<1024x512xbf16>
    %cst = arith.constant dense<0.000000e+00> : vector<168x512xf32>
    %6 = tpu.matmul %4, %5, %cst {dimension_numbers = #tpu.dot_dimension_numbers<[1], [0], [0], [1], [0, 0, 1, 1], [], []>} : vector<168x1024xbf16>, vector<1024x512xbf16>, vector<168x512xf32> -> vector<168x512xf32>
    %7 = arith.addf %3, %6 : vector<168x512xf32>
    %c0_6 = arith.constant 0 : index
    %c0_7 = arith.constant 0 : index
    %8 = vector.load %arg6[%c0_6, %c0_7] : memref<168x512xf32, #tpu.memory_space<vmem>>, vector<168x512xf32>
    tpu.vector_store %arg6[%c0_6, %c0_7], %7 {strides = array<i32>} : memref<168x512xf32, #tpu.memory_space<vmem>>, vector<168x512xf32>,
    %c0_i32_8 = arith.constant 0 : i32
    %9 = arith.cmpi eq, %arg2, %c0_i32_8 : i32
    %10 = arith.extui %9 : i1 to i32
    %c0_i32_9 = arith.constant 0 : i32
    %11 = arith.cmpi ne, %10, %c0_i32_9 : i32
    scf.if %11 {
      %c0_10 = arith.constant 0 : index
      %c0_11 = arith.constant 0 : index
      %12 = vector.load %arg6[%c0_10, %c0_11] : memref<168x512xf32, #tpu.memory_space<vmem>>, vector<168x512xf32>
      %cst_12 = arith.constant 0.000000e+00 : f32
      %13 = vector.broadcast %cst_12 : f32 to vector<168x512xf32>
      %14 = arith.maximumf %12, %13 : vector<168x512xf32>
      %15 = arith.truncf %14 : vector<168x512xf32> to vector<168x512xbf16>
      %c0_13 = arith.constant 0 : index
      %c0_14 = arith.constant 0 : index
      %16 = vector.load %arg5[%c0_13, %c0_14] : memref<168x512xbf16, #tpu.memory_space<vmem>>, vector<168x512xbf16>
      tpu.vector_store %arg5[%c0_13, %c0_14], %15 {strides = array<i32>} : memref<168x512xbf16, #tpu.memory_space<vmem>>, vector<168x512xbf16>,
    } else {
    }
    return
  }
  func.func @transform_0(%arg0: i32, %arg1: i32, %arg2: i32) -> (i32, i32) {
    %c0_i32 = arith.constant 0 : i32
    return %arg0, %arg2 : i32, i32
  }
  func.func @transform_1(%arg0: i32, %arg1: i32, %arg2: i32) -> (i32, i32) {
    %c0_i32 = arith.constant 0 : i32
    return %arg2, %arg1 : i32, i32
  }
  func.func @transform_2(%arg0: i32, %arg1: i32, %arg2: i32) -> (i32, i32) {
    %c0_i32 = arith.constant 0 : i32
    return %arg0, %arg1 : i32, i32
  }
}

module attributes {stable_mosaic.version = 11 : i64} {
  func.func @_matmul_act_kernel(%arg0: i32, %arg1: i32, %arg2: i32, %arg3: memref<296x512xbf16, #tpu.memory_space<vmem>>, %arg4: memref<512x256xbf16, #tpu.memory_space<vmem>>, %arg5: memref<296x256xbf16, #tpu.memory_space<vmem>>, %arg6: memref<296x256xf32, #tpu.memory_space<vmem>>) attributes {dimension_semantics = [#tpu.dimension_semantics<parallel>, #tpu.dimension_semantics<parallel>, #tpu.dimension_semantics<arbitrary>], iteration_bounds = array<i64: 2, 1, 1>, scalar_prefetch = 0 : i64, scratch_operands = 1 : i64, tpu.core_type = #tpu.core_type<tc>, window_params = [{transform_indices = @transform_0, window_bounds = array<i64: 296, 512>}, {transform_indices = @transform_1, window_bounds = array<i64: 512, 256>}, {transform_indices = @transform_2, window_bounds = array<i64: 296, 256>}]} {
    %c0_i32 = arith.constant 0 : i32
    %0 = arith.cmpi eq, %arg2, %c0_i32 : i32
    %1 = arith.extui %0 : i1 to i32
    %c0_i32_0 = arith.constant 0 : i32
    %2 = arith.cmpi ne, %1, %c0_i32_0 : i32
    scf.if %2 {
      %cst_10 = arith.constant 0.000000e+00 : f32
      %12 = vector.broadcast %cst_10 : f32 to vector<296x256xf32>
      %c0_11 = arith.constant 0 : index
      %c0_12 = arith.constant 0 : index
      %13 = vector.load %arg6[%c0_11, %c0_12] : memref<296x256xf32, #tpu.memory_space<vmem>>, vector<296x256xf32>
      tpu.vector_store %arg6[%c0_11, %c0_12], %12 {strides = array<i32>} : memref<296x256xf32, #tpu.memory_space<vmem>>, vector<296x256xf32>,
    } else {
    }
    %c0 = arith.constant 0 : index
    %c0_1 = arith.constant 0 : index
    %3 = vector.load %arg6[%c0, %c0_1] : memref<296x256xf32, #tpu.memory_space<vmem>>, vector<296x256xf32>
    %c0_2 = arith.constant 0 : index
    %c0_3 = arith.constant 0 : index
    %4 = vector.load %arg3[%c0_2, %c0_3] : memref<296x512xbf16, #tpu.memory_space<vmem>>, vector<296x512xbf16>
    %c0_4 = arith.constant 0 : index
    %c0_5 = arith.constant 0 : index
    %5 = vector.load %arg4[%c0_4, %c0_5] : memref<512x256xbf16, #tpu.memory_space<vmem>>, vector<512x256xbf16>
    %cst = arith.constant dense<0.000000e+00> : vector<296x256xf32>
    %6 = tpu.matmul %4, %5, %cst {dimension_numbers = #tpu.dot_dimension_numbers<[1], [0], [0], [1], [0, 0, 1, 1], [], []>} : vector<296x512xbf16>, vector<512x256xbf16>, vector<296x256xf32> -> vector<296x256xf32>
    %7 = arith.addf %3, %6 : vector<296x256xf32>
    %c0_6 = arith.constant 0 : index
    %c0_7 = arith.constant 0 : index
    %8 = vector.load %arg6[%c0_6, %c0_7] : memref<296x256xf32, #tpu.memory_space<vmem>>, vector<296x256xf32>
    tpu.vector_store %arg6[%c0_6, %c0_7], %7 {strides = array<i32>} : memref<296x256xf32, #tpu.memory_space<vmem>>, vector<296x256xf32>,
    %c0_i32_8 = arith.constant 0 : i32
    %9 = arith.cmpi eq, %arg2, %c0_i32_8 : i32
    %10 = arith.extui %9 : i1 to i32
    %c0_i32_9 = arith.constant 0 : i32
    %11 = arith.cmpi ne, %10, %c0_i32_9 : i32
    scf.if %11 {
      %c0_10 = arith.constant 0 : index
      %c0_11 = arith.constant 0 : index
      %12 = vector.load %arg6[%c0_10, %c0_11] : memref<296x256xf32, #tpu.memory_space<vmem>>, vector<296x256xf32>
      %cst_12 = arith.constant 0.000000e+00 : f32
      %13 = vector.broadcast %cst_12 : f32 to vector<296x256xf32>
      %14 = arith.maximumf %12, %13 : vector<296x256xf32>
      %15 = arith.truncf %14 : vector<296x256xf32> to vector<296x256xbf16>
      %c0_13 = arith.constant 0 : index
      %c0_14 = arith.constant 0 : index
      %16 = vector.load %arg5[%c0_13, %c0_14] : memref<296x256xbf16, #tpu.memory_space<vmem>>, vector<296x256xbf16>
      tpu.vector_store %arg5[%c0_13, %c0_14], %15 {strides = array<i32>} : memref<296x256xbf16, #tpu.memory_space<vmem>>, vector<296x256xbf16>,
    } else {
    }
    return
  }
  func.func @transform_0(%arg0: i32, %arg1: i32, %arg2: i32) -> (i32, i32) {
    %c0_i32 = arith.constant 0 : i32
    return %arg0, %arg2 : i32, i32
  }
  func.func @transform_1(%arg0: i32, %arg1: i32, %arg2: i32) -> (i32, i32) {
    %c0_i32 = arith.constant 0 : i32
    return %arg2, %arg1 : i32, i32
  }
  func.func @transform_2(%arg0: i32, %arg1: i32, %arg2: i32) -> (i32, i32) {
    %c0_i32 = arith.constant 0 : i32
    return %arg0, %arg1 : i32, i32
  }
}

module attributes {stable_mosaic.version = 11 : i64} {
  func.func @_matmul_act_kernel(%arg0: i32, %arg1: i32, %arg2: i32, %arg3: memref<440x256xbf16, #tpu.memory_space<vmem>>, %arg4: memref<256x128xbf16, #tpu.memory_space<vmem>>, %arg5: memref<440x128xf32, #tpu.memory_space<vmem>>, %arg6: memref<440x128xf32, #tpu.memory_space<vmem>>) attributes {dimension_semantics = [#tpu.dimension_semantics<parallel>, #tpu.dimension_semantics<parallel>, #tpu.dimension_semantics<arbitrary>], iteration_bounds = array<i64: 5, 1, 1>, scalar_prefetch = 0 : i64, scratch_operands = 1 : i64, tpu.core_type = #tpu.core_type<tc>, window_params = [{transform_indices = @transform_0, window_bounds = array<i64: 440, 256>}, {transform_indices = @transform_1, window_bounds = array<i64: 256, 128>}, {transform_indices = @transform_2, window_bounds = array<i64: 440, 128>}]} {
    %c0_i32 = arith.constant 0 : i32
    %0 = arith.cmpi eq, %arg2, %c0_i32 : i32
    %1 = arith.extui %0 : i1 to i32
    %c0_i32_0 = arith.constant 0 : i32
    %2 = arith.cmpi ne, %1, %c0_i32_0 : i32
    scf.if %2 {
      %cst_10 = arith.constant 0.000000e+00 : f32
      %12 = vector.broadcast %cst_10 : f32 to vector<440x128xf32>
      %c0_11 = arith.constant 0 : index
      %c0_12 = arith.constant 0 : index
      %13 = vector.load %arg6[%c0_11, %c0_12] : memref<440x128xf32, #tpu.memory_space<vmem>>, vector<440x128xf32>
      tpu.vector_store %arg6[%c0_11, %c0_12], %12 {strides = array<i32>} : memref<440x128xf32, #tpu.memory_space<vmem>>, vector<440x128xf32>,
    } else {
    }
    %c0 = arith.constant 0 : index
    %c0_1 = arith.constant 0 : index
    %3 = vector.load %arg6[%c0, %c0_1] : memref<440x128xf32, #tpu.memory_space<vmem>>, vector<440x128xf32>
    %c0_2 = arith.constant 0 : index
    %c0_3 = arith.constant 0 : index
    %4 = vector.load %arg3[%c0_2, %c0_3] : memref<440x256xbf16, #tpu.memory_space<vmem>>, vector<440x256xbf16>
    %c0_4 = arith.constant 0 : index
    %c0_5 = arith.constant 0 : index
    %5 = vector.load %arg4[%c0_4, %c0_5] : memref<256x128xbf16, #tpu.memory_space<vmem>>, vector<256x128xbf16>
    %cst = arith.constant dense<0.000000e+00> : vector<440x128xf32>
    %6 = tpu.matmul %4, %5, %cst {dimension_numbers = #tpu.dot_dimension_numbers<[1], [0], [0], [1], [0, 0, 1, 1], [], []>} : vector<440x256xbf16>, vector<256x128xbf16>, vector<440x128xf32> -> vector<440x128xf32>
    %7 = arith.addf %3, %6 : vector<440x128xf32>
    %c0_6 = arith.constant 0 : index
    %c0_7 = arith.constant 0 : index
    %8 = vector.load %arg6[%c0_6, %c0_7] : memref<440x128xf32, #tpu.memory_space<vmem>>, vector<440x128xf32>
    tpu.vector_store %arg6[%c0_6, %c0_7], %7 {strides = array<i32>} : memref<440x128xf32, #tpu.memory_space<vmem>>, vector<440x128xf32>,
    %c0_i32_8 = arith.constant 0 : i32
    %9 = arith.cmpi eq, %arg2, %c0_i32_8 : i32
    %10 = arith.extui %9 : i1 to i32
    %c0_i32_9 = arith.constant 0 : i32
    %11 = arith.cmpi ne, %10, %c0_i32_9 : i32
    scf.if %11 {
      %c0_10 = arith.constant 0 : index
      %c0_11 = arith.constant 0 : index
      %12 = vector.load %arg6[%c0_10, %c0_11] : memref<440x128xf32, #tpu.memory_space<vmem>>, vector<440x128xf32>
      %13 = math.tanh %12 : vector<440x128xf32>
      %c0_12 = arith.constant 0 : index
      %c0_13 = arith.constant 0 : index
      %14 = vector.load %arg5[%c0_12, %c0_13] : memref<440x128xf32, #tpu.memory_space<vmem>>, vector<440x128xf32>
      tpu.vector_store %arg5[%c0_12, %c0_13], %13 {strides = array<i32>} : memref<440x128xf32, #tpu.memory_space<vmem>>, vector<440x128xf32>,
    } else {
    }
    return
  }
  func.func @transform_0(%arg0: i32, %arg1: i32, %arg2: i32) -> (i32, i32) {
    %c0_i32 = arith.constant 0 : i32
    return %arg0, %arg2 : i32, i32
  }
  func.func @transform_1(%arg0: i32, %arg1: i32, %arg2: i32) -> (i32, i32) {
    %c0_i32 = arith.constant 0 : i32
    return %arg2, %arg1 : i32, i32
  }
  func.func @transform_2(%arg0: i32, %arg1: i32, %arg2: i32) -> (i32, i32) {
    %c0_i32 = arith.constant 0 : i32
    return %arg0, %arg1 : i32, i32
  }
}

</mosaic_0001>

<bundles_post_ra>
// kernel: generator_forward.5
= control target key start
LH: loop header
LB: loop body
LE: loop exit
PB: predicated region body
PF: predicated region fallthrough
CT: control target
= control target key end

     0   :  { %7 = vsyncpa [#allocation4], 0  ;;  %s1092_s0 = inlined_call_operand.vmem [shape: bf16[8,128], index: 0, kind: input, shape index: {}]   ;;  %s1093_s1 = inlined_call_operand.hbm [shape: bf16[128,8192], index: 1, kind: input, shape index: {}]   ;;  %s1094_s2 = inlined_call_operand.vmem [shape: bf16[8,8192], index: 2, kind: output, shape index: {}]  }
   0x1   :  { %9 = vsyncpa [#allocation4 + $0x1], 0  ;;  %s930_s9 = smov 0   ;;  %s932_s10 = smov 0  }
   0x2   :  { %s934_s11 = smov 0   ;;  %s936_s12 = smov 0  }
   0x3   :  { %s938_s13 = smov 0   ;;  %s940_s14 = smov 0  }
   0x4 LB: > { %s670_s15 = sadd.s32 4294967295, %s908_s14   ;;  %s30_s16 = sadd.s32 1, %s904_s13  ;;  %s908_s14 = sphi %s940_s14, %s15_s14   ;;  %s904_s13 = sphi %s938_s13, %s1103_s13   ;;  %s900_s12 = sphi %s936_s12, %s1102_s12   ;;  %s896_s11 = sphi %s934_s11, %s1101_s11   ;;  %s892_s10 = sphi %s932_s10, %s1100_s10   ;;  %s888_s9 = sphi %s930_s9, %s1099_s9  }
   0x5   : > { %p32_p0 = scmp.ge.s32.totalorder %s30_s16, 16  ;;  %s71_s17 = sadd.s32 1, %s896_s11 }
   0x6   : > { %p78_p1 = scmp.ne.s32.totalorder %s896_s11, %s892_s10  ;;  %p79_p2 = scmp.eq.s32.totalorder %s908_s14, 0 }
   0x7   : > { %s1105_s16 = smov (%p32_p0, %s30_s16), 0  ;;  %p84_p4 = scmp.ne.s32.totalorder %s892_s10, %s888_s9 }
   0x8   : > { %p966_p3 = por %p79_p2, %p78_p1  ;;  %s67_s19 = ssub.s32 %s904_s13, %s1105_s16 }
   0x9   : > { %p85_p5 = scmp.eq.s32.totalorder %s670_s15, 0  ;;  %p69_p6 = scmp.eq.s32.totalorder %s67_s19, 0 }
   0xa   : > { %p727_p8 = scmp.lt.s32.totalorder %s908_s14, 16  ;;  %s146_s22 = sand.u32 1, %s896_s11  }
   0xb   : > { %p973_p7 = por %p85_p5, %p84_p4  ;;  %s718_s23 = sshll.u32 %s904_s13, 8 }
   0xc   : > { %s979_s21 = scalar_select %p69_p6, %s896_s11, %s71_s17  }
   0xd   : > { %s675_s24 = sshll.u32 %s146_s22, 8  ;;  %s986_s27 = scalar_lea.hbm %s1093_s1, %s718_s23 }
   0xe   : > { %s150_s28 = scalar_lea.vmem [#allocation3], %s675_s24  ;;  %p990_p9 = pnand %p727_p8, %p966_p3 }
   0xf   : > { %s160_s29 = sshll.u32 %s150_s28, 4  ;;  %s997_s3 = scalar_lea.sflag [#allocation4], %s146_s22  ;;  %s994_s29 = int_to_ptr.vmem [resolvable:$true] %s160_s29 }
  0x10   : > { %s828_s4 = scalar_lea.hbm %s986_s27, 4096  ;;  %p830_p12 = pneg %p990_p9 }
  0x11   : > { %p829_p11 = scmp.ne.s32.totalorder %s986_s27, %s828_s4  ;;  %s833_s7 = scalar_lea.hbm %s1093_s1, 65536 }
  0x12   : > { %p834_p1 = scmp.lt.u32.totalorder %s986_s27, %s1093_s1  ;;  %p835_p2 = scmp.lt.u32.totalorder %s833_s7, %s828_s4 }
  0x13   : > { %p831_p13 = pnand %p830_p12, %p829_p11  ;;  %p837_p4 = scmp.lt.u32.totalorder %s828_s4, %s986_s27 }
  0x14   : > { %p836_p3 = por %p835_p2, %p834_p1 }
  0x15   : > { %p832_p0 = pneg %p831_p13 }
  0x16   : > { %p838_p5 = por %p837_p4, %p836_p3 }
  0x18   : > { %p839_p6 = pnand %p838_p5, %p832_p0 }
  0x1a   : > { %842 = shalt.err (!%p839_p6)
}
  0x1b   : > { %s843_s15 = scalar_lea.vmem %s994_s29, 4096  ;;  %s910_s17 = smov [#allocation3]  }
  0x1c   : > { %p844_p8 = scmp.ne.s32.totalorder %s994_s29, %s843_s15  ;;  %s848_s18 = sshll.u32 %s910_s17, 4  ;;  %s849_s18 = int_to_ptr.vmem [resolvable:$false] %s848_s18 }
  0x1d   : > { %s850_s19 = scalar_lea.vmem %s849_s18, 8192  ;;  %p851_p10 = scmp.lt.s32.totalorder %s994_s29, %s849_s18 }
  0x1e   : > { %p846_p11 = pnand %p844_p8, %p830_p12  ;;  %p852_p1 = scmp.lt.s32.totalorder %s850_s19, %s843_s15 }
  0x20   : > { %p847_p13 = pneg %p846_p11  ;;  %p853_p2 = por %p852_p1, %p851_p10 }
  0x22   : > { %p854_p3 = pnand %p853_p2, %p847_p13 }
  0x24   : > { %857 = shalt.err (!%p854_p3)
}
  0x25   : > { %s911_s22 = smov 4096   ;;  %s912_s23 = smov 256  }
  0x26   : > { %s913_s24 = smov 16   ;;  %p168_p12 = scmp.lt.s32.totalorder %s908_s14, 17 }
  0x27   : > { %726 = dma.hbm_to_vmem [thread:$0]  (!%p990_p9), %s986_s27, 4096, %s994_s29, %s997_s3, %s911_s22, %s912_s23, %s913_s24  }
  0x28   : > { %p1098_p0 = scmp.ge.s32.totalorder %s908_s14, 1 }
  0x2a   : > { %p169_p4 = pnand %p1098_p0, %p168_p12 }
  0x2b   : > { %s174_s25 = sand.u32 (!%p169_p4), 1, %s892_s10  }
  0x2c   : > { %172 = sbr.rel (%p169_p4) target bundleno = 304 (0x130), region = 28  ;;  %s679_s26 = sshll.u32 (!%p169_p4), %s174_s25, 8 }
  0x2d   : > { %s175_s28 = scalar_lea.sflag (!%p169_p4), [#allocation4], %s174_s25  ;;  %s1029_s4 = scalar_lea.vmem (!%p169_p4), [#allocation3], %s679_s26 }
  0x33   : > { %883 = dma.done.wait (%p973_p7), %s175_s28, 4096  }
  0x34   : > { %885 = vsyncadd (%p973_p7), %s175_s28, 4294963200  ;;  %v914_v0 = vmov 0   ;;  %v780_v1 = vld [vmem:[%s1029_s4 + $0x4] ss:$16 sps:$4 sm:$0xff]   ;;  %v782_v2 = vld [vmem:[%s1029_s4 + $0xc] ss:$16 sps:$4 sm:$0xff]  }
  0x35   : > { %467 = vmatprep.mubr.bf16.mxu0 %v914_v0  ;;  %508 = vmatprep.mubr.bf16.mxu1 %v914_v0  ;;  %v784_v3 = vld [vmem:[%s1029_s4] ss:$16 sps:$4 sm:$0xff]   ;;  %v785_v4 = vld [vmem:[%s1029_s4 + $0x8] ss:$16 sps:$4 sm:$0xff]   ;;  %v786_v5 = vld [vmem:[%s1029_s4 + $0x24] ss:$16 sps:$4 sm:$0xff]  }
  0x36   : > { %435 = vmatprep.subr.bf16.mxu0 %v780_v1  ;;  %476 = vmatprep.subr.bf16.mxu1 %v782_v2  ;;  %v788_v6 = vld [vmem:[%s1029_s4 + $0x2c] ss:$16 sps:$4 sm:$0xff]   ;;  %v790_v7 = vld [vmem:[%s1029_s4 + $0x20] ss:$16 sps:$4 sm:$0xff]   ;;  %v791_v8 = vld [vmem:[%s1029_s4 + $0x28] ss:$16 sps:$4 sm:$0xff]  }
  0x37   : > { %436 = vmatpush1.bf16.msra.mxu0 %v784_v3  ;;  %477 = vmatpush1.bf16.msra.mxu1 %v785_v4  ;;  %v792_v9 = vld [vmem:[%s1029_s4 + $0x44] ss:$16 sps:$4 sm:$0xff]   ;;  %v794_v10 = vld [vmem:[%s1029_s4 + $0x4c] ss:$16 sps:$4 sm:$0xff]   ;;  %v796_v11 = vld [vmem:[%s1029_s4 + $0x40] ss:$16 sps:$4 sm:$0xff]  }
  0x38   : > { %437 = vmatprep.subr.bf16.mxu0 %v786_v5  ;;  %478 = vmatprep.subr.bf16.mxu1 %v788_v6  ;;  %v797_v12 = vld [vmem:[%s1029_s4 + $0x48] ss:$16 sps:$4 sm:$0xff]   ;;  %v798_v13 = vld [vmem:[%s1029_s4 + $0x64] ss:$16 sps:$4 sm:$0xff]   ;;  %v800_v14 = vld [vmem:[%s1029_s4 + $0x6c] ss:$16 sps:$4 sm:$0xff]  }
  0x39   : > { %v802_v15 = vld [vmem:[%s1029_s4 + $0x60] ss:$16 sps:$4 sm:$0xff]   ;;  %v803_v16 = vld [vmem:[%s1029_s4 + $0x68] ss:$16 sps:$4 sm:$0xff]   ;;  %v804_v17 = vld [vmem:[%s1029_s4 + $0x84] ss:$16 sps:$4 sm:$0xff]  }
  0x3a   : > { %v806_v18 = vld [vmem:[%s1029_s4 + $0x8c] ss:$16 sps:$4 sm:$0xff]   ;;  %v808_v19 = vld [vmem:[%s1029_s4 + $0x80] ss:$16 sps:$4 sm:$0xff]   ;;  %v809_v20 = vld [vmem:[%s1029_s4 + $0x88] ss:$16 sps:$4 sm:$0xff]  }
  0x3b   : > { %438 = vmatpush1.bf16.msra.mxu0 %v790_v7  ;;  %479 = vmatpush1.bf16.msra.mxu1 %v791_v8  ;;  %v810_v21 = vld [vmem:[%s1029_s4 + $0xa4] ss:$16 sps:$4 sm:$0xff]   ;;  %v812_v22 = vld [vmem:[%s1029_s4 + $0xac] ss:$16 sps:$4 sm:$0xff]   ;;  %v814_v23 = vld [vmem:[%s1029_s4 + $0xa0] ss:$16 sps:$4 sm:$0xff]  }
  0x3c   : > { %439 = vmatprep.subr.bf16.mxu0 %v792_v9  ;;  %480 = vmatprep.subr.bf16.mxu1 %v794_v10  ;;  %v815_v24 = vld [vmem:[%s1029_s4 + $0xa8] ss:$16 sps:$4 sm:$0xff]   ;;  %v816_v25 = vld [vmem:[%s1029_s4 + $0xc4] ss:$16 sps:$4 sm:$0xff]   ;;  %v818_v26 = vld [vmem:[%s1029_s4 + $0xcc] ss:$16 sps:$4 sm:$0xff]  }
  0x3d   : > { %v820_v27 = vld [vmem:[%s1029_s4 + $0xc0] ss:$16 sps:$4 sm:$0xff]   ;;  %v821_v28 = vld [vmem:[%s1029_s4 + $0xc8] ss:$16 sps:$4 sm:$0xff]   ;;  %v822_v29 = vld [vmem:[%s1029_s4 + $0xe4] ss:$16 sps:$4 sm:$0xff]  }
  0x3e   : > { %v824_v30 = vld [vmem:[%s1029_s4 + $0xec] ss:$16 sps:$4 sm:$0xff]   ;;  %v826_v31 = vld [vmem:[%s1029_s4 + $0xe0] ss:$16 sps:$4 sm:$0xff]   ;;  %v827_v32 = vld [vmem:[%s1029_s4 + $0xe8] ss:$16 sps:$4 sm:$0xff]  }
  0x3f   : > { %440 = vmatpush1.bf16.msra.mxu0 %v796_v11  ;;  %481 = vmatpush1.bf16.msra.mxu1 %v797_v12  ;;  %v242_v33 = vld [vmem:[%s1092_s0] sm:$0xf]  ;;  %s680_s29 = sshll.u32 %s900_s12, 2 }
  0x40   : > { %441 = vmatprep.subr.bf16.mxu0 %v798_v13  ;;  %482 = vmatprep.subr.bf16.mxu1 %v800_v14  ;;  %p222_p7 = scmp.lt.s32.totalorder %s680_s29, 63 }
  0x42   : > { %s1107_s29 = smov (!%p222_p7, %s680_s29), 63 }
  0x43   : > { %442 = vmatpush1.bf16.msra.mxu0 %v802_v15  ;;  %483 = vmatpush1.bf16.msra.mxu1 %v803_v16  ;;  %s681_s30 = sshll.u32 %s1107_s29, 2 }
  0x44   : > { %443 = vmatprep.subr.bf16.mxu0 %v804_v17  ;;  %484 = vmatprep.subr.bf16.mxu1 %v806_v18  ;;  %s227_s6 = scalar_lea.vmem %s1094_s2, %s681_s30 }
  0x47   : > { %444 = vmatpush1.bf16.msra.mxu0 %v808_v19  ;;  %485 = vmatpush1.bf16.msra.mxu1 %v809_v20 }
  0x48   : > { %445 = vmatprep.subr.bf16.mxu0 %v810_v21  ;;  %486 = vmatprep.subr.bf16.mxu1 %v812_v22 }
  0x4b   : > { %446 = vmatpush1.bf16.msra.mxu0 %v814_v23  ;;  %487 = vmatpush1.bf16.msra.mxu1 %v815_v24 }
  0x4c   : > { %447 = vmatprep.subr.bf16.mxu0 %v816_v25  ;;  %488 = vmatprep.subr.bf16.mxu1 %v818_v26 }
  0x4f   : > { %448 = vmatpush1.bf16.msra.mxu0 %v820_v27  ;;  %489 = vmatpush1.bf16.msra.mxu1 %v821_v28 }
  0x50   : > { %449 = vmatprep.subr.bf16.mxu0 %v822_v29  ;;  %490 = vmatprep.subr.bf16.mxu1 %v824_v30 }
  0x53   : > { %450 = vmatpush1.bf16.msra.mxu0 %v826_v31  ;;  %491 = vmatpush1.bf16.msra.mxu1 %v827_v32 }
  0x56   : > { %468 = vmatmul.mubr.bf16.vlgmr.msra.gmra.mrb[0].mxu0 %v242_v33  ;;  %509 = vmatmul.mubr.bf16.vlgmr.msra.gmra.mrb[0].mxu1 %v242_v33 }
 0x129   : > { %v469_v34 = vpop.f32.mrb[0].mxu0  ;;  %v510_v35 = vpop.f32.mrb[0].mxu1 }
 0x12a   : > { %v532_v36 = vmax.f32 %v469_v34, 0.0  ;;  %v534_v37 = vmax.f32 %v510_v35, 0.0  ;;  %v471_v38 = vpop.f32.mrb[1].mxu0  ;;  %v512_v39 = vpop.f32.mrb[1].mxu1 }
 0x12b   : > { %v533_v40 = vmax.f32 %v471_v38, 0.0  ;;  %v535_v41 = vmax.f32 %v512_v39, 0.0  ;;  %v473_v42 = vpop.f32.mrb[2].mxu0  ;;  %v514_v43 = vpop.f32.mrb[2].mxu1 }
 0x12c   : > { %v474_v44 = vpop.f32.mrb[3].mxu0  ;;  %v515_v45 = vpop.f32.mrb[3].mxu1 }
 0x12d   : > { %v719_v46 = vpack.c.bf16 %v533_v40, %v532_v36  ;;  %v720_v47 = vpack.c.bf16 %v535_v41, %v534_v37 }
 0x12f   : > { %552 = vst [vmem:[%s227_s6] sm:$0xff] %v719_v46  ;;  %553 = vst [vmem:[%s227_s6 + $0x8] sm:$0xff] %v720_v47 }
 0x130 PF: > { %s15_s14 = sadd.s32 1, %s908_s14   ;;  %s1099_s9 = smov %s892_s10 }
 0x131   : > { %p12_p9 = scmp.ge.s32.totalorder %s15_s14, 18   ;;  %s1100_s10 = smov %s896_s11 }
 0x132   : > { %s1101_s11 = smov %s979_s21  ;;  %s1102_s12 = smov %s904_s13 }
 0x133   : > { %s1103_s13 = smov %s1105_s16  ;;  %14 = sbr.rel (!%p12_p9) target bundleno = 4 (0x4), region = 79 }
 0x13a   :  { %584 = vsyncpa [#allocation4], 1 }
 0x13b   :  { %586 = vsyncpa [#allocation4 + $0x1], 1 }

// kernel: generator_forward.6
= control target key start
LH: loop header
LB: loop body
LE: loop exit
PB: predicated region body
PF: predicated region fallthrough
CT: control target
= control target key end

     0   :  { %s5599_s0 = inlined_call_operand.vmem [shape: bf16[56,2048], index: 0, kind: input, shape index: {}]   ;;  %s5600_s1 = inlined_call_operand.vmem [shape: bf16[2048,1024], index: 1, kind: input, shape index: {}]   ;;  %s5601_s2 = inlined_call_operand.vmem [shape: bf16[56,1024], index: 2, kind: output, shape index: {}]  }
   0x1   :  { %5602 = sst [smem:[#allocation6_spill]] %s5599_s0 }
   0x2   :  { %s4509_s9 = smov 0   ;;  %s4511_s10 = smov 0  }
   0x3   :  { %s4513_s11 = smov 0   ;;  %s4515_s12 = smov 0  }
   0x4   :  { %s4517_s13 = smov 0   ;;  %s4519_s14 = smov 0  }
   0x5   :  { %s4521_s15 = smov 0   ;;  %s4523_s16 = smov 0  }
   0x6   :  { %s4525_s17 = smov 0   ;;  %s4527_s18 = smov 0  }
   0x7   :  { %s4529_s19 = smov 0  }
   0x8 LB: > { %s3511_s20 = sadd.s32 4294967295, %s4491_s19   ;;  %s24_s21 = sadd.s32 1, %s4483_s17  ;;  %s4491_s19 = sphi %s4529_s19, %s12_s19   ;;  %s4487_s18 = sphi %s4527_s18, %s5616_s18   ;;  %s4483_s17 = sphi %s4525_s17, %s5615_s17   ;;  %s4479_s16 = sphi %s4523_s16, %s5614_s16   ;;  %s4475_s15 = sphi %s4521_s15, %s5613_s15   ;;  %s4471_s14 = sphi %s4519_s14, %s5612_s14   ;;  %s4467_s13 = sphi %s4517_s13, %s5611_s13   ;;  %s4463_s12 = sphi %s4515_s12, %s5610_s12   ;;  %s4459_s11 = sphi %s4513_s11, %s5609_s11   ;;  %s4455_s10 = sphi %s4511_s10, %s5608_s10   ;;  %s4451_s9 = sphi %s4509_s9, %s5607_s9  }
   0x9   : > { %p25_p0 = scmp.ge.s32.totalorder %s24_s21, 2  ;;  %s27_s22 = sadd.s32 1, %s4487_s18 }
   0xa   : > { %s40_s23 = sadd.s32 1, %s4471_s14  ;;  %p47_p1 = scmp.ne.s32.totalorder %s4471_s14, %s4467_s13 }
   0xb   : > { %s5618_s21 = smov (%p25_p0, %s24_s21), 0  ;;  %s5620_s22 = smov (!%p25_p0, %s27_s22), %s4487_s18 }
   0xc   : > { %s36_s24 = ssub.s32 %s4483_s17, %s5618_s21  ;;  %p48_p2 = scmp.eq.s32.totalorder %s4491_s19, 0 }
   0xd   : > { %p29_p3 = scmp.ge.s32.totalorder %s5620_s22, 2  ;;  %p38_p4 = scmp.eq.s32.totalorder %s36_s24, 0 }
   0xe   : > { %p4576_p5 = por %p48_p2, %p47_p1  ;;  %s68_s26 = sadd.s32 1, %s4463_s12 }
   0xf   : > { %s5622_s22 = smov (%p29_p3, %s5620_s22), 0  ;;  %p75_p6 = scmp.ne.s32.totalorder %s4463_s12, %s4459_s11 }
  0x10   : > { %s4584_s27 = scalar_select %p38_p4, %s4471_s14, %s40_s23  }
  0x11   : > { %s64_s28 = ssub.s32 %s4487_s18, %s5622_s22  ;;  %p4590_p9 = por %p75_p6, %p48_p2 }
  0x12   : > { %s65_s29 = sor.u32 %s64_s28, %s36_s24  ;;  %p94_p7 = scmp.eq.s32.totalorder %s64_s28, 0 }
  0x13   : > { %p66_p8 = scmp.eq.s32.totalorder %s65_s29, 0  ;;  %s96_s3 = sadd.s32 1, %s4455_s10 }
  0x14   : > { %p106_p10 = scmp.ne.s32.totalorder %s4455_s10, %s4451_s9  ;;  %p107_p11 = scmp.eq.s32.totalorder %s3511_s20, 3 }
  0x15   : > { %s4598_s4 = scalar_select %p66_p8, %s4463_s12, %s68_s26  }
  0x16   : > { %s4601_s5 = scalar_select %p94_p7, %s4455_s10, %s96_s3  }
  0x17   : > { %p4603_p12 = por %p107_p11, %p106_p10  ;;  %p3514_p13 = scmp.ge.s32.totalorder %s4491_s19, 4 }
  0x19   : > { %129 = sbr.rel (%p3514_p13) target bundleno = 192 (0xc0), region = 16 }
  0x20   : > { %132 = sbr.rel (!%p4576_p5) target bundleno = 57 (0x39), region = 20  ;;  %s134_s7 = sand.u32 (%p4576_p5), 1, %s4471_s14  }
  0x21   : > { %s3832_s8 = sshll.u32 (%p4576_p5), %s4483_s17, 5  ;;  %s3921_s23 = smul.u32 (%p4576_p5), 224, %s134_s7 }
  0x22   : > { %s5606_s0 = sld [smem:[#allocation6_spill]] (%p4576_p5) }
  0x23   : > { %s4623_s20 = scalar_lea.vmem (%p4576_p5), [#allocation3], %s3921_s23 }
  0x28   : > { %s4615_s28 = scalar_lea.vmem %s5606_s0, %s3832_s8 }
  0x29   : > { %v155_v0 = vld [vmem:[%s4615_s28] sm:$0xff]  ;;  %v157_v1 = vld [vmem:[%s4615_s28 + $0x8] sm:$0xff]  ;;  %v159_v2 = vld [vmem:[%s4615_s28 + $0x10] sm:$0xff] }
  0x2a   : > { %v161_v3 = vld [vmem:[%s4615_s28 + $0x18] sm:$0xff]  ;;  %v163_v4 = vld [vmem:[%s4615_s28 + $0x40] sm:$0xff]  ;;  %v165_v5 = vld [vmem:[%s4615_s28 + $0x48] sm:$0xff]  ;;  %156 = vst [vmem:[%s4623_s20] sm:$0xff] %v155_v0 }
  0x2b   : > { %158 = vst [vmem:[%s4623_s20 + $0x8] sm:$0xff] %v157_v1  ;;  %160 = vst [vmem:[%s4623_s20 + $0x10] sm:$0xff] %v159_v2  ;;  %v167_v6 = vld [vmem:[%s4615_s28 + $0x50] sm:$0xff]  ;;  %v169_v7 = vld [vmem:[%s4615_s28 + $0x58] sm:$0xff] }
  0x2c   : > { %162 = vst [vmem:[%s4623_s20 + $0x18] sm:$0xff] %v161_v3  ;;  %164 = vst [vmem:[%s4623_s20 + $0x20] sm:$0xff] %v163_v4  ;;  %v171_v8 = vld [vmem:[%s4615_s28 + $0x80] sm:$0xff]  ;;  %v173_v9 = vld [vmem:[%s4615_s28 + $0x88] sm:$0xff] }
  0x2d   : > { %166 = vst [vmem:[%s4623_s20 + $0x28] sm:$0xff] %v165_v5  ;;  %168 = vst [vmem:[%s4623_s20 + $0x30] sm:$0xff] %v167_v6  ;;  %v175_v10 = vld [vmem:[%s4615_s28 + $0x90] sm:$0xff]  ;;  %v177_v11 = vld [vmem:[%s4615_s28 + $0x98] sm:$0xff] }
  0x2e   : > { %170 = vst [vmem:[%s4623_s20 + $0x38] sm:$0xff] %v169_v7  ;;  %172 = vst [vmem:[%s4623_s20 + $0x40] sm:$0xff] %v171_v8  ;;  %v179_v12 = vld [vmem:[%s4615_s28 + $0xc0] sm:$0xff]  ;;  %v181_v13 = vld [vmem:[%s4615_s28 + $0xc8] sm:$0xff] }
  0x2f   : > { %174 = vst [vmem:[%s4623_s20 + $0x48] sm:$0xff] %v173_v9  ;;  %176 = vst [vmem:[%s4623_s20 + $0x50] sm:$0xff] %v175_v10  ;;  %v183_v14 = vld [vmem:[%s4615_s28 + $0xd0] sm:$0xff]  ;;  %v185_v15 = vld [vmem:[%s4615_s28 + $0xd8] sm:$0xff] }
  0x30   : > { %178 = vst [vmem:[%s4623_s20 + $0x58] sm:$0xff] %v177_v11  ;;  %180 = vst [vmem:[%s4623_s20 + $0x60] sm:$0xff] %v179_v12  ;;  %v187_v16 = vld [vmem:[%s4615_s28 + $0x100] sm:$0xff]  ;;  %v189_v17 = vld [vmem:[%s4615_s28 + $0x108] sm:$0xff] }
  0x31   : > { %182 = vst [vmem:[%s4623_s20 + $0x68] sm:$0xff] %v181_v13  ;;  %184 = vst [vmem:[%s4623_s20 + $0x70] sm:$0xff] %v183_v14  ;;  %v191_v18 = vld [vmem:[%s4615_s28 + $0x110] sm:$0xff]  ;;  %v193_v19 = vld [vmem:[%s4615_s28 + $0x118] sm:$0xff] }
  0x32   : > { %186 = vst [vmem:[%s4623_s20 + $0x78] sm:$0xff] %v185_v15  ;;  %188 = vst [vmem:[%s4623_s20 + $0x80] sm:$0xff] %v187_v16  ;;  %v195_v20 = vld [vmem:[%s4615_s28 + $0x140] sm:$0xff]  ;;  %v197_v21 = vld [vmem:[%s4615_s28 + $0x148] sm:$0xff] }
  0x33   : > { %190 = vst [vmem:[%s4623_s20 + $0x88] sm:$0xff] %v189_v17  ;;  %192 = vst [vmem:[%s4623_s20 + $0x90] sm:$0xff] %v191_v18  ;;  %v199_v22 = vld [vmem:[%s4615_s28 + $0x150] sm:$0xff]  ;;  %v201_v23 = vld [vmem:[%s4615_s28 + $0x158] sm:$0xff] }
  0x34   : > { %194 = vst [vmem:[%s4623_s20 + $0x98] sm:$0xff] %v193_v19  ;;  %196 = vst [vmem:[%s4623_s20 + $0xa0] sm:$0xff] %v195_v20  ;;  %v203_v24 = vld [vmem:[%s4615_s28 + $0x180] sm:$0xff]  ;;  %v205_v25 = vld [vmem:[%s4615_s28 + $0x188] sm:$0xff] }
  0x35   : > { %198 = vst [vmem:[%s4623_s20 + $0xa8] sm:$0xff] %v197_v21  ;;  %200 = vst [vmem:[%s4623_s20 + $0xb0] sm:$0xff] %v199_v22  ;;  %v207_v26 = vld [vmem:[%s4615_s28 + $0x190] sm:$0xff]  ;;  %v209_v27 = vld [vmem:[%s4615_s28 + $0x198] sm:$0xff] }
  0x36   : > { %202 = vst [vmem:[%s4623_s20 + $0xb8] sm:$0xff] %v201_v23  ;;  %204 = vst [vmem:[%s4623_s20 + $0xc0] sm:$0xff] %v203_v24 }
  0x37   : > { %206 = vst [vmem:[%s4623_s20 + $0xc8] sm:$0xff] %v205_v25  ;;  %208 = vst [vmem:[%s4623_s20 + $0xd0] sm:$0xff] %v207_v26 }
  0x38   : > { %210 = vst [vmem:[%s4623_s20 + $0xd8] sm:$0xff] %v209_v27 }
  0x39 PF: > { %216 = sbr.rel (!%p4590_p9) target bundleno = 192 (0xc0), region = 43  ;;  %s218_s25 = sand.u32 (%p4590_p9), 1, %s4463_s12  }
  0x3a   : > { %s3519_s29 = sshll.u32 (%p4590_p9), %s4487_s18, 2  ;;  %s3517_s3 = sshll.u32 (%p4590_p9), %s218_s25, 11 }
  0x3b   : > { %s3833_s7 = sshll.u32 (%p4590_p9), %s4483_s17, 10  ;;  %s4688_s30 = scalar_lea.vmem (%p4590_p9), [#allocation4], %s3517_s3 }
  0x3c   : > { %s224_s8 = sadd.s32 (%p4590_p9), %s3833_s7, %s3519_s29 }
  0x3d   : > { %s3521_s23 = sshll.u32 (%p4590_p9), %s224_s8, 2 }
  0x3e   : > { %s4683_s0 = scalar_lea.vmem (%p4590_p9), %s5600_s1, %s3521_s23 }
  0x3f   : > { %v239_v28 = vld [vmem:[%s4683_s0] sm:$0xff] (%p4590_p9)  ;;  %v241_v29 = vld [vmem:[%s4683_s0 + $0x8] sm:$0xff] (%p4590_p9) }
  0x40   : > { %v243_v30 = vld [vmem:[%s4683_s0 + $0x20] sm:$0xff]  ;;  %240 = vst [vmem:[%s4688_s30] sm:$0xff] %v239_v28  ;;  %242 = vst [vmem:[%s4688_s30 + $0x8] sm:$0xff] %v241_v29  ;;  %v245_v31 = vld [vmem:[%s4683_s0 + $0x28] sm:$0xff] }
  0x41   : > { %244 = vst [vmem:[%s4688_s30 + $0x10] sm:$0xff] %v243_v30  ;;  %v247_v32 = vld [vmem:[%s4683_s0 + $0x40] sm:$0xff]  ;;  %v249_v33 = vld [vmem:[%s4683_s0 + $0x48] sm:$0xff]  ;;  %246 = vst [vmem:[%s4688_s30 + $0x18] sm:$0xff] %v245_v31 }
  0x42   : > { %248 = vst [vmem:[%s4688_s30 + $0x20] sm:$0xff] %v247_v32  ;;  %250 = vst [vmem:[%s4688_s30 + $0x28] sm:$0xff] %v249_v33  ;;  %v251_v34 = vld [vmem:[%s4683_s0 + $0x60] sm:$0xff]  ;;  %v253_v35 = vld [vmem:[%s4683_s0 + $0x68] sm:$0xff] }
  0x43   : > { %v255_v36 = vld [vmem:[%s4683_s0 + $0x80] sm:$0xff]  ;;  %252 = vst [vmem:[%s4688_s30 + $0x30] sm:$0xff] %v251_v34  ;;  %254 = vst [vmem:[%s4688_s30 + $0x38] sm:$0xff] %v253_v35  ;;  %v257_v37 = vld [vmem:[%s4683_s0 + $0x88] sm:$0xff] }
  0x44   : > { %256 = vst [vmem:[%s4688_s30 + $0x40] sm:$0xff] %v255_v36  ;;  %v259_v38 = vld [vmem:[%s4683_s0 + $0xa0] sm:$0xff]  ;;  %v261_v39 = vld [vmem:[%s4683_s0 + $0xa8] sm:$0xff]  ;;  %258 = vst [vmem:[%s4688_s30 + $0x48] sm:$0xff] %v257_v37 }
  0x45   : > { %260 = vst [vmem:[%s4688_s30 + $0x50] sm:$0xff] %v259_v38  ;;  %262 = vst [vmem:[%s4688_s30 + $0x58] sm:$0xff] %v261_v39  ;;  %v263_v40 = vld [vmem:[%s4683_s0 + $0xc0] sm:$0xff]  ;;  %v265_v41 = vld [vmem:[%s4683_s0 + $0xc8] sm:$0xff] }
  0x46   : > { %v267_v42 = vld [vmem:[%s4683_s0 + $0xe0] sm:$0xff]  ;;  %264 = vst [vmem:[%s4688_s30 + $0x60] sm:$0xff] %v263_v40  ;;  %266 = vst [vmem:[%s4688_s30 + $0x68] sm:$0xff] %v265_v41  ;;  %v269_v43 = vld [vmem:[%s4683_s0 + $0xe8] sm:$0xff] }
  0x47   : > { %268 = vst [vmem:[%s4688_s30 + $0x70] sm:$0xff] %v267_v42  ;;  %v271_v44 = vld [vmem:[%s4683_s0 + $0x100] sm:$0xff]  ;;  %v273_v45 = vld [vmem:[%s4683_s0 + $0x108] sm:$0xff]  ;;  %270 = vst [vmem:[%s4688_s30 + $0x78] sm:$0xff] %v269_v43 }
  0x48   : > { %272 = vst [vmem:[%s4688_s30 + $0x80] sm:$0xff] %v271_v44  ;;  %274 = vst [vmem:[%s4688_s30 + $0x88] sm:$0xff] %v273_v45  ;;  %v275_v46 = vld [vmem:[%s4683_s0 + $0x120] sm:$0xff]  ;;  %v277_v47 = vld [vmem:[%s4683_s0 + $0x128] sm:$0xff] }
  0x49   : > { %v279_v48 = vld [vmem:[%s4683_s0 + $0x140] sm:$0xff]  ;;  %276 = vst [vmem:[%s4688_s30 + $0x90] sm:$0xff] %v275_v46  ;;  %278 = vst [vmem:[%s4688_s30 + $0x98] sm:$0xff] %v277_v47  ;;  %v281_v49 = vld [vmem:[%s4683_s0 + $0x148] sm:$0xff] }
  0x4a   : > { %280 = vst [vmem:[%s4688_s30 + $0xa0] sm:$0xff] %v279_v48  ;;  %v283_v50 = vld [vmem:[%s4683_s0 + $0x160] sm:$0xff]  ;;  %v285_v51 = vld [vmem:[%s4683_s0 + $0x168] sm:$0xff]  ;;  %282 = vst [vmem:[%s4688_s30 + $0xa8] sm:$0xff] %v281_v49 }
  0x4b   : > { %284 = vst [vmem:[%s4688_s30 + $0xb0] sm:$0xff] %v283_v50  ;;  %286 = vst [vmem:[%s4688_s30 + $0xb8] sm:$0xff] %v285_v51  ;;  %v287_v52 = vld [vmem:[%s4683_s0 + $0x180] sm:$0xff]  ;;  %v289_v53 = vld [vmem:[%s4683_s0 + $0x188] sm:$0xff] }
  0x4c   : > { %v291_v54 = vld [vmem:[%s4683_s0 + $0x1a0] sm:$0xff]  ;;  %288 = vst [vmem:[%s4688_s30 + $0xc0] sm:$0xff] %v287_v52  ;;  %290 = vst [vmem:[%s4688_s30 + $0xc8] sm:$0xff] %v289_v53  ;;  %v293_v55 = vld [vmem:[%s4683_s0 + $0x1a8] sm:$0xff] }
  0x4d   : > { %292 = vst [vmem:[%s4688_s30 + $0xd0] sm:$0xff] %v291_v54  ;;  %v295_v56 = vld [vmem:[%s4683_s0 + $0x1c0] sm:$0xff]  ;;  %v297_v57 = vld [vmem:[%s4683_s0 + $0x1c8] sm:$0xff]  ;;  %294 = vst [vmem:[%s4688_s30 + $0xd8] sm:$0xff] %v293_v55 }
  0x4e   : > { %296 = vst [vmem:[%s4688_s30 + $0xe0] sm:$0xff] %v295_v56  ;;  %298 = vst [vmem:[%s4688_s30 + $0xe8] sm:$0xff] %v297_v57  ;;  %v299_v58 = vld [vmem:[%s4683_s0 + $0x1e0] sm:$0xff]  ;;  %v301_v59 = vld [vmem:[%s4683_s0 + $0x1e8] sm:$0xff] }
  0x4f   : > { %v303_v60 = vld [vmem:[%s4683_s0 + $0x200] sm:$0xff]  ;;  %300 = vst [vmem:[%s4688_s30 + $0xf0] sm:$0xff] %v299_v58  ;;  %302 = vst [vmem:[%s4688_s30 + $0xf8] sm:$0xff] %v301_v59  ;;  %v305_v61 = vld [vmem:[%s4683_s0 + $0x208] sm:$0xff] }
  0x50   : > { %304 = vst [vmem:[%s4688_s30 + $0x100] sm:$0xff] %v303_v60  ;;  %v307_v62 = vld [vmem:[%s4683_s0 + $0x220] sm:$0xff]  ;;  %v309_v63 = vld [vmem:[%s4683_s0 + $0x228] sm:$0xff]  ;;  %306 = vst [vmem:[%s4688_s30 + $0x108] sm:$0xff] %v305_v61 }
  0x51   : > { %308 = vst [vmem:[%s4688_s30 + $0x110] sm:$0xff] %v307_v62  ;;  %310 = vst [vmem:[%s4688_s30 + $0x118] sm:$0xff] %v309_v63  ;;  %v311_v0 = vld [vmem:[%s4683_s0 + $0x240] sm:$0xff]  ;;  %v313_v1 = vld [vmem:[%s4683_s0 + $0x248] sm:$0xff] }
  0x52   : > { %v315_v2 = vld [vmem:[%s4683_s0 + $0x260] sm:$0xff]  ;;  %312 = vst [vmem:[%s4688_s30 + $0x120] sm:$0xff] %v311_v0  ;;  %314 = vst [vmem:[%s4688_s30 + $0x128] sm:$0xff] %v313_v1  ;;  %v317_v3 = vld [vmem:[%s4683_s0 + $0x268] sm:$0xff] }
  0x53   : > { %316 = vst [vmem:[%s4688_s30 + $0x130] sm:$0xff] %v315_v2  ;;  %v319_v4 = vld [vmem:[%s4683_s0 + $0x280] sm:$0xff]  ;;  %v321_v5 = vld [vmem:[%s4683_s0 + $0x288] sm:$0xff]  ;;  %318 = vst [vmem:[%s4688_s30 + $0x138] sm:$0xff] %v317_v3 }
  0x54   : > { %320 = vst [vmem:[%s4688_s30 + $0x140] sm:$0xff] %v319_v4  ;;  %322 = vst [vmem:[%s4688_s30 + $0x148] sm:$0xff] %v321_v5  ;;  %v323_v6 = vld [vmem:[%s4683_s0 + $0x2a0] sm:$0xff]  ;;  %v325_v7 = vld [vmem:[%s4683_s0 + $0x2a8] sm:$0xff] }
  0x55   : > { %v327_v8 = vld [vmem:[%s4683_s0 + $0x2c0] sm:$0xff]  ;;  %324 = vst [vmem:[%s4688_s30 + $0x150] sm:$0xff] %v323_v6  ;;  %326 = vst [vmem:[%s4688_s30 + $0x158] sm:$0xff] %v325_v7  ;;  %v329_v9 = vld [vmem:[%s4683_s0 + $0x2c8] sm:$0xff] }
  0x56   : > { %328 = vst [vmem:[%s4688_s30 + $0x160] sm:$0xff] %v327_v8  ;;  %v331_v10 = vld [vmem:[%s4683_s0 + $0x2e0] sm:$0xff]  ;;  %v333_v11 = vld [vmem:[%s4683_s0 + $0x2e8] sm:$0xff]  ;;  %330 = vst [vmem:[%s4688_s30 + $0x168] sm:$0xff] %v329_v9 }
  0x57   : > { %332 = vst [vmem:[%s4688_s30 + $0x170] sm:$0xff] %v331_v10  ;;  %334 = vst [vmem:[%s4688_s30 + $0x178] sm:$0xff] %v333_v11  ;;  %v335_v12 = vld [vmem:[%s4683_s0 + $0x300] sm:$0xff]  ;;  %v337_v13 = vld [vmem:[%s4683_s0 + $0x308] sm:$0xff] }
  0x58   : > { %v339_v14 = vld [vmem:[%s4683_s0 + $0x320] sm:$0xff]  ;;  %336 = vst [vmem:[%s4688_s30 + $0x180] sm:$0xff] %v335_v12  ;;  %338 = vst [vmem:[%s4688_s30 + $0x188] sm:$0xff] %v337_v13  ;;  %v341_v15 = vld [vmem:[%s4683_s0 + $0x328] sm:$0xff] }
  0x59   : > { %340 = vst [vmem:[%s4688_s30 + $0x190] sm:$0xff] %v339_v14  ;;  %v343_v16 = vld [vmem:[%s4683_s0 + $0x340] sm:$0xff]  ;;  %v345_v17 = vld [vmem:[%s4683_s0 + $0x348] sm:$0xff]  ;;  %342 = vst [vmem:[%s4688_s30 + $0x198] sm:$0xff] %v341_v15 }
  0x5a   : > { %344 = vst [vmem:[%s4688_s30 + $0x1a0] sm:$0xff] %v343_v16  ;;  %346 = vst [vmem:[%s4688_s30 + $0x1a8] sm:$0xff] %v345_v17  ;;  %v347_v18 = vld [vmem:[%s4683_s0 + $0x360] sm:$0xff]  ;;  %v349_v19 = vld [vmem:[%s4683_s0 + $0x368] sm:$0xff] }
  0x5b   : > { %v351_v20 = vld [vmem:[%s4683_s0 + $0x380] sm:$0xff]  ;;  %348 = vst [vmem:[%s4688_s30 + $0x1b0] sm:$0xff] %v347_v18  ;;  %350 = vst [vmem:[%s4688_s30 + $0x1b8] sm:$0xff] %v349_v19  ;;  %v353_v21 = vld [vmem:[%s4683_s0 + $0x388] sm:$0xff] }
  0x5c   : > { %352 = vst [vmem:[%s4688_s30 + $0x1c0] sm:$0xff] %v351_v20  ;;  %v355_v22 = vld [vmem:[%s4683_s0 + $0x3a0] sm:$0xff]  ;;  %v357_v23 = vld [vmem:[%s4683_s0 + $0x3a8] sm:$0xff]  ;;  %354 = vst [vmem:[%s4688_s30 + $0x1c8] sm:$0xff] %v353_v21 }
  0x5d   : > { %356 = vst [vmem:[%s4688_s30 + $0x1d0] sm:$0xff] %v355_v22  ;;  %358 = vst [vmem:[%s4688_s30 + $0x1d8] sm:$0xff] %v357_v23  ;;  %v359_v24 = vld [vmem:[%s4683_s0 + $0x3c0] sm:$0xff]  ;;  %v361_v25 = vld [vmem:[%s4683_s0 + $0x3c8] sm:$0xff] }
  0x5e   : > { %v363_v26 = vld [vmem:[%s4683_s0 + $0x3e0] sm:$0xff]  ;;  %360 = vst [vmem:[%s4688_s30 + $0x1e0] sm:$0xff] %v359_v24  ;;  %362 = vst [vmem:[%s4688_s30 + $0x1e8] sm:$0xff] %v361_v25  ;;  %v365_v27 = vld [vmem:[%s4683_s0 + $0x3e8] sm:$0xff] }
  0x5f   : > { %364 = vst [vmem:[%s4688_s30 + $0x1f0] sm:$0xff] %v363_v26  ;;  %v367_v28 = vld [vmem:[%s4683_s0 + $0x400] sm:$0xff]  ;;  %v369_v29 = vld [vmem:[%s4683_s0 + $0x408] sm:$0xff]  ;;  %366 = vst [vmem:[%s4688_s30 + $0x1f8] sm:$0xff] %v365_v27 }
  0x60   : > { %368 = vst [vmem:[%s4688_s30 + $0x200] sm:$0xff] %v367_v28  ;;  %370 = vst [vmem:[%s4688_s30 + $0x208] sm:$0xff] %v369_v29  ;;  %v371_v30 = vld [vmem:[%s4683_s0 + $0x420] sm:$0xff]  ;;  %v373_v31 = vld [vmem:[%s4683_s0 + $0x428] sm:$0xff] }
  0x61   : > { %v375_v32 = vld [vmem:[%s4683_s0 + $0x440] sm:$0xff]  ;;  %372 = vst [vmem:[%s4688_s30 + $0x210] sm:$0xff] %v371_v30  ;;  %374 = vst [vmem:[%s4688_s30 + $0x218] sm:$0xff] %v373_v31  ;;  %v377_v33 = vld [vmem:[%s4683_s0 + $0x448] sm:$0xff] }
  0x62   : > { %376 = vst [vmem:[%s4688_s30 + $0x220] sm:$0xff] %v375_v32  ;;  %v379_v34 = vld [vmem:[%s4683_s0 + $0x460] sm:$0xff]  ;;  %v381_v35 = vld [vmem:[%s4683_s0 + $0x468] sm:$0xff]  ;;  %378 = vst [vmem:[%s4688_s30 + $0x228] sm:$0xff] %v377_v33 }
  0x63   : > { %380 = vst [vmem:[%s4688_s30 + $0x230] sm:$0xff] %v379_v34  ;;  %382 = vst [vmem:[%s4688_s30 + $0x238] sm:$0xff] %v381_v35  ;;  %v383_v36 = vld [vmem:[%s4683_s0 + $0x480] sm:$0xff]  ;;  %v385_v37 = vld [vmem:[%s4683_s0 + $0x488] sm:$0xff] }
  0x64   : > { %v387_v38 = vld [vmem:[%s4683_s0 + $0x4a0] sm:$0xff]  ;;  %384 = vst [vmem:[%s4688_s30 + $0x240] sm:$0xff] %v383_v36  ;;  %386 = vst [vmem:[%s4688_s30 + $0x248] sm:$0xff] %v385_v37  ;;  %v389_v39 = vld [vmem:[%s4683_s0 + $0x4a8] sm:$0xff] }
  0x65   : > { %388 = vst [vmem:[%s4688_s30 + $0x250] sm:$0xff] %v387_v38  ;;  %v391_v40 = vld [vmem:[%s4683_s0 + $0x4c0] sm:$0xff]  ;;  %v393_v41 = vld [vmem:[%s4683_s0 + $0x4c8] sm:$0xff]  ;;  %390 = vst [vmem:[%s4688_s30 + $0x258] sm:$0xff] %v389_v39 }
  0x66   : > { %392 = vst [vmem:[%s4688_s30 + $0x260] sm:$0xff] %v391_v40  ;;  %394 = vst [vmem:[%s4688_s30 + $0x268] sm:$0xff] %v393_v41  ;;  %v395_v42 = vld [vmem:[%s4683_s0 + $0x4e0] sm:$0xff]  ;;  %v397_v43 = vld [vmem:[%s4683_s0 + $0x4e8] sm:$0xff] }
  0x67   : > { %v399_v44 = vld [vmem:[%s4683_s0 + $0x500] sm:$0xff]  ;;  %396 = vst [vmem:[%s4688_s30 + $0x270] sm:$0xff] %v395_v42  ;;  %398 = vst [vmem:[%s4688_s30 + $0x278] sm:$0xff] %v397_v43  ;;  %v401_v45 = vld [vmem:[%s4683_s0 + $0x508] sm:$0xff] }
  0x68   : > { %400 = vst [vmem:[%s4688_s30 + $0x280] sm:$0xff] %v399_v44  ;;  %v403_v46 = vld [vmem:[%s4683_s0 + $0x520] sm:$0xff]  ;;  %v405_v47 = vld [vmem:[%s4683_s0 + $0x528] sm:$0xff]  ;;  %402 = vst [vmem:[%s4688_s30 + $0x288] sm:$0xff] %v401_v45 }
  0x69   : > { %404 = vst [vmem:[%s4688_s30 + $0x290] sm:$0xff] %v403_v46  ;;  %406 = vst [vmem:[%s4688_s30 + $0x298] sm:$0xff] %v405_v47  ;;  %v407_v48 = vld [vmem:[%s4683_s0 + $0x540] sm:$0xff]  ;;  %v409_v49 = vld [vmem:[%s4683_s0 + $0x548] sm:$0xff] }
  0x6a   : > { %v411_v50 = vld [vmem:[%s4683_s0 + $0x560] sm:$0xff]  ;;  %408 = vst [vmem:[%s4688_s30 + $0x2a0] sm:$0xff] %v407_v48  ;;  %410 = vst [vmem:[%s4688_s30 + $0x2a8] sm:$0xff] %v409_v49  ;;  %v413_v51 = vld [vmem:[%s4683_s0 + $0x568] sm:$0xff] }
  0x6b   : > { %412 = vst [vmem:[%s4688_s30 + $0x2b0] sm:$0xff] %v411_v50  ;;  %v415_v52 = vld [vmem:[%s4683_s0 + $0x580] sm:$0xff]  ;;  %v417_v53 = vld [vmem:[%s4683_s0 + $0x588] sm:$0xff]  ;;  %414 = vst [vmem:[%s4688_s30 + $0x2b8] sm:$0xff] %v413_v51 }
  0x6c   : > { %416 = vst [vmem:[%s4688_s30 + $0x2c0] sm:$0xff] %v415_v52  ;;  %418 = vst [vmem:[%s4688_s30 + $0x2c8] sm:$0xff] %v417_v53  ;;  %v419_v54 = vld [vmem:[%s4683_s0 + $0x5a0] sm:$0xff]  ;;  %v421_v55 = vld [vmem:[%s4683_s0 + $0x5a8] sm:$0xff] }
  0x6d   : > { %v423_v56 = vld [vmem:[%s4683_s0 + $0x5c0] sm:$0xff]  ;;  %420 = vst [vmem:[%s4688_s30 + $0x2d0] sm:$0xff] %v419_v54  ;;  %422 = vst [vmem:[%s4688_s30 + $0x2d8] sm:$0xff] %v421_v55  ;;  %v425_v57 = vld [vmem:[%s4683_s0 + $0x5c8] sm:$0xff] }
  0x6e   : > { %424 = vst [vmem:[%s4688_s30 + $0x2e0] sm:$0xff] %v423_v56  ;;  %v427_v58 = vld [vmem:[%s4683_s0 + $0x5e0] sm:$0xff]  ;;  %v429_v59 = vld [vmem:[%s4683_s0 + $0x5e8] sm:$0xff]  ;;  %426 = vst [vmem:[%s4688_s30 + $0x2e8] sm:$0xff] %v425_v57 }
  0x6f   : > { %428 = vst [vmem:[%s4688_s30 + $0x2f0] sm:$0xff] %v427_v58  ;;  %430 = vst [vmem:[%s4688_s30 + $0x2f8] sm:$0xff] %v429_v59  ;;  %v431_v60 = vld [vmem:[%s4683_s0 + $0x600] sm:$0xff]  ;;  %v433_v61 = vld [vmem:[%s4683_s0 + $0x608] sm:$0xff] }
  0x70   : > { %v435_v62 = vld [vmem:[%s4683_s0 + $0x620] sm:$0xff]  ;;  %432 = vst [vmem:[%s4688_s30 + $0x300] sm:$0xff] %v431_v60  ;;  %434 = vst [vmem:[%s4688_s30 + $0x308] sm:$0xff] %v433_v61  ;;  %v437_v63 = vld [vmem:[%s4683_s0 + $0x628] sm:$0xff] }
  0x71   : > { %436 = vst [vmem:[%s4688_s30 + $0x310] sm:$0xff] %v435_v62  ;;  %v439_v0 = vld [vmem:[%s4683_s0 + $0x640] sm:$0xff]  ;;  %v441_v1 = vld [vmem:[%s4683_s0 + $0x648] sm:$0xff]  ;;  %438 = vst [vmem:[%s4688_s30 + $0x318] sm:$0xff] %v437_v63 }
  0x72   : > { %440 = vst [vmem:[%s4688_s30 + $0x320] sm:$0xff] %v439_v0  ;;  %442 = vst [vmem:[%s4688_s30 + $0x328] sm:$0xff] %v441_v1  ;;  %v443_v2 = vld [vmem:[%s4683_s0 + $0x660] sm:$0xff]  ;;  %v445_v3 = vld [vmem:[%s4683_s0 + $0x668] sm:$0xff] }
  0x73   : > { %v447_v4 = vld [vmem:[%s4683_s0 + $0x680] sm:$0xff]  ;;  %444 = vst [vmem:[%s4688_s30 + $0x330] sm:$0xff] %v443_v2  ;;  %446 = vst [vmem:[%s4688_s30 + $0x338] sm:$0xff] %v445_v3  ;;  %v449_v5 = vld [vmem:[%s4683_s0 + $0x688] sm:$0xff] }
  0x74   : > { %448 = vst [vmem:[%s4688_s30 + $0x340] sm:$0xff] %v447_v4  ;;  %v451_v6 = vld [vmem:[%s4683_s0 + $0x6a0] sm:$0xff]  ;;  %v453_v7 = vld [vmem:[%s4683_s0 + $0x6a8] sm:$0xff]  ;;  %450 = vst [vmem:[%s4688_s30 + $0x348] sm:$0xff] %v449_v5 }
  0x75   : > { %452 = vst [vmem:[%s4688_s30 + $0x350] sm:$0xff] %v451_v6  ;;  %454 = vst [vmem:[%s4688_s30 + $0x358] sm:$0xff] %v453_v7  ;;  %v455_v8 = vld [vmem:[%s4683_s0 + $0x6c0] sm:$0xff]  ;;  %v457_v9 = vld [vmem:[%s4683_s0 + $0x6c8] sm:$0xff] }
  0x76   : > { %v459_v10 = vld [vmem:[%s4683_s0 + $0x6e0] sm:$0xff]  ;;  %456 = vst [vmem:[%s4688_s30 + $0x360] sm:$0xff] %v455_v8  ;;  %458 = vst [vmem:[%s4688_s30 + $0x368] sm:$0xff] %v457_v9  ;;  %v461_v11 = vld [vmem:[%s4683_s0 + $0x6e8] sm:$0xff] }
  0x77   : > { %460 = vst [vmem:[%s4688_s30 + $0x370] sm:$0xff] %v459_v10  ;;  %v463_v12 = vld [vmem:[%s4683_s0 + $0x700] sm:$0xff]  ;;  %v465_v13 = vld [vmem:[%s4683_s0 + $0x708] sm:$0xff]  ;;  %462 = vst [vmem:[%s4688_s30 + $0x378] sm:$0xff] %v461_v11 }
  0x78   : > { %464 = vst [vmem:[%s4688_s30 + $0x380] sm:$0xff] %v463_v12  ;;  %466 = vst [vmem:[%s4688_s30 + $0x388] sm:$0xff] %v465_v13  ;;  %v467_v14 = vld [vmem:[%s4683_s0 + $0x720] sm:$0xff]  ;;  %v469_v15 = vld [vmem:[%s4683_s0 + $0x728] sm:$0xff] }
  0x79   : > { %v471_v16 = vld [vmem:[%s4683_s0 + $0x740] sm:$0xff]  ;;  %468 = vst [vmem:[%s4688_s30 + $0x390] sm:$0xff] %v467_v14  ;;  %470 = vst [vmem:[%s4688_s30 + $0x398] sm:$0xff] %v469_v15  ;;  %v473_v17 = vld [vmem:[%s4683_s0 + $0x748] sm:$0xff] }
  0x7a   : > { %472 = vst [vmem:[%s4688_s30 + $0x3a0] sm:$0xff] %v471_v16  ;;  %v475_v18 = vld [vmem:[%s4683_s0 + $0x760] sm:$0xff]  ;;  %v477_v19 = vld [vmem:[%s4683_s0 + $0x768] sm:$0xff]  ;;  %474 = vst [vmem:[%s4688_s30 + $0x3a8] sm:$0xff] %v473_v17 }
  0x7b   : > { %476 = vst [vmem:[%s4688_s30 + $0x3b0] sm:$0xff] %v475_v18  ;;  %478 = vst [vmem:[%s4688_s30 + $0x3b8] sm:$0xff] %v477_v19  ;;  %v479_v20 = vld [vmem:[%s4683_s0 + $0x780] sm:$0xff]  ;;  %v481_v21 = vld [vmem:[%s4683_s0 + $0x788] sm:$0xff] }
  0x7c   : > { %v483_v22 = vld [vmem:[%s4683_s0 + $0x7a0] sm:$0xff]  ;;  %480 = vst [vmem:[%s4688_s30 + $0x3c0] sm:$0xff] %v479_v20  ;;  %482 = vst [vmem:[%s4688_s30 + $0x3c8] sm:$0xff] %v481_v21  ;;  %v485_v23 = vld [vmem:[%s4683_s0 + $0x7a8] sm:$0xff] }
  0x7d   : > { %484 = vst [vmem:[%s4688_s30 + $0x3d0] sm:$0xff] %v483_v22  ;;  %v487_v24 = vld [vmem:[%s4683_s0 + $0x7c0] sm:$0xff]  ;;  %v489_v25 = vld [vmem:[%s4683_s0 + $0x7c8] sm:$0xff]  ;;  %486 = vst [vmem:[%s4688_s30 + $0x3d8] sm:$0xff] %v485_v23 }
  0x7e   : > { %488 = vst [vmem:[%s4688_s30 + $0x3e0] sm:$0xff] %v487_v24  ;;  %490 = vst [vmem:[%s4688_s30 + $0x3e8] sm:$0xff] %v489_v25  ;;  %v491_v26 = vld [vmem:[%s4683_s0 + $0x7e0] sm:$0xff]  ;;  %v493_v27 = vld [vmem:[%s4683_s0 + $0x7e8] sm:$0xff] }
  0x7f   : > { %v495_v28 = vld [vmem:[%s4683_s0 + $0x800] sm:$0xff]  ;;  %492 = vst [vmem:[%s4688_s30 + $0x3f0] sm:$0xff] %v491_v26  ;;  %494 = vst [vmem:[%s4688_s30 + $0x3f8] sm:$0xff] %v493_v27  ;;  %v497_v29 = vld [vmem:[%s4683_s0 + $0x808] sm:$0xff] }
  0x80   : > { %496 = vst [vmem:[%s4688_s30 + $0x400] sm:$0xff] %v495_v28  ;;  %v499_v30 = vld [vmem:[%s4683_s0 + $0x820] sm:$0xff]  ;;  %v501_v31 = vld [vmem:[%s4683_s0 + $0x828] sm:$0xff]  ;;  %498 = vst [vmem:[%s4688_s30 + $0x408] sm:$0xff] %v497_v29 }
  0x81   : > { %500 = vst [vmem:[%s4688_s30 + $0x410] sm:$0xff] %v499_v30  ;;  %502 = vst [vmem:[%s4688_s30 + $0x418] sm:$0xff] %v501_v31  ;;  %v503_v32 = vld [vmem:[%s4683_s0 + $0x840] sm:$0xff]  ;;  %v505_v33 = vld [vmem:[%s4683_s0 + $0x848] sm:$0xff] }
  0x82   : > { %v507_v34 = vld [vmem:[%s4683_s0 + $0x860] sm:$0xff]  ;;  %504 = vst [vmem:[%s4688_s30 + $0x420] sm:$0xff] %v503_v32  ;;  %506 = vst [vmem:[%s4688_s30 + $0x428] sm:$0xff] %v505_v33  ;;  %v509_v35 = vld [vmem:[%s4683_s0 + $0x868] sm:$0xff] }
  0x83   : > { %508 = vst [vmem:[%s4688_s30 + $0x430] sm:$0xff] %v507_v34  ;;  %v511_v36 = vld [vmem:[%s4683_s0 + $0x880] sm:$0xff]  ;;  %v513_v37 = vld [vmem:[%s4683_s0 + $0x888] sm:$0xff]  ;;  %510 = vst [vmem:[%s4688_s30 + $0x438] sm:$0xff] %v509_v35 }
  0x84   : > { %512 = vst [vmem:[%s4688_s30 + $0x440] sm:$0xff] %v511_v36  ;;  %514 = vst [vmem:[%s4688_s30 + $0x448] sm:$0xff] %v513_v37  ;;  %v515_v38 = vld [vmem:[%s4683_s0 + $0x8a0] sm:$0xff]  ;;  %v517_v39 = vld [vmem:[%s4683_s0 + $0x8a8] sm:$0xff] }
  0x85   : > { %v519_v40 = vld [vmem:[%s4683_s0 + $0x8c0] sm:$0xff]  ;;  %516 = vst [vmem:[%s4688_s30 + $0x450] sm:$0xff] %v515_v38  ;;  %518 = vst [vmem:[%s4688_s30 + $0x458] sm:$0xff] %v517_v39  ;;  %v521_v41 = vld [vmem:[%s4683_s0 + $0x8c8] sm:$0xff] }
  0x86   : > { %520 = vst [vmem:[%s4688_s30 + $0x460] sm:$0xff] %v519_v40  ;;  %v523_v42 = vld [vmem:[%s4683_s0 + $0x8e0] sm:$0xff]  ;;  %v525_v43 = vld [vmem:[%s4683_s0 + $0x8e8] sm:$0xff]  ;;  %522 = vst [vmem:[%s4688_s30 + $0x468] sm:$0xff] %v521_v41 }
  0x87   : > { %524 = vst [vmem:[%s4688_s30 + $0x470] sm:$0xff] %v523_v42  ;;  %526 = vst [vmem:[%s4688_s30 + $0x478] sm:$0xff] %v525_v43  ;;  %v527_v44 = vld [vmem:[%s4683_s0 + $0x900] sm:$0xff]  ;;  %v529_v45 = vld [vmem:[%s4683_s0 + $0x908] sm:$0xff] }
  0x88   : > { %v531_v46 = vld [vmem:[%s4683_s0 + $0x920] sm:$0xff]  ;;  %528 = vst [vmem:[%s4688_s30 + $0x480] sm:$0xff] %v527_v44  ;;  %530 = vst [vmem:[%s4688_s30 + $0x488] sm:$0xff] %v529_v45  ;;  %v533_v47 = vld [vmem:[%s4683_s0 + $0x928] sm:$0xff] }
  0x89   : > { %532 = vst [vmem:[%s4688_s30 + $0x490] sm:$0xff] %v531_v46  ;;  %v535_v48 = vld [vmem:[%s4683_s0 + $0x940] sm:$0xff]  ;;  %v537_v49 = vld [vmem:[%s4683_s0 + $0x948] sm:$0xff]  ;;  %534 = vst [vmem:[%s4688_s30 + $0x498] sm:$0xff] %v533_v47 }
  0x8a   : > { %536 = vst [vmem:[%s4688_s30 + $0x4a0] sm:$0xff] %v535_v48  ;;  %538 = vst [vmem:[%s4688_s30 + $0x4a8] sm:$0xff] %v537_v49  ;;  %v539_v50 = vld [vmem:[%s4683_s0 + $0x960] sm:$0xff]  ;;  %v541_v51 = vld [vmem:[%s4683_s0 + $0x968] sm:$0xff] }
  0x8b   : > { %v543_v52 = vld [vmem:[%s4683_s0 + $0x980] sm:$0xff]  ;;  %540 = vst [vmem:[%s4688_s30 + $0x4b0] sm:$0xff] %v539_v50  ;;  %542 = vst [vmem:[%s4688_s30 + $0x4b8] sm:$0xff] %v541_v51  ;;  %v545_v53 = vld [vmem:[%s4683_s0 + $0x988] sm:$0xff] }
  0x8c   : > { %544 = vst [vmem:[%s4688_s30 + $0x4c0] sm:$0xff] %v543_v52  ;;  %v547_v54 = vld [vmem:[%s4683_s0 + $0x9a0] sm:$0xff]  ;;  %v549_v55 = vld [vmem:[%s4683_s0 + $0x9a8] sm:$0xff]  ;;  %546 = vst [vmem:[%s4688_s30 + $0x4c8] sm:$0xff] %v545_v53 }
  0x8d   : > { %548 = vst [vmem:[%s4688_s30 + $0x4d0] sm:$0xff] %v547_v54  ;;  %550 = vst [vmem:[%s4688_s30 + $0x4d8] sm:$0xff] %v549_v55  ;;  %v551_v56 = vld [vmem:[%s4683_s0 + $0x9c0] sm:$0xff]  ;;  %v553_v57 = vld [vmem:[%s4683_s0 + $0x9c8] sm:$0xff] }
  0x8e   : > { %v555_v58 = vld [vmem:[%s4683_s0 + $0x9e0] sm:$0xff]  ;;  %552 = vst [vmem:[%s4688_s30 + $0x4e0] sm:$0xff] %v551_v56  ;;  %554 = vst [vmem:[%s4688_s30 + $0x4e8] sm:$0xff] %v553_v57  ;;  %v557_v59 = vld [vmem:[%s4683_s0 + $0x9e8] sm:$0xff] }
  0x8f   : > { %556 = vst [vmem:[%s4688_s30 + $0x4f0] sm:$0xff] %v555_v58  ;;  %v559_v60 = vld [vmem:[%s4683_s0 + $0xa00] sm:$0xff]  ;;  %v561_v61 = vld [vmem:[%s4683_s0 + $0xa08] sm:$0xff]  ;;  %558 = vst [vmem:[%s4688_s30 + $0x4f8] sm:$0xff] %v557_v59 }
  0x90   : > { %560 = vst [vmem:[%s4688_s30 + $0x500] sm:$0xff] %v559_v60  ;;  %562 = vst [vmem:[%s4688_s30 + $0x508] sm:$0xff] %v561_v61  ;;  %v563_v62 = vld [vmem:[%s4683_s0 + $0xa20] sm:$0xff]  ;;  %v565_v63 = vld [vmem:[%s4683_s0 + $0xa28] sm:$0xff] }
  0x91   : > { %v567_v0 = vld [vmem:[%s4683_s0 + $0xa40] sm:$0xff]  ;;  %564 = vst [vmem:[%s4688_s30 + $0x510] sm:$0xff] %v563_v62  ;;  %566 = vst [vmem:[%s4688_s30 + $0x518] sm:$0xff] %v565_v63  ;;  %v569_v1 = vld [vmem:[%s4683_s0 + $0xa48] sm:$0xff] }
  0x92   : > { %568 = vst [vmem:[%s4688_s30 + $0x520] sm:$0xff] %v567_v0  ;;  %v571_v2 = vld [vmem:[%s4683_s0 + $0xa60] sm:$0xff]  ;;  %v573_v3 = vld [vmem:[%s4683_s0 + $0xa68] sm:$0xff]  ;;  %570 = vst [vmem:[%s4688_s30 + $0x528] sm:$0xff] %v569_v1 }
  0x93   : > { %572 = vst [vmem:[%s4688_s30 + $0x530] sm:$0xff] %v571_v2  ;;  %574 = vst [vmem:[%s4688_s30 + $0x538] sm:$0xff] %v573_v3  ;;  %v575_v4 = vld [vmem:[%s4683_s0 + $0xa80] sm:$0xff]  ;;  %v577_v5 = vld [vmem:[%s4683_s0 + $0xa88] sm:$0xff] }
  0x94   : > { %v579_v6 = vld [vmem:[%s4683_s0 + $0xaa0] sm:$0xff]  ;;  %576 = vst [vmem:[%s4688_s30 + $0x540] sm:$0xff] %v575_v4  ;;  %578 = vst [vmem:[%s4688_s30 + $0x548] sm:$0xff] %v577_v5  ;;  %v581_v7 = vld [vmem:[%s4683_s0 + $0xaa8] sm:$0xff] }
  0x95   : > { %580 = vst [vmem:[%s4688_s30 + $0x550] sm:$0xff] %v579_v6  ;;  %v583_v8 = vld [vmem:[%s4683_s0 + $0xac0] sm:$0xff]  ;;  %v585_v9 = vld [vmem:[%s4683_s0 + $0xac8] sm:$0xff]  ;;  %582 = vst [vmem:[%s4688_s30 + $0x558] sm:$0xff] %v581_v7 }
  0x96   : > { %584 = vst [vmem:[%s4688_s30 + $0x560] sm:$0xff] %v583_v8  ;;  %586 = vst [vmem:[%s4688_s30 + $0x568] sm:$0xff] %v585_v9  ;;  %v587_v10 = vld [vmem:[%s4683_s0 + $0xae0] sm:$0xff]  ;;  %v589_v11 = vld [vmem:[%s4683_s0 + $0xae8] sm:$0xff] }
  0x97   : > { %v591_v12 = vld [vmem:[%s4683_s0 + $0xb00] sm:$0xff]  ;;  %588 = vst [vmem:[%s4688_s30 + $0x570] sm:$0xff] %v587_v10  ;;  %590 = vst [vmem:[%s4688_s30 + $0x578] sm:$0xff] %v589_v11  ;;  %v593_v13 = vld [vmem:[%s4683_s0 + $0xb08] sm:$0xff] }
  0x98   : > { %592 = vst [vmem:[%s4688_s30 + $0x580] sm:$0xff] %v591_v12  ;;  %v595_v14 = vld [vmem:[%s4683_s0 + $0xb20] sm:$0xff]  ;;  %v597_v15 = vld [vmem:[%s4683_s0 + $0xb28] sm:$0xff]  ;;  %594 = vst [vmem:[%s4688_s30 + $0x588] sm:$0xff] %v593_v13 }
  0x99   : > { %596 = vst [vmem:[%s4688_s30 + $0x590] sm:$0xff] %v595_v14  ;;  %598 = vst [vmem:[%s4688_s30 + $0x598] sm:$0xff] %v597_v15  ;;  %v599_v16 = vld [vmem:[%s4683_s0 + $0xb40] sm:$0xff]  ;;  %v601_v17 = vld [vmem:[%s4683_s0 + $0xb48] sm:$0xff] }
  0x9a   : > { %v603_v18 = vld [vmem:[%s4683_s0 + $0xb60] sm:$0xff]  ;;  %600 = vst [vmem:[%s4688_s30 + $0x5a0] sm:$0xff] %v599_v16  ;;  %602 = vst [vmem:[%s4688_s30 + $0x5a8] sm:$0xff] %v601_v17  ;;  %v605_v19 = vld [vmem:[%s4683_s0 + $0xb68] sm:$0xff] }
  0x9b   : > { %604 = vst [vmem:[%s4688_s30 + $0x5b0] sm:$0xff] %v603_v18  ;;  %v607_v20 = vld [vmem:[%s4683_s0 + $0xb80] sm:$0xff]  ;;  %v609_v21 = vld [vmem:[%s4683_s0 + $0xb88] sm:$0xff]  ;;  %606 = vst [vmem:[%s4688_s30 + $0x5b8] sm:$0xff] %v605_v19 }
  0x9c   : > { %608 = vst [vmem:[%s4688_s30 + $0x5c0] sm:$0xff] %v607_v20  ;;  %610 = vst [vmem:[%s4688_s30 + $0x5c8] sm:$0xff] %v609_v21  ;;  %v611_v22 = vld [vmem:[%s4683_s0 + $0xba0] sm:$0xff]  ;;  %v613_v23 = vld [vmem:[%s4683_s0 + $0xba8] sm:$0xff] }
  0x9d   : > { %v615_v24 = vld [vmem:[%s4683_s0 + $0xbc0] sm:$0xff]  ;;  %612 = vst [vmem:[%s4688_s30 + $0x5d0] sm:$0xff] %v611_v22  ;;  %614 = vst [vmem:[%s4688_s30 + $0x5d8] sm:$0xff] %v613_v23  ;;  %v617_v25 = vld [vmem:[%s4683_s0 + $0xbc8] sm:$0xff] }
  0x9e   : > { %616 = vst [vmem:[%s4688_s30 + $0x5e0] sm:$0xff] %v615_v24  ;;  %v619_v26 = vld [vmem:[%s4683_s0 + $0xbe0] sm:$0xff]  ;;  %v621_v27 = vld [vmem:[%s4683_s0 + $0xbe8] sm:$0xff]  ;;  %618 = vst [vmem:[%s4688_s30 + $0x5e8] sm:$0xff] %v617_v25 }
  0x9f   : > { %620 = vst [vmem:[%s4688_s30 + $0x5f0] sm:$0xff] %v619_v26  ;;  %622 = vst [vmem:[%s4688_s30 + $0x5f8] sm:$0xff] %v621_v27  ;;  %v623_v28 = vld [vmem:[%s4683_s0 + $0xc00] sm:$0xff]  ;;  %v625_v29 = vld [vmem:[%s4683_s0 + $0xc08] sm:$0xff] }
  0xa0   : > { %v627_v30 = vld [vmem:[%s4683_s0 + $0xc20] sm:$0xff]  ;;  %624 = vst [vmem:[%s4688_s30 + $0x600] sm:$0xff] %v623_v28  ;;  %626 = vst [vmem:[%s4688_s30 + $0x608] sm:$0xff] %v625_v29  ;;  %v629_v31 = vld [vmem:[%s4683_s0 + $0xc28] sm:$0xff] }
  0xa1   : > { %628 = vst [vmem:[%s4688_s30 + $0x610] sm:$0xff] %v627_v30  ;;  %v631_v32 = vld [vmem:[%s4683_s0 + $0xc40] sm:$0xff]  ;;  %v633_v33 = vld [vmem:[%s4683_s0 + $0xc48] sm:$0xff]  ;;  %630 = vst [vmem:[%s4688_s30 + $0x618] sm:$0xff] %v629_v31 }
  0xa2   : > { %632 = vst [vmem:[%s4688_s30 + $0x620] sm:$0xff] %v631_v32  ;;  %634 = vst [vmem:[%s4688_s30 + $0x628] sm:$0xff] %v633_v33  ;;  %v635_v34 = vld [vmem:[%s4683_s0 + $0xc60] sm:$0xff]  ;;  %v637_v35 = vld [vmem:[%s4683_s0 + $0xc68] sm:$0xff] }
  0xa3   : > { %v639_v36 = vld [vmem:[%s4683_s0 + $0xc80] sm:$0xff]  ;;  %636 = vst [vmem:[%s4688_s30 + $0x630] sm:$0xff] %v635_v34  ;;  %638 = vst [vmem:[%s4688_s30 + $0x638] sm:$0xff] %v637_v35  ;;  %v641_v37 = vld [vmem:[%s4683_s0 + $0xc88] sm:$0xff] }
  0xa4   : > { %640 = vst [vmem:[%s4688_s30 + $0x640] sm:$0xff] %v639_v36  ;;  %v643_v38 = vld [vmem:[%s4683_s0 + $0xca0] sm:$0xff]  ;;  %v645_v39 = vld [vmem:[%s4683_s0 + $0xca8] sm:$0xff]  ;;  %642 = vst [vmem:[%s4688_s30 + $0x648] sm:$0xff] %v641_v37 }
  0xa5   : > { %644 = vst [vmem:[%s4688_s30 + $0x650] sm:$0xff] %v643_v38  ;;  %646 = vst [vmem:[%s4688_s30 + $0x658] sm:$0xff] %v645_v39  ;;  %v647_v40 = vld [vmem:[%s4683_s0 + $0xcc0] sm:$0xff]  ;;  %v649_v41 = vld [vmem:[%s4683_s0 + $0xcc8] sm:$0xff] }
  0xa6   : > { %v651_v42 = vld [vmem:[%s4683_s0 + $0xce0] sm:$0xff]  ;;  %648 = vst [vmem:[%s4688_s30 + $0x660] sm:$0xff] %v647_v40  ;;  %650 = vst [vmem:[%s4688_s30 + $0x668] sm:$0xff] %v649_v41  ;;  %v653_v43 = vld [vmem:[%s4683_s0 + $0xce8] sm:$0xff] }
  0xa7   : > { %652 = vst [vmem:[%s4688_s30 + $0x670] sm:$0xff] %v651_v42  ;;  %v655_v44 = vld [vmem:[%s4683_s0 + $0xd00] sm:$0xff]  ;;  %v657_v45 = vld [vmem:[%s4683_s0 + $0xd08] sm:$0xff]  ;;  %654 = vst [vmem:[%s4688_s30 + $0x678] sm:$0xff] %v653_v43 }
  0xa8   : > { %656 = vst [vmem:[%s4688_s30 + $0x680] sm:$0xff] %v655_v44  ;;  %658 = vst [vmem:[%s4688_s30 + $0x688] sm:$0xff] %v657_v45  ;;  %v659_v46 = vld [vmem:[%s4683_s0 + $0xd20] sm:$0xff]  ;;  %v661_v47 = vld [vmem:[%s4683_s0 + $0xd28] sm:$0xff] }
  0xa9   : > { %v663_v48 = vld [vmem:[%s4683_s0 + $0xd40] sm:$0xff]  ;;  %660 = vst [vmem:[%s4688_s30 + $0x690] sm:$0xff] %v659_v46  ;;  %662 = vst [vmem:[%s4688_s30 + $0x698] sm:$0xff] %v661_v47  ;;  %v665_v49 = vld [vmem:[%s4683_s0 + $0xd48] sm:$0xff] }
  0xaa   : > { %664 = vst [vmem:[%s4688_s30 + $0x6a0] sm:$0xff] %v663_v48  ;;  %v667_v50 = vld [vmem:[%s4683_s0 + $0xd60] sm:$0xff]  ;;  %v669_v51 = vld [vmem:[%s4683_s0 + $0xd68] sm:$0xff]  ;;  %666 = vst [vmem:[%s4688_s30 + $0x6a8] sm:$0xff] %v665_v49 }
  0xab   : > { %668 = vst [vmem:[%s4688_s30 + $0x6b0] sm:$0xff] %v667_v50  ;;  %670 = vst [vmem:[%s4688_s30 + $0x6b8] sm:$0xff] %v669_v51  ;;  %v671_v52 = vld [vmem:[%s4683_s0 + $0xd80] sm:$0xff]  ;;  %v673_v53 = vld [vmem:[%s4683_s0 + $0xd88] sm:$0xff] }
  0xac   : > { %v675_v54 = vld [vmem:[%s4683_s0 + $0xda0] sm:$0xff]  ;;  %672 = vst [vmem:[%s4688_s30 + $0x6c0] sm:$0xff] %v671_v52  ;;  %674 = vst [vmem:[%s4688_s30 + $0x6c8] sm:$0xff] %v673_v53  ;;  %v677_v55 = vld [vmem:[%s4683_s0 + $0xda8] sm:$0xff] }
  0xad   : > { %676 = vst [vmem:[%s4688_s30 + $0x6d0] sm:$0xff] %v675_v54  ;;  %v679_v56 = vld [vmem:[%s4683_s0 + $0xdc0] sm:$0xff]  ;;  %v681_v57 = vld [vmem:[%s4683_s0 + $0xdc8] sm:$0xff]  ;;  %678 = vst [vmem:[%s4688_s30 + $0x6d8] sm:$0xff] %v677_v55 }
  0xae   : > { %680 = vst [vmem:[%s4688_s30 + $0x6e0] sm:$0xff] %v679_v56  ;;  %682 = vst [vmem:[%s4688_s30 + $0x6e8] sm:$0xff] %v681_v57  ;;  %v683_v58 = vld [vmem:[%s4683_s0 + $0xde0] sm:$0xff]  ;;  %v685_v59 = vld [vmem:[%s4683_s0 + $0xde8] sm:$0xff] }
  0xaf   : > { %v687_v60 = vld [vmem:[%s4683_s0 + $0xe00] sm:$0xff]  ;;  %684 = vst [vmem:[%s4688_s30 + $0x6f0] sm:$0xff] %v683_v58  ;;  %686 = vst [vmem:[%s4688_s30 + $0x6f8] sm:$0xff] %v685_v59  ;;  %v689_v61 = vld [vmem:[%s4683_s0 + $0xe08] sm:$0xff] }
  0xb0   : > { %688 = vst [vmem:[%s4688_s30 + $0x700] sm:$0xff] %v687_v60  ;;  %v691_v62 = vld [vmem:[%s4683_s0 + $0xe20] sm:$0xff]  ;;  %v693_v63 = vld [vmem:[%s4683_s0 + $0xe28] sm:$0xff]  ;;  %690 = vst [vmem:[%s4688_s30 + $0x708] sm:$0xff] %v689_v61 }
  0xb1   : > { %692 = vst [vmem:[%s4688_s30 + $0x710] sm:$0xff] %v691_v62  ;;  %694 = vst [vmem:[%s4688_s30 + $0x718] sm:$0xff] %v693_v63  ;;  %v695_v0 = vld [vmem:[%s4683_s0 + $0xe40] sm:$0xff]  ;;  %v697_v1 = vld [vmem:[%s4683_s0 + $0xe48] sm:$0xff] }
  0xb2   : > { %v699_v2 = vld [vmem:[%s4683_s0 + $0xe60] sm:$0xff]  ;;  %696 = vst [vmem:[%s4688_s30 + $0x720] sm:$0xff] %v695_v0  ;;  %698 = vst [vmem:[%s4688_s30 + $0x728] sm:$0xff] %v697_v1  ;;  %v701_v3 = vld [vmem:[%s4683_s0 + $0xe68] sm:$0xff] }
  0xb3   : > { %700 = vst [vmem:[%s4688_s30 + $0x730] sm:$0xff] %v699_v2  ;;  %v703_v4 = vld [vmem:[%s4683_s0 + $0xe80] sm:$0xff]  ;;  %v705_v5 = vld [vmem:[%s4683_s0 + $0xe88] sm:$0xff]  ;;  %702 = vst [vmem:[%s4688_s30 + $0x738] sm:$0xff] %v701_v3 }
  0xb4   : > { %704 = vst [vmem:[%s4688_s30 + $0x740] sm:$0xff] %v703_v4  ;;  %706 = vst [vmem:[%s4688_s30 + $0x748] sm:$0xff] %v705_v5  ;;  %v707_v6 = vld [vmem:[%s4683_s0 + $0xea0] sm:$0xff]  ;;  %v709_v7 = vld [vmem:[%s4683_s0 + $0xea8] sm:$0xff] }
  0xb5   : > { %v711_v8 = vld [vmem:[%s4683_s0 + $0xec0] sm:$0xff]  ;;  %708 = vst [vmem:[%s4688_s30 + $0x750] sm:$0xff] %v707_v6  ;;  %710 = vst [vmem:[%s4688_s30 + $0x758] sm:$0xff] %v709_v7  ;;  %v713_v9 = vld [vmem:[%s4683_s0 + $0xec8] sm:$0xff] }
  0xb6   : > { %712 = vst [vmem:[%s4688_s30 + $0x760] sm:$0xff] %v711_v8  ;;  %v715_v10 = vld [vmem:[%s4683_s0 + $0xee0] sm:$0xff]  ;;  %v717_v11 = vld [vmem:[%s4683_s0 + $0xee8] sm:$0xff]  ;;  %714 = vst [vmem:[%s4688_s30 + $0x768] sm:$0xff] %v713_v9 }
  0xb7   : > { %716 = vst [vmem:[%s4688_s30 + $0x770] sm:$0xff] %v715_v10  ;;  %718 = vst [vmem:[%s4688_s30 + $0x778] sm:$0xff] %v717_v11  ;;  %v719_v12 = vld [vmem:[%s4683_s0 + $0xf00] sm:$0xff]  ;;  %v721_v13 = vld [vmem:[%s4683_s0 + $0xf08] sm:$0xff] }
  0xb8   : > { %v723_v14 = vld [vmem:[%s4683_s0 + $0xf20] sm:$0xff]  ;;  %720 = vst [vmem:[%s4688_s30 + $0x780] sm:$0xff] %v719_v12  ;;  %722 = vst [vmem:[%s4688_s30 + $0x788] sm:$0xff] %v721_v13  ;;  %v725_v15 = vld [vmem:[%s4683_s0 + $0xf28] sm:$0xff] }
  0xb9   : > { %724 = vst [vmem:[%s4688_s30 + $0x790] sm:$0xff] %v723_v14  ;;  %v727_v16 = vld [vmem:[%s4683_s0 + $0xf40] sm:$0xff]  ;;  %v729_v17 = vld [vmem:[%s4683_s0 + $0xf48] sm:$0xff]  ;;  %726 = vst [vmem:[%s4688_s30 + $0x798] sm:$0xff] %v725_v15 }
  0xba   : > { %728 = vst [vmem:[%s4688_s30 + $0x7a0] sm:$0xff] %v727_v16  ;;  %730 = vst [vmem:[%s4688_s30 + $0x7a8] sm:$0xff] %v729_v17  ;;  %v731_v18 = vld [vmem:[%s4683_s0 + $0xf60] sm:$0xff]  ;;  %v733_v19 = vld [vmem:[%s4683_s0 + $0xf68] sm:$0xff] }
  0xbb   : > { %v735_v20 = vld [vmem:[%s4683_s0 + $0xf80] sm:$0xff]  ;;  %732 = vst [vmem:[%s4688_s30 + $0x7b0] sm:$0xff] %v731_v18  ;;  %734 = vst [vmem:[%s4688_s30 + $0x7b8] sm:$0xff] %v733_v19  ;;  %v737_v21 = vld [vmem:[%s4683_s0 + $0xf88] sm:$0xff] }
  0xbc   : > { %736 = vst [vmem:[%s4688_s30 + $0x7c0] sm:$0xff] %v735_v20  ;;  %v739_v22 = vld [vmem:[%s4683_s0 + $0xfa0] sm:$0xff]  ;;  %v741_v23 = vld [vmem:[%s4683_s0 + $0xfa8] sm:$0xff]  ;;  %738 = vst [vmem:[%s4688_s30 + $0x7c8] sm:$0xff] %v737_v21 }
  0xbd   : > { %740 = vst [vmem:[%s4688_s30 + $0x7d0] sm:$0xff] %v739_v22  ;;  %742 = vst [vmem:[%s4688_s30 + $0x7d8] sm:$0xff] %v741_v23  ;;  %v743_v24 = vld [vmem:[%s4683_s0 + $0xfc0] sm:$0xff]  ;;  %v745_v25 = vld [vmem:[%s4683_s0 + $0xfc8] sm:$0xff] }
  0xbe   : > { %v747_v26 = vld [vmem:[%s4683_s0 + $0xfe0] sm:$0xff]  ;;  %744 = vst [vmem:[%s4688_s30 + $0x7e0] sm:$0xff] %v743_v24  ;;  %746 = vst [vmem:[%s4688_s30 + $0x7e8] sm:$0xff] %v745_v25  ;;  %v749_v27 = vld [vmem:[%s4683_s0 + $0xfe8] sm:$0xff] }
  0xbf   : > { %748 = vst [vmem:[%s4688_s30 + $0x7f0] sm:$0xff] %v747_v26  ;;  %750 = vst [vmem:[%s4688_s30 + $0x7f8] sm:$0xff] %v749_v27 }
  0xc0 PF: > { %p3522_p0 = scmp.ge.s32.totalorder %s4491_s19, 1  ;;  %p755_p1 = scmp.lt.s32.totalorder %s4491_s19, 5 }
  0xc2   : > { %p756_p2 = pnand %p3522_p0, %p755_p1 }
  0xc3   : > { %s762_s28 = sand.u32 (!%p756_p2), 1, %s4467_s13   ;;  %s769_s20 = sand.u32 (!%p756_p2), 1, %s4459_s11  }
  0xc4   : > { %759 = sbr.rel (%p756_p2) target bundleno = 738 (0x2e2), region = 66  ;;  %s3523_s29 = sshll.u32 (!%p756_p2), %s769_s20, 11 }
  0xc5   : > { %s3922_s25 = smul.u32 (!%p756_p2), 224, %s762_s28  ;;  %s790_s3 = sand.u32 (!%p756_p2), 1, %s4451_s9  }
  0xc6   : > { %s3923_s7 = smul.u32 (!%p756_p2), 112, %s790_s3  ;;  %s5206_s0 = scalar_lea.vmem (!%p756_p2), [#allocation4], %s3523_s29 }
  0xc7   : > { %s5204_s8 = scalar_lea.vmem (!%p756_p2), [#allocation3], %s3922_s25  ;;  %p3524_p3 = scmp.ne.s32.totalorder (!%p756_p2), %s4475_s15, 0 }
  0xc8   : > { %s5208_s23 = scalar_lea.vmem (!%p756_p2), [#allocation5], %s3923_s7 }
  0xcb   : > { %802 = sbr.rel (%p3524_p3) target bundleno = 218 (0xda), region = 78  ;;  %v4493_v28 = vmov (!%p3524_p3), 0.0  }
  0xcc   : > { %803 = vst [vmem:[#allocation2] sm:$0xff] (!%p3524_p3), %v4493_v28  ;;  %804 = vst [vmem:[#allocation2 + $0x8] sm:$0xff] (!%p3524_p3), %v4493_v28 }
  0xcd   : > { %805 = vst [vmem:[#allocation2 + $0x10] sm:$0xff] (!%p3524_p3), %v4493_v28  ;;  %806 = vst [vmem:[#allocation2 + $0x18] sm:$0xff] (!%p3524_p3), %v4493_v28 }
  0xce   : > { %807 = vst [vmem:[#allocation2 + $0x20] sm:$0xff] (!%p3524_p3), %v4493_v28  ;;  %808 = vst [vmem:[#allocation2 + $0x28] sm:$0xff] (!%p3524_p3), %v4493_v28 }
  0xcf   : > { %809 = vst [vmem:[#allocation2 + $0x30] sm:$0xff] (!%p3524_p3), %v4493_v28  ;;  %810 = vst [vmem:[#allocation2 + $0x38] sm:$0xff] (!%p3524_p3), %v4493_v28 }
  0xd0   : > { %811 = vst [vmem:[#allocation2 + $0x40] sm:$0xff] (!%p3524_p3), %v4493_v28  ;;  %812 = vst [vmem:[#allocation2 + $0x48] sm:$0xff] (!%p3524_p3), %v4493_v28 }
  0xd1   : > { %813 = vst [vmem:[#allocation2 + $0x50] sm:$0xff] (!%p3524_p3), %v4493_v28  ;;  %814 = vst [vmem:[#allocation2 + $0x58] sm:$0xff] (!%p3524_p3), %v4493_v28 }
  0xd2   : > { %815 = vst [vmem:[#allocation2 + $0x60] sm:$0xff] %v4493_v28  ;;  %816 = vst [vmem:[#allocation2 + $0x68] sm:$0xff] %v4493_v28 }
  0xd3   : > { %817 = vst [vmem:[#allocation2 + $0x70] sm:$0xff] %v4493_v28  ;;  %818 = vst [vmem:[#allocation2 + $0x78] sm:$0xff] %v4493_v28 }
  0xd4   : > { %819 = vst [vmem:[#allocation2 + $0x80] sm:$0xff] %v4493_v28  ;;  %820 = vst [vmem:[#allocation2 + $0x88] sm:$0xff] %v4493_v28 }
  0xd5   : > { %821 = vst [vmem:[#allocation2 + $0x90] sm:$0xff] %v4493_v28  ;;  %822 = vst [vmem:[#allocation2 + $0x98] sm:$0xff] %v4493_v28 }
  0xd6   : > { %823 = vst [vmem:[#allocation2 + $0xa0] sm:$0xff] %v4493_v28  ;;  %824 = vst [vmem:[#allocation2 + $0xa8] sm:$0xff] %v4493_v28 }
  0xd7   : > { %825 = vst [vmem:[#allocation2 + $0xb0] sm:$0xff] %v4493_v28  ;;  %826 = vst [vmem:[#allocation2 + $0xb8] sm:$0xff] %v4493_v28 }
  0xd8   : > { %827 = vst [vmem:[#allocation2 + $0xc0] sm:$0xff] %v4493_v28  ;;  %828 = vst [vmem:[#allocation2 + $0xc8] sm:$0xff] %v4493_v28 }
  0xd9   : > { %829 = vst [vmem:[#allocation2 + $0xd0] sm:$0xff] %v4493_v28  ;;  %830 = vst [vmem:[#allocation2 + $0xd8] sm:$0xff] %v4493_v28 }
  0xda PF: > { %v4013_v29 = vld [vmem:[%s5206_s0 + $0x4] ss:$16 sps:$4 sm:$0xff]   ;;  %v4015_v30 = vld [vmem:[%s5206_s0 + $0xc] ss:$16 sps:$4 sm:$0xff]   ;;  %v4017_v31 = vld [vmem:[%s5206_s0] ss:$16 sps:$4 sm:$0xff]  }
  0xdb   : > { %2571 = vmatprep.subr.bf16.mxu0 %v4013_v29  ;;  %v4018_v32 = vld [vmem:[%s5206_s0 + $0x8] ss:$16 sps:$4 sm:$0xff]   ;;  %2855 = vmatprep.subr.bf16.mxu1 %v4015_v30  ;;  %v4019_v33 = vld [vmem:[%s5206_s0 + $0x24] ss:$16 sps:$4 sm:$0xff]   ;;  %v4021_v34 = vld [vmem:[%s5206_s0 + $0x2c] ss:$16 sps:$4 sm:$0xff]  }
  0xdc   : > { %2572 = vmatpush1.bf16.msra.mxu0 %v4017_v31  ;;  %2856 = vmatpush1.bf16.msra.mxu1 %v4018_v32  ;;  %v4023_v35 = vld [vmem:[%s5206_s0 + $0x20] ss:$16 sps:$4 sm:$0xff]   ;;  %v4024_v36 = vld [vmem:[%s5206_s0 + $0x28] ss:$16 sps:$4 sm:$0xff]   ;;  %v4025_v37 = vld [vmem:[%s5206_s0 + $0x44] ss:$16 sps:$4 sm:$0xff]  }
  0xdd   : > { %2573 = vmatprep.subr.bf16.mxu0 %v4019_v33  ;;  %2857 = vmatprep.subr.bf16.mxu1 %v4021_v34  ;;  %v4027_v38 = vld [vmem:[%s5206_s0 + $0x4c] ss:$16 sps:$4 sm:$0xff]   ;;  %v4029_v39 = vld [vmem:[%s5206_s0 + $0x40] ss:$16 sps:$4 sm:$0xff]   ;;  %v4030_v40 = vld [vmem:[%s5206_s0 + $0x48] ss:$16 sps:$4 sm:$0xff]  }
  0xde   : > { %v4031_v41 = vld [vmem:[%s5206_s0 + $0x64] ss:$16 sps:$4 sm:$0xff]   ;;  %v4033_v42 = vld [vmem:[%s5206_s0 + $0x6c] ss:$16 sps:$4 sm:$0xff]   ;;  %v4035_v43 = vld [vmem:[%s5206_s0 + $0x60] ss:$16 sps:$4 sm:$0xff]  }
  0xdf   : > { %v4036_v44 = vld [vmem:[%s5206_s0 + $0x68] ss:$16 sps:$4 sm:$0xff]   ;;  %v4037_v45 = vld [vmem:[%s5206_s0 + $0x84] ss:$16 sps:$4 sm:$0xff]   ;;  %v4039_v46 = vld [vmem:[%s5206_s0 + $0x8c] ss:$16 sps:$4 sm:$0xff]  }
  0xe0   : > { %2574 = vmatpush1.bf16.msra.mxu0 %v4023_v35  ;;  %2858 = vmatpush1.bf16.msra.mxu1 %v4024_v36  ;;  %v4041_v47 = vld [vmem:[%s5206_s0 + $0x80] ss:$16 sps:$4 sm:$0xff]   ;;  %v4042_v48 = vld [vmem:[%s5206_s0 + $0x88] ss:$16 sps:$4 sm:$0xff]   ;;  %v4043_v49 = vld [vmem:[%s5206_s0 + $0xa4] ss:$16 sps:$4 sm:$0xff]  }
  0xe1   : > { %2575 = vmatprep.subr.bf16.mxu0 %v4025_v37  ;;  %2859 = vmatprep.subr.bf16.mxu1 %v4027_v38  ;;  %v4045_v50 = vld [vmem:[%s5206_s0 + $0xac] ss:$16 sps:$4 sm:$0xff]   ;;  %v4047_v51 = vld [vmem:[%s5206_s0 + $0xa0] ss:$16 sps:$4 sm:$0xff]   ;;  %v4048_v52 = vld [vmem:[%s5206_s0 + $0xa8] ss:$16 sps:$4 sm:$0xff]  }
  0xe2   : > { %v4049_v53 = vld [vmem:[%s5206_s0 + $0xc4] ss:$16 sps:$4 sm:$0xff]   ;;  %v4051_v54 = vld [vmem:[%s5206_s0 + $0xcc] ss:$16 sps:$4 sm:$0xff]   ;;  %v4053_v55 = vld [vmem:[%s5206_s0 + $0xc0] ss:$16 sps:$4 sm:$0xff]  }
  0xe3   : > { %v4054_v56 = vld [vmem:[%s5206_s0 + $0xc8] ss:$16 sps:$4 sm:$0xff]   ;;  %v4055_v57 = vld [vmem:[%s5206_s0 + $0xe4] ss:$16 sps:$4 sm:$0xff]   ;;  %v4057_v58 = vld [vmem:[%s5206_s0 + $0xec] ss:$16 sps:$4 sm:$0xff]  }
  0xe4   : > { %2576 = vmatpush1.bf16.msra.mxu0 %v4029_v39  ;;  %2860 = vmatpush1.bf16.msra.mxu1 %v4030_v40  ;;  %v4059_v59 = vld [vmem:[%s5206_s0 + $0xe0] ss:$16 sps:$4 sm:$0xff]   ;;  %v4060_v60 = vld [vmem:[%s5206_s0 + $0xe8] ss:$16 sps:$4 sm:$0xff]   ;;  %v4061_v61 = vld [vmem:[%s5206_s0 + $0x104] ss:$16 sps:$4 sm:$0xff]  }
  0xe5   : > { %2577 = vmatprep.subr.bf16.mxu0 %v4031_v41  ;;  %2861 = vmatprep.subr.bf16.mxu1 %v4033_v42  ;;  %v4063_v62 = vld [vmem:[%s5206_s0 + $0x10c] ss:$16 sps:$4 sm:$0xff]   ;;  %v4065_v63 = vld [vmem:[%s5206_s0 + $0x100] ss:$16 sps:$4 sm:$0xff]   ;;  %v4066_v0 = vld [vmem:[%s5206_s0 + $0x108] ss:$16 sps:$4 sm:$0xff]  }
  0xe6   : > { %v4067_v1 = vld [vmem:[%s5206_s0 + $0x124] ss:$16 sps:$4 sm:$0xff]   ;;  %v4069_v2 = vld [vmem:[%s5206_s0 + $0x12c] ss:$16 sps:$4 sm:$0xff]   ;;  %v4071_v3 = vld [vmem:[%s5206_s0 + $0x120] ss:$16 sps:$4 sm:$0xff]  }
  0xe7   : > { %v4072_v4 = vld [vmem:[%s5206_s0 + $0x128] ss:$16 sps:$4 sm:$0xff]   ;;  %v4073_v5 = vld [vmem:[%s5206_s0 + $0x144] ss:$16 sps:$4 sm:$0xff]   ;;  %v4075_v6 = vld [vmem:[%s5206_s0 + $0x14c] ss:$16 sps:$4 sm:$0xff]  }
  0xe8   : > { %2578 = vmatpush1.bf16.msra.mxu0 %v4035_v43  ;;  %2862 = vmatpush1.bf16.msra.mxu1 %v4036_v44  ;;  %v4077_v7 = vld [vmem:[%s5206_s0 + $0x140] ss:$16 sps:$4 sm:$0xff]   ;;  %v4078_v8 = vld [vmem:[%s5206_s0 + $0x148] ss:$16 sps:$4 sm:$0xff]   ;;  %v4079_v9 = vld [vmem:[%s5206_s0 + $0x164] ss:$16 sps:$4 sm:$0xff]  }
  0xe9   : > { %2579 = vmatprep.subr.bf16.mxu0 %v4037_v45  ;;  %2863 = vmatprep.subr.bf16.mxu1 %v4039_v46  ;;  %v4081_v10 = vld [vmem:[%s5206_s0 + $0x16c] ss:$16 sps:$4 sm:$0xff]   ;;  %v859_v11 = vld [vmem:[%s5204_s8] sm:$0xff]  ;;  %v4084_v14 = vld [vmem:[%s5206_s0 + $0x168] ss:$16 sps:$4 sm:$0xff]   ;;  %p3813_p4 = scmp.ne.s32.totalorder %s4475_s15, 1 }
  0xea   : > { %v863_v12 = vld [vmem:[%s5204_s8 + $0x20] sm:$0xff]  ;;  %v4087_v17 = vld [vmem:[%s5206_s0 + $0x18c] ss:$16 sps:$4 sm:$0xff]   ;;  %v4090_v19 = vld [vmem:[%s5206_s0 + $0x188] ss:$16 sps:$4 sm:$0xff]  }
  0xeb   : > { %v4083_v13 = vld [vmem:[%s5206_s0 + $0x160] ss:$16 sps:$4 sm:$0xff]   ;;  %v3526_v15 = vcombine.high %v859_v11, %v863_v12  ;;  %v4085_v16 = vld [vmem:[%s5206_s0 + $0x184] ss:$16 sps:$4 sm:$0xff]   ;;  %v4093_v21 = vld [vmem:[%s5206_s0 + $0x1ac] ss:$16 sps:$4 sm:$0xff]   ;;  %v3525_v34 = vcombine.low %v859_v11, %v863_v12 }
  0xec   : > { %2580 = vmatpush1.bf16.msra.mxu0 %v4041_v47  ;;  %2864 = vmatpush1.bf16.msra.mxu1 %v4042_v48  ;;  %v4089_v18 = vld [vmem:[%s5206_s0 + $0x180] ss:$16 sps:$4 sm:$0xff]   ;;  %v4091_v20 = vld [vmem:[%s5206_s0 + $0x1a4] ss:$16 sps:$4 sm:$0xff]   ;;  %v4096_v23 = vld [vmem:[%s5206_s0 + $0x1a8] ss:$16 sps:$4 sm:$0xff]  }
  0xed   : > { %2581 = vmatprep.subr.bf16.mxu0 %v4043_v49  ;;  %2865 = vmatprep.subr.bf16.mxu1 %v4045_v50  ;;  %v4095_v22 = vld [vmem:[%s5206_s0 + $0x1a0] ss:$16 sps:$4 sm:$0xff]   ;;  %v4097_v24 = vld [vmem:[%s5206_s0 + $0x1c4] ss:$16 sps:$4 sm:$0xff]   ;;  %v4099_v25 = vld [vmem:[%s5206_s0 + $0x1cc] ss:$16 sps:$4 sm:$0xff]  }
  0xee   : > { %2603 = vmatprep.mubr.bf16.mxu0 %v3526_v15  ;;  %2887 = vmatprep.mubr.bf16.mxu1 %v3526_v15  ;;  %v4101_v26 = vld [vmem:[%s5206_s0 + $0x1c0] ss:$16 sps:$4 sm:$0xff]   ;;  %v4102_v27 = vld [vmem:[%s5206_s0 + $0x1c8] ss:$16 sps:$4 sm:$0xff]   ;;  %v4103_v28 = vld [vmem:[%s5206_s0 + $0x1e4] ss:$16 sps:$4 sm:$0xff]  }
  0xef   : > { %v4105_v29 = vld [vmem:[%s5206_s0 + $0x1ec] ss:$16 sps:$4 sm:$0xff]   ;;  %v4107_v30 = vld [vmem:[%s5206_s0 + $0x1e0] ss:$16 sps:$4 sm:$0xff]   ;;  %v4108_v31 = vld [vmem:[%s5206_s0 + $0x1e8] ss:$16 sps:$4 sm:$0xff]  }
  0xf0   : > { %2582 = vmatpush1.bf16.msra.mxu0 %v4047_v51  ;;  %2866 = vmatpush1.bf16.msra.mxu1 %v4048_v52  ;;  %v4111_v32 = vld [vmem:[%s5206_s0 + $0x204] ss:$16 sps:$4 sm:$0xff]   ;;  %v4114_v33 = vld [vmem:[%s5206_s0 + $0x20c] ss:$16 sps:$4 sm:$0xff]   ;;  %v4109_v35 = vld [vmem:[%s5206_s0 + $0x200] ss:$16 sps:$4 sm:$0xff]  }
  0xf1   : > { %2583 = vmatprep.subr.bf16.mxu0 %v4049_v53  ;;  %2867 = vmatprep.subr.bf16.mxu1 %v4051_v54  ;;  %v4112_v36 = vld [vmem:[%s5206_s0 + $0x208] ss:$16 sps:$4 sm:$0xff]   ;;  %v4117_v37 = vld [vmem:[%s5206_s0 + $0x224] ss:$16 sps:$4 sm:$0xff]   ;;  %v4120_v38 = vld [vmem:[%s5206_s0 + $0x22c] ss:$16 sps:$4 sm:$0xff]  }
  0xf2   : > { %v4115_v39 = vld [vmem:[%s5206_s0 + $0x220] ss:$16 sps:$4 sm:$0xff]   ;;  %v4118_v40 = vld [vmem:[%s5206_s0 + $0x228] ss:$16 sps:$4 sm:$0xff]   ;;  %v4123_v41 = vld [vmem:[%s5206_s0 + $0x244] ss:$16 sps:$4 sm:$0xff]  }
  0xf3   : > { %v4126_v42 = vld [vmem:[%s5206_s0 + $0x24c] ss:$16 sps:$4 sm:$0xff]   ;;  %v867_v43 = vld [vmem:[%s5204_s8 + $0x40] sm:$0xff]  ;;  %v4124_v46 = vld [vmem:[%s5206_s0 + $0x248] ss:$16 sps:$4 sm:$0xff]  }
  0xf4   : > { %2584 = vmatpush1.bf16.msra.mxu0 %v4053_v55  ;;  %2868 = vmatpush1.bf16.msra.mxu1 %v4054_v56  ;;  %v871_v44 = vld [vmem:[%s5204_s8 + $0x60] sm:$0xff]  ;;  %v4132_v50 = vld [vmem:[%s5206_s0 + $0x26c] ss:$16 sps:$4 sm:$0xff]   ;;  %v4130_v52 = vld [vmem:[%s5206_s0 + $0x268] ss:$16 sps:$4 sm:$0xff]  }
  0xf5   : > { %2585 = vmatprep.subr.bf16.mxu0 %v4055_v57  ;;  %2869 = vmatprep.subr.bf16.mxu1 %v4057_v58  ;;  %v4121_v45 = vld [vmem:[%s5206_s0 + $0x240] ss:$16 sps:$4 sm:$0xff]   ;;  %v3534_v47 = vcombine.high %v867_v43, %v871_v44  ;;  %v3533_v48 = vcombine.low %v867_v43, %v871_v44  ;;  %v4129_v49 = vld [vmem:[%s5206_s0 + $0x264] ss:$16 sps:$4 sm:$0xff]   ;;  %v4138_v56 = vld [vmem:[%s5206_s0 + $0x28c] ss:$16 sps:$4 sm:$0xff]  }
  0xf6   : > { %v4127_v51 = vld [vmem:[%s5206_s0 + $0x260] ss:$16 sps:$4 sm:$0xff]   ;;  %v4135_v55 = vld [vmem:[%s5206_s0 + $0x284] ss:$16 sps:$4 sm:$0xff]   ;;  %v4156_v11 = vld [vmem:[%s5206_s0 + $0x2ec] ss:$16 sps:$4 sm:$0xff]  }
  0xf7   : > { %v875_v53 = vld [vmem:[%s5204_s8 + $0x80] sm:$0xff]  ;;  %v4206_v44 = vld [vmem:[%s5206_s0 + $0x3ec] ss:$16 sps:$4 sm:$0xff]  }
  0xf8   : > { %2586 = vmatpush1.bf16.msra.mxu0 %v4059_v59  ;;  %2870 = vmatpush1.bf16.msra.mxu1 %v4060_v60  ;;  %v879_v54 = vld [vmem:[%s5204_s8 + $0xa0] sm:$0xff]  ;;  %v4136_v60 = vld [vmem:[%s5206_s0 + $0x288] ss:$16 sps:$4 sm:$0xff]  }
  0xf9   : > { %2587 = vmatprep.subr.bf16.mxu0 %v4061_v61  ;;  %2871 = vmatprep.subr.bf16.mxu1 %v4063_v62  ;;  %v3542_v57 = vcombine.high %v875_v53, %v879_v54  ;;  %v3541_v58 = vcombine.low %v875_v53, %v879_v54  ;;  %v4133_v59 = vld [vmem:[%s5206_s0 + $0x280] ss:$16 sps:$4 sm:$0xff]   ;;  %v4141_v61 = vld [vmem:[%s5206_s0 + $0x2a4] ss:$16 sps:$4 sm:$0xff]   ;;  %v4144_v62 = vld [vmem:[%s5206_s0 + $0x2ac] ss:$16 sps:$4 sm:$0xff]  }
  0xfa   : > { %v4159_v15 = vld [vmem:[%s5206_s0 + $0x304] ss:$16 sps:$4 sm:$0xff]   ;;  %v4210_v53 = vld [vmem:[%s5206_s0 + $0x408] ss:$16 sps:$4 sm:$0xff]  }
  0xfb   : > { %v4203_v43 = vld [vmem:[%s5206_s0 + $0x3e4] ss:$16 sps:$4 sm:$0xff]  }
  0xfc   : > { %2588 = vmatpush1.bf16.msra.mxu0 %v4065_v63  ;;  %2872 = vmatpush1.bf16.msra.mxu1 %v4066_v0  ;;  %v883_v63 = vld [vmem:[%s5204_s8 + $0xc0] sm:$0xff] }
  0xfd   : > { %2589 = vmatprep.subr.bf16.mxu0 %v4067_v1  ;;  %2873 = vmatprep.subr.bf16.mxu1 %v4069_v2  ;;  %v4139_v0 = vld [vmem:[%s5206_s0 + $0x2a0] ss:$16 sps:$4 sm:$0xff]   ;;  %v3550_v1 = vcombine.high %v883_v63, %v883_v63  ;;  %v4142_v2 = vld [vmem:[%s5206_s0 + $0x2a8] ss:$16 sps:$4 sm:$0xff]   ;;  %v4215_v54 = vld [vmem:[%s5206_s0 + $0x424] ss:$16 sps:$4 sm:$0xff]  }
 0x100   : > { %2590 = vmatpush1.bf16.msra.mxu0 %v4071_v3  ;;  %2874 = vmatpush1.bf16.msra.mxu1 %v4072_v4  ;;  %v4147_v3 = vld [vmem:[%s5206_s0 + $0x2c4] ss:$16 sps:$4 sm:$0xff]   ;;  %v4150_v4 = vld [vmem:[%s5206_s0 + $0x2cc] ss:$16 sps:$4 sm:$0xff]  }
 0x101   : > { %2591 = vmatprep.subr.bf16.mxu0 %v4073_v5  ;;  %2875 = vmatprep.subr.bf16.mxu1 %v4075_v6  ;;  %v4145_v5 = vld [vmem:[%s5206_s0 + $0x2c0] ss:$16 sps:$4 sm:$0xff]   ;;  %v4148_v6 = vld [vmem:[%s5206_s0 + $0x2c8] ss:$16 sps:$4 sm:$0xff]  }
 0x104   : > { %2592 = vmatpush1.bf16.msra.mxu0 %v4077_v7  ;;  %2876 = vmatpush1.bf16.msra.mxu1 %v4078_v8  ;;  %v3549_v7 = vcombine.low %v883_v63, %v883_v63  ;;  %v5311_v8 = vld [vmem:[%s5204_s8 + $0x8] sm:$0xff] }
 0x105   : > { %2593 = vmatprep.subr.bf16.mxu0 %v4079_v9  ;;  %2877 = vmatprep.subr.bf16.mxu1 %v4081_v10  ;;  %v5314_v9 = vld [vmem:[%s5204_s8 + $0x28] sm:$0xff]  ;;  %v4153_v10 = vld [vmem:[%s5206_s0 + $0x2e4] ss:$16 sps:$4 sm:$0xff]  }
 0x106   : > { %v3528_v12 = vcombine.high %v5311_v8, %v5314_v9 }
 0x108   : > { %2594 = vmatpush1.bf16.msra.mxu0 %v4083_v13  ;;  %2878 = vmatpush1.bf16.msra.mxu1 %v4084_v14  ;;  %v4151_v13 = vld [vmem:[%s5206_s0 + $0x2e0] ss:$16 sps:$4 sm:$0xff]   ;;  %v4154_v14 = vld [vmem:[%s5206_s0 + $0x2e8] ss:$16 sps:$4 sm:$0xff]  }
 0x109   : > { %2595 = vmatprep.subr.bf16.mxu0 %v4085_v16  ;;  %2879 = vmatprep.subr.bf16.mxu1 %v4087_v17  ;;  %v4162_v16 = vld [vmem:[%s5206_s0 + $0x30c] ss:$16 sps:$4 sm:$0xff]   ;;  %v4157_v17 = vld [vmem:[%s5206_s0 + $0x300] ss:$16 sps:$4 sm:$0xff]  }
 0x10c   : > { %2596 = vmatpush1.bf16.msra.mxu0 %v4089_v18  ;;  %2880 = vmatpush1.bf16.msra.mxu1 %v4090_v19  ;;  %v4160_v18 = vld [vmem:[%s5206_s0 + $0x308] ss:$16 sps:$4 sm:$0xff]   ;;  %v4165_v19 = vld [vmem:[%s5206_s0 + $0x324] ss:$16 sps:$4 sm:$0xff]  }
 0x10d   : > { %2597 = vmatprep.subr.bf16.mxu0 %v4091_v20  ;;  %2881 = vmatprep.subr.bf16.mxu1 %v4093_v21  ;;  %v4168_v20 = vld [vmem:[%s5206_s0 + $0x32c] ss:$16 sps:$4 sm:$0xff]   ;;  %v4163_v21 = vld [vmem:[%s5206_s0 + $0x320] ss:$16 sps:$4 sm:$0xff]  }
 0x110   : > { %2598 = vmatpush1.bf16.msra.mxu0 %v4095_v22  ;;  %2882 = vmatpush1.bf16.msra.mxu1 %v4096_v23  ;;  %v4166_v22 = vld [vmem:[%s5206_s0 + $0x328] ss:$16 sps:$4 sm:$0xff]   ;;  %v4171_v23 = vld [vmem:[%s5206_s0 + $0x344] ss:$16 sps:$4 sm:$0xff]  }
 0x111   : > { %2599 = vmatprep.subr.bf16.mxu0 %v4097_v24  ;;  %2883 = vmatprep.subr.bf16.mxu1 %v4099_v25  ;;  %v4174_v24 = vld [vmem:[%s5206_s0 + $0x34c] ss:$16 sps:$4 sm:$0xff]   ;;  %v4169_v25 = vld [vmem:[%s5206_s0 + $0x340] ss:$16 sps:$4 sm:$0xff]  }
 0x114   : > { %2600 = vmatpush1.bf16.msra.mxu0 %v4101_v26  ;;  %2884 = vmatpush1.bf16.msra.mxu1 %v4102_v27  ;;  %v4172_v26 = vld [vmem:[%s5206_s0 + $0x348] ss:$16 sps:$4 sm:$0xff]   ;;  %v4177_v27 = vld [vmem:[%s5206_s0 + $0x364] ss:$16 sps:$4 sm:$0xff]  }
 0x115   : > { %2601 = vmatprep.subr.bf16.mxu0 %v4103_v28  ;;  %2885 = vmatprep.subr.bf16.mxu1 %v4105_v29  ;;  %v4180_v28 = vld [vmem:[%s5206_s0 + $0x36c] ss:$16 sps:$4 sm:$0xff]   ;;  %v4175_v29 = vld [vmem:[%s5206_s0 + $0x360] ss:$16 sps:$4 sm:$0xff]  }
 0x118   : > { %2602 = vmatpush1.bf16.msra.mxu0 %v4107_v30  ;;  %2886 = vmatpush1.bf16.msra.mxu1 %v4108_v31  ;;  %v4178_v30 = vld [vmem:[%s5206_s0 + $0x368] ss:$16 sps:$4 sm:$0xff]   ;;  %v4183_v31 = vld [vmem:[%s5206_s0 + $0x384] ss:$16 sps:$4 sm:$0xff]  }
 0x119   : > { %2642 = vmatprep.subr.bf16.mxu0 %v4111_v32  ;;  %2926 = vmatprep.subr.bf16.mxu1 %v4114_v33  ;;  %v4186_v32 = vld [vmem:[%s5206_s0 + $0x38c] ss:$16 sps:$4 sm:$0xff]   ;;  %v4181_v33 = vld [vmem:[%s5206_s0 + $0x380] ss:$16 sps:$4 sm:$0xff]  }
 0x11b   : > { %2604 = vmatmul.mubr.bf16.vlgmr.msra.gmra.mrb[0].mxu0 %v3525_v34  ;;  %2888 = vmatmul.mubr.bf16.vlgmr.msra.gmra.mrb[0].mxu1 %v3525_v34  ;;  %v4184_v34 = vld [vmem:[%s5206_s0 + $0x388] ss:$16 sps:$4 sm:$0xff]  }
 0x11c   : > { %2643 = vmatpush1.bf16.msra.mxu0 %v4109_v35  ;;  %2927 = vmatpush1.bf16.msra.mxu1 %v4112_v36  ;;  %v4189_v35 = vld [vmem:[%s5206_s0 + $0x3a4] ss:$16 sps:$4 sm:$0xff]   ;;  %v4192_v36 = vld [vmem:[%s5206_s0 + $0x3ac] ss:$16 sps:$4 sm:$0xff]  }
 0x11d   : > { %2644 = vmatprep.subr.bf16.mxu0 %v4117_v37  ;;  %2928 = vmatprep.subr.bf16.mxu1 %v4120_v38  ;;  %v4187_v37 = vld [vmem:[%s5206_s0 + $0x3a0] ss:$16 sps:$4 sm:$0xff]   ;;  %v4190_v38 = vld [vmem:[%s5206_s0 + $0x3a8] ss:$16 sps:$4 sm:$0xff]  }
 0x11e   : > { %2613 = vmatprep.mubr.bf16.mxu0 %v3534_v47  ;;  %2897 = vmatprep.mubr.bf16.mxu1 %v3534_v47  ;;  %v4209_v47 = vld [vmem:[%s5206_s0 + $0x404] ss:$16 sps:$4 sm:$0xff]  }
 0x120   : > { %2645 = vmatpush1.bf16.msra.mxu0 %v4115_v39  ;;  %2929 = vmatpush1.bf16.msra.mxu1 %v4118_v40  ;;  %v4197_v39 = vld [vmem:[%s5206_s0 + $0x3c4] ss:$16 sps:$4 sm:$0xff]   ;;  %v4200_v40 = vld [vmem:[%s5206_s0 + $0x3cc] ss:$16 sps:$4 sm:$0xff]  }
 0x121   : > { %2646 = vmatprep.subr.bf16.mxu0 %v4123_v41  ;;  %2930 = vmatprep.subr.bf16.mxu1 %v4126_v42  ;;  %v4195_v41 = vld [vmem:[%s5206_s0 + $0x3c0] ss:$16 sps:$4 sm:$0xff]   ;;  %v4198_v42 = vld [vmem:[%s5206_s0 + $0x3c8] ss:$16 sps:$4 sm:$0xff]  }
 0x123   : > { %2614 = vmatmul.mubr.bf16.gmra.mrb[4].mxu0 %v3533_v48  ;;  %2898 = vmatmul.mubr.bf16.gmra.mrb[4].mxu1 %v3533_v48  ;;  %v4212_v48 = vld [vmem:[%s5206_s0 + $0x40c] ss:$16 sps:$4 sm:$0xff]  }
 0x124   : > { %2647 = vmatpush1.bf16.msra.mxu0 %v4121_v45  ;;  %2931 = vmatpush1.bf16.msra.mxu1 %v4124_v46  ;;  %v4201_v45 = vld [vmem:[%s5206_s0 + $0x3e0] ss:$16 sps:$4 sm:$0xff]   ;;  %v4204_v46 = vld [vmem:[%s5206_s0 + $0x3e8] ss:$16 sps:$4 sm:$0xff]  }
 0x125   : > { %2648 = vmatprep.subr.bf16.mxu0 %v4129_v49  ;;  %2932 = vmatprep.subr.bf16.mxu1 %v4132_v50  ;;  %v868_v49 = vld [vmem:[%s5204_s8 + $0x48] sm:$0xff]  ;;  %v3527_v50 = vcombine.low %v5311_v8, %v5314_v9 }
 0x126   : > { %2623 = vmatprep.mubr.bf16.mxu0 %v3542_v57  ;;  %2907 = vmatprep.mubr.bf16.mxu1 %v3542_v57  ;;  %v4213_v57 = vld [vmem:[%s5206_s0 + $0x420] ss:$16 sps:$4 sm:$0xff]   ;;  %v4236_v8 = vld [vmem:[%s5206_s0 + $0x48c] ss:$16 sps:$4 sm:$0xff]  }
 0x128   : > { %2649 = vmatpush1.bf16.msra.mxu0 %v4127_v51  ;;  %2933 = vmatpush1.bf16.msra.mxu1 %v4130_v52  ;;  %v872_v51 = vld [vmem:[%s5204_s8 + $0x68] sm:$0xff]  ;;  %v4207_v52 = vld [vmem:[%s5206_s0 + $0x400] ss:$16 sps:$4 sm:$0xff]  }
 0x129   : > { %2650 = vmatprep.subr.bf16.mxu0 %v4135_v55  ;;  %2934 = vmatprep.subr.bf16.mxu1 %v4138_v56  ;;  %v4218_v55 = vld [vmem:[%s5206_s0 + $0x42c] ss:$16 sps:$4 sm:$0xff]   ;;  %v3536_v56 = vcombine.high %v868_v49, %v872_v51  ;;  %v3535_v63 = vcombine.low %v868_v49, %v872_v51  ;;  %v4284_v49 = vld [vmem:[%s5206_s0 + $0x588] ss:$16 sps:$4 sm:$0xff]  }
 0x12a   : > { %v4292_v51 = vld [vmem:[%s5206_s0 + $0x5ac] ss:$16 sps:$4 sm:$0xff]  }
 0x12b   : > { %2624 = vmatmul.mubr.bf16.gmra.mrb[8].mxu0 %v3541_v58  ;;  %2908 = vmatmul.mubr.bf16.gmra.mrb[8].mxu1 %v3541_v58  ;;  %v4216_v58 = vld [vmem:[%s5206_s0 + $0x428] ss:$16 sps:$4 sm:$0xff]  }
 0x12c   : > { %2651 = vmatpush1.bf16.msra.mxu0 %v4133_v59  ;;  %2935 = vmatpush1.bf16.msra.mxu1 %v4136_v60  ;;  %v4221_v59 = vld [vmem:[%s5206_s0 + $0x444] ss:$16 sps:$4 sm:$0xff]   ;;  %v4224_v60 = vld [vmem:[%s5206_s0 + $0x44c] ss:$16 sps:$4 sm:$0xff]  }
 0x12d   : > { %2652 = vmatprep.subr.bf16.mxu0 %v4141_v61  ;;  %2936 = vmatprep.subr.bf16.mxu1 %v4144_v62  ;;  %v4219_v61 = vld [vmem:[%s5206_s0 + $0x440] ss:$16 sps:$4 sm:$0xff]   ;;  %v4222_v62 = vld [vmem:[%s5206_s0 + $0x448] ss:$16 sps:$4 sm:$0xff]  }
 0x12e   : > { %2633 = vmatprep.mubr.bf16.mxu0 %v3550_v1  ;;  %2917 = vmatprep.mubr.bf16.mxu1 %v3550_v1  ;;  %v880_v1 = vld [vmem:[%s5204_s8 + $0xa8] sm:$0xff] }
 0x130   : > { %2653 = vmatpush1.bf16.msra.mxu0 %v4139_v0  ;;  %2937 = vmatpush1.bf16.msra.mxu1 %v4142_v2  ;;  %v876_v0 = vld [vmem:[%s5204_s8 + $0x88] sm:$0xff]  ;;  %v4227_v2 = vld [vmem:[%s5206_s0 + $0x464] ss:$16 sps:$4 sm:$0xff]  }
 0x131   : > { %2654 = vmatprep.subr.bf16.mxu0 %v4147_v3  ;;  %2938 = vmatprep.subr.bf16.mxu1 %v4150_v4  ;;  %v4230_v3 = vld [vmem:[%s5206_s0 + $0x46c] ss:$16 sps:$4 sm:$0xff]   ;;  %v3544_v4 = vcombine.high %v876_v0, %v880_v1  ;;  %v3543_v9 = vcombine.low %v876_v0, %v880_v1  ;;  %v869_v1 = vld [vmem:[%s5204_s8 + $0x50] sm:$0xff] }
 0x133   : > { %2634 = vmatmul.mubr.bf16.gmra.mrb[12].mxu0 %v3549_v7  ;;  %2918 = vmatmul.mubr.bf16.gmra.mrb[12].mxu1 %v3549_v7  ;;  %v4233_v7 = vld [vmem:[%s5206_s0 + $0x484] ss:$16 sps:$4 sm:$0xff]  }
 0x134   : > { %2655 = vmatpush1.bf16.msra.mxu0 %v4145_v5  ;;  %2939 = vmatpush1.bf16.msra.mxu1 %v4148_v6  ;;  %v4225_v5 = vld [vmem:[%s5206_s0 + $0x460] ss:$16 sps:$4 sm:$0xff]   ;;  %v4228_v6 = vld [vmem:[%s5206_s0 + $0x468] ss:$16 sps:$4 sm:$0xff]  }
 0x135   : > { %2656 = vmatprep.subr.bf16.mxu0 %v4153_v10  ;;  %2940 = vmatprep.subr.bf16.mxu1 %v4156_v11  ;;  %v884_v10 = vld [vmem:[%s5204_s8 + $0xc8] sm:$0xff]  ;;  %v4231_v11 = vld [vmem:[%s5206_s0 + $0x480] ss:$16 sps:$4 sm:$0xff]  }
 0x136   : > { %2674 = vmatprep.mubr.bf16.mxu0 %v3528_v12  ;;  %2958 = vmatprep.mubr.bf16.mxu1 %v3528_v12  ;;  %v4234_v12 = vld [vmem:[%s5206_s0 + $0x488] ss:$16 sps:$4 sm:$0xff]  }
 0x138   : > { %2657 = vmatpush1.bf16.msra.mxu0 %v4151_v13  ;;  %2941 = vmatpush1.bf16.msra.mxu1 %v4154_v14  ;;  %v4239_v13 = vld [vmem:[%s5206_s0 + $0x4a4] ss:$16 sps:$4 sm:$0xff]   ;;  %v4242_v14 = vld [vmem:[%s5206_s0 + $0x4ac] ss:$16 sps:$4 sm:$0xff]  }
 0x139   : > { %2658 = vmatprep.subr.bf16.mxu0 %v4159_v15  ;;  %2942 = vmatprep.subr.bf16.mxu1 %v4162_v16  ;;  %v3552_v15 = vcombine.high %v884_v10, %v884_v10  ;;  %v4237_v16 = vld [vmem:[%s5206_s0 + $0x4a0] ss:$16 sps:$4 sm:$0xff]  }
 0x13c   : > { %2659 = vmatpush1.bf16.msra.mxu0 %v4157_v17  ;;  %2943 = vmatpush1.bf16.msra.mxu1 %v4160_v18  ;;  %v4240_v17 = vld [vmem:[%s5206_s0 + $0x4a8] ss:$16 sps:$4 sm:$0xff]   ;;  %v4247_v18 = vld [vmem:[%s5206_s0 + $0x4c4] ss:$16 sps:$4 sm:$0xff]  }
 0x13d   : > { %2660 = vmatprep.subr.bf16.mxu0 %v4165_v19  ;;  %2944 = vmatprep.subr.bf16.mxu1 %v4168_v20  ;;  %v4250_v19 = vld [vmem:[%s5206_s0 + $0x4cc] ss:$16 sps:$4 sm:$0xff]   ;;  %v4245_v20 = vld [vmem:[%s5206_s0 + $0x4c0] ss:$16 sps:$4 sm:$0xff]  }
 0x140   : > { %2661 = vmatpush1.bf16.msra.mxu0 %v4163_v21  ;;  %2945 = vmatpush1.bf16.msra.mxu1 %v4166_v22  ;;  %v5389_v21 = vld [vmem:[%s5204_s8 + $0x10] sm:$0xff]  ;;  %v3551_v22 = vcombine.low %v884_v10, %v884_v10 }
 0x141   : > { %2662 = vmatprep.subr.bf16.mxu0 %v4171_v23  ;;  %2946 = vmatprep.subr.bf16.mxu1 %v4174_v24  ;;  %v5392_v23 = vld [vmem:[%s5204_s8 + $0x30] sm:$0xff]  ;;  %v4248_v24 = vld [vmem:[%s5206_s0 + $0x4c8] ss:$16 sps:$4 sm:$0xff]  }
 0x142   : > { %v3529_v0 = vcombine.low %v5389_v21, %v5392_v23  ;;  %v4319_v10 = vld [vmem:[%s5206_s0 + $0x644] ss:$16 sps:$4 sm:$0xff]  }
 0x144   : > { %2663 = vmatpush1.bf16.msra.mxu0 %v4169_v25  ;;  %2947 = vmatpush1.bf16.msra.mxu1 %v4172_v26  ;;  %v4253_v25 = vld [vmem:[%s5206_s0 + $0x4e4] ss:$16 sps:$4 sm:$0xff]   ;;  %v4256_v26 = vld [vmem:[%s5206_s0 + $0x4ec] ss:$16 sps:$4 sm:$0xff]  }
 0x145   : > { %2664 = vmatprep.subr.bf16.mxu0 %v4177_v27  ;;  %2948 = vmatprep.subr.bf16.mxu1 %v4180_v28  ;;  %v3530_v27 = vcombine.high %v5389_v21, %v5392_v23  ;;  %v4251_v28 = vld [vmem:[%s5206_s0 + $0x4e0] ss:$16 sps:$4 sm:$0xff]   ;;  %v4326_v21 = vld [vmem:[%s5206_s0 + $0x668] ss:$16 sps:$4 sm:$0xff]   ;;  %v4334_v23 = vld [vmem:[%s5206_s0 + $0x68c] ss:$16 sps:$4 sm:$0xff]  }
 0x148   : > { %2665 = vmatpush1.bf16.msra.mxu0 %v4175_v29  ;;  %2949 = vmatpush1.bf16.msra.mxu1 %v4178_v30  ;;  %v4254_v29 = vld [vmem:[%s5206_s0 + $0x4e8] ss:$16 sps:$4 sm:$0xff]   ;;  %v4259_v30 = vld [vmem:[%s5206_s0 + $0x504] ss:$16 sps:$4 sm:$0xff]  }
 0x149   : > { %2666 = vmatprep.subr.bf16.mxu0 %v4183_v31  ;;  %2950 = vmatprep.subr.bf16.mxu1 %v4186_v32  ;;  %v4262_v31 = vld [vmem:[%s5206_s0 + $0x50c] ss:$16 sps:$4 sm:$0xff]   ;;  %v4257_v32 = vld [vmem:[%s5206_s0 + $0x500] ss:$16 sps:$4 sm:$0xff]  }
 0x14c   : > { %2667 = vmatpush1.bf16.msra.mxu0 %v4181_v33  ;;  %2951 = vmatpush1.bf16.msra.mxu1 %v4184_v34  ;;  %v4260_v33 = vld [vmem:[%s5206_s0 + $0x508] ss:$16 sps:$4 sm:$0xff]   ;;  %v4265_v34 = vld [vmem:[%s5206_s0 + $0x524] ss:$16 sps:$4 sm:$0xff]  }
 0x14d   : > { %2668 = vmatprep.subr.bf16.mxu0 %v4189_v35  ;;  %2952 = vmatprep.subr.bf16.mxu1 %v4192_v36  ;;  %v4268_v35 = vld [vmem:[%s5206_s0 + $0x52c] ss:$16 sps:$4 sm:$0xff]   ;;  %v4263_v36 = vld [vmem:[%s5206_s0 + $0x520] ss:$16 sps:$4 sm:$0xff]  }
 0x150   : > { %2669 = vmatpush1.bf16.msra.mxu0 %v4187_v37  ;;  %2953 = vmatpush1.bf16.msra.mxu1 %v4190_v38  ;;  %v4266_v37 = vld [vmem:[%s5206_s0 + $0x528] ss:$16 sps:$4 sm:$0xff]   ;;  %v4271_v38 = vld [vmem:[%s5206_s0 + $0x544] ss:$16 sps:$4 sm:$0xff]  }
 0x151   : > { %2670 = vmatprep.subr.bf16.mxu0 %v4197_v39  ;;  %2954 = vmatprep.subr.bf16.mxu1 %v4200_v40  ;;  %v4274_v39 = vld [vmem:[%s5206_s0 + $0x54c] ss:$16 sps:$4 sm:$0xff]   ;;  %v4269_v40 = vld [vmem:[%s5206_s0 + $0x540] ss:$16 sps:$4 sm:$0xff]  }
 0x154   : > { %2671 = vmatpush1.bf16.msra.mxu0 %v4195_v41  ;;  %2955 = vmatpush1.bf16.msra.mxu1 %v4198_v42  ;;  %v4272_v41 = vld [vmem:[%s5206_s0 + $0x548] ss:$16 sps:$4 sm:$0xff]   ;;  %v4277_v42 = vld [vmem:[%s5206_s0 + $0x564] ss:$16 sps:$4 sm:$0xff]  }
 0x155   : > { %2672 = vmatprep.subr.bf16.mxu0 %v4203_v43  ;;  %2956 = vmatprep.subr.bf16.mxu1 %v4206_v44  ;;  %v4280_v43 = vld [vmem:[%s5206_s0 + $0x56c] ss:$16 sps:$4 sm:$0xff]   ;;  %v4275_v44 = vld [vmem:[%s5206_s0 + $0x560] ss:$16 sps:$4 sm:$0xff]  }
 0x158   : > { %2673 = vmatpush1.bf16.msra.mxu0 %v4201_v45  ;;  %2957 = vmatpush1.bf16.msra.mxu1 %v4204_v46  ;;  %v4278_v45 = vld [vmem:[%s5206_s0 + $0x568] ss:$16 sps:$4 sm:$0xff]   ;;  %v4283_v46 = vld [vmem:[%s5206_s0 + $0x584] ss:$16 sps:$4 sm:$0xff]  }
 0x159   : > { %2713 = vmatprep.subr.bf16.mxu0 %v4209_v47  ;;  %2997 = vmatprep.subr.bf16.mxu1 %v4212_v48  ;;  %v4286_v47 = vld [vmem:[%s5206_s0 + $0x58c] ss:$16 sps:$4 sm:$0xff]   ;;  %v4281_v48 = vld [vmem:[%s5206_s0 + $0x580] ss:$16 sps:$4 sm:$0xff]  }
 0x15b   : > { %2675 = vmatmul.mubr.bf16.vlgmr.msra.gmra.mrb[0].mxu0 %v3527_v50  ;;  %2959 = vmatmul.mubr.bf16.vlgmr.msra.gmra.mrb[0].mxu1 %v3527_v50  ;;  %v4289_v50 = vld [vmem:[%s5206_s0 + $0x5a4] ss:$16 sps:$4 sm:$0xff]  }
 0x15c   : > { %2714 = vmatpush1.bf16.msra.mxu0 %v4207_v52  ;;  %2998 = vmatpush1.bf16.msra.mxu1 %v4210_v53  ;;  %v4287_v52 = vld [vmem:[%s5206_s0 + $0x5a0] ss:$16 sps:$4 sm:$0xff]   ;;  %v4290_v53 = vld [vmem:[%s5206_s0 + $0x5a8] ss:$16 sps:$4 sm:$0xff]  }
 0x15d   : > { %2715 = vmatprep.subr.bf16.mxu0 %v4215_v54  ;;  %2999 = vmatprep.subr.bf16.mxu1 %v4218_v55  ;;  %v4295_v54 = vld [vmem:[%s5206_s0 + $0x5c4] ss:$16 sps:$4 sm:$0xff]   ;;  %v4298_v55 = vld [vmem:[%s5206_s0 + $0x5cc] ss:$16 sps:$4 sm:$0xff]  }
 0x15e   : > { %2684 = vmatprep.mubr.bf16.mxu0 %v3536_v56  ;;  %2968 = vmatprep.mubr.bf16.mxu1 %v3536_v56  ;;  %v4293_v56 = vld [vmem:[%s5206_s0 + $0x5c0] ss:$16 sps:$4 sm:$0xff]  }
 0x160   : > { %2716 = vmatpush1.bf16.msra.mxu0 %v4213_v57  ;;  %3000 = vmatpush1.bf16.msra.mxu1 %v4216_v58  ;;  %v4296_v57 = vld [vmem:[%s5206_s0 + $0x5c8] ss:$16 sps:$4 sm:$0xff]   ;;  %v4301_v58 = vld [vmem:[%s5206_s0 + $0x5e4] ss:$16 sps:$4 sm:$0xff]  }
 0x161   : > { %2717 = vmatprep.subr.bf16.mxu0 %v4221_v59  ;;  %3001 = vmatprep.subr.bf16.mxu1 %v4224_v60  ;;  %v4304_v59 = vld [vmem:[%s5206_s0 + $0x5ec] ss:$16 sps:$4 sm:$0xff]   ;;  %v4299_v60 = vld [vmem:[%s5206_s0 + $0x5e0] ss:$16 sps:$4 sm:$0xff]  }
 0x163   : > { %2685 = vmatmul.mubr.bf16.gmra.mrb[4].mxu0 %v3535_v63  ;;  %2969 = vmatmul.mubr.bf16.gmra.mrb[4].mxu1 %v3535_v63  ;;  %v4310_v63 = vld [vmem:[%s5206_s0 + $0x60c] ss:$16 sps:$4 sm:$0xff]  }
 0x164   : > { %2718 = vmatpush1.bf16.msra.mxu0 %v4219_v61  ;;  %3002 = vmatpush1.bf16.msra.mxu1 %v4222_v62  ;;  %v4302_v61 = vld [vmem:[%s5206_s0 + $0x5e8] ss:$16 sps:$4 sm:$0xff]   ;;  %v4307_v62 = vld [vmem:[%s5206_s0 + $0x604] ss:$16 sps:$4 sm:$0xff]  }
 0x165   : > { %2719 = vmatprep.subr.bf16.mxu0 %v4227_v2  ;;  %3003 = vmatprep.subr.bf16.mxu1 %v4230_v3  ;;  %v873_v2 = vld [vmem:[%s5204_s8 + $0x70] sm:$0xff] }
 0x166   : > { %2694 = vmatprep.mubr.bf16.mxu0 %v3544_v4  ;;  %2978 = vmatprep.mubr.bf16.mxu1 %v3544_v4  ;;  %v4305_v3 = vld [vmem:[%s5206_s0 + $0x600] ss:$16 sps:$4 sm:$0xff]   ;;  %v4308_v4 = vld [vmem:[%s5206_s0 + $0x608] ss:$16 sps:$4 sm:$0xff]  }
 0x168   : > { %2720 = vmatpush1.bf16.msra.mxu0 %v4225_v5  ;;  %3004 = vmatpush1.bf16.msra.mxu1 %v4228_v6  ;;  %v4313_v5 = vld [vmem:[%s5206_s0 + $0x624] ss:$16 sps:$4 sm:$0xff]   ;;  %v4316_v6 = vld [vmem:[%s5206_s0 + $0x62c] ss:$16 sps:$4 sm:$0xff]  }
 0x169   : > { %2721 = vmatprep.subr.bf16.mxu0 %v4233_v7  ;;  %3005 = vmatprep.subr.bf16.mxu1 %v4236_v8  ;;  %v3538_v7 = vcombine.high %v869_v1, %v873_v2  ;;  %v4311_v8 = vld [vmem:[%s5206_s0 + $0x620] ss:$16 sps:$4 sm:$0xff]  }
 0x16b   : > { %2695 = vmatmul.mubr.bf16.gmra.mrb[8].mxu0 %v3543_v9  ;;  %2979 = vmatmul.mubr.bf16.gmra.mrb[8].mxu1 %v3543_v9  ;;  %v4314_v9 = vld [vmem:[%s5206_s0 + $0x628] ss:$16 sps:$4 sm:$0xff]  }
 0x16c   : > { %2722 = vmatpush1.bf16.msra.mxu0 %v4231_v11  ;;  %3006 = vmatpush1.bf16.msra.mxu1 %v4234_v12  ;;  %v4322_v11 = vld [vmem:[%s5206_s0 + $0x64c] ss:$16 sps:$4 sm:$0xff]   ;;  %v3537_v12 = vcombine.low %v869_v1, %v873_v2  ;;  %v4387_v1 = vld [vmem:[%s5206_s0 + $0x7a4] ss:$16 sps:$4 sm:$0xff]  }
 0x16d   : > { %2723 = vmatprep.subr.bf16.mxu0 %v4239_v13  ;;  %3007 = vmatprep.subr.bf16.mxu1 %v4242_v14  ;;  %v877_v13 = vld [vmem:[%s5204_s8 + $0x90] sm:$0xff]  ;;  %v4390_v2 = vld [vmem:[%s5206_s0 + $0x7ac] ss:$16 sps:$4 sm:$0xff]  }
 0x16e   : > { %2704 = vmatprep.mubr.bf16.mxu0 %v3552_v15  ;;  %2988 = vmatprep.mubr.bf16.mxu1 %v3552_v15  ;;  %v881_v14 = vld [vmem:[%s5204_s8 + $0xb0] sm:$0xff] }
 0x16f   : > { %v4317_v15 = vld [vmem:[%s5206_s0 + $0x640] ss:$16 sps:$4 sm:$0xff]  }
 0x170   : > { %2724 = vmatpush1.bf16.msra.mxu0 %v4237_v16  ;;  %3008 = vmatpush1.bf16.msra.mxu1 %v4240_v17  ;;  %v4320_v16 = vld [vmem:[%s5206_s0 + $0x648] ss:$16 sps:$4 sm:$0xff]   ;;  %v4325_v17 = vld [vmem:[%s5206_s0 + $0x664] ss:$16 sps:$4 sm:$0xff]  }
 0x171   : > { %2725 = vmatprep.subr.bf16.mxu0 %v4247_v18  ;;  %3009 = vmatprep.subr.bf16.mxu1 %v4250_v19  ;;  %v4328_v18 = vld [vmem:[%s5206_s0 + $0x66c] ss:$16 sps:$4 sm:$0xff]   ;;  %v3546_v19 = vcombine.high %v877_v13, %v881_v14 }
 0x173   : > { %2705 = vmatmul.mubr.bf16.gmra.mrb[16].mxu0 %v3551_v22  ;;  %2989 = vmatmul.mubr.bf16.gmra.mrb[16].mxu1 %v3551_v22  ;;  %v4331_v22 = vld [vmem:[%s5206_s0 + $0x684] ss:$16 sps:$4 sm:$0xff]  }
 0x174   : > { %2726 = vmatpush1.bf16.msra.mxu0 %v4245_v20  ;;  %3010 = vmatpush1.bf16.msra.mxu1 %v4248_v24  ;;  %v4323_v20 = vld [vmem:[%s5206_s0 + $0x660] ss:$16 sps:$4 sm:$0xff]   ;;  %v3545_v24 = vcombine.low %v877_v13, %v881_v14  ;;  %v870_v13 = vld [vmem:[%s5204_s8 + $0x58] sm:$0xff] }
 0x175   : > { %2727 = vmatprep.subr.bf16.mxu0 %v4253_v25  ;;  %3011 = vmatprep.subr.bf16.mxu1 %v4256_v26  ;;  %v885_v25 = vld [vmem:[%s5204_s8 + $0xd0] sm:$0xff]  ;;  %v874_v14 = vld [vmem:[%s5204_s8 + $0x78] sm:$0xff] }
 0x176   : > { %2745 = vmatprep.mubr.bf16.mxu0 %v3530_v27  ;;  %3029 = vmatprep.mubr.bf16.mxu1 %v3530_v27  ;;  %v4329_v26 = vld [vmem:[%s5206_s0 + $0x680] ss:$16 sps:$4 sm:$0xff]   ;;  %v4332_v27 = vld [vmem:[%s5206_s0 + $0x688] ss:$16 sps:$4 sm:$0xff]  }
 0x178   : > { %2728 = vmatpush1.bf16.msra.mxu0 %v4251_v28  ;;  %3012 = vmatpush1.bf16.msra.mxu1 %v4254_v29  ;;  %v4337_v28 = vld [vmem:[%s5206_s0 + $0x6a4] ss:$16 sps:$4 sm:$0xff]   ;;  %v4340_v29 = vld [vmem:[%s5206_s0 + $0x6ac] ss:$16 sps:$4 sm:$0xff]  }
 0x179   : > { %2729 = vmatprep.subr.bf16.mxu0 %v4259_v30  ;;  %3013 = vmatprep.subr.bf16.mxu1 %v4262_v31  ;;  %v3554_v30 = vcombine.high %v885_v25, %v885_v25  ;;  %v4335_v31 = vld [vmem:[%s5206_s0 + $0x6a0] ss:$16 sps:$4 sm:$0xff]  }
 0x17c   : > { %2730 = vmatpush1.bf16.msra.mxu0 %v4257_v32  ;;  %3014 = vmatpush1.bf16.msra.mxu1 %v4260_v33  ;;  %v4338_v32 = vld [vmem:[%s5206_s0 + $0x6a8] ss:$16 sps:$4 sm:$0xff]   ;;  %v4345_v33 = vld [vmem:[%s5206_s0 + $0x6c4] ss:$16 sps:$4 sm:$0xff]  }
 0x17d   : > { %2731 = vmatprep.subr.bf16.mxu0 %v4265_v34  ;;  %3015 = vmatprep.subr.bf16.mxu1 %v4268_v35  ;;  %v4348_v34 = vld [vmem:[%s5206_s0 + $0x6cc] ss:$16 sps:$4 sm:$0xff]   ;;  %v3553_v35 = vcombine.low %v885_v25, %v885_v25 }
 0x180   : > { %2732 = vmatpush1.bf16.msra.mxu0 %v4263_v36  ;;  %3016 = vmatpush1.bf16.msra.mxu1 %v4266_v37  ;;  %v5467_v36 = vld [vmem:[%s5204_s8 + $0x18] sm:$0xff] }
 0x181   : > { %2733 = vmatprep.subr.bf16.mxu0 %v4271_v38  ;;  %3017 = vmatprep.subr.bf16.mxu1 %v4274_v39  ;;  %v5470_v37 = vld [vmem:[%s5204_s8 + $0x38] sm:$0xff]  ;;  %v4343_v38 = vld [vmem:[%s5206_s0 + $0x6c0] ss:$16 sps:$4 sm:$0xff]  }
 0x182   : > { %v4346_v39 = vld [vmem:[%s5206_s0 + $0x6c8] ss:$16 sps:$4 sm:$0xff]  }
 0x184   : > { %2734 = vmatpush1.bf16.msra.mxu0 %v4269_v40  ;;  %3018 = vmatpush1.bf16.msra.mxu1 %v4272_v41  ;;  %v4351_v40 = vld [vmem:[%s5206_s0 + $0x6e4] ss:$16 sps:$4 sm:$0xff]   ;;  %v4354_v41 = vld [vmem:[%s5206_s0 + $0x6ec] ss:$16 sps:$4 sm:$0xff]  }
 0x185   : > { %2735 = vmatprep.subr.bf16.mxu0 %v4277_v42  ;;  %3019 = vmatprep.subr.bf16.mxu1 %v4280_v43  ;;  %v3532_v42 = vcombine.high %v5467_v36, %v5470_v37  ;;  %v4349_v43 = vld [vmem:[%s5206_s0 + $0x6e0] ss:$16 sps:$4 sm:$0xff]  }
 0x188   : > { %2736 = vmatpush1.bf16.msra.mxu0 %v4275_v44  ;;  %3020 = vmatpush1.bf16.msra.mxu1 %v4278_v45  ;;  %v4352_v44 = vld [vmem:[%s5206_s0 + $0x6e8] ss:$16 sps:$4 sm:$0xff]   ;;  %v4357_v45 = vld [vmem:[%s5206_s0 + $0x704] ss:$16 sps:$4 sm:$0xff]  }
 0x189   : > { %2737 = vmatprep.subr.bf16.mxu0 %v4283_v46  ;;  %3021 = vmatprep.subr.bf16.mxu1 %v4286_v47  ;;  %v4360_v46 = vld [vmem:[%s5206_s0 + $0x70c] ss:$16 sps:$4 sm:$0xff]   ;;  %v4355_v47 = vld [vmem:[%s5206_s0 + $0x700] ss:$16 sps:$4 sm:$0xff]  }
 0x18c   : > { %2738 = vmatpush1.bf16.msra.mxu0 %v4281_v48  ;;  %3022 = vmatpush1.bf16.msra.mxu1 %v4284_v49  ;;  %v4358_v48 = vld [vmem:[%s5206_s0 + $0x708] ss:$16 sps:$4 sm:$0xff]   ;;  %v4363_v49 = vld [vmem:[%s5206_s0 + $0x724] ss:$16 sps:$4 sm:$0xff]  }
 0x18d   : > { %2739 = vmatprep.subr.bf16.mxu0 %v4289_v50  ;;  %3023 = vmatprep.subr.bf16.mxu1 %v4292_v51  ;;  %v4366_v50 = vld [vmem:[%s5206_s0 + $0x72c] ss:$16 sps:$4 sm:$0xff]   ;;  %v4361_v51 = vld [vmem:[%s5206_s0 + $0x720] ss:$16 sps:$4 sm:$0xff]  }
 0x190   : > { %2740 = vmatpush1.bf16.msra.mxu0 %v4287_v52  ;;  %3024 = vmatpush1.bf16.msra.mxu1 %v4290_v53  ;;  %v4364_v52 = vld [vmem:[%s5206_s0 + $0x728] ss:$16 sps:$4 sm:$0xff]   ;;  %v4369_v53 = vld [vmem:[%s5206_s0 + $0x744] ss:$16 sps:$4 sm:$0xff]  }
 0x191   : > { %2741 = vmatprep.subr.bf16.mxu0 %v4295_v54  ;;  %3025 = vmatprep.subr.bf16.mxu1 %v4298_v55  ;;  %v4372_v54 = vld [vmem:[%s5206_s0 + $0x74c] ss:$16 sps:$4 sm:$0xff]   ;;  %v4367_v55 = vld [vmem:[%s5206_s0 + $0x740] ss:$16 sps:$4 sm:$0xff]  }
 0x194   : > { %2742 = vmatpush1.bf16.msra.mxu0 %v4293_v56  ;;  %3026 = vmatpush1.bf16.msra.mxu1 %v4296_v57  ;;  %v4370_v56 = vld [vmem:[%s5206_s0 + $0x748] ss:$16 sps:$4 sm:$0xff]   ;;  %v4375_v57 = vld [vmem:[%s5206_s0 + $0x764] ss:$16 sps:$4 sm:$0xff]  }
 0x195   : > { %2743 = vmatprep.subr.bf16.mxu0 %v4301_v58  ;;  %3027 = vmatprep.subr.bf16.mxu1 %v4304_v59  ;;  %v4378_v58 = vld [vmem:[%s5206_s0 + $0x76c] ss:$16 sps:$4 sm:$0xff]   ;;  %v4373_v59 = vld [vmem:[%s5206_s0 + $0x760] ss:$16 sps:$4 sm:$0xff]  }
 0x198   : > { %2744 = vmatpush1.bf16.msra.mxu0 %v4299_v60  ;;  %3028 = vmatpush1.bf16.msra.mxu1 %v4302_v61  ;;  %v4376_v60 = vld [vmem:[%s5206_s0 + $0x768] ss:$16 sps:$4 sm:$0xff]   ;;  %v4381_v61 = vld [vmem:[%s5206_s0 + $0x784] ss:$16 sps:$4 sm:$0xff]  }
 0x199   : > { %2784 = vmatprep.subr.bf16.mxu0 %v4307_v62  ;;  %3068 = vmatprep.subr.bf16.mxu1 %v4310_v63  ;;  %v4384_v62 = vld [vmem:[%s5206_s0 + $0x78c] ss:$16 sps:$4 sm:$0xff]   ;;  %v4379_v63 = vld [vmem:[%s5206_s0 + $0x780] ss:$16 sps:$4 sm:$0xff]  }
 0x19b   : > { %2746 = vmatmul.mubr.bf16.vlgmr.msra.gmra.mrb[0].mxu0 %v3529_v0  ;;  %3030 = vmatmul.mubr.bf16.vlgmr.msra.gmra.mrb[0].mxu1 %v3529_v0  ;;  %v4382_v0 = vld [vmem:[%s5206_s0 + $0x788] ss:$16 sps:$4 sm:$0xff]  }
 0x19c   : > { %2785 = vmatpush1.bf16.msra.mxu0 %v4305_v3  ;;  %3069 = vmatpush1.bf16.msra.mxu1 %v4308_v4  ;;  %v4385_v3 = vld [vmem:[%s5206_s0 + $0x7a0] ss:$16 sps:$4 sm:$0xff]   ;;  %v4388_v4 = vld [vmem:[%s5206_s0 + $0x7a8] ss:$16 sps:$4 sm:$0xff]  }
 0x19d   : > { %2786 = vmatprep.subr.bf16.mxu0 %v4313_v5  ;;  %3070 = vmatprep.subr.bf16.mxu1 %v4316_v6  ;;  %v4393_v5 = vld [vmem:[%s5206_s0 + $0x7c4] ss:$16 sps:$4 sm:$0xff]   ;;  %v4396_v6 = vld [vmem:[%s5206_s0 + $0x7cc] ss:$16 sps:$4 sm:$0xff]  }
 0x19e   : > { %2755 = vmatprep.mubr.bf16.mxu0 %v3538_v7  ;;  %3039 = vmatprep.mubr.bf16.mxu1 %v3538_v7  ;;  %v4391_v7 = vld [vmem:[%s5206_s0 + $0x7c0] ss:$16 sps:$4 sm:$0xff]  }
 0x1a0   : > { %2787 = vmatpush1.bf16.msra.mxu0 %v4311_v8  ;;  %3071 = vmatpush1.bf16.msra.mxu1 %v4314_v9  ;;  %v4394_v8 = vld [vmem:[%s5206_s0 + $0x7c8] ss:$16 sps:$4 sm:$0xff]   ;;  %v4399_v9 = vld [vmem:[%s5206_s0 + $0x7e4] ss:$16 sps:$4 sm:$0xff]  }
 0x1a1   : > { %2788 = vmatprep.subr.bf16.mxu0 %v4319_v10  ;;  %3072 = vmatprep.subr.bf16.mxu1 %v4322_v11  ;;  %v4402_v10 = vld [vmem:[%s5206_s0 + $0x7ec] ss:$16 sps:$4 sm:$0xff]   ;;  %v4397_v11 = vld [vmem:[%s5206_s0 + $0x7e0] ss:$16 sps:$4 sm:$0xff]  }
 0x1a3   : > { %2756 = vmatmul.mubr.bf16.gmra.mrb[4].mxu0 %v3537_v12  ;;  %3040 = vmatmul.mubr.bf16.gmra.mrb[4].mxu1 %v3537_v12  ;;  %v4400_v12 = vld [vmem:[%s5206_s0 + $0x7e8] ss:$16 sps:$4 sm:$0xff]  }
 0x1a4   : > { %2789 = vmatpush1.bf16.msra.mxu0 %v4317_v15  ;;  %3073 = vmatpush1.bf16.msra.mxu1 %v4320_v16  ;;  %v3531_v15 = vcombine.low %v5467_v36, %v5470_v37  ;;  %v3540_v16 = vcombine.high %v870_v13, %v874_v14 }
 0x1a5   : > { %2790 = vmatprep.subr.bf16.mxu0 %v4325_v17  ;;  %3074 = vmatprep.subr.bf16.mxu1 %v4328_v18  ;;  %v878_v17 = vld [vmem:[%s5204_s8 + $0x98] sm:$0xff] }
 0x1a6   : > { %2765 = vmatprep.mubr.bf16.mxu0 %v3546_v19  ;;  %3049 = vmatprep.mubr.bf16.mxu1 %v3546_v19  ;;  %v882_v18 = vld [vmem:[%s5204_s8 + $0xb8] sm:$0xff]  ;;  %v3539_v19 = vcombine.low %v870_v13, %v874_v14 }
 0x1a8   : > { %2791 = vmatpush1.bf16.msra.mxu0 %v4323_v20  ;;  %3075 = vmatpush1.bf16.msra.mxu1 %v4326_v21  ;;  %v3548_v20 = vcombine.high %v878_v17, %v882_v18  ;;  %v886_v21 = vld [vmem:[%s5204_s8 + $0xd8] sm:$0xff] }
 0x1a9   : > { %2792 = vmatprep.subr.bf16.mxu0 %v4331_v22  ;;  %3076 = vmatprep.subr.bf16.mxu1 %v4334_v23  ;;  %v3547_v22 = vcombine.low %v878_v17, %v882_v18  ;;  %v3556_v23 = vcombine.high %v886_v21, %v886_v21  ;;  %v839_v17 = vld [vmem:[#allocation2 + $0x40] sm:$0xff]  ;;  %v841_v18 = vld [vmem:[#allocation2 + $0x50] sm:$0xff] }
 0x1ab   : > { %2766 = vmatmul.mubr.bf16.gmra.mrb[8].mxu0 %v3545_v24  ;;  %3050 = vmatmul.mubr.bf16.gmra.mrb[8].mxu1 %v3545_v24  ;;  %v3555_v24 = vcombine.low %v886_v21, %v886_v21 }
 0x1ac   : > { %2793 = vmatpush1.bf16.msra.mxu0 %v4329_v26  ;;  %3077 = vmatpush1.bf16.msra.mxu1 %v4332_v27 }
 0x1ad   : > { %2794 = vmatprep.subr.bf16.mxu0 %v4337_v28  ;;  %3078 = vmatprep.subr.bf16.mxu1 %v4340_v29 }
 0x1ae   : > { %2775 = vmatprep.mubr.bf16.mxu0 %v3554_v30  ;;  %3059 = vmatprep.mubr.bf16.mxu1 %v3554_v30 }
 0x1b0   : > { %2795 = vmatpush1.bf16.msra.mxu0 %v4335_v31  ;;  %3079 = vmatpush1.bf16.msra.mxu1 %v4338_v32 }
 0x1b1   : > { %2796 = vmatprep.subr.bf16.mxu0 %v4345_v33  ;;  %3080 = vmatprep.subr.bf16.mxu1 %v4348_v34 }
 0x1b3   : > { %2776 = vmatmul.mubr.bf16.gmra.mrb[20].mxu0 %v3553_v35  ;;  %3060 = vmatmul.mubr.bf16.gmra.mrb[20].mxu1 %v3553_v35 }
 0x1b4   : > { %2797 = vmatpush1.bf16.msra.mxu0 %v4343_v38  ;;  %3081 = vmatpush1.bf16.msra.mxu1 %v4346_v39 }
 0x1b5   : > { %2798 = vmatprep.subr.bf16.mxu0 %v4351_v40  ;;  %3082 = vmatprep.subr.bf16.mxu1 %v4354_v41 }
 0x1b6   : > { %2816 = vmatprep.mubr.bf16.mxu0 %v3532_v42  ;;  %3100 = vmatprep.mubr.bf16.mxu1 %v3532_v42 }
 0x1b8   : > { %2799 = vmatpush1.bf16.msra.mxu0 %v4349_v43  ;;  %3083 = vmatpush1.bf16.msra.mxu1 %v4352_v44 }
 0x1b9   : > { %2800 = vmatprep.subr.bf16.mxu0 %v4357_v45  ;;  %3084 = vmatprep.subr.bf16.mxu1 %v4360_v46 }
 0x1bc   : > { %2801 = vmatpush1.bf16.msra.mxu0 %v4355_v47  ;;  %3085 = vmatpush1.bf16.msra.mxu1 %v4358_v48 }
 0x1bd   : > { %2802 = vmatprep.subr.bf16.mxu0 %v4363_v49  ;;  %3086 = vmatprep.subr.bf16.mxu1 %v4366_v50 }
 0x1c0   : > { %2803 = vmatpush1.bf16.msra.mxu0 %v4361_v51  ;;  %3087 = vmatpush1.bf16.msra.mxu1 %v4364_v52 }
 0x1c1   : > { %2804 = vmatprep.subr.bf16.mxu0 %v4369_v53  ;;  %3088 = vmatprep.subr.bf16.mxu1 %v4372_v54 }
 0x1c4   : > { %2805 = vmatpush1.bf16.msra.mxu0 %v4367_v55  ;;  %3089 = vmatpush1.bf16.msra.mxu1 %v4370_v56 }
 0x1c5   : > { %2806 = vmatprep.subr.bf16.mxu0 %v4375_v57  ;;  %3090 = vmatprep.subr.bf16.mxu1 %v4378_v58  ;;  %v831_v57 = vld [vmem:[#allocation2] sm:$0xff]  ;;  %v833_v58 = vld [vmem:[#allocation2 + $0x10] sm:$0xff] }
 0x1c8   : > { %2807 = vmatpush1.bf16.msra.mxu0 %v4373_v59  ;;  %3091 = vmatpush1.bf16.msra.mxu1 %v4376_v60  ;;  %v832_v59 = vld [vmem:[#allocation2 + $0x8] sm:$0xff]  ;;  %v834_v60 = vld [vmem:[#allocation2 + $0x18] sm:$0xff] }
 0x1c9   : > { %2808 = vmatprep.subr.bf16.mxu0 %v4381_v61  ;;  %3092 = vmatprep.subr.bf16.mxu1 %v4384_v62 }
 0x1cc   : > { %2809 = vmatpush1.bf16.msra.mxu0 %v4379_v63  ;;  %3093 = vmatpush1.bf16.msra.mxu1 %v4382_v0  ;;  %v835_v63 = vld [vmem:[#allocation2 + $0x20] sm:$0xff]  ;;  %v837_v0 = vld [vmem:[#allocation2 + $0x30] sm:$0xff] }
 0x1cd   : > { %2810 = vmatprep.subr.bf16.mxu0 %v4387_v1  ;;  %3094 = vmatprep.subr.bf16.mxu1 %v4390_v2 }
 0x1d0   : > { %2811 = vmatpush1.bf16.msra.mxu0 %v4385_v3  ;;  %3095 = vmatpush1.bf16.msra.mxu1 %v4388_v4 }
 0x1d1   : > { %2812 = vmatprep.subr.bf16.mxu0 %v4393_v5  ;;  %3096 = vmatprep.subr.bf16.mxu1 %v4396_v6  ;;  %v836_v5 = vld [vmem:[#allocation2 + $0x28] sm:$0xff]  ;;  %v838_v6 = vld [vmem:[#allocation2 + $0x38] sm:$0xff] }
 0x1d4   : > { %2813 = vmatpush1.bf16.msra.mxu0 %v4391_v7  ;;  %3097 = vmatpush1.bf16.msra.mxu1 %v4394_v8 }
 0x1d5   : > { %2814 = vmatprep.subr.bf16.mxu0 %v4399_v9  ;;  %3098 = vmatprep.subr.bf16.mxu1 %v4402_v10 }
 0x1d8   : > { %2815 = vmatpush1.bf16.msra.mxu0 %v4397_v11  ;;  %3099 = vmatpush1.bf16.msra.mxu1 %v4400_v12 }
 0x1db   : > { %2817 = vmatmul.mubr.bf16.vlgmr.msra.gmra.mrb[0].mxu0 %v3531_v15  ;;  %3101 = vmatmul.mubr.bf16.vlgmr.msra.gmra.mrb[0].mxu1 %v3531_v15 }
 0x1dc   : > { %2826 = vmatprep.mubr.bf16.mxu0 %v3540_v16  ;;  %3110 = vmatprep.mubr.bf16.mxu1 %v3540_v16 }
 0x1e3   : > { %2827 = vmatmul.mubr.bf16.gmra.mrb[4].mxu0 %v3539_v19  ;;  %3111 = vmatmul.mubr.bf16.gmra.mrb[4].mxu1 %v3539_v19  ;;  %v840_v19 = vld [vmem:[#allocation2 + $0x48] sm:$0xff] }
 0x1e4   : > { %2836 = vmatprep.mubr.bf16.mxu0 %v3548_v20  ;;  %3120 = vmatprep.mubr.bf16.mxu1 %v3548_v20  ;;  %v842_v20 = vld [vmem:[#allocation2 + $0x58] sm:$0xff] }
 0x1eb   : > { %2837 = vmatmul.mubr.bf16.gmra.mrb[8].mxu0 %v3547_v22  ;;  %3121 = vmatmul.mubr.bf16.gmra.mrb[8].mxu1 %v3547_v22 }
 0x1ec   : > { %2846 = vmatprep.mubr.bf16.mxu0 %v3556_v23  ;;  %3130 = vmatprep.mubr.bf16.mxu1 %v3556_v23  ;;  %v843_v23 = vld [vmem:[#allocation2 + $0x60] sm:$0xff] }
 0x1f3   : > { %2847 = vmatmul.mubr.bf16.gmra.mrb[24].mxu0 %v3555_v24  ;;  %3131 = vmatmul.mubr.bf16.gmra.mrb[24].mxu1 %v3555_v24  ;;  %v845_v24 = vld [vmem:[#allocation2 + $0x70] sm:$0xff] }
 0x206   : > { %v2635_v25 = vpop.f32.mrb[12].mxu0  ;;  %v2919_v26 = vpop.f32.mrb[12].mxu1 }
 0x207   : > { %v2637_v27 = vpop.f32.mrb[13].mxu0  ;;  %v2921_v28 = vpop.f32.mrb[13].mxu1 }
 0x208   : > { %v2639_v29 = vpop.f32.mrb[14].mxu0  ;;  %v2923_v30 = vpop.f32.mrb[14].mxu1 }
 0x209   : > { %v2640_v31 = vpop.f32.mrb[15].mxu0  ;;  %v2924_v32 = vpop.f32.mrb[15].mxu1  ;;  %v844_v29 = vld [vmem:[#allocation2 + $0x68] sm:$0xff]  ;;  %v846_v30 = vld [vmem:[#allocation2 + $0x78] sm:$0xff] }
 0x246   : > { %v2706_v33 = vpop.f32.mrb[16].mxu0  ;;  %v2990_v34 = vpop.f32.mrb[16].mxu1 }
 0x247   : > { %v2707_v35 = vadd.f32 %v2706_v33, %v2635_v25  ;;  %v2991_v36 = vadd.f32 %v2990_v34, %v2919_v26  ;;  %v2708_v37 = vpop.f32.mrb[17].mxu0  ;;  %v2992_v38 = vpop.f32.mrb[17].mxu1 }
 0x248   : > { %v2709_v39 = vadd.f32 %v2708_v37, %v2637_v27  ;;  %v2993_v40 = vadd.f32 %v2992_v38, %v2921_v28  ;;  %v2710_v41 = vpop.f32.mrb[18].mxu0  ;;  %v2994_v42 = vpop.f32.mrb[18].mxu1 }
 0x249   : > { %v2711_v43 = vpop.f32.mrb[19].mxu0  ;;  %v2995_v44 = vpop.f32.mrb[19].mxu1  ;;  %v847_v41 = vld [vmem:[#allocation2 + $0x80] sm:$0xff]  ;;  %v849_v42 = vld [vmem:[#allocation2 + $0x90] sm:$0xff] }
 0x24a   : > { %v848_v43 = vld [vmem:[#allocation2 + $0x88] sm:$0xff]  ;;  %v850_v44 = vld [vmem:[#allocation2 + $0x98] sm:$0xff] }
 0x286   : > { %v2777_v45 = vpop.f32.mrb[20].mxu0  ;;  %v3061_v46 = vpop.f32.mrb[20].mxu1 }
 0x287   : > { %v5519_v47 = vadd.f32 %v2777_v45, %v2707_v35  ;;  %v5521_v48 = vadd.f32 %v3061_v46, %v2991_v36  ;;  %v2779_v49 = vpop.f32.mrb[21].mxu0  ;;  %v3063_v50 = vpop.f32.mrb[21].mxu1 }
 0x288   : > { %v5523_v51 = vadd.f32 %v2779_v49, %v2709_v39  ;;  %v5525_v52 = vadd.f32 %v3063_v50, %v2993_v40  ;;  %v2781_v53 = vpop.f32.mrb[22].mxu0  ;;  %v3065_v54 = vpop.f32.mrb[22].mxu1  ;;  %v851_v49 = vld [vmem:[#allocation2 + $0xa0] sm:$0xff]  ;;  %v853_v50 = vld [vmem:[#allocation2 + $0xb0] sm:$0xff] }
 0x289   : > { %v2782_v55 = vpop.f32.mrb[23].mxu0  ;;  %v3066_v56 = vpop.f32.mrb[23].mxu1 }
 0x2ae   : > { %v2818_v61 = vpop.f32.mrb[0].mxu0  ;;  %v3102_v62 = vpop.f32.mrb[0].mxu1 }
 0x2af   : > { %v3139_v1 = vadd.f32 %v2818_v61, %v831_v57  ;;  %v3141_v2 = vadd.f32 %v3102_v62, %v833_v58  ;;  %v2820_v3 = vpop.f32.mrb[1].mxu0  ;;  %v3104_v4 = vpop.f32.mrb[1].mxu1  ;;  %v852_v57 = vld [vmem:[#allocation2 + $0xa8] sm:$0xff]  ;;  %v854_v58 = vld [vmem:[#allocation2 + $0xb8] sm:$0xff] }
 0x2b0   : > { %v3140_v7 = vadd.f32 %v2820_v3, %v832_v59  ;;  %v3142_v8 = vadd.f32 %v3104_v4, %v834_v60  ;;  %v2822_v9 = vpop.f32.mrb[2].mxu0  ;;  %v3106_v10 = vpop.f32.mrb[2].mxu1 }
 0x2b1   : > { %3167 = vst [vmem:[#allocation2] sm:$0xff] %v3139_v1  ;;  %3169 = vst [vmem:[#allocation2 + $0x10] sm:$0xff] %v3141_v2  ;;  %v3143_v11 = vadd.f32 %v2822_v9, %v835_v63  ;;  %v3145_v12 = vadd.f32 %v3106_v10, %v837_v0  ;;  %v2824_v13 = vpop.f32.mrb[3].mxu0  ;;  %v3108_v14 = vpop.f32.mrb[3].mxu1 }
 0x2b2   : > { %3168 = vst [vmem:[#allocation2 + $0x8] sm:$0xff] %v3140_v7  ;;  %3170 = vst [vmem:[#allocation2 + $0x18] sm:$0xff] %v3142_v8  ;;  %v3144_v15 = vadd.f32 %v2824_v13, %v836_v5  ;;  %v3146_v16 = vadd.f32 %v3108_v14, %v838_v6  ;;  %v855_v5 = vld [vmem:[#allocation2 + $0xc0] sm:$0xff]  ;;  %v857_v7 = vld [vmem:[#allocation2 + $0xd0] sm:$0xff] }
 0x2b3   : > { %3171 = vst [vmem:[#allocation2 + $0x20] sm:$0xff] %v3143_v11  ;;  %3173 = vst [vmem:[#allocation2 + $0x30] sm:$0xff] %v3145_v12  ;;  %v856_v11 = vld [vmem:[#allocation2 + $0xc8] sm:$0xff]  ;;  %v858_v13 = vld [vmem:[#allocation2 + $0xd8] sm:$0xff] }
 0x2b4   : > { %3172 = vst [vmem:[#allocation2 + $0x28] sm:$0xff] %v3144_v15  ;;  %3174 = vst [vmem:[#allocation2 + $0x38] sm:$0xff] %v3146_v16 }
 0x2b6   : > { %v2828_v21 = vpop.f32.mrb[4].mxu0  ;;  %v3112_v22 = vpop.f32.mrb[4].mxu1 }
 0x2b7   : > { %v3147_v25 = vadd.f32 %v2828_v21, %v839_v17  ;;  %v3149_v26 = vadd.f32 %v3112_v22, %v841_v18  ;;  %v2830_v27 = vpop.f32.mrb[5].mxu0  ;;  %v3114_v28 = vpop.f32.mrb[5].mxu1 }
 0x2b8   : > { %v3148_v31 = vadd.f32 %v2830_v27, %v840_v19  ;;  %v3150_v32 = vadd.f32 %v3114_v28, %v842_v20  ;;  %v2832_v33 = vpop.f32.mrb[6].mxu0  ;;  %v3116_v34 = vpop.f32.mrb[6].mxu1 }
 0x2b9   : > { %3175 = vst [vmem:[#allocation2 + $0x40] sm:$0xff] %v3147_v25  ;;  %3177 = vst [vmem:[#allocation2 + $0x50] sm:$0xff] %v3149_v26  ;;  %v3151_v35 = vadd.f32 %v2832_v33, %v843_v23  ;;  %v3153_v36 = vadd.f32 %v3116_v34, %v845_v24  ;;  %v2834_v37 = vpop.f32.mrb[7].mxu0  ;;  %v3118_v38 = vpop.f32.mrb[7].mxu1  ;;  %v3202_v26 = vld [vmem:[#allocation2 + $0x18] sm:$0xff] (!%p3813_p4) }
 0x2ba   : > { %3176 = vst [vmem:[#allocation2 + $0x48] sm:$0xff] %v3148_v31  ;;  %3178 = vst [vmem:[#allocation2 + $0x58] sm:$0xff] %v3150_v32  ;;  %v3152_v39 = vadd.f32 %v2834_v37, %v844_v29  ;;  %v3154_v40 = vadd.f32 %v3118_v38, %v846_v30  ;;  %v3203_v28 = vld [vmem:[#allocation2 + $0x20] sm:$0xff] (!%p3813_p4)  ;;  %v3230_v30 = vmax.f32 (!%p3813_p4), %v3202_v26, 0.0  ;;  %v3205_v33 = vld [vmem:[#allocation2 + $0x30] sm:$0xff] (!%p3813_p4) }
 0x2bb   : > { %3179 = vst [vmem:[#allocation2 + $0x60] sm:$0xff] %v3151_v35  ;;  %3181 = vst [vmem:[#allocation2 + $0x70] sm:$0xff] %v3153_v36  ;;  %v3204_v29 = vld [vmem:[#allocation2 + $0x28] sm:$0xff] (!%p3813_p4)  ;;  %v3231_v31 = vmax.f32 (!%p3813_p4), %v3203_v28, 0.0  ;;  %v3206_v34 = vld [vmem:[#allocation2 + $0x38] sm:$0xff] (!%p3813_p4)  ;;  %v3233_v37 = vmax.f32 (!%p3813_p4), %v3205_v33, 0.0 }
 0x2bc   : > { %3180 = vst [vmem:[#allocation2 + $0x68] sm:$0xff] %v3152_v39  ;;  %3182 = vst [vmem:[#allocation2 + $0x78] sm:$0xff] %v3154_v40  ;;  %v3232_v32 = vmax.f32 (!%p3813_p4), %v3204_v29, 0.0  ;;  %v3234_v38 = vmax.f32 (!%p3813_p4), %v3206_v34, 0.0 }
 0x2be   : > { %v2838_v45 = vpop.f32.mrb[8].mxu0  ;;  %v3122_v46 = vpop.f32.mrb[8].mxu1 }
 0x2bf   : > { %v3155_v53 = vadd.f32 %v2838_v45, %v847_v41  ;;  %v3157_v54 = vadd.f32 %v3122_v46, %v849_v42  ;;  %v2840_v55 = vpop.f32.mrb[9].mxu0  ;;  %v3124_v56 = vpop.f32.mrb[9].mxu1 }
 0x2c0   : > { %v3156_v59 = vadd.f32 %v2840_v55, %v848_v43  ;;  %v3158_v60 = vadd.f32 %v3124_v56, %v850_v44  ;;  %v2842_v61 = vpop.f32.mrb[10].mxu0  ;;  %v3126_v62 = vpop.f32.mrb[10].mxu1  ;;  %v3207_v35 = vld [vmem:[#allocation2 + $0x40] sm:$0xff] (!%p3813_p4)  ;;  %v3209_v41 = vld [vmem:[#allocation2 + $0x50] sm:$0xff] (!%p3813_p4)  ;;  %v3836_v44 = vpack.c.bf16 (!%p3813_p4), %v3232_v32, %v3231_v31 }
 0x2c1   : > { %3183 = vst [vmem:[#allocation2 + $0x80] sm:$0xff] %v3155_v53  ;;  %3185 = vst [vmem:[#allocation2 + $0x90] sm:$0xff] %v3157_v54  ;;  %v3159_v63 = vadd.f32 %v2842_v61, %v851_v49  ;;  %v3161_v0 = vadd.f32 %v3126_v62, %v853_v50  ;;  %v2844_v1 = vpop.f32.mrb[11].mxu0  ;;  %v3128_v2 = vpop.f32.mrb[11].mxu1  ;;  %v3208_v39 = vld [vmem:[#allocation2 + $0x48] sm:$0xff] (!%p3813_p4)  ;;  %v3235_v40 = vmax.f32 (!%p3813_p4), %v3207_v35, 0.0  ;;  %v3837_v54 = vpack.c.bf16 (!%p3813_p4), %v3234_v38, %v3233_v37 }
 0x2c2   : > { %3184 = vst [vmem:[#allocation2 + $0x88] sm:$0xff] %v3156_v59  ;;  %3186 = vst [vmem:[#allocation2 + $0x98] sm:$0xff] %v3158_v60  ;;  %v3160_v3 = vadd.f32 %v2844_v1, %v852_v57  ;;  %v3162_v4 = vadd.f32 %v3128_v2, %v854_v58  ;;  %v3210_v42 = vld [vmem:[#allocation2 + $0x58] sm:$0xff] (!%p3813_p4)  ;;  %v3236_v45 = vmax.f32 (!%p3813_p4), %v3208_v39, 0.0  ;;  %v3237_v46 = vmax.f32 (!%p3813_p4), %v3209_v41, 0.0  ;;  %v3211_v49 = vld [vmem:[#allocation2 + $0x60] sm:$0xff] (!%p3813_p4) }
 0x2c3   : > { %3187 = vst [vmem:[#allocation2 + $0xa0] sm:$0xff] %v3159_v63  ;;  %3189 = vst [vmem:[#allocation2 + $0xb0] sm:$0xff] %v3161_v0  ;;  %v3212_v50 = vld [vmem:[#allocation2 + $0x68] sm:$0xff] (!%p3813_p4)  ;;  %v3213_v53 = vld [vmem:[#allocation2 + $0x70] sm:$0xff] (!%p3813_p4)  ;;  %v3238_v55 = vmax.f32 (!%p3813_p4), %v3210_v42, 0.0  ;;  %v3239_v56 = vmax.f32 (!%p3813_p4), %v3211_v49, 0.0 }
 0x2c4   : > { %3188 = vst [vmem:[#allocation2 + $0xa8] sm:$0xff] %v3160_v3  ;;  %3190 = vst [vmem:[#allocation2 + $0xb8] sm:$0xff] %v3162_v4  ;;  %v3240_v57 = vmax.f32 (!%p3813_p4), %v3212_v50, 0.0  ;;  %v3214_v58 = vld [vmem:[#allocation2 + $0x78] sm:$0xff] (!%p3813_p4)  ;;  %v3838_v61 = vpack.c.bf16 (!%p3813_p4), %v3236_v45, %v3235_v40  ;;  %v3241_v62 = vmax.f32 (!%p3813_p4), %v3213_v53, 0.0 }
 0x2c5   : > { %3345 = vst [vmem:[%s5208_s23 + $0x10] sm:$0xff] (!%p3813_p4), %v3836_v44  ;;  %v3242_v63 = vmax.f32 (!%p3813_p4), %v3214_v58, 0.0  ;;  %3346 = vst [vmem:[%s5208_s23 + $0x18] sm:$0xff] (!%p3813_p4), %v3837_v54  ;;  %v3839_v4 = vpack.c.bf16 (!%p3813_p4), %v3238_v55, %v3237_v46 }
 0x2c6   : > { %v2848_v6 = vpop.f32.mrb[24].mxu0  ;;  %v3132_v8 = vpop.f32.mrb[24].mxu1  ;;  %3198 = sbr.rel (%p3813_p4) target bundleno = 729 (0x2d9), region = 82  ;;  %3347 = vst [vmem:[%s5208_s23 + $0x20] sm:$0xff] (!%p3813_p4), %v3838_v61 }
 0x2c7   : > { %v2849_v9 = vadd.f32 %v2848_v6, %v5519_v47  ;;  %v3133_v10 = vadd.f32 %v3132_v8, %v5521_v48  ;;  %v2850_v12 = vpop.f32.mrb[25].mxu0  ;;  %v3134_v14 = vpop.f32.mrb[25].mxu1  ;;  %v3199_v47 = vld [vmem:[#allocation2] sm:$0xff] (!%p3813_p4)  ;;  %v3200_v48 = vld [vmem:[#allocation2 + $0x8] sm:$0xff] (!%p3813_p4)  ;;  %3348 = vst [vmem:[%s5208_s23 + $0x28] sm:$0xff] (!%p3813_p4), %v3839_v4 }
 0x2c8   : > { %v2851_v15 = vadd.f32 %v2850_v12, %v5523_v51  ;;  %v3135_v16 = vadd.f32 %v3134_v14, %v5525_v52  ;;  %v2852_v17 = vpop.f32.mrb[26].mxu0  ;;  %v3136_v18 = vpop.f32.mrb[26].mxu1  ;;  %v3201_v51 = vld [vmem:[#allocation2 + $0x10] sm:$0xff] (!%p3813_p4)  ;;  %v3227_v25 = vmax.f32 (!%p3813_p4), %v3199_v47, 0.0  ;;  %v3228_v52 = vmax.f32 (!%p3813_p4), %v3200_v48, 0.0  ;;  %v3215_v59 = vld [vmem:[#allocation2 + $0x80] sm:$0xff] (!%p3813_p4) }
 0x2c9   : > { %v3163_v19 = vadd.f32 %v2849_v9, %v855_v5  ;;  %v3165_v20 = vadd.f32 %v3133_v10, %v857_v7  ;;  %v2853_v21 = vpop.f32.mrb[27].mxu0  ;;  %v3137_v22 = vpop.f32.mrb[27].mxu1  ;;  %v3229_v27 = vmax.f32 (!%p3813_p4), %v3201_v51, 0.0  ;;  %v3216_v60 = vld [vmem:[#allocation2 + $0x88] sm:$0xff] (!%p3813_p4)  ;;  %v3243_v0 = vmax.f32 (!%p3813_p4), %v3215_v59, 0.0  ;;  %v3217_v1 = vld [vmem:[#allocation2 + $0x90] sm:$0xff] (!%p3813_p4) }
 0x2ca   : > { %v3164_v23 = vadd.f32 %v2851_v15, %v856_v11  ;;  %v3166_v24 = vadd.f32 %v3135_v16, %v858_v13  ;;  %v3834_v36 = vpack.c.bf16 (!%p3813_p4), %v3228_v52, %v3227_v25  ;;  %v3218_v2 = vld [vmem:[#allocation2 + $0x98] sm:$0xff] (!%p3813_p4)  ;;  %v3219_v3 = vld [vmem:[#allocation2 + $0xa0] sm:$0xff] (!%p3813_p4)  ;;  %v3840_v5 = vpack.c.bf16 (!%p3813_p4), %v3240_v57, %v3239_v56  ;;  %v3221_v9 = vld [vmem:[#allocation2 + $0xb0] sm:$0xff] (!%p3813_p4) }
 0x2cb   : > { %3191 = vst [vmem:[#allocation2 + $0xc0] sm:$0xff] %v3163_v19  ;;  %3193 = vst [vmem:[#allocation2 + $0xd0] sm:$0xff] %v3165_v20  ;;  %v3835_v43 = vpack.c.bf16 (!%p3813_p4), %v3230_v30, %v3229_v27  ;;  %v3244_v6 = vmax.f32 (!%p3813_p4), %v3216_v60, 0.0  ;;  %v3245_v7 = vmax.f32 (!%p3813_p4), %v3217_v1, 0.0  ;;  %v3220_v8 = vld [vmem:[#allocation2 + $0xa8] sm:$0xff] (!%p3813_p4)  ;;  %v3222_v10 = vld [vmem:[#allocation2 + $0xb8] sm:$0xff] (!%p3813_p4)  ;;  %v3841_v11 = vpack.c.bf16 (!%p3813_p4), %v3242_v63, %v3241_v62 }
 0x2cc   : > { %3192 = vst [vmem:[#allocation2 + $0xc8] sm:$0xff] %v3164_v23  ;;  %3194 = vst [vmem:[#allocation2 + $0xd8] sm:$0xff] %v3166_v24  ;;  %v3246_v12 = vmax.f32 (!%p3813_p4), %v3218_v2, 0.0  ;;  %v3247_v13 = vmax.f32 (!%p3813_p4), %v3219_v3, 0.0  ;;  %v3248_v14 = vmax.f32 (!%p3813_p4), %v3220_v8, 0.0  ;;  %v3249_v19 = vmax.f32 (!%p3813_p4), %v3221_v9, 0.0 }
 0x2cd   : > { %3343 = vst [vmem:[%s5208_s23] sm:$0xff] %v3834_v36  ;;  %3344 = vst [vmem:[%s5208_s23 + $0x8] sm:$0xff] %v3835_v43  ;;  %v3842_v18 = vpack.c.bf16 %v3244_v6, %v3243_v0  ;;  %v3250_v20 = vmax.f32 %v3222_v10, 0.0 }
 0x2ce   : > { %3349 = vst [vmem:[%s5208_s23 + $0x30] sm:$0xff] %v3840_v5  ;;  %3350 = vst [vmem:[%s5208_s23 + $0x38] sm:$0xff] %v3841_v11  ;;  %v3843_v23 = vpack.c.bf16 %v3246_v12, %v3245_v7  ;;  %v3844_v24 = vpack.c.bf16 %v3248_v14, %v3247_v13 }
 0x2cf   : > { %3351 = vst [vmem:[%s5208_s23 + $0x40] sm:$0xff] %v3842_v18  ;;  %v3845_v51 = vpack.c.bf16 %v3250_v20, %v3249_v19 }
 0x2d0   : > { %3352 = vst [vmem:[%s5208_s23 + $0x48] sm:$0xff] %v3843_v23  ;;  %3353 = vst [vmem:[%s5208_s23 + $0x50] sm:$0xff] %v3844_v24 }
 0x2d1   : > { %3354 = vst [vmem:[%s5208_s23 + $0x58] sm:$0xff] %v3845_v51 }
 0x2d2   : > { %v3223_v15 = vld [vmem:[#allocation2 + $0xc0] sm:$0xff]  ;;  %v3225_v17 = vld [vmem:[#allocation2 + $0xd0] sm:$0xff] }
 0x2d3   : > { %v3224_v16 = vld [vmem:[#allocation2 + $0xc8] sm:$0xff]  ;;  %v3251_v21 = vmax.f32 %v3223_v15, 0.0  ;;  %v3226_v22 = vld [vmem:[#allocation2 + $0xd8] sm:$0xff]  ;;  %v3253_v48 = vmax.f32 %v3225_v17, 0.0 }
 0x2d4   : > { %v3252_v47 = vmax.f32 %v3224_v16, 0.0  ;;  %v3254_v25 = vmax.f32 %v3226_v22, 0.0 }
 0x2d6   : > { %v3846_v52 = vpack.c.bf16 %v3252_v47, %v3251_v21  ;;  %v3847_v26 = vpack.c.bf16 %v3254_v25, %v3253_v48 }
 0x2d8   : > { %3355 = vst [vmem:[%s5208_s23 + $0x60] sm:$0xff] %v3846_v52  ;;  %3356 = vst [vmem:[%s5208_s23 + $0x68] sm:$0xff] %v3847_v26 }
 0x2d9 PF: > { %3363 = sbr.rel (!%p4603_p12) target bundleno = 738 (0x2e2), region = 86  ;;  %s3848_s9 = sshll.u32 (%p4603_p12), %s4479_s16, 4  ;;  %v3386_v29 = vld [vmem:[%s5208_s23 + $0x10] sm:$0xff] (%p4603_p12)  ;;  %v3388_v30 = vld [vmem:[%s5208_s23 + $0x18] sm:$0xff] (%p4603_p12)  ;;  %v3390_v31 = vld [vmem:[%s5208_s23 + $0x20] sm:$0xff] (%p4603_p12) }
 0x2da   : > { %s3369_s15 = scalar_lea.vmem (%p4603_p12), %s5601_s2, %s3848_s9  ;;  %v3392_v32 = vld [vmem:[%s5208_s23 + $0x28] sm:$0xff] (%p4603_p12)  ;;  %v3394_v33 = vld [vmem:[%s5208_s23 + $0x30] sm:$0xff] (%p4603_p12)  ;;  %v3396_v34 = vld [vmem:[%s5208_s23 + $0x38] sm:$0xff] (%p4603_p12) }
 0x2db   : > { %3387 = vst [vmem:[%s3369_s15 + $0x20] sm:$0xff] (%p4603_p12), %v3386_v29  ;;  %3389 = vst [vmem:[%s3369_s15 + $0x28] sm:$0xff] (%p4603_p12), %v3388_v30  ;;  %v3398_v35 = vld [vmem:[%s5208_s23 + $0x40] sm:$0xff] (%p4603_p12)  ;;  %v3400_v36 = vld [vmem:[%s5208_s23 + $0x48] sm:$0xff] (%p4603_p12) }
 0x2dc   : > { %3391 = vst [vmem:[%s3369_s15 + $0x40] sm:$0xff] (%p4603_p12), %v3390_v31  ;;  %3393 = vst [vmem:[%s3369_s15 + $0x48] sm:$0xff] (%p4603_p12), %v3392_v32  ;;  %v3402_v37 = vld [vmem:[%s5208_s23 + $0x50] sm:$0xff] (%p4603_p12)  ;;  %v3404_v38 = vld [vmem:[%s5208_s23 + $0x58] sm:$0xff] (%p4603_p12) }
 0x2dd   : > { %3395 = vst [vmem:[%s3369_s15 + $0x60] sm:$0xff] (%p4603_p12), %v3394_v33  ;;  %3397 = vst [vmem:[%s3369_s15 + $0x68] sm:$0xff] (%p4603_p12), %v3396_v34 }
 0x2de   : > { %3399 = vst [vmem:[%s3369_s15 + $0x80] sm:$0xff] (%p4603_p12), %v3398_v35  ;;  %3401 = vst [vmem:[%s3369_s15 + $0x88] sm:$0xff] (%p4603_p12), %v3400_v36 }
 0x2df   : > { %3403 = vst [vmem:[%s3369_s15 + $0xa0] sm:$0xff] (%p4603_p12), %v3402_v37  ;;  %3405 = vst [vmem:[%s3369_s15 + $0xa8] sm:$0xff] (%p4603_p12), %v3404_v38  ;;  %v3406_v39 = vld [vmem:[%s5208_s23 + $0x60] sm:$0xff] (%p4603_p12)  ;;  %v3408_v40 = vld [vmem:[%s5208_s23 + $0x68] sm:$0xff] (%p4603_p12) }
 0x2e0   : > { %v3382_v27 = vld [vmem:[%s5208_s23] sm:$0xff]  ;;  %v3384_v28 = vld [vmem:[%s5208_s23 + $0x8] sm:$0xff]  ;;  %3407 = vst [vmem:[%s3369_s15 + $0xc0] sm:$0xff] %v3406_v39  ;;  %3409 = vst [vmem:[%s3369_s15 + $0xc8] sm:$0xff] %v3408_v40 }
 0x2e1   : > { %3383 = vst [vmem:[%s3369_s15] sm:$0xff] %v3382_v27  ;;  %3385 = vst [vmem:[%s3369_s15 + $0x8] sm:$0xff] %v3384_v28 }
 0x2e2 PF: > { %s12_s19 = sadd.s32 1, %s4491_s19   ;;  %s5607_s9 = smov %s4455_s10 }
 0x2e3   : > { %p9_p5 = scmp.ge.s32.totalorder %s12_s19, 6   ;;  %s5608_s10 = smov %s4601_s5 }
 0x2e4   : > { %s5609_s11 = smov %s4463_s12  ;;  %s5610_s12 = smov %s4598_s4 }
 0x2e5   : > { %s5611_s13 = smov %s4471_s14  ;;  %s5612_s14 = smov %s4584_s27 }
 0x2e6   : > { %s5613_s15 = smov %s4483_s17  ;;  %s5614_s16 = smov %s4487_s18 }
 0x2e7   : > { %s5615_s17 = smov %s5618_s21  ;;  %s5616_s18 = smov %s5622_s22 }
 0x2e8   :  { %11 = sbr.rel (!%p9_p5) target bundleno = 8 (0x8), region = 148 }

// kernel: generator_forward.7
= control target key start
LH: loop header
LB: loop body
LE: loop exit
PB: predicated region body
PF: predicated region fallthrough
CT: control target
= control target key end

     0   :  { %s6245_s1 = inlined_call_operand.vmem [shape: bf16[1024,512], index: 1, kind: input, shape index: {}]   ;;  %s6246_s0 = inlined_call_operand.vmem [shape: bf16[168,1024], index: 0, kind: input, shape index: {}]   ;;  %s6247_s2 = inlined_call_operand.vmem [shape: bf16[168,512], index: 2, kind: output, shape index: {}]  }
   0x1   :  { %v4692_v0 = vld [vmem:[%s6245_s1 + $0x4] ss:$16 sps:$4 sm:$0xff]   ;;  %v4694_v1 = vld [vmem:[%s6245_s1 + $0xc] ss:$16 sps:$4 sm:$0xff]   ;;  %v4696_v2 = vld [vmem:[%s6245_s1] ss:$16 sps:$4 sm:$0xff]  }
   0x2   :  { %2231 = vmatprep.subr.bf16.mxu0 %v4692_v0  ;;  %v4697_v3 = vld [vmem:[%s6245_s1 + $0x8] ss:$16 sps:$4 sm:$0xff]   ;;  %2795 = vmatprep.subr.bf16.mxu1 %v4694_v1  ;;  %v4698_v4 = vld [vmem:[%s6245_s1 + $0x24] ss:$16 sps:$4 sm:$0xff]   ;;  %v4700_v5 = vld [vmem:[%s6245_s1 + $0x2c] ss:$16 sps:$4 sm:$0xff]  }
   0x3   :  { %2232 = vmatpush1.bf16.msra.mxu0 %v4696_v2  ;;  %2796 = vmatpush1.bf16.msra.mxu1 %v4697_v3  ;;  %v4702_v6 = vld [vmem:[%s6245_s1 + $0x20] ss:$16 sps:$4 sm:$0xff]   ;;  %v4703_v7 = vld [vmem:[%s6245_s1 + $0x28] ss:$16 sps:$4 sm:$0xff]   ;;  %v4704_v8 = vld [vmem:[%s6245_s1 + $0x44] ss:$16 sps:$4 sm:$0xff]  }
   0x4   :  { %2233 = vmatprep.subr.bf16.mxu0 %v4698_v4  ;;  %2797 = vmatprep.subr.bf16.mxu1 %v4700_v5  ;;  %v4706_v9 = vld [vmem:[%s6245_s1 + $0x4c] ss:$16 sps:$4 sm:$0xff]   ;;  %v4708_v10 = vld [vmem:[%s6245_s1 + $0x40] ss:$16 sps:$4 sm:$0xff]   ;;  %v4709_v11 = vld [vmem:[%s6245_s1 + $0x48] ss:$16 sps:$4 sm:$0xff]  }
   0x5   :  { %v4710_v12 = vld [vmem:[%s6245_s1 + $0x64] ss:$16 sps:$4 sm:$0xff]   ;;  %v4712_v13 = vld [vmem:[%s6245_s1 + $0x6c] ss:$16 sps:$4 sm:$0xff]   ;;  %v4714_v14 = vld [vmem:[%s6245_s1 + $0x60] ss:$16 sps:$4 sm:$0xff]  }
   0x6   :  { %v4715_v15 = vld [vmem:[%s6245_s1 + $0x68] ss:$16 sps:$4 sm:$0xff]   ;;  %v4716_v16 = vld [vmem:[%s6245_s1 + $0x84] ss:$16 sps:$4 sm:$0xff]   ;;  %v4718_v17 = vld [vmem:[%s6245_s1 + $0x8c] ss:$16 sps:$4 sm:$0xff]  }
   0x7   :  { %2234 = vmatpush1.bf16.msra.mxu0 %v4702_v6  ;;  %2798 = vmatpush1.bf16.msra.mxu1 %v4703_v7  ;;  %v4720_v18 = vld [vmem:[%s6245_s1 + $0x80] ss:$16 sps:$4 sm:$0xff]   ;;  %v4721_v19 = vld [vmem:[%s6245_s1 + $0x88] ss:$16 sps:$4 sm:$0xff]   ;;  %v4722_v20 = vld [vmem:[%s6245_s1 + $0xa4] ss:$16 sps:$4 sm:$0xff]  }
   0x8   :  { %2235 = vmatprep.subr.bf16.mxu0 %v4704_v8  ;;  %2799 = vmatprep.subr.bf16.mxu1 %v4706_v9  ;;  %v4724_v21 = vld [vmem:[%s6245_s1 + $0xac] ss:$16 sps:$4 sm:$0xff]   ;;  %v4726_v22 = vld [vmem:[%s6245_s1 + $0xa0] ss:$16 sps:$4 sm:$0xff]   ;;  %v4727_v23 = vld [vmem:[%s6245_s1 + $0xa8] ss:$16 sps:$4 sm:$0xff]  }
   0x9   :  { %v4728_v24 = vld [vmem:[%s6245_s1 + $0xc4] ss:$16 sps:$4 sm:$0xff]   ;;  %v4730_v25 = vld [vmem:[%s6245_s1 + $0xcc] ss:$16 sps:$4 sm:$0xff]   ;;  %v4732_v26 = vld [vmem:[%s6245_s1 + $0xc0] ss:$16 sps:$4 sm:$0xff]  }
   0xa   :  { %v4733_v27 = vld [vmem:[%s6245_s1 + $0xc8] ss:$16 sps:$4 sm:$0xff]   ;;  %v4734_v28 = vld [vmem:[%s6245_s1 + $0xe4] ss:$16 sps:$4 sm:$0xff]   ;;  %v4736_v29 = vld [vmem:[%s6245_s1 + $0xec] ss:$16 sps:$4 sm:$0xff]  }
   0xb   :  { %2236 = vmatpush1.bf16.msra.mxu0 %v4708_v10  ;;  %2800 = vmatpush1.bf16.msra.mxu1 %v4709_v11  ;;  %v4738_v30 = vld [vmem:[%s6245_s1 + $0xe0] ss:$16 sps:$4 sm:$0xff]   ;;  %v4739_v31 = vld [vmem:[%s6245_s1 + $0xe8] ss:$16 sps:$4 sm:$0xff]   ;;  %v4740_v32 = vld [vmem:[%s6245_s1 + $0x104] ss:$16 sps:$4 sm:$0xff]  }
   0xc   :  { %2237 = vmatprep.subr.bf16.mxu0 %v4710_v12  ;;  %2801 = vmatprep.subr.bf16.mxu1 %v4712_v13  ;;  %v4742_v33 = vld [vmem:[%s6245_s1 + $0x10c] ss:$16 sps:$4 sm:$0xff]   ;;  %v4744_v34 = vld [vmem:[%s6245_s1 + $0x100] ss:$16 sps:$4 sm:$0xff]   ;;  %v4745_v35 = vld [vmem:[%s6245_s1 + $0x108] ss:$16 sps:$4 sm:$0xff]  }
   0xd   :  { %v4746_v36 = vld [vmem:[%s6245_s1 + $0x124] ss:$16 sps:$4 sm:$0xff]   ;;  %v4748_v37 = vld [vmem:[%s6245_s1 + $0x12c] ss:$16 sps:$4 sm:$0xff]   ;;  %v4750_v38 = vld [vmem:[%s6245_s1 + $0x120] ss:$16 sps:$4 sm:$0xff]  }
   0xe   :  { %v4751_v39 = vld [vmem:[%s6245_s1 + $0x128] ss:$16 sps:$4 sm:$0xff]   ;;  %v4752_v40 = vld [vmem:[%s6245_s1 + $0x144] ss:$16 sps:$4 sm:$0xff]   ;;  %v4754_v41 = vld [vmem:[%s6245_s1 + $0x14c] ss:$16 sps:$4 sm:$0xff]  }
   0xf   :  { %2238 = vmatpush1.bf16.msra.mxu0 %v4714_v14  ;;  %2802 = vmatpush1.bf16.msra.mxu1 %v4715_v15  ;;  %v4756_v42 = vld [vmem:[%s6245_s1 + $0x140] ss:$16 sps:$4 sm:$0xff]   ;;  %v4757_v43 = vld [vmem:[%s6245_s1 + $0x148] ss:$16 sps:$4 sm:$0xff]   ;;  %v4758_v44 = vld [vmem:[%s6245_s1 + $0x164] ss:$16 sps:$4 sm:$0xff]  }
  0x10   :  { %2239 = vmatprep.subr.bf16.mxu0 %v4716_v16  ;;  %2803 = vmatprep.subr.bf16.mxu1 %v4718_v17  ;;  %v4760_v45 = vld [vmem:[%s6245_s1 + $0x16c] ss:$16 sps:$4 sm:$0xff]   ;;  %v183_v46 = vld [vmem:[%s6246_s0] sm:$0xff]  ;;  %v4763_v49 = vld [vmem:[%s6245_s1 + $0x168] ss:$16 sps:$4 sm:$0xff]  }
  0x11   :  { %v187_v47 = vld [vmem:[%s6246_s0 + $0x20] sm:$0xff]  ;;  %v4766_v52 = vld [vmem:[%s6245_s1 + $0x18c] ss:$16 sps:$4 sm:$0xff]   ;;  %v4769_v54 = vld [vmem:[%s6245_s1 + $0x188] ss:$16 sps:$4 sm:$0xff]  }
  0x12   :  { %v4762_v48 = vld [vmem:[%s6245_s1 + $0x160] ss:$16 sps:$4 sm:$0xff]   ;;  %v4001_v50 = vcombine.high %v183_v46, %v187_v47  ;;  %v4764_v51 = vld [vmem:[%s6245_s1 + $0x184] ss:$16 sps:$4 sm:$0xff]   ;;  %v4772_v56 = vld [vmem:[%s6245_s1 + $0x1ac] ss:$16 sps:$4 sm:$0xff]   ;;  %v4000_v6 = vcombine.low %v183_v46, %v187_v47 }
  0x13   :  { %2240 = vmatpush1.bf16.msra.mxu0 %v4720_v18  ;;  %2804 = vmatpush1.bf16.msra.mxu1 %v4721_v19  ;;  %v4768_v53 = vld [vmem:[%s6245_s1 + $0x180] ss:$16 sps:$4 sm:$0xff]   ;;  %v4770_v55 = vld [vmem:[%s6245_s1 + $0x1a4] ss:$16 sps:$4 sm:$0xff]   ;;  %v4775_v58 = vld [vmem:[%s6245_s1 + $0x1a8] ss:$16 sps:$4 sm:$0xff]  }
  0x14   :  { %2241 = vmatprep.subr.bf16.mxu0 %v4722_v20  ;;  %2805 = vmatprep.subr.bf16.mxu1 %v4724_v21  ;;  %v4774_v57 = vld [vmem:[%s6245_s1 + $0x1a0] ss:$16 sps:$4 sm:$0xff]   ;;  %v4776_v59 = vld [vmem:[%s6245_s1 + $0x1c4] ss:$16 sps:$4 sm:$0xff]   ;;  %v4778_v60 = vld [vmem:[%s6245_s1 + $0x1cc] ss:$16 sps:$4 sm:$0xff]  }
  0x15   :  { %2263 = vmatprep.mubr.bf16.mxu0 %v4001_v50  ;;  %2827 = vmatprep.mubr.bf16.mxu1 %v4001_v50  ;;  %v4780_v61 = vld [vmem:[%s6245_s1 + $0x1c0] ss:$16 sps:$4 sm:$0xff]   ;;  %v4781_v62 = vld [vmem:[%s6245_s1 + $0x1c8] ss:$16 sps:$4 sm:$0xff]   ;;  %v4782_v63 = vld [vmem:[%s6245_s1 + $0x1e4] ss:$16 sps:$4 sm:$0xff]  }
  0x16   :  { %v4784_v0 = vld [vmem:[%s6245_s1 + $0x1ec] ss:$16 sps:$4 sm:$0xff]   ;;  %v4786_v1 = vld [vmem:[%s6245_s1 + $0x1e0] ss:$16 sps:$4 sm:$0xff]   ;;  %v4787_v2 = vld [vmem:[%s6245_s1 + $0x1e8] ss:$16 sps:$4 sm:$0xff]  }
  0x17   :  { %2242 = vmatpush1.bf16.msra.mxu0 %v4726_v22  ;;  %2806 = vmatpush1.bf16.msra.mxu1 %v4727_v23  ;;  %v4790_v3 = vld [vmem:[%s6245_s1 + $0x204] ss:$16 sps:$4 sm:$0xff]   ;;  %v4793_v4 = vld [vmem:[%s6245_s1 + $0x20c] ss:$16 sps:$4 sm:$0xff]   ;;  %v4788_v8 = vld [vmem:[%s6245_s1 + $0x200] ss:$16 sps:$4 sm:$0xff]  }
  0x18   :  { %2243 = vmatprep.subr.bf16.mxu0 %v4728_v24  ;;  %2807 = vmatprep.subr.bf16.mxu1 %v4730_v25  ;;  %v191_v5 = vld [vmem:[%s6246_s0 + $0x40] sm:$0xff]  ;;  %v4791_v9 = vld [vmem:[%s6245_s1 + $0x208] ss:$16 sps:$4 sm:$0xff]   ;;  %v4799_v11 = vld [vmem:[%s6245_s1 + $0x22c] ss:$16 sps:$4 sm:$0xff]  }
  0x19   :  { %v195_v7 = vld [vmem:[%s6246_s0 + $0x60] sm:$0xff]  ;;  %v4797_v14 = vld [vmem:[%s6245_s1 + $0x228] ss:$16 sps:$4 sm:$0xff]   ;;  %v4805_v16 = vld [vmem:[%s6245_s1 + $0x24c] ss:$16 sps:$4 sm:$0xff]  }
  0x1a   :  { %v4796_v10 = vld [vmem:[%s6245_s1 + $0x224] ss:$16 sps:$4 sm:$0xff]   ;;  %v4009_v12 = vcombine.high %v191_v5, %v195_v7  ;;  %v4794_v13 = vld [vmem:[%s6245_s1 + $0x220] ss:$16 sps:$4 sm:$0xff]   ;;  %v4008_v19 = vcombine.low %v191_v5, %v195_v7  ;;  %v4803_v21 = vld [vmem:[%s6245_s1 + $0x248] ss:$16 sps:$4 sm:$0xff]  }
  0x1b   :  { %2244 = vmatpush1.bf16.msra.mxu0 %v4732_v26  ;;  %2808 = vmatpush1.bf16.msra.mxu1 %v4733_v27  ;;  %v4802_v15 = vld [vmem:[%s6245_s1 + $0x244] ss:$16 sps:$4 sm:$0xff]   ;;  %v4800_v20 = vld [vmem:[%s6245_s1 + $0x240] ss:$16 sps:$4 sm:$0xff]   ;;  %v4809_v25 = vld [vmem:[%s6245_s1 + $0x268] ss:$16 sps:$4 sm:$0xff]  }
  0x1c   :  { %2245 = vmatprep.subr.bf16.mxu0 %v4734_v28  ;;  %2809 = vmatprep.subr.bf16.mxu1 %v4736_v29  ;;  %v199_v17 = vld [vmem:[%s6246_s0 + $0x80] sm:$0xff]  ;;  %v4811_v26 = vld [vmem:[%s6245_s1 + $0x26c] ss:$16 sps:$4 sm:$0xff]   ;;  %v4827_v46 = vld [vmem:[%s6245_s1 + $0x2c8] ss:$16 sps:$4 sm:$0xff]  }
  0x1d   :  { %v203_v18 = vld [vmem:[%s6246_s0 + $0xa0] sm:$0xff]  ;;  %v4817_v28 = vld [vmem:[%s6245_s1 + $0x28c] ss:$16 sps:$4 sm:$0xff]  }
  0x1e   :  { %v4017_v22 = vcombine.high %v199_v17, %v203_v18  ;;  %v4808_v23 = vld [vmem:[%s6245_s1 + $0x264] ss:$16 sps:$4 sm:$0xff]   ;;  %v4806_v24 = vld [vmem:[%s6245_s1 + $0x260] ss:$16 sps:$4 sm:$0xff]  }
  0x1f   :  { %2246 = vmatpush1.bf16.msra.mxu0 %v4738_v30  ;;  %2810 = vmatpush1.bf16.msra.mxu1 %v4739_v31  ;;  %v4814_v27 = vld [vmem:[%s6245_s1 + $0x284] ss:$16 sps:$4 sm:$0xff]   ;;  %v4016_v31 = vcombine.low %v199_v17, %v203_v18  ;;  %v4848_v5 = vld [vmem:[%s6245_s1 + $0x340] ss:$16 sps:$4 sm:$0xff]   ;;  %v4863_v18 = vld [vmem:[%s6245_s1 + $0x388] ss:$16 sps:$4 sm:$0xff]  }
  0x20   :  { %2247 = vmatprep.subr.bf16.mxu0 %v4740_v32  ;;  %2811 = vmatprep.subr.bf16.mxu1 %v4742_v33  ;;  %v207_v29 = vld [vmem:[%s6246_s0 + $0xc0] sm:$0xff] }
  0x21   :  { %v211_v30 = vld [vmem:[%s6246_s0 + $0xe0] sm:$0xff] }
  0x22   :  { %v4812_v32 = vld [vmem:[%s6245_s1 + $0x280] ss:$16 sps:$4 sm:$0xff]   ;;  %v4025_v33 = vcombine.high %v207_v29, %v211_v30  ;;  %v4832_v47 = vld [vmem:[%s6245_s1 + $0x2e4] ss:$16 sps:$4 sm:$0xff]  }
  0x23   :  { %2248 = vmatpush1.bf16.msra.mxu0 %v4744_v34  ;;  %2812 = vmatpush1.bf16.msra.mxu1 %v4745_v35  ;;  %v4815_v34 = vld [vmem:[%s6245_s1 + $0x288] ss:$16 sps:$4 sm:$0xff]   ;;  %v4820_v35 = vld [vmem:[%s6245_s1 + $0x2a4] ss:$16 sps:$4 sm:$0xff]   ;;  %v4860_v17 = vld [vmem:[%s6245_s1 + $0x380] ss:$16 sps:$4 sm:$0xff]  }
  0x24   :  { %2249 = vmatprep.subr.bf16.mxu0 %v4746_v36  ;;  %2813 = vmatprep.subr.bf16.mxu1 %v4748_v37  ;;  %v4823_v36 = vld [vmem:[%s6245_s1 + $0x2ac] ss:$16 sps:$4 sm:$0xff]   ;;  %v4818_v37 = vld [vmem:[%s6245_s1 + $0x2a0] ss:$16 sps:$4 sm:$0xff]   ;;  %v4856_v7 = vld [vmem:[%s6245_s1 + $0x364] ss:$16 sps:$4 sm:$0xff]  }
  0x25   :  { %v227_v50 = vld [vmem:[%s6246_s0 + $0x160] sm:$0xff] }
  0x27   :  { %2250 = vmatpush1.bf16.msra.mxu0 %v4750_v38  ;;  %2814 = vmatpush1.bf16.msra.mxu1 %v4751_v39  ;;  %v4821_v38 = vld [vmem:[%s6245_s1 + $0x2a8] ss:$16 sps:$4 sm:$0xff]   ;;  %v215_v39 = vld [vmem:[%s6246_s0 + $0x100] sm:$0xff] }
  0x28   :  { %2251 = vmatprep.subr.bf16.mxu0 %v4752_v40  ;;  %2815 = vmatprep.subr.bf16.mxu1 %v4754_v41  ;;  %v219_v40 = vld [vmem:[%s6246_s0 + $0x120] sm:$0xff] }
  0x29   :  { %v4826_v41 = vld [vmem:[%s6245_s1 + $0x2c4] ss:$16 sps:$4 sm:$0xff]  }
  0x2b   :  { %2252 = vmatpush1.bf16.msra.mxu0 %v4756_v42  ;;  %2816 = vmatpush1.bf16.msra.mxu1 %v4757_v43  ;;  %v4829_v42 = vld [vmem:[%s6245_s1 + $0x2cc] ss:$16 sps:$4 sm:$0xff]   ;;  %v4024_v43 = vcombine.low %v207_v29, %v211_v30  ;;  %v4872_v29 = vld [vmem:[%s6245_s1 + $0x3c0] ss:$16 sps:$4 sm:$0xff]   ;;  %v4875_v30 = vld [vmem:[%s6245_s1 + $0x3c8] ss:$16 sps:$4 sm:$0xff]  }
  0x2c   :  { %2253 = vmatprep.subr.bf16.mxu0 %v4758_v44  ;;  %2817 = vmatprep.subr.bf16.mxu1 %v4760_v45  ;;  %v4033_v44 = vcombine.high %v215_v39, %v219_v40  ;;  %v4824_v45 = vld [vmem:[%s6245_s1 + $0x2c0] ss:$16 sps:$4 sm:$0xff]  }
  0x2f   :  { %2254 = vmatpush1.bf16.msra.mxu0 %v4762_v48  ;;  %2818 = vmatpush1.bf16.msra.mxu1 %v4763_v49  ;;  %v4835_v48 = vld [vmem:[%s6245_s1 + $0x2ec] ss:$16 sps:$4 sm:$0xff]   ;;  %v223_v49 = vld [vmem:[%s6246_s0 + $0x140] sm:$0xff] }
  0x30   :  { %2255 = vmatprep.subr.bf16.mxu0 %v4764_v51  ;;  %2819 = vmatprep.subr.bf16.mxu1 %v4766_v52  ;;  %v4830_v51 = vld [vmem:[%s6245_s1 + $0x2e0] ss:$16 sps:$4 sm:$0xff]   ;;  %v4833_v52 = vld [vmem:[%s6245_s1 + $0x2e8] ss:$16 sps:$4 sm:$0xff]  }
  0x33   :  { %2256 = vmatpush1.bf16.msra.mxu0 %v4768_v53  ;;  %2820 = vmatpush1.bf16.msra.mxu1 %v4769_v54  ;;  %v4838_v53 = vld [vmem:[%s6245_s1 + $0x304] ss:$16 sps:$4 sm:$0xff]   ;;  %v4841_v54 = vld [vmem:[%s6245_s1 + $0x30c] ss:$16 sps:$4 sm:$0xff]  }
  0x34   :  { %2257 = vmatprep.subr.bf16.mxu0 %v4770_v55  ;;  %2821 = vmatprep.subr.bf16.mxu1 %v4772_v56  ;;  %v4032_v55 = vcombine.low %v215_v39, %v219_v40  ;;  %v4041_v56 = vcombine.high %v223_v49, %v227_v50 }
  0x37   :  { %2258 = vmatpush1.bf16.msra.mxu0 %v4774_v57  ;;  %2822 = vmatpush1.bf16.msra.mxu1 %v4775_v58  ;;  %v4836_v57 = vld [vmem:[%s6245_s1 + $0x300] ss:$16 sps:$4 sm:$0xff]   ;;  %v4839_v58 = vld [vmem:[%s6245_s1 + $0x308] ss:$16 sps:$4 sm:$0xff]  }
  0x38   :  { %2259 = vmatprep.subr.bf16.mxu0 %v4776_v59  ;;  %2823 = vmatprep.subr.bf16.mxu1 %v4778_v60  ;;  %v4844_v59 = vld [vmem:[%s6245_s1 + $0x324] ss:$16 sps:$4 sm:$0xff]   ;;  %v4847_v60 = vld [vmem:[%s6245_s1 + $0x32c] ss:$16 sps:$4 sm:$0xff]  }
  0x3b   :  { %2260 = vmatpush1.bf16.msra.mxu0 %v4780_v61  ;;  %2824 = vmatpush1.bf16.msra.mxu1 %v4781_v62  ;;  %v231_v61 = vld [vmem:[%s6246_s0 + $0x180] sm:$0xff] }
  0x3c   :  { %2261 = vmatprep.subr.bf16.mxu0 %v4782_v63  ;;  %2825 = vmatprep.subr.bf16.mxu1 %v4784_v0  ;;  %v235_v62 = vld [vmem:[%s6246_s0 + $0x1a0] sm:$0xff]  ;;  %v4845_v0 = vld [vmem:[%s6245_s1 + $0x328] ss:$16 sps:$4 sm:$0xff]  }
  0x3d   :  { %v4842_v63 = vld [vmem:[%s6245_s1 + $0x320] ss:$16 sps:$4 sm:$0xff]  }
  0x3f   :  { %2262 = vmatpush1.bf16.msra.mxu0 %v4786_v1  ;;  %2826 = vmatpush1.bf16.msra.mxu1 %v4787_v2  ;;  %v4850_v1 = vld [vmem:[%s6245_s1 + $0x344] ss:$16 sps:$4 sm:$0xff]   ;;  %v4853_v2 = vld [vmem:[%s6245_s1 + $0x34c] ss:$16 sps:$4 sm:$0xff]  }
  0x40   :  { %2372 = vmatprep.subr.bf16.mxu0 %v4790_v3  ;;  %2936 = vmatprep.subr.bf16.mxu1 %v4793_v4  ;;  %v4040_v3 = vcombine.low %v223_v49, %v227_v50  ;;  %v4049_v4 = vcombine.high %v231_v61, %v235_v62  ;;  %v4889_v50 = vld [vmem:[%s6245_s1 + $0x408] ss:$16 sps:$4 sm:$0xff]  }
  0x42   :  { %2264 = vmatmul.mubr.bf16.vlgmr.msra.gmra.mrb[0].mxu0 %v4000_v6  ;;  %2828 = vmatmul.mubr.bf16.vlgmr.msra.gmra.mrb[0].mxu1 %v4000_v6  ;;  %v4851_v6 = vld [vmem:[%s6245_s1 + $0x348] ss:$16 sps:$4 sm:$0xff]  }
  0x43   :  { %2373 = vmatpush1.bf16.msra.mxu0 %v4788_v8  ;;  %2937 = vmatpush1.bf16.msra.mxu1 %v4791_v9  ;;  %v4859_v8 = vld [vmem:[%s6245_s1 + $0x36c] ss:$16 sps:$4 sm:$0xff]   ;;  %v239_v9 = vld [vmem:[%s6246_s0 + $0x1c0] sm:$0xff] }
  0x44   :  { %2374 = vmatprep.subr.bf16.mxu0 %v4796_v10  ;;  %2938 = vmatprep.subr.bf16.mxu1 %v4799_v11  ;;  %v243_v10 = vld [vmem:[%s6246_s0 + $0x1e0] sm:$0xff] }
  0x45   :  { %2273 = vmatprep.mubr.bf16.mxu0 %v4009_v12  ;;  %2837 = vmatprep.mubr.bf16.mxu1 %v4009_v12  ;;  %v4854_v11 = vld [vmem:[%s6245_s1 + $0x360] ss:$16 sps:$4 sm:$0xff]   ;;  %v4857_v12 = vld [vmem:[%s6245_s1 + $0x368] ss:$16 sps:$4 sm:$0xff]  }
  0x47   :  { %2375 = vmatpush1.bf16.msra.mxu0 %v4794_v13  ;;  %2939 = vmatpush1.bf16.msra.mxu1 %v4797_v14  ;;  %v4862_v13 = vld [vmem:[%s6245_s1 + $0x384] ss:$16 sps:$4 sm:$0xff]   ;;  %v4865_v14 = vld [vmem:[%s6245_s1 + $0x38c] ss:$16 sps:$4 sm:$0xff]  }
  0x48   :  { %2376 = vmatprep.subr.bf16.mxu0 %v4802_v15  ;;  %2940 = vmatprep.subr.bf16.mxu1 %v4805_v16  ;;  %v4048_v15 = vcombine.low %v231_v61, %v235_v62  ;;  %v4057_v16 = vcombine.high %v239_v9, %v243_v10  ;;  %v204_v61 = vld [vmem:[%s6246_s0 + $0xa8] sm:$0xff] }
  0x4a   :  { %2274 = vmatmul.mubr.bf16.gmra.mrb[4].mxu0 %v4008_v19  ;;  %2838 = vmatmul.mubr.bf16.gmra.mrb[4].mxu1 %v4008_v19  ;;  %v4868_v19 = vld [vmem:[%s6245_s1 + $0x3a4] ss:$16 sps:$4 sm:$0xff]  }
  0x4b   :  { %2377 = vmatpush1.bf16.msra.mxu0 %v4800_v20  ;;  %2941 = vmatpush1.bf16.msra.mxu1 %v4803_v21  ;;  %v4871_v20 = vld [vmem:[%s6245_s1 + $0x3ac] ss:$16 sps:$4 sm:$0xff]   ;;  %v247_v21 = vld [vmem:[%s6246_s0 + $0x200] sm:$0xff] }
  0x4c   :  { %2283 = vmatprep.mubr.bf16.mxu0 %v4017_v22  ;;  %2847 = vmatprep.mubr.bf16.mxu1 %v4017_v22  ;;  %v251_v22 = vld [vmem:[%s6246_s0 + $0x220] sm:$0xff] }
  0x4d   :  { %2378 = vmatprep.subr.bf16.mxu0 %v4808_v23  ;;  %2942 = vmatprep.subr.bf16.mxu1 %v4811_v26  ;;  %v4866_v23 = vld [vmem:[%s6245_s1 + $0x3a0] ss:$16 sps:$4 sm:$0xff]   ;;  %v4877_v26 = vld [vmem:[%s6245_s1 + $0x3cc] ss:$16 sps:$4 sm:$0xff]   ;;  %v4064_v39 = vcombine.low %v247_v21, %v251_v22 }
  0x4f   :  { %2379 = vmatpush1.bf16.msra.mxu0 %v4806_v24  ;;  %2943 = vmatpush1.bf16.msra.mxu1 %v4809_v25  ;;  %v4869_v24 = vld [vmem:[%s6245_s1 + $0x3a8] ss:$16 sps:$4 sm:$0xff]   ;;  %v4874_v25 = vld [vmem:[%s6245_s1 + $0x3c4] ss:$16 sps:$4 sm:$0xff]  }
  0x50   :  { %2380 = vmatprep.subr.bf16.mxu0 %v4814_v27  ;;  %2944 = vmatprep.subr.bf16.mxu1 %v4817_v28  ;;  %v4056_v27 = vcombine.low %v239_v9, %v243_v10  ;;  %v4065_v28 = vcombine.high %v247_v21, %v251_v22  ;;  %v212_v9 = vld [vmem:[%s6246_s0 + $0xe8] sm:$0xff] }
  0x51   :  { %v4927_v21 = vld [vmem:[%s6245_s1 + $0x4cc] ss:$16 sps:$4 sm:$0xff]  }
  0x52   :  { %2284 = vmatmul.mubr.bf16.gmra.mrb[8].mxu0 %v4016_v31  ;;  %2848 = vmatmul.mubr.bf16.gmra.mrb[8].mxu1 %v4016_v31  ;;  %v4882_v31 = vld [vmem:[%s6245_s1 + $0x3e4] ss:$16 sps:$4 sm:$0xff]  }
  0x53   :  { %2293 = vmatprep.mubr.bf16.mxu0 %v4025_v33  ;;  %2381 = vmatpush1.bf16.msra.mxu0 %v4812_v32  ;;  %v4885_v32 = vld [vmem:[%s6245_s1 + $0x3ec] ss:$16 sps:$4 sm:$0xff]  }
  0x54   :  { %2857 = vmatprep.mubr.bf16.mxu1 %v4025_v33  ;;  %2945 = vmatpush1.bf16.msra.mxu1 %v4815_v34  ;;  %v255_v33 = vld [vmem:[%s6246_s0 + $0x240] sm:$0xff] }
  0x55   :  { %2382 = vmatprep.subr.bf16.mxu0 %v4820_v35  ;;  %2946 = vmatprep.subr.bf16.mxu1 %v4823_v36  ;;  %v259_v34 = vld [vmem:[%s6246_s0 + $0x260] sm:$0xff]  ;;  %v4883_v36 = vld [vmem:[%s6245_s1 + $0x3e8] ss:$16 sps:$4 sm:$0xff]  }
  0x56   :  { %v4880_v35 = vld [vmem:[%s6245_s1 + $0x3e0] ss:$16 sps:$4 sm:$0xff]   ;;  %v4073_v40 = vcombine.high %v255_v33, %v259_v34 }
  0x57   :  { %2383 = vmatpush1.bf16.msra.mxu0 %v4818_v37  ;;  %v4888_v37 = vld [vmem:[%s6245_s1 + $0x404] ss:$16 sps:$4 sm:$0xff]  }
  0x58   :  { %2947 = vmatpush1.bf16.msra.mxu1 %v4821_v38  ;;  %2384 = vmatprep.subr.bf16.mxu0 %v4826_v41  ;;  %v4891_v38 = vld [vmem:[%s6245_s1 + $0x40c] ss:$16 sps:$4 sm:$0xff]   ;;  %v263_v41 = vld [vmem:[%s6246_s0 + $0x280] sm:$0xff] }
  0x59   :  { %2948 = vmatprep.subr.bf16.mxu1 %v4829_v42  ;;  %v4072_v42 = vcombine.low %v255_v33, %v259_v34  ;;  %v4939_v33 = vld [vmem:[%s6245_s1 + $0x50c] ss:$16 sps:$4 sm:$0xff]  }
  0x5a   :  { %2294 = vmatmul.mubr.bf16.gmra.mrb[12].mxu0 %v4024_v43  ;;  %2858 = vmatmul.mubr.bf16.gmra.mrb[12].mxu1 %v4024_v43  ;;  %v4081_v43 = vcombine.high %v263_v41, %v263_v41 }
  0x5b   :  { %2303 = vmatprep.mubr.bf16.mxu0 %v4033_v44  ;;  %2867 = vmatprep.mubr.bf16.mxu1 %v4033_v44  ;;  %v184_v44 = vld [vmem:[%s6246_s0 + $0x8] sm:$0xff] }
  0x5c   :  { %2385 = vmatpush1.bf16.msra.mxu0 %v4824_v45  ;;  %2949 = vmatpush1.bf16.msra.mxu1 %v4827_v46  ;;  %v188_v45 = vld [vmem:[%s6246_s0 + $0x28] sm:$0xff]  ;;  %v4080_v46 = vcombine.low %v263_v41, %v263_v41 }
  0x5d   :  { %2386 = vmatprep.subr.bf16.mxu0 %v4832_v47  ;;  %2950 = vmatprep.subr.bf16.mxu1 %v4835_v48  ;;  %v4003_v47 = vcombine.high %v184_v44, %v188_v45  ;;  %v4886_v48 = vld [vmem:[%s6245_s1 + $0x400] ss:$16 sps:$4 sm:$0xff]   ;;  %v4002_v49 = vcombine.low %v184_v44, %v188_v45  ;;  %v236_v41 = vld [vmem:[%s6246_s0 + $0x1a8] sm:$0xff]  ;;  %v4948_v44 = vld [vmem:[%s6245_s1 + $0x544] ss:$16 sps:$4 sm:$0xff]  }
  0x5e   :  { %v4951_v45 = vld [vmem:[%s6245_s1 + $0x54c] ss:$16 sps:$4 sm:$0xff]  }
  0x60   :  { %2387 = vmatpush1.bf16.msra.mxu0 %v4830_v51  ;;  %2951 = vmatpush1.bf16.msra.mxu1 %v4833_v52  ;;  %v192_v51 = vld [vmem:[%s6246_s0 + $0x48] sm:$0xff] }
  0x61   :  { %2388 = vmatprep.subr.bf16.mxu0 %v4838_v53  ;;  %2952 = vmatprep.subr.bf16.mxu1 %v4841_v54  ;;  %v196_v52 = vld [vmem:[%s6246_s0 + $0x68] sm:$0xff]  ;;  %v4894_v53 = vld [vmem:[%s6245_s1 + $0x424] ss:$16 sps:$4 sm:$0xff]  }
  0x62   :  { %2304 = vmatmul.mubr.bf16.gmra.mrb[16].mxu0 %v4032_v55  ;;  %2868 = vmatmul.mubr.bf16.gmra.mrb[16].mxu1 %v4032_v55  ;;  %v4897_v54 = vld [vmem:[%s6245_s1 + $0x42c] ss:$16 sps:$4 sm:$0xff]   ;;  %v4011_v55 = vcombine.high %v192_v51, %v196_v52  ;;  %v4010_v62 = vcombine.low %v192_v51, %v196_v52 }
  0x63   :  { %2313 = vmatprep.mubr.bf16.mxu0 %v4041_v56  ;;  %2877 = vmatprep.mubr.bf16.mxu1 %v4041_v56  ;;  %v4892_v56 = vld [vmem:[%s6245_s1 + $0x420] ss:$16 sps:$4 sm:$0xff]   ;;  %v4957_v51 = vld [vmem:[%s6245_s1 + $0x56c] ss:$16 sps:$4 sm:$0xff]  }
  0x64   :  { %2389 = vmatpush1.bf16.msra.mxu0 %v4836_v57  ;;  %2953 = vmatpush1.bf16.msra.mxu1 %v4839_v58  ;;  %v4895_v57 = vld [vmem:[%s6245_s1 + $0x428] ss:$16 sps:$4 sm:$0xff]   ;;  %v4900_v58 = vld [vmem:[%s6245_s1 + $0x444] ss:$16 sps:$4 sm:$0xff]  }
  0x65   :  { %2390 = vmatprep.subr.bf16.mxu0 %v4844_v59  ;;  %2954 = vmatprep.subr.bf16.mxu1 %v4847_v60  ;;  %v4903_v59 = vld [vmem:[%s6245_s1 + $0x44c] ss:$16 sps:$4 sm:$0xff]  }
  0x66   :  { %v200_v60 = vld [vmem:[%s6246_s0 + $0x88] sm:$0xff] }
  0x67   :  { %v4018_v10 = vcombine.low %v200_v60, %v204_v61  ;;  %v240_v52 = vld [vmem:[%s6246_s0 + $0x1c8] sm:$0xff] }
  0x68   :  { %2391 = vmatpush1.bf16.msra.mxu0 %v4842_v63  ;;  %2955 = vmatpush1.bf16.msra.mxu1 %v4845_v0  ;;  %v4898_v63 = vld [vmem:[%s6245_s1 + $0x440] ss:$16 sps:$4 sm:$0xff]   ;;  %v4901_v0 = vld [vmem:[%s6245_s1 + $0x448] ss:$16 sps:$4 sm:$0xff]  }
  0x69   :  { %2392 = vmatprep.subr.bf16.mxu0 %v4850_v1  ;;  %2956 = vmatprep.subr.bf16.mxu1 %v4853_v2  ;;  %v4019_v1 = vcombine.high %v200_v60, %v204_v61  ;;  %v4906_v2 = vld [vmem:[%s6245_s1 + $0x464] ss:$16 sps:$4 sm:$0xff]   ;;  %v4958_v60 = vld [vmem:[%s6245_s1 + $0x580] ss:$16 sps:$4 sm:$0xff]   ;;  %v4961_v61 = vld [vmem:[%s6245_s1 + $0x588] ss:$16 sps:$4 sm:$0xff]  }
  0x6a   :  { %2314 = vmatmul.mubr.bf16.gmra.mrb[20].mxu0 %v4040_v3  ;;  %2878 = vmatmul.mubr.bf16.gmra.mrb[20].mxu1 %v4040_v3  ;;  %v4909_v3 = vld [vmem:[%s6245_s1 + $0x46c] ss:$16 sps:$4 sm:$0xff]  }
  0x6b   :  { %2323 = vmatprep.mubr.bf16.mxu0 %v4049_v4  ;;  %2887 = vmatprep.mubr.bf16.mxu1 %v4049_v4  ;;  %v4904_v4 = vld [vmem:[%s6245_s1 + $0x460] ss:$16 sps:$4 sm:$0xff]  }
  0x6c   :  { %2393 = vmatpush1.bf16.msra.mxu0 %v4848_v5  ;;  %2957 = vmatpush1.bf16.msra.mxu1 %v4851_v6  ;;  %v4907_v5 = vld [vmem:[%s6245_s1 + $0x468] ss:$16 sps:$4 sm:$0xff]   ;;  %v4912_v6 = vld [vmem:[%s6245_s1 + $0x484] ss:$16 sps:$4 sm:$0xff]  }
  0x6d   :  { %2394 = vmatprep.subr.bf16.mxu0 %v4856_v7  ;;  %2958 = vmatprep.subr.bf16.mxu1 %v4859_v8  ;;  %v4915_v7 = vld [vmem:[%s6245_s1 + $0x48c] ss:$16 sps:$4 sm:$0xff]  }
  0x6e   :  { %v208_v8 = vld [vmem:[%s6246_s0 + $0xc8] sm:$0xff] }
  0x6f   :  { %v4026_v22 = vcombine.low %v208_v8, %v212_v9 }
  0x70   :  { %2395 = vmatpush1.bf16.msra.mxu0 %v4854_v11  ;;  %2959 = vmatpush1.bf16.msra.mxu1 %v4857_v12  ;;  %v4910_v11 = vld [vmem:[%s6245_s1 + $0x480] ss:$16 sps:$4 sm:$0xff]   ;;  %v4027_v12 = vcombine.high %v208_v8, %v212_v9  ;;  %v4973_v9 = vld [vmem:[%s6245_s1 + $0x5c8] ss:$16 sps:$4 sm:$0xff]  }
  0x71   :  { %2396 = vmatprep.subr.bf16.mxu0 %v4862_v13  ;;  %2960 = vmatprep.subr.bf16.mxu1 %v4865_v14  ;;  %v4913_v13 = vld [vmem:[%s6245_s1 + $0x488] ss:$16 sps:$4 sm:$0xff]   ;;  %v4918_v14 = vld [vmem:[%s6245_s1 + $0x4a4] ss:$16 sps:$4 sm:$0xff]   ;;  %v4970_v8 = vld [vmem:[%s6245_s1 + $0x5c0] ss:$16 sps:$4 sm:$0xff]  }
  0x72   :  { %2324 = vmatmul.mubr.bf16.gmra.mrb[24].mxu0 %v4048_v15  ;;  %2888 = vmatmul.mubr.bf16.gmra.mrb[24].mxu1 %v4048_v15  ;;  %v4921_v15 = vld [vmem:[%s6245_s1 + $0x4ac] ss:$16 sps:$4 sm:$0xff]  }
  0x73   :  { %2333 = vmatprep.mubr.bf16.mxu0 %v4057_v16  ;;  %2897 = vmatprep.mubr.bf16.mxu1 %v4057_v16  ;;  %v4916_v16 = vld [vmem:[%s6245_s1 + $0x4a0] ss:$16 sps:$4 sm:$0xff]  }
  0x74   :  { %2397 = vmatpush1.bf16.msra.mxu0 %v4860_v17  ;;  %2961 = vmatpush1.bf16.msra.mxu1 %v4863_v18  ;;  %v4919_v17 = vld [vmem:[%s6245_s1 + $0x4a8] ss:$16 sps:$4 sm:$0xff]  }
  0x75   :  { %2398 = vmatprep.subr.bf16.mxu0 %v4868_v19  ;;  %2962 = vmatprep.subr.bf16.mxu1 %v4871_v20  ;;  %v216_v18 = vld [vmem:[%s6246_s0 + $0x108] sm:$0xff]  ;;  %v4924_v20 = vld [vmem:[%s6245_s1 + $0x4c4] ss:$16 sps:$4 sm:$0xff]  }
  0x76   :  { %v220_v19 = vld [vmem:[%s6246_s0 + $0x128] sm:$0xff] }
  0x77   :  { %v4034_v34 = vcombine.low %v216_v18, %v220_v19 }
  0x78   :  { %2399 = vmatpush1.bf16.msra.mxu0 %v4866_v23  ;;  %2963 = vmatpush1.bf16.msra.mxu1 %v4869_v24  ;;  %v4035_v23 = vcombine.high %v216_v18, %v220_v19  ;;  %v4922_v24 = vld [vmem:[%s6245_s1 + $0x4c0] ss:$16 sps:$4 sm:$0xff]  }
  0x79   :  { %2400 = vmatprep.subr.bf16.mxu0 %v4874_v25  ;;  %2964 = vmatprep.subr.bf16.mxu1 %v4877_v26  ;;  %v4925_v25 = vld [vmem:[%s6245_s1 + $0x4c8] ss:$16 sps:$4 sm:$0xff]   ;;  %v4930_v26 = vld [vmem:[%s6245_s1 + $0x4e4] ss:$16 sps:$4 sm:$0xff]  }
  0x7a   :  { %2334 = vmatmul.mubr.bf16.gmra.mrb[28].mxu0 %v4056_v27  ;;  %2898 = vmatmul.mubr.bf16.gmra.mrb[28].mxu1 %v4056_v27  ;;  %v4933_v27 = vld [vmem:[%s6245_s1 + $0x4ec] ss:$16 sps:$4 sm:$0xff]  }
  0x7b   :  { %2343 = vmatprep.mubr.bf16.mxu0 %v4065_v28  ;;  %2907 = vmatprep.mubr.bf16.mxu1 %v4065_v28  ;;  %v224_v28 = vld [vmem:[%s6246_s0 + $0x148] sm:$0xff] }
  0x7c   :  { %2401 = vmatpush1.bf16.msra.mxu0 %v4872_v29  ;;  %2965 = vmatpush1.bf16.msra.mxu1 %v4875_v30  ;;  %v228_v29 = vld [vmem:[%s6246_s0 + $0x168] sm:$0xff]  ;;  %v4928_v30 = vld [vmem:[%s6245_s1 + $0x4e0] ss:$16 sps:$4 sm:$0xff]  }
  0x7d   :  { %2402 = vmatprep.subr.bf16.mxu0 %v4882_v31  ;;  %2966 = vmatprep.subr.bf16.mxu1 %v4885_v32  ;;  %v4931_v31 = vld [vmem:[%s6245_s1 + $0x4e8] ss:$16 sps:$4 sm:$0xff]   ;;  %v4936_v32 = vld [vmem:[%s6245_s1 + $0x504] ss:$16 sps:$4 sm:$0xff]  }
  0x80   :  { %2403 = vmatpush1.bf16.msra.mxu0 %v4880_v35  ;;  %2967 = vmatpush1.bf16.msra.mxu1 %v4883_v36  ;;  %v4934_v35 = vld [vmem:[%s6245_s1 + $0x500] ss:$16 sps:$4 sm:$0xff]   ;;  %v4937_v36 = vld [vmem:[%s6245_s1 + $0x508] ss:$16 sps:$4 sm:$0xff]  }
  0x81   :  { %2513 = vmatprep.subr.bf16.mxu0 %v4888_v37  ;;  %3077 = vmatprep.subr.bf16.mxu1 %v4891_v38  ;;  %v4043_v37 = vcombine.high %v224_v28, %v228_v29  ;;  %v4942_v38 = vld [vmem:[%s6245_s1 + $0x524] ss:$16 sps:$4 sm:$0xff]  }
  0x82   :  { %2344 = vmatmul.mubr.bf16.gmra.mrb[32].mxu0 %v4064_v39  ;;  %2908 = vmatmul.mubr.bf16.gmra.mrb[32].mxu1 %v4064_v39  ;;  %v4945_v39 = vld [vmem:[%s6245_s1 + $0x52c] ss:$16 sps:$4 sm:$0xff]  }
  0x83   :  { %2353 = vmatprep.mubr.bf16.mxu0 %v4073_v40  ;;  %2917 = vmatprep.mubr.bf16.mxu1 %v4073_v40  ;;  %v232_v40 = vld [vmem:[%s6246_s0 + $0x188] sm:$0xff] }
  0x8a   :  { %2354 = vmatmul.mubr.bf16.gmra.mrb[36].mxu0 %v4072_v42  ;;  %2918 = vmatmul.mubr.bf16.gmra.mrb[36].mxu1 %v4072_v42  ;;  %v4940_v42 = vld [vmem:[%s6245_s1 + $0x520] ss:$16 sps:$4 sm:$0xff]  }
  0x8b   :  { %2363 = vmatprep.mubr.bf16.mxu0 %v4081_v43  ;;  %2927 = vmatprep.mubr.bf16.mxu1 %v4081_v43  ;;  %v4943_v43 = vld [vmem:[%s6245_s1 + $0x528] ss:$16 sps:$4 sm:$0xff]  }
  0x92   :  { %2364 = vmatmul.mubr.bf16.gmra.mrb[40].mxu0 %v4080_v46  ;;  %2928 = vmatmul.mubr.bf16.gmra.mrb[40].mxu1 %v4080_v46  ;;  %v4042_v46 = vcombine.low %v224_v28, %v228_v29  ;;  %v193_v28 = vld [vmem:[%s6246_s0 + $0x50] sm:$0xff] }
  0x93   :  { %2404 = vmatprep.mubr.bf16.mxu0 %v4003_v47  ;;  %2968 = vmatprep.mubr.bf16.mxu1 %v4003_v47  ;;  %v4051_v47 = vcombine.high %v232_v40, %v236_v41  ;;  %v197_v29 = vld [vmem:[%s6246_s0 + $0x70] sm:$0xff] }
  0x9a   :  { %2405 = vmatmul.mubr.bf16.vlgmr.msra.gmra.mrb[0].mxu0 %v4002_v49  ;;  %2969 = vmatmul.mubr.bf16.vlgmr.msra.gmra.mrb[0].mxu1 %v4002_v49  ;;  %v4949_v49 = vld [vmem:[%s6245_s1 + $0x548] ss:$16 sps:$4 sm:$0xff]  }
  0x9b   :  { %2514 = vmatpush1.bf16.msra.mxu0 %v4886_v48  ;;  %3078 = vmatpush1.bf16.msra.mxu1 %v4889_v50  ;;  %v4946_v48 = vld [vmem:[%s6245_s1 + $0x540] ss:$16 sps:$4 sm:$0xff]   ;;  %v4954_v50 = vld [vmem:[%s6245_s1 + $0x564] ss:$16 sps:$4 sm:$0xff]  }
  0x9c   :  { %2515 = vmatprep.subr.bf16.mxu0 %v4894_v53  ;;  %3079 = vmatprep.subr.bf16.mxu1 %v4897_v54  ;;  %v244_v53 = vld [vmem:[%s6246_s0 + $0x1e8] sm:$0xff]  ;;  %v4952_v54 = vld [vmem:[%s6245_s1 + $0x560] ss:$16 sps:$4 sm:$0xff]  }
  0x9d   :  { %2414 = vmatprep.mubr.bf16.mxu0 %v4011_v55  ;;  %2978 = vmatprep.mubr.bf16.mxu1 %v4011_v55  ;;  %v4955_v55 = vld [vmem:[%s6245_s1 + $0x568] ss:$16 sps:$4 sm:$0xff]  }
  0x9f   :  { %2516 = vmatpush1.bf16.msra.mxu0 %v4892_v56  ;;  %3080 = vmatpush1.bf16.msra.mxu1 %v4895_v57  ;;  %v4960_v56 = vld [vmem:[%s6245_s1 + $0x584] ss:$16 sps:$4 sm:$0xff]   ;;  %v4963_v57 = vld [vmem:[%s6245_s1 + $0x58c] ss:$16 sps:$4 sm:$0xff]  }
  0xa0   :  { %2517 = vmatprep.subr.bf16.mxu0 %v4900_v58  ;;  %3081 = vmatprep.subr.bf16.mxu1 %v4903_v59  ;;  %v4050_v58 = vcombine.low %v232_v40, %v236_v41  ;;  %v4059_v59 = vcombine.high %v240_v52, %v244_v53  ;;  %v205_v40 = vld [vmem:[%s6246_s0 + $0xb0] sm:$0xff]  ;;  %v4012_v41 = vcombine.low %v193_v28, %v197_v29 }
  0xa2   :  { %2415 = vmatmul.mubr.bf16.gmra.mrb[4].mxu0 %v4010_v62  ;;  %2979 = vmatmul.mubr.bf16.gmra.mrb[4].mxu1 %v4010_v62  ;;  %v4966_v62 = vld [vmem:[%s6245_s1 + $0x5a4] ss:$16 sps:$4 sm:$0xff]  }
  0xa3   :  { %2518 = vmatpush1.bf16.msra.mxu0 %v4898_v63  ;;  %3082 = vmatpush1.bf16.msra.mxu1 %v4901_v0  ;;  %v4969_v63 = vld [vmem:[%s6245_s1 + $0x5ac] ss:$16 sps:$4 sm:$0xff]  }
  0xa4   :  { %2424 = vmatprep.mubr.bf16.mxu0 %v4019_v1  ;;  %2988 = vmatprep.mubr.bf16.mxu1 %v4019_v1  ;;  %v248_v0 = vld [vmem:[%s6246_s0 + $0x208] sm:$0xff] }
  0xa5   :  { %2519 = vmatprep.subr.bf16.mxu0 %v4906_v2  ;;  %3083 = vmatprep.subr.bf16.mxu1 %v4909_v3  ;;  %v252_v1 = vld [vmem:[%s6246_s0 + $0x228] sm:$0xff]  ;;  %v4964_v2 = vld [vmem:[%s6245_s1 + $0x5a0] ss:$16 sps:$4 sm:$0xff]  }
  0xa6   :  { %v4967_v3 = vld [vmem:[%s6245_s1 + $0x5a8] ss:$16 sps:$4 sm:$0xff]   ;;  %v4066_v18 = vcombine.low %v248_v0, %v252_v1 }
  0xa7   :  { %2520 = vmatpush1.bf16.msra.mxu0 %v4904_v4  ;;  %3084 = vmatpush1.bf16.msra.mxu1 %v4907_v5  ;;  %v4972_v4 = vld [vmem:[%s6245_s1 + $0x5c4] ss:$16 sps:$4 sm:$0xff]   ;;  %v4975_v5 = vld [vmem:[%s6245_s1 + $0x5cc] ss:$16 sps:$4 sm:$0xff]  }
  0xa8   :  { %2521 = vmatprep.subr.bf16.mxu0 %v4912_v6  ;;  %3085 = vmatprep.subr.bf16.mxu1 %v4915_v7  ;;  %v4058_v6 = vcombine.low %v240_v52, %v244_v53  ;;  %v4067_v7 = vcombine.high %v248_v0, %v252_v1  ;;  %v213_v52 = vld [vmem:[%s6246_s0 + $0xf0] sm:$0xff]  ;;  %v5025_v0 = vld [vmem:[%s6245_s1 + $0x6cc] ss:$16 sps:$4 sm:$0xff]  }
  0xaa   :  { %2425 = vmatmul.mubr.bf16.gmra.mrb[8].mxu0 %v4018_v10  ;;  %2989 = vmatmul.mubr.bf16.gmra.mrb[8].mxu1 %v4018_v10  ;;  %v4980_v10 = vld [vmem:[%s6245_s1 + $0x5e4] ss:$16 sps:$4 sm:$0xff]  }
  0xab   :  { %2434 = vmatprep.mubr.bf16.mxu0 %v4027_v12  ;;  %2522 = vmatpush1.bf16.msra.mxu0 %v4910_v11  ;;  %v4983_v11 = vld [vmem:[%s6245_s1 + $0x5ec] ss:$16 sps:$4 sm:$0xff]  }
  0xac   :  { %2998 = vmatprep.mubr.bf16.mxu1 %v4027_v12  ;;  %3086 = vmatpush1.bf16.msra.mxu1 %v4913_v13  ;;  %v256_v12 = vld [vmem:[%s6246_s0 + $0x248] sm:$0xff] }
  0xad   :  { %2523 = vmatprep.subr.bf16.mxu0 %v4918_v14  ;;  %3087 = vmatprep.subr.bf16.mxu1 %v4921_v15  ;;  %v260_v13 = vld [vmem:[%s6246_s0 + $0x268] sm:$0xff]  ;;  %v4978_v14 = vld [vmem:[%s6245_s1 + $0x5e0] ss:$16 sps:$4 sm:$0xff]  }
  0xae   :  { %v4981_v15 = vld [vmem:[%s6245_s1 + $0x5e8] ss:$16 sps:$4 sm:$0xff]   ;;  %v4075_v19 = vcombine.high %v256_v12, %v260_v13 }
  0xaf   :  { %2524 = vmatpush1.bf16.msra.mxu0 %v4916_v16  ;;  %v4986_v16 = vld [vmem:[%s6245_s1 + $0x604] ss:$16 sps:$4 sm:$0xff]  }
  0xb0   :  { %3088 = vmatpush1.bf16.msra.mxu1 %v4919_v17  ;;  %2525 = vmatprep.subr.bf16.mxu0 %v4924_v20  ;;  %v4989_v17 = vld [vmem:[%s6245_s1 + $0x60c] ss:$16 sps:$4 sm:$0xff]  }
  0xb1   :  { %3089 = vmatprep.subr.bf16.mxu1 %v4927_v21  ;;  %v264_v20 = vld [vmem:[%s6246_s0 + $0x288] sm:$0xff]  ;;  %v4074_v21 = vcombine.low %v256_v12, %v260_v13 }
  0xb2   :  { %2435 = vmatmul.mubr.bf16.gmra.mrb[12].mxu0 %v4026_v22  ;;  %2999 = vmatmul.mubr.bf16.gmra.mrb[12].mxu1 %v4026_v22  ;;  %v4083_v22 = vcombine.high %v264_v20, %v264_v20  ;;  %v5037_v12 = vld [vmem:[%s6245_s1 + $0x70c] ss:$16 sps:$4 sm:$0xff]  }
  0xb3   :  { %2444 = vmatprep.mubr.bf16.mxu0 %v4035_v23  ;;  %3008 = vmatprep.mubr.bf16.mxu1 %v4035_v23  ;;  %v185_v23 = vld [vmem:[%s6246_s0 + $0x10] sm:$0xff] }
  0xb4   :  { %2526 = vmatpush1.bf16.msra.mxu0 %v4922_v24  ;;  %3090 = vmatpush1.bf16.msra.mxu1 %v4925_v25  ;;  %v189_v24 = vld [vmem:[%s6246_s0 + $0x30] sm:$0xff]  ;;  %v4082_v25 = vcombine.low %v264_v20, %v264_v20 }
  0xb5   :  { %2527 = vmatprep.subr.bf16.mxu0 %v4930_v26  ;;  %3091 = vmatprep.subr.bf16.mxu1 %v4933_v27  ;;  %v4005_v26 = vcombine.high %v185_v23, %v189_v24  ;;  %v4004_v27 = vcombine.low %v185_v23, %v189_v24  ;;  %v237_v20 = vld [vmem:[%s6246_s0 + $0x1b0] sm:$0xff]  ;;  %v5049_v24 = vld [vmem:[%s6245_s1 + $0x74c] ss:$16 sps:$4 sm:$0xff]  }
  0xb6   :  { %v5046_v23 = vld [vmem:[%s6245_s1 + $0x744] ss:$16 sps:$4 sm:$0xff]  }
  0xb8   :  { %2528 = vmatpush1.bf16.msra.mxu0 %v4928_v30  ;;  %3092 = vmatpush1.bf16.msra.mxu1 %v4931_v31  ;;  %v4984_v30 = vld [vmem:[%s6245_s1 + $0x600] ss:$16 sps:$4 sm:$0xff]   ;;  %v4987_v31 = vld [vmem:[%s6245_s1 + $0x608] ss:$16 sps:$4 sm:$0xff]  }
  0xb9   :  { %2529 = vmatprep.subr.bf16.mxu0 %v4936_v32  ;;  %3093 = vmatprep.subr.bf16.mxu1 %v4939_v33  ;;  %v4992_v32 = vld [vmem:[%s6245_s1 + $0x624] ss:$16 sps:$4 sm:$0xff]   ;;  %v4995_v33 = vld [vmem:[%s6245_s1 + $0x62c] ss:$16 sps:$4 sm:$0xff]  }
  0xba   :  { %2445 = vmatmul.mubr.bf16.gmra.mrb[16].mxu0 %v4034_v34  ;;  %3009 = vmatmul.mubr.bf16.gmra.mrb[16].mxu1 %v4034_v34  ;;  %v4013_v34 = vcombine.high %v193_v28, %v197_v29  ;;  %v5047_v28 = vld [vmem:[%s6245_s1 + $0x748] ss:$16 sps:$4 sm:$0xff]   ;;  %v5052_v29 = vld [vmem:[%s6245_s1 + $0x764] ss:$16 sps:$4 sm:$0xff]  }
  0xbb   :  { %2454 = vmatprep.mubr.bf16.mxu0 %v4043_v37  ;;  %3018 = vmatprep.mubr.bf16.mxu1 %v4043_v37  ;;  %v4998_v37 = vld [vmem:[%s6245_s1 + $0x644] ss:$16 sps:$4 sm:$0xff]  }
  0xbc   :  { %2530 = vmatpush1.bf16.msra.mxu0 %v4934_v35  ;;  %3094 = vmatpush1.bf16.msra.mxu1 %v4937_v36  ;;  %v4990_v35 = vld [vmem:[%s6245_s1 + $0x620] ss:$16 sps:$4 sm:$0xff]   ;;  %v4993_v36 = vld [vmem:[%s6245_s1 + $0x628] ss:$16 sps:$4 sm:$0xff]  }
  0xbd   :  { %2531 = vmatprep.subr.bf16.mxu0 %v4942_v38  ;;  %3095 = vmatprep.subr.bf16.mxu1 %v4945_v39  ;;  %v5001_v38 = vld [vmem:[%s6245_s1 + $0x64c] ss:$16 sps:$4 sm:$0xff]   ;;  %v201_v39 = vld [vmem:[%s6246_s0 + $0x90] sm:$0xff] }
  0xbe   :  { %v4020_v53 = vcombine.low %v201_v39, %v205_v40 }
  0xc0   :  { %2532 = vmatpush1.bf16.msra.mxu0 %v4940_v42  ;;  %3096 = vmatpush1.bf16.msra.mxu1 %v4943_v43  ;;  %v4996_v42 = vld [vmem:[%s6245_s1 + $0x640] ss:$16 sps:$4 sm:$0xff]   ;;  %v4999_v43 = vld [vmem:[%s6245_s1 + $0x648] ss:$16 sps:$4 sm:$0xff]  }
  0xc1   :  { %2533 = vmatprep.subr.bf16.mxu0 %v4948_v44  ;;  %3097 = vmatprep.subr.bf16.mxu1 %v4951_v45  ;;  %v4021_v44 = vcombine.high %v201_v39, %v205_v40  ;;  %v5004_v45 = vld [vmem:[%s6245_s1 + $0x664] ss:$16 sps:$4 sm:$0xff]   ;;  %v5056_v39 = vld [vmem:[%s6245_s1 + $0x780] ss:$16 sps:$4 sm:$0xff]   ;;  %v5059_v40 = vld [vmem:[%s6245_s1 + $0x788] ss:$16 sps:$4 sm:$0xff]  }
  0xc2   :  { %2455 = vmatmul.mubr.bf16.gmra.mrb[20].mxu0 %v4042_v46  ;;  %3019 = vmatmul.mubr.bf16.gmra.mrb[20].mxu1 %v4042_v46  ;;  %v5007_v46 = vld [vmem:[%s6245_s1 + $0x66c] ss:$16 sps:$4 sm:$0xff]  }
  0xc3   :  { %2464 = vmatprep.mubr.bf16.mxu0 %v4051_v47  ;;  %3028 = vmatprep.mubr.bf16.mxu1 %v4051_v47  ;;  %v5002_v47 = vld [vmem:[%s6245_s1 + $0x660] ss:$16 sps:$4 sm:$0xff]  }
  0xc4   :  { %2534 = vmatpush1.bf16.msra.mxu0 %v4946_v48  ;;  %3098 = vmatpush1.bf16.msra.mxu1 %v4949_v49  ;;  %v5005_v48 = vld [vmem:[%s6245_s1 + $0x668] ss:$16 sps:$4 sm:$0xff]   ;;  %v5010_v49 = vld [vmem:[%s6245_s1 + $0x684] ss:$16 sps:$4 sm:$0xff]  }
  0xc5   :  { %2535 = vmatprep.subr.bf16.mxu0 %v4954_v50  ;;  %3099 = vmatprep.subr.bf16.mxu1 %v4957_v51  ;;  %v5013_v50 = vld [vmem:[%s6245_s1 + $0x68c] ss:$16 sps:$4 sm:$0xff]   ;;  %v209_v51 = vld [vmem:[%s6246_s0 + $0xd0] sm:$0xff] }
  0xc6   :  { %v4028_v1 = vcombine.low %v209_v51, %v213_v52 }
  0xc8   :  { %2536 = vmatpush1.bf16.msra.mxu0 %v4952_v54  ;;  %3100 = vmatpush1.bf16.msra.mxu1 %v4955_v55  ;;  %v5008_v54 = vld [vmem:[%s6245_s1 + $0x680] ss:$16 sps:$4 sm:$0xff]   ;;  %v4029_v55 = vcombine.high %v209_v51, %v213_v52  ;;  %v5071_v52 = vld [vmem:[%s6245_s1 + $0x7c8] ss:$16 sps:$4 sm:$0xff]  }
  0xc9   :  { %2537 = vmatprep.subr.bf16.mxu0 %v4960_v56  ;;  %3101 = vmatprep.subr.bf16.mxu1 %v4963_v57  ;;  %v5011_v56 = vld [vmem:[%s6245_s1 + $0x688] ss:$16 sps:$4 sm:$0xff]   ;;  %v5016_v57 = vld [vmem:[%s6245_s1 + $0x6a4] ss:$16 sps:$4 sm:$0xff]   ;;  %v5068_v51 = vld [vmem:[%s6245_s1 + $0x7c0] ss:$16 sps:$4 sm:$0xff]  }
  0xca   :  { %2465 = vmatmul.mubr.bf16.gmra.mrb[24].mxu0 %v4050_v58  ;;  %3029 = vmatmul.mubr.bf16.gmra.mrb[24].mxu1 %v4050_v58  ;;  %v5019_v58 = vld [vmem:[%s6245_s1 + $0x6ac] ss:$16 sps:$4 sm:$0xff]  }
  0xcb   :  { %2474 = vmatprep.mubr.bf16.mxu0 %v4059_v59  ;;  %3038 = vmatprep.mubr.bf16.mxu1 %v4059_v59  ;;  %v5014_v59 = vld [vmem:[%s6245_s1 + $0x6a0] ss:$16 sps:$4 sm:$0xff]  }
  0xcc   :  { %2538 = vmatpush1.bf16.msra.mxu0 %v4958_v60  ;;  %3102 = vmatpush1.bf16.msra.mxu1 %v4961_v61  ;;  %v5017_v60 = vld [vmem:[%s6245_s1 + $0x6a8] ss:$16 sps:$4 sm:$0xff]   ;;  %v217_v61 = vld [vmem:[%s6246_s0 + $0x110] sm:$0xff] }
  0xcd   :  { %2539 = vmatprep.subr.bf16.mxu0 %v4966_v62  ;;  %3103 = vmatprep.subr.bf16.mxu1 %v4969_v63  ;;  %v221_v62 = vld [vmem:[%s6246_s0 + $0x130] sm:$0xff] }
  0xce   :  { %v5022_v63 = vld [vmem:[%s6245_s1 + $0x6c4] ss:$16 sps:$4 sm:$0xff]   ;;  %v4036_v13 = vcombine.low %v217_v61, %v221_v62 }
  0xd0   :  { %2540 = vmatpush1.bf16.msra.mxu0 %v4964_v2  ;;  %3104 = vmatpush1.bf16.msra.mxu1 %v4967_v3  ;;  %v4037_v2 = vcombine.high %v217_v61, %v221_v62  ;;  %v5020_v3 = vld [vmem:[%s6245_s1 + $0x6c0] ss:$16 sps:$4 sm:$0xff]  }
  0xd1   :  { %2541 = vmatprep.subr.bf16.mxu0 %v4972_v4  ;;  %3105 = vmatprep.subr.bf16.mxu1 %v4975_v5  ;;  %v5023_v4 = vld [vmem:[%s6245_s1 + $0x6c8] ss:$16 sps:$4 sm:$0xff]   ;;  %v5028_v5 = vld [vmem:[%s6245_s1 + $0x6e4] ss:$16 sps:$4 sm:$0xff]  }
  0xd2   :  { %2475 = vmatmul.mubr.bf16.gmra.mrb[28].mxu0 %v4058_v6  ;;  %3039 = vmatmul.mubr.bf16.gmra.mrb[28].mxu1 %v4058_v6  ;;  %v5031_v6 = vld [vmem:[%s6245_s1 + $0x6ec] ss:$16 sps:$4 sm:$0xff]   ;;  %v265_v61 = vld [vmem:[%s6246_s0 + $0x290] sm:$0xff] }
  0xd3   :  { %2484 = vmatprep.mubr.bf16.mxu0 %v4067_v7  ;;  %3048 = vmatprep.mubr.bf16.mxu1 %v4067_v7  ;;  %v225_v7 = vld [vmem:[%s6246_s0 + $0x150] sm:$0xff] }
  0xd4   :  { %2542 = vmatpush1.bf16.msra.mxu0 %v4970_v8  ;;  %3106 = vmatpush1.bf16.msra.mxu1 %v4973_v9  ;;  %v229_v8 = vld [vmem:[%s6246_s0 + $0x170] sm:$0xff] }
  0xd5   :  { %2543 = vmatprep.subr.bf16.mxu0 %v4980_v10  ;;  %3107 = vmatprep.subr.bf16.mxu1 %v4983_v11  ;;  %v5026_v9 = vld [vmem:[%s6245_s1 + $0x6e0] ss:$16 sps:$4 sm:$0xff]   ;;  %v5029_v10 = vld [vmem:[%s6245_s1 + $0x6e8] ss:$16 sps:$4 sm:$0xff]   ;;  %v5034_v11 = vld [vmem:[%s6245_s1 + $0x704] ss:$16 sps:$4 sm:$0xff]  }
  0xd8   :  { %2544 = vmatpush1.bf16.msra.mxu0 %v4978_v14  ;;  %3108 = vmatpush1.bf16.msra.mxu1 %v4981_v15  ;;  %v4045_v14 = vcombine.high %v225_v7, %v229_v8  ;;  %v5032_v15 = vld [vmem:[%s6245_s1 + $0x700] ss:$16 sps:$4 sm:$0xff]  }
  0xd9   :  { %2654 = vmatprep.subr.bf16.mxu0 %v4986_v16  ;;  %3218 = vmatprep.subr.bf16.mxu1 %v4989_v17  ;;  %v5035_v16 = vld [vmem:[%s6245_s1 + $0x708] ss:$16 sps:$4 sm:$0xff]   ;;  %v5040_v17 = vld [vmem:[%s6245_s1 + $0x724] ss:$16 sps:$4 sm:$0xff]  }
  0xda   :  { %2485 = vmatmul.mubr.bf16.gmra.mrb[32].mxu0 %v4066_v18  ;;  %3049 = vmatmul.mubr.bf16.gmra.mrb[32].mxu1 %v4066_v18  ;;  %v5043_v18 = vld [vmem:[%s6245_s1 + $0x72c] ss:$16 sps:$4 sm:$0xff]  }
  0xdb   :  { %2494 = vmatprep.mubr.bf16.mxu0 %v4075_v19  ;;  %3058 = vmatprep.mubr.bf16.mxu1 %v4075_v19  ;;  %v233_v19 = vld [vmem:[%s6246_s0 + $0x190] sm:$0xff] }
  0xe2   :  { %2495 = vmatmul.mubr.bf16.gmra.mrb[36].mxu0 %v4074_v21  ;;  %3059 = vmatmul.mubr.bf16.gmra.mrb[36].mxu1 %v4074_v21  ;;  %v5038_v21 = vld [vmem:[%s6245_s1 + $0x720] ss:$16 sps:$4 sm:$0xff]  }
  0xe3   :  { %2504 = vmatprep.mubr.bf16.mxu0 %v4083_v22  ;;  %3068 = vmatprep.mubr.bf16.mxu1 %v4083_v22  ;;  %v5041_v22 = vld [vmem:[%s6245_s1 + $0x728] ss:$16 sps:$4 sm:$0xff]  }
  0xea   :  { %2505 = vmatmul.mubr.bf16.gmra.mrb[40].mxu0 %v4082_v25  ;;  %3069 = vmatmul.mubr.bf16.gmra.mrb[40].mxu1 %v4082_v25  ;;  %v4044_v25 = vcombine.low %v225_v7, %v229_v8  ;;  %v202_v8 = vld [vmem:[%s6246_s0 + $0x98] sm:$0xff] }
  0xeb   :  { %2545 = vmatprep.mubr.bf16.mxu0 %v4005_v26  ;;  %3109 = vmatprep.mubr.bf16.mxu1 %v4005_v26  ;;  %v4053_v26 = vcombine.high %v233_v19, %v237_v20 }
  0xf2   :  { %2546 = vmatmul.mubr.bf16.vlgmr.msra.gmra.mrb[0].mxu0 %v4004_v27  ;;  %3110 = vmatmul.mubr.bf16.vlgmr.msra.gmra.mrb[0].mxu1 %v4004_v27  ;;  %v5044_v27 = vld [vmem:[%s6245_s1 + $0x740] ss:$16 sps:$4 sm:$0xff]  }
  0xf3   :  { %2655 = vmatpush1.bf16.msra.mxu0 %v4984_v30  ;;  %3219 = vmatpush1.bf16.msra.mxu1 %v4987_v31  ;;  %v5055_v30 = vld [vmem:[%s6245_s1 + $0x76c] ss:$16 sps:$4 sm:$0xff]   ;;  %v241_v31 = vld [vmem:[%s6246_s0 + $0x1d0] sm:$0xff] }
  0xf4   :  { %2656 = vmatprep.subr.bf16.mxu0 %v4992_v32  ;;  %3220 = vmatprep.subr.bf16.mxu1 %v4995_v33  ;;  %v245_v32 = vld [vmem:[%s6246_s0 + $0x1f0] sm:$0xff] }
  0xf5   :  { %2555 = vmatprep.mubr.bf16.mxu0 %v4013_v34  ;;  %3119 = vmatprep.mubr.bf16.mxu1 %v4013_v34  ;;  %v5050_v33 = vld [vmem:[%s6245_s1 + $0x760] ss:$16 sps:$4 sm:$0xff]   ;;  %v5053_v34 = vld [vmem:[%s6245_s1 + $0x768] ss:$16 sps:$4 sm:$0xff]  }
  0xf7   :  { %2657 = vmatpush1.bf16.msra.mxu0 %v4990_v35  ;;  %3221 = vmatpush1.bf16.msra.mxu1 %v4993_v36  ;;  %v5058_v35 = vld [vmem:[%s6245_s1 + $0x784] ss:$16 sps:$4 sm:$0xff]   ;;  %v5061_v36 = vld [vmem:[%s6245_s1 + $0x78c] ss:$16 sps:$4 sm:$0xff]  }
  0xf8   :  { %2658 = vmatprep.subr.bf16.mxu0 %v4998_v37  ;;  %3222 = vmatprep.subr.bf16.mxu1 %v5001_v38  ;;  %v4052_v37 = vcombine.low %v233_v19, %v237_v20  ;;  %v4061_v38 = vcombine.high %v241_v31, %v245_v32  ;;  %v226_v20 = vld [vmem:[%s6246_s0 + $0x158] sm:$0xff] }
  0xfa   :  { %2556 = vmatmul.mubr.bf16.gmra.mrb[4].mxu0 %v4012_v41  ;;  %3120 = vmatmul.mubr.bf16.gmra.mrb[4].mxu1 %v4012_v41  ;;  %v5064_v41 = vld [vmem:[%s6245_s1 + $0x7a4] ss:$16 sps:$4 sm:$0xff]  }
  0xfb   :  { %2659 = vmatpush1.bf16.msra.mxu0 %v4996_v42  ;;  %3223 = vmatpush1.bf16.msra.mxu1 %v4999_v43  ;;  %v5067_v42 = vld [vmem:[%s6245_s1 + $0x7ac] ss:$16 sps:$4 sm:$0xff]   ;;  %v249_v43 = vld [vmem:[%s6246_s0 + $0x210] sm:$0xff] }
  0xfc   :  { %2565 = vmatprep.mubr.bf16.mxu0 %v4021_v44  ;;  %3129 = vmatprep.mubr.bf16.mxu1 %v4021_v44  ;;  %v253_v44 = vld [vmem:[%s6246_s0 + $0x230] sm:$0xff] }
  0xfd   :  { %2660 = vmatprep.subr.bf16.mxu0 %v5004_v45  ;;  %3224 = vmatprep.subr.bf16.mxu1 %v5007_v46  ;;  %v5062_v45 = vld [vmem:[%s6245_s1 + $0x7a0] ss:$16 sps:$4 sm:$0xff]   ;;  %v5065_v46 = vld [vmem:[%s6245_s1 + $0x7a8] ss:$16 sps:$4 sm:$0xff]  }
  0xff   :  { %2661 = vmatpush1.bf16.msra.mxu0 %v5002_v47  ;;  %3225 = vmatpush1.bf16.msra.mxu1 %v5005_v48  ;;  %v5070_v47 = vld [vmem:[%s6245_s1 + $0x7c4] ss:$16 sps:$4 sm:$0xff]   ;;  %v5073_v48 = vld [vmem:[%s6245_s1 + $0x7cc] ss:$16 sps:$4 sm:$0xff]  }
 0x100   :  { %2662 = vmatprep.subr.bf16.mxu0 %v5010_v49  ;;  %3226 = vmatprep.subr.bf16.mxu1 %v5013_v50  ;;  %v4060_v49 = vcombine.low %v241_v31, %v245_v32  ;;  %v4069_v50 = vcombine.high %v249_v43, %v253_v44  ;;  %v250_v32 = vld [vmem:[%s6246_s0 + $0x218] sm:$0xff] }
 0x102   :  { %2566 = vmatmul.mubr.bf16.gmra.mrb[8].mxu0 %v4020_v53  ;;  %3130 = vmatmul.mubr.bf16.gmra.mrb[8].mxu1 %v4020_v53  ;;  %v5078_v53 = vld [vmem:[%s6245_s1 + $0x7e4] ss:$16 sps:$4 sm:$0xff]  }
 0x103   :  { %2575 = vmatprep.mubr.bf16.mxu0 %v4029_v55  ;;  %2663 = vmatpush1.bf16.msra.mxu0 %v5008_v54  ;;  %v5081_v54 = vld [vmem:[%s6245_s1 + $0x7ec] ss:$16 sps:$4 sm:$0xff]  }
 0x104   :  { %3139 = vmatprep.mubr.bf16.mxu1 %v4029_v55  ;;  %3227 = vmatpush1.bf16.msra.mxu1 %v5011_v56  ;;  %v257_v55 = vld [vmem:[%s6246_s0 + $0x250] sm:$0xff] }
 0x105   :  { %2664 = vmatprep.subr.bf16.mxu0 %v5016_v57  ;;  %3228 = vmatprep.subr.bf16.mxu1 %v5019_v58  ;;  %v261_v56 = vld [vmem:[%s6246_s0 + $0x270] sm:$0xff]  ;;  %v5079_v58 = vld [vmem:[%s6245_s1 + $0x7e8] ss:$16 sps:$4 sm:$0xff]  }
 0x106   :  { %v5076_v57 = vld [vmem:[%s6245_s1 + $0x7e0] ss:$16 sps:$4 sm:$0xff]   ;;  %v4076_v62 = vcombine.low %v257_v55, %v261_v56 }
 0x107   :  { %2665 = vmatpush1.bf16.msra.mxu0 %v5014_v59  ;;  %v4068_v59 = vcombine.low %v249_v43, %v253_v44 }
 0x108   :  { %3229 = vmatpush1.bf16.msra.mxu1 %v5017_v60  ;;  %2666 = vmatprep.subr.bf16.mxu0 %v5022_v63  ;;  %v4077_v60 = vcombine.high %v257_v55, %v261_v56  ;;  %v4085_v63 = vcombine.high %v265_v61, %v265_v61 }
 0x109   :  { %3230 = vmatprep.subr.bf16.mxu1 %v5025_v0  ;;  %v186_v0 = vld [vmem:[%s6246_s0 + $0x18] sm:$0xff] }
 0x10a   :  { %2576 = vmatmul.mubr.bf16.gmra.mrb[12].mxu0 %v4028_v1  ;;  %3140 = vmatmul.mubr.bf16.gmra.mrb[12].mxu1 %v4028_v1  ;;  %v190_v1 = vld [vmem:[%s6246_s0 + $0x38] sm:$0xff] }
 0x10b   :  { %2585 = vmatprep.mubr.bf16.mxu0 %v4037_v2  ;;  %3149 = vmatprep.mubr.bf16.mxu1 %v4037_v2  ;;  %v4084_v2 = vcombine.low %v265_v61, %v265_v61 }
 0x10c   :  { %2667 = vmatpush1.bf16.msra.mxu0 %v5020_v3  ;;  %3231 = vmatpush1.bf16.msra.mxu1 %v5023_v4  ;;  %v4007_v3 = vcombine.high %v186_v0, %v190_v1  ;;  %v194_v4 = vld [vmem:[%s6246_s0 + $0x58] sm:$0xff] }
 0x10d   :  { %2668 = vmatprep.subr.bf16.mxu0 %v5028_v5  ;;  %3232 = vmatprep.subr.bf16.mxu1 %v5031_v6  ;;  %v198_v5 = vld [vmem:[%s6246_s0 + $0x78] sm:$0xff]  ;;  %v4006_v6 = vcombine.low %v186_v0, %v190_v1 }
 0x10e   :  { %v4015_v7 = vcombine.high %v194_v4, %v198_v5 }
 0x110   :  { %2669 = vmatpush1.bf16.msra.mxu0 %v5026_v9  ;;  %3233 = vmatpush1.bf16.msra.mxu1 %v5029_v10  ;;  %v206_v9 = vld [vmem:[%s6246_s0 + $0xb8] sm:$0xff]  ;;  %v4014_v10 = vcombine.low %v194_v4, %v198_v5 }
 0x111   :  { %2670 = vmatprep.subr.bf16.mxu0 %v5034_v11  ;;  %3234 = vmatprep.subr.bf16.mxu1 %v5037_v12  ;;  %v4023_v11 = vcombine.high %v202_v8, %v206_v9  ;;  %v210_v12 = vld [vmem:[%s6246_s0 + $0xd8] sm:$0xff] }
 0x112   :  { %2586 = vmatmul.mubr.bf16.gmra.mrb[16].mxu0 %v4036_v13  ;;  %3150 = vmatmul.mubr.bf16.gmra.mrb[16].mxu1 %v4036_v13  ;;  %v214_v13 = vld [vmem:[%s6246_s0 + $0xf8] sm:$0xff] }
 0x113   :  { %2595 = vmatprep.mubr.bf16.mxu0 %v4045_v14  ;;  %3159 = vmatprep.mubr.bf16.mxu1 %v4045_v14  ;;  %v4022_v14 = vcombine.low %v202_v8, %v206_v9 }
 0x114   :  { %2671 = vmatpush1.bf16.msra.mxu0 %v5032_v15  ;;  %3235 = vmatpush1.bf16.msra.mxu1 %v5035_v16  ;;  %v4031_v15 = vcombine.high %v210_v12, %v214_v13  ;;  %v218_v16 = vld [vmem:[%s6246_s0 + $0x118] sm:$0xff] }
 0x115   :  { %2672 = vmatprep.subr.bf16.mxu0 %v5040_v17  ;;  %3236 = vmatprep.subr.bf16.mxu1 %v5043_v18  ;;  %v222_v17 = vld [vmem:[%s6246_s0 + $0x138] sm:$0xff]  ;;  %v4030_v18 = vcombine.low %v210_v12, %v214_v13 }
 0x116   :  { %v4039_v19 = vcombine.high %v218_v16, %v222_v17 }
 0x118   :  { %2673 = vmatpush1.bf16.msra.mxu0 %v5038_v21  ;;  %3237 = vmatpush1.bf16.msra.mxu1 %v5041_v22  ;;  %v230_v21 = vld [vmem:[%s6246_s0 + $0x178] sm:$0xff]  ;;  %v4038_v22 = vcombine.low %v218_v16, %v222_v17 }
 0x119   :  { %2674 = vmatprep.subr.bf16.mxu0 %v5046_v23  ;;  %3238 = vmatprep.subr.bf16.mxu1 %v5049_v24  ;;  %v4047_v23 = vcombine.high %v226_v20, %v230_v21  ;;  %v234_v24 = vld [vmem:[%s6246_s0 + $0x198] sm:$0xff] }
 0x11a   :  { %2596 = vmatmul.mubr.bf16.gmra.mrb[20].mxu0 %v4044_v25  ;;  %3160 = vmatmul.mubr.bf16.gmra.mrb[20].mxu1 %v4044_v25  ;;  %v238_v25 = vld [vmem:[%s6246_s0 + $0x1b8] sm:$0xff] }
 0x11b   :  { %2605 = vmatprep.mubr.bf16.mxu0 %v4053_v26  ;;  %3169 = vmatprep.mubr.bf16.mxu1 %v4053_v26  ;;  %v4046_v26 = vcombine.low %v226_v20, %v230_v21 }
 0x11c   :  { %2675 = vmatpush1.bf16.msra.mxu0 %v5044_v27  ;;  %3239 = vmatpush1.bf16.msra.mxu1 %v5047_v28  ;;  %v4055_v27 = vcombine.high %v234_v24, %v238_v25  ;;  %v242_v28 = vld [vmem:[%s6246_s0 + $0x1d8] sm:$0xff] }
 0x11d   :  { %2676 = vmatprep.subr.bf16.mxu0 %v5052_v29  ;;  %3240 = vmatprep.subr.bf16.mxu1 %v5055_v30  ;;  %v246_v29 = vld [vmem:[%s6246_s0 + $0x1f8] sm:$0xff]  ;;  %v4054_v30 = vcombine.low %v234_v24, %v238_v25 }
 0x11e   :  { %v4063_v31 = vcombine.high %v242_v28, %v246_v29 }
 0x120   :  { %2677 = vmatpush1.bf16.msra.mxu0 %v5050_v33  ;;  %3241 = vmatpush1.bf16.msra.mxu1 %v5053_v34  ;;  %v254_v33 = vld [vmem:[%s6246_s0 + $0x238] sm:$0xff]  ;;  %v4062_v34 = vcombine.low %v242_v28, %v246_v29 }
 0x121   :  { %2678 = vmatprep.subr.bf16.mxu0 %v5058_v35  ;;  %3242 = vmatprep.subr.bf16.mxu1 %v5061_v36  ;;  %v4071_v35 = vcombine.high %v250_v32, %v254_v33  ;;  %v258_v36 = vld [vmem:[%s6246_s0 + $0x258] sm:$0xff] }
 0x122   :  { %2606 = vmatmul.mubr.bf16.gmra.mrb[24].mxu0 %v4052_v37  ;;  %3170 = vmatmul.mubr.bf16.gmra.mrb[24].mxu1 %v4052_v37  ;;  %v262_v37 = vld [vmem:[%s6246_s0 + $0x278] sm:$0xff] }
 0x123   :  { %2615 = vmatprep.mubr.bf16.mxu0 %v4061_v38  ;;  %3179 = vmatprep.mubr.bf16.mxu1 %v4061_v38  ;;  %v4070_v38 = vcombine.low %v250_v32, %v254_v33 }
 0x124   :  { %2679 = vmatpush1.bf16.msra.mxu0 %v5056_v39  ;;  %3243 = vmatpush1.bf16.msra.mxu1 %v5059_v40  ;;  %v4079_v39 = vcombine.high %v258_v36, %v262_v37  ;;  %v266_v40 = vld [vmem:[%s6246_s0 + $0x298] sm:$0xff] }
 0x125   :  { %2680 = vmatprep.subr.bf16.mxu0 %v5064_v41  ;;  %3244 = vmatprep.subr.bf16.mxu1 %v5067_v42  ;;  %v4078_v41 = vcombine.low %v258_v36, %v262_v37  ;;  %v4087_v42 = vcombine.high %v266_v40, %v266_v40  ;;  %v4086_v43 = vcombine.low %v266_v40, %v266_v40 }
 0x128   :  { %2681 = vmatpush1.bf16.msra.mxu0 %v5062_v45  ;;  %3245 = vmatpush1.bf16.msra.mxu1 %v5065_v46 }
 0x129   :  { %2682 = vmatprep.subr.bf16.mxu0 %v5070_v47  ;;  %3246 = vmatprep.subr.bf16.mxu1 %v5073_v48 }
 0x12a   :  { %2616 = vmatmul.mubr.bf16.gmra.mrb[28].mxu0 %v4060_v49  ;;  %3180 = vmatmul.mubr.bf16.gmra.mrb[28].mxu1 %v4060_v49 }
 0x12b   :  { %2625 = vmatprep.mubr.bf16.mxu0 %v4069_v50  ;;  %3189 = vmatprep.mubr.bf16.mxu1 %v4069_v50 }
 0x12c   :  { %2683 = vmatpush1.bf16.msra.mxu0 %v5068_v51  ;;  %3247 = vmatpush1.bf16.msra.mxu1 %v5071_v52 }
 0x12d   :  { %2684 = vmatprep.subr.bf16.mxu0 %v5078_v53  ;;  %3248 = vmatprep.subr.bf16.mxu1 %v5081_v54 }
 0x130   :  { %2685 = vmatpush1.bf16.msra.mxu0 %v5076_v57  ;;  %3249 = vmatpush1.bf16.msra.mxu1 %v5079_v58 }
 0x132   :  { %2626 = vmatmul.mubr.bf16.gmra.mrb[32].mxu0 %v4068_v59  ;;  %3190 = vmatmul.mubr.bf16.gmra.mrb[32].mxu1 %v4068_v59 }
 0x133   :  { %2635 = vmatprep.mubr.bf16.mxu0 %v4077_v60  ;;  %3199 = vmatprep.mubr.bf16.mxu1 %v4077_v60 }
 0x13a   :  { %2636 = vmatmul.mubr.bf16.gmra.mrb[36].mxu0 %v4076_v62  ;;  %3200 = vmatmul.mubr.bf16.gmra.mrb[36].mxu1 %v4076_v62 }
 0x13b   :  { %2645 = vmatprep.mubr.bf16.mxu0 %v4085_v63  ;;  %3209 = vmatprep.mubr.bf16.mxu1 %v4085_v63 }
 0x142   :  { %2646 = vmatmul.mubr.bf16.gmra.mrb[40].mxu0 %v4084_v2  ;;  %3210 = vmatmul.mubr.bf16.gmra.mrb[40].mxu1 %v4084_v2 }
 0x143   :  { %2686 = vmatprep.mubr.bf16.mxu0 %v4007_v3  ;;  %3250 = vmatprep.mubr.bf16.mxu1 %v4007_v3 }
 0x14a   :  { %2687 = vmatmul.mubr.bf16.vlgmr.msra.gmra.mrb[0].mxu0 %v4006_v6  ;;  %3251 = vmatmul.mubr.bf16.vlgmr.msra.gmra.mrb[0].mxu1 %v4006_v6 }
 0x14b   :  { %2696 = vmatprep.mubr.bf16.mxu0 %v4015_v7  ;;  %3260 = vmatprep.mubr.bf16.mxu1 %v4015_v7 }
 0x152   :  { %2697 = vmatmul.mubr.bf16.gmra.mrb[4].mxu0 %v4014_v10  ;;  %3261 = vmatmul.mubr.bf16.gmra.mrb[4].mxu1 %v4014_v10 }
 0x153   :  { %2706 = vmatprep.mubr.bf16.mxu0 %v4023_v11  ;;  %3270 = vmatprep.mubr.bf16.mxu1 %v4023_v11 }
 0x15a   :  { %2707 = vmatmul.mubr.bf16.gmra.mrb[8].mxu0 %v4022_v14  ;;  %3271 = vmatmul.mubr.bf16.gmra.mrb[8].mxu1 %v4022_v14 }
 0x15b   :  { %2716 = vmatprep.mubr.bf16.mxu0 %v4031_v15  ;;  %3280 = vmatprep.mubr.bf16.mxu1 %v4031_v15 }
 0x162   :  { %2717 = vmatmul.mubr.bf16.gmra.mrb[12].mxu0 %v4030_v18  ;;  %3281 = vmatmul.mubr.bf16.gmra.mrb[12].mxu1 %v4030_v18 }
 0x163   :  { %2726 = vmatprep.mubr.bf16.mxu0 %v4039_v19  ;;  %3290 = vmatprep.mubr.bf16.mxu1 %v4039_v19 }
 0x16a   :  { %2727 = vmatmul.mubr.bf16.gmra.mrb[16].mxu0 %v4038_v22  ;;  %3291 = vmatmul.mubr.bf16.gmra.mrb[16].mxu1 %v4038_v22 }
 0x16b   :  { %2736 = vmatprep.mubr.bf16.mxu0 %v4047_v23  ;;  %3300 = vmatprep.mubr.bf16.mxu1 %v4047_v23 }
 0x172   :  { %2737 = vmatmul.mubr.bf16.gmra.mrb[20].mxu0 %v4046_v26  ;;  %3301 = vmatmul.mubr.bf16.gmra.mrb[20].mxu1 %v4046_v26 }
 0x173   :  { %2746 = vmatprep.mubr.bf16.mxu0 %v4055_v27  ;;  %3310 = vmatprep.mubr.bf16.mxu1 %v4055_v27 }
 0x17a   :  { %2747 = vmatmul.mubr.bf16.gmra.mrb[24].mxu0 %v4054_v30  ;;  %3311 = vmatmul.mubr.bf16.gmra.mrb[24].mxu1 %v4054_v30 }
 0x17b   :  { %2756 = vmatprep.mubr.bf16.mxu0 %v4063_v31  ;;  %3320 = vmatprep.mubr.bf16.mxu1 %v4063_v31 }
 0x182   :  { %2757 = vmatmul.mubr.bf16.gmra.mrb[28].mxu0 %v4062_v34  ;;  %3321 = vmatmul.mubr.bf16.gmra.mrb[28].mxu1 %v4062_v34 }
 0x183   :  { %2766 = vmatprep.mubr.bf16.mxu0 %v4071_v35  ;;  %3330 = vmatprep.mubr.bf16.mxu1 %v4071_v35 }
 0x18a   :  { %2767 = vmatmul.mubr.bf16.gmra.mrb[32].mxu0 %v4070_v38  ;;  %3331 = vmatmul.mubr.bf16.gmra.mrb[32].mxu1 %v4070_v38 }
 0x18b   :  { %2776 = vmatprep.mubr.bf16.mxu0 %v4079_v39  ;;  %3340 = vmatprep.mubr.bf16.mxu1 %v4079_v39 }
 0x192   :  { %2777 = vmatmul.mubr.bf16.gmra.mrb[36].mxu0 %v4078_v41  ;;  %3341 = vmatmul.mubr.bf16.gmra.mrb[36].mxu1 %v4078_v41 }
 0x193   :  { %2786 = vmatprep.mubr.bf16.mxu0 %v4087_v42  ;;  %3350 = vmatprep.mubr.bf16.mxu1 %v4087_v42 }
 0x19a   :  { %2787 = vmatmul.mubr.bf16.gmra.mrb[40].mxu0 %v4086_v43  ;;  %3351 = vmatmul.mubr.bf16.gmra.mrb[40].mxu1 %v4086_v43 }
 0x21d   :  { %v2688_v44 = vpop.f32.mrb[0].mxu0  ;;  %v3252_v45 = vpop.f32.mrb[0].mxu1 }
 0x21e   :  { %v3614_v46 = vmax.f32 %v2688_v44, 0.0  ;;  %v3616_v47 = vmax.f32 %v3252_v45, 0.0  ;;  %v2690_v48 = vpop.f32.mrb[1].mxu0  ;;  %v3254_v49 = vpop.f32.mrb[1].mxu1 }
 0x21f   :  { %v3615_v50 = vmax.f32 %v2690_v48, 0.0  ;;  %v3617_v51 = vmax.f32 %v3254_v49, 0.0  ;;  %v2692_v52 = vpop.f32.mrb[2].mxu0  ;;  %v3256_v53 = vpop.f32.mrb[2].mxu1 }
 0x220   :  { %v3618_v54 = vmax.f32 %v2692_v52, 0.0  ;;  %v3620_v55 = vmax.f32 %v3256_v53, 0.0  ;;  %v2694_v56 = vpop.f32.mrb[3].mxu0  ;;  %v3258_v57 = vpop.f32.mrb[3].mxu1 }
 0x221   :  { %v4386_v58 = vpack.c.bf16 %v3615_v50, %v3614_v46  ;;  %v4387_v59 = vpack.c.bf16 %v3617_v51, %v3616_v47  ;;  %v3619_v60 = vmax.f32 %v2694_v56, 0.0  ;;  %v3621_v61 = vmax.f32 %v3258_v57, 0.0 }
 0x223   :  { %3954 = vst [vmem:[%s6247_s2] sm:$0xff] %v4386_v58  ;;  %3955 = vst [vmem:[%s6247_s2 + $0x8] sm:$0xff] %v4387_v59  ;;  %v4388_v62 = vpack.c.bf16 %v3619_v60, %v3618_v54  ;;  %v4389_v63 = vpack.c.bf16 %v3621_v61, %v3620_v55 }
 0x225   :  { %3956 = vst [vmem:[%s6247_s2 + $0x10] sm:$0xff] %v4388_v62  ;;  %3957 = vst [vmem:[%s6247_s2 + $0x18] sm:$0xff] %v4389_v63  ;;  %v2698_v0 = vpop.f32.mrb[4].mxu0  ;;  %v3262_v1 = vpop.f32.mrb[4].mxu1 }
 0x226   :  { %v3622_v2 = vmax.f32 %v2698_v0, 0.0  ;;  %v3624_v3 = vmax.f32 %v3262_v1, 0.0  ;;  %v2700_v4 = vpop.f32.mrb[5].mxu0  ;;  %v3264_v5 = vpop.f32.mrb[5].mxu1 }
 0x227   :  { %v3623_v6 = vmax.f32 %v2700_v4, 0.0  ;;  %v3625_v7 = vmax.f32 %v3264_v5, 0.0  ;;  %v2702_v8 = vpop.f32.mrb[6].mxu0  ;;  %v3266_v9 = vpop.f32.mrb[6].mxu1 }
 0x228   :  { %v3626_v10 = vmax.f32 %v2702_v8, 0.0  ;;  %v3628_v11 = vmax.f32 %v3266_v9, 0.0  ;;  %v2704_v12 = vpop.f32.mrb[7].mxu0  ;;  %v3268_v13 = vpop.f32.mrb[7].mxu1 }
 0x229   :  { %v4390_v14 = vpack.c.bf16 %v3623_v6, %v3622_v2  ;;  %v4391_v15 = vpack.c.bf16 %v3625_v7, %v3624_v3  ;;  %v3627_v16 = vmax.f32 %v2704_v12, 0.0  ;;  %v3629_v17 = vmax.f32 %v3268_v13, 0.0 }
 0x22b   :  { %3958 = vst [vmem:[%s6247_s2 + $0x20] sm:$0xff] %v4390_v14  ;;  %3959 = vst [vmem:[%s6247_s2 + $0x28] sm:$0xff] %v4391_v15  ;;  %v4392_v18 = vpack.c.bf16 %v3627_v16, %v3626_v10  ;;  %v4393_v19 = vpack.c.bf16 %v3629_v17, %v3628_v11 }
 0x22d   :  { %3960 = vst [vmem:[%s6247_s2 + $0x30] sm:$0xff] %v4392_v18  ;;  %3961 = vst [vmem:[%s6247_s2 + $0x38] sm:$0xff] %v4393_v19  ;;  %v2708_v20 = vpop.f32.mrb[8].mxu0  ;;  %v3272_v21 = vpop.f32.mrb[8].mxu1 }
 0x22e   :  { %v3630_v22 = vmax.f32 %v2708_v20, 0.0  ;;  %v3632_v23 = vmax.f32 %v3272_v21, 0.0  ;;  %v2710_v24 = vpop.f32.mrb[9].mxu0  ;;  %v3274_v25 = vpop.f32.mrb[9].mxu1 }
 0x22f   :  { %v3631_v26 = vmax.f32 %v2710_v24, 0.0  ;;  %v3633_v27 = vmax.f32 %v3274_v25, 0.0  ;;  %v2712_v28 = vpop.f32.mrb[10].mxu0  ;;  %v3276_v29 = vpop.f32.mrb[10].mxu1 }
 0x230   :  { %v3634_v30 = vmax.f32 %v2712_v28, 0.0  ;;  %v3636_v31 = vmax.f32 %v3276_v29, 0.0  ;;  %v2714_v32 = vpop.f32.mrb[11].mxu0  ;;  %v3278_v33 = vpop.f32.mrb[11].mxu1 }
 0x231   :  { %v4394_v34 = vpack.c.bf16 %v3631_v26, %v3630_v22  ;;  %v4395_v35 = vpack.c.bf16 %v3633_v27, %v3632_v23  ;;  %v3635_v36 = vmax.f32 %v2714_v32, 0.0  ;;  %v3637_v37 = vmax.f32 %v3278_v33, 0.0 }
 0x233   :  { %3962 = vst [vmem:[%s6247_s2 + $0x40] sm:$0xff] %v4394_v34  ;;  %3963 = vst [vmem:[%s6247_s2 + $0x48] sm:$0xff] %v4395_v35  ;;  %v4396_v38 = vpack.c.bf16 %v3635_v36, %v3634_v30  ;;  %v4397_v39 = vpack.c.bf16 %v3637_v37, %v3636_v31 }
 0x235   :  { %3964 = vst [vmem:[%s6247_s2 + $0x50] sm:$0xff] %v4396_v38  ;;  %3965 = vst [vmem:[%s6247_s2 + $0x58] sm:$0xff] %v4397_v39  ;;  %v2718_v40 = vpop.f32.mrb[12].mxu0  ;;  %v3282_v41 = vpop.f32.mrb[12].mxu1 }
 0x236   :  { %v3638_v42 = vmax.f32 %v2718_v40, 0.0  ;;  %v3640_v43 = vmax.f32 %v3282_v41, 0.0  ;;  %v2720_v44 = vpop.f32.mrb[13].mxu0  ;;  %v3284_v45 = vpop.f32.mrb[13].mxu1 }
 0x237   :  { %v3639_v46 = vmax.f32 %v2720_v44, 0.0  ;;  %v3641_v47 = vmax.f32 %v3284_v45, 0.0  ;;  %v2722_v48 = vpop.f32.mrb[14].mxu0  ;;  %v3286_v49 = vpop.f32.mrb[14].mxu1 }
 0x238   :  { %v3642_v50 = vmax.f32 %v2722_v48, 0.0  ;;  %v3644_v51 = vmax.f32 %v3286_v49, 0.0  ;;  %v2724_v52 = vpop.f32.mrb[15].mxu0  ;;  %v3288_v53 = vpop.f32.mrb[15].mxu1 }
 0x239   :  { %v4398_v54 = vpack.c.bf16 %v3639_v46, %v3638_v42  ;;  %v4399_v55 = vpack.c.bf16 %v3641_v47, %v3640_v43  ;;  %v3643_v56 = vmax.f32 %v2724_v52, 0.0  ;;  %v3645_v57 = vmax.f32 %v3288_v53, 0.0 }
 0x23b   :  { %3966 = vst [vmem:[%s6247_s2 + $0x60] sm:$0xff] %v4398_v54  ;;  %3967 = vst [vmem:[%s6247_s2 + $0x68] sm:$0xff] %v4399_v55  ;;  %v4400_v58 = vpack.c.bf16 %v3643_v56, %v3642_v50  ;;  %v4401_v59 = vpack.c.bf16 %v3645_v57, %v3644_v51 }
 0x23d   :  { %3968 = vst [vmem:[%s6247_s2 + $0x70] sm:$0xff] %v4400_v58  ;;  %3969 = vst [vmem:[%s6247_s2 + $0x78] sm:$0xff] %v4401_v59  ;;  %v2728_v60 = vpop.f32.mrb[16].mxu0  ;;  %v3292_v61 = vpop.f32.mrb[16].mxu1 }
 0x23e   :  { %v3646_v62 = vmax.f32 %v2728_v60, 0.0  ;;  %v3648_v63 = vmax.f32 %v3292_v61, 0.0  ;;  %v2730_v0 = vpop.f32.mrb[17].mxu0  ;;  %v3294_v1 = vpop.f32.mrb[17].mxu1 }
 0x23f   :  { %v3647_v2 = vmax.f32 %v2730_v0, 0.0  ;;  %v3649_v3 = vmax.f32 %v3294_v1, 0.0  ;;  %v2732_v4 = vpop.f32.mrb[18].mxu0  ;;  %v3296_v5 = vpop.f32.mrb[18].mxu1 }
 0x240   :  { %v3650_v6 = vmax.f32 %v2732_v4, 0.0  ;;  %v3652_v7 = vmax.f32 %v3296_v5, 0.0  ;;  %v2734_v8 = vpop.f32.mrb[19].mxu0  ;;  %v3298_v9 = vpop.f32.mrb[19].mxu1 }
 0x241   :  { %v4402_v10 = vpack.c.bf16 %v3647_v2, %v3646_v62  ;;  %v4403_v11 = vpack.c.bf16 %v3649_v3, %v3648_v63  ;;  %v3651_v12 = vmax.f32 %v2734_v8, 0.0  ;;  %v3653_v13 = vmax.f32 %v3298_v9, 0.0 }
 0x243   :  { %3970 = vst [vmem:[%s6247_s2 + $0x80] sm:$0xff] %v4402_v10  ;;  %3971 = vst [vmem:[%s6247_s2 + $0x88] sm:$0xff] %v4403_v11  ;;  %v4404_v14 = vpack.c.bf16 %v3651_v12, %v3650_v6  ;;  %v4405_v15 = vpack.c.bf16 %v3653_v13, %v3652_v7 }
 0x245   :  { %3972 = vst [vmem:[%s6247_s2 + $0x90] sm:$0xff] %v4404_v14  ;;  %3973 = vst [vmem:[%s6247_s2 + $0x98] sm:$0xff] %v4405_v15  ;;  %v2738_v16 = vpop.f32.mrb[20].mxu0  ;;  %v3302_v17 = vpop.f32.mrb[20].mxu1 }
 0x246   :  { %v3654_v18 = vmax.f32 %v2738_v16, 0.0  ;;  %v3656_v19 = vmax.f32 %v3302_v17, 0.0  ;;  %v2740_v20 = vpop.f32.mrb[21].mxu0  ;;  %v3304_v21 = vpop.f32.mrb[21].mxu1 }
 0x247   :  { %v3655_v22 = vmax.f32 %v2740_v20, 0.0  ;;  %v3657_v23 = vmax.f32 %v3304_v21, 0.0  ;;  %v2742_v24 = vpop.f32.mrb[22].mxu0  ;;  %v3306_v25 = vpop.f32.mrb[22].mxu1 }
 0x248   :  { %v3658_v26 = vmax.f32 %v2742_v24, 0.0  ;;  %v3660_v27 = vmax.f32 %v3306_v25, 0.0  ;;  %v2744_v28 = vpop.f32.mrb[23].mxu0  ;;  %v3308_v29 = vpop.f32.mrb[23].mxu1 }
 0x249   :  { %v4406_v30 = vpack.c.bf16 %v3655_v22, %v3654_v18  ;;  %v4407_v31 = vpack.c.bf16 %v3657_v23, %v3656_v19  ;;  %v3659_v32 = vmax.f32 %v2744_v28, 0.0  ;;  %v3661_v33 = vmax.f32 %v3308_v29, 0.0 }
 0x24b   :  { %3974 = vst [vmem:[%s6247_s2 + $0xa0] sm:$0xff] %v4406_v30  ;;  %3975 = vst [vmem:[%s6247_s2 + $0xa8] sm:$0xff] %v4407_v31  ;;  %v4408_v34 = vpack.c.bf16 %v3659_v32, %v3658_v26  ;;  %v4409_v35 = vpack.c.bf16 %v3661_v33, %v3660_v27 }
 0x24d   :  { %3976 = vst [vmem:[%s6247_s2 + $0xb0] sm:$0xff] %v4408_v34  ;;  %3977 = vst [vmem:[%s6247_s2 + $0xb8] sm:$0xff] %v4409_v35  ;;  %v2748_v36 = vpop.f32.mrb[24].mxu0  ;;  %v3312_v37 = vpop.f32.mrb[24].mxu1 }
 0x24e   :  { %v3662_v38 = vmax.f32 %v2748_v36, 0.0  ;;  %v3664_v39 = vmax.f32 %v3312_v37, 0.0  ;;  %v2750_v40 = vpop.f32.mrb[25].mxu0  ;;  %v3314_v41 = vpop.f32.mrb[25].mxu1 }
 0x24f   :  { %v3663_v42 = vmax.f32 %v2750_v40, 0.0  ;;  %v3665_v43 = vmax.f32 %v3314_v41, 0.0  ;;  %v2752_v44 = vpop.f32.mrb[26].mxu0  ;;  %v3316_v45 = vpop.f32.mrb[26].mxu1 }
 0x250   :  { %v3666_v46 = vmax.f32 %v2752_v44, 0.0  ;;  %v3668_v47 = vmax.f32 %v3316_v45, 0.0  ;;  %v2754_v48 = vpop.f32.mrb[27].mxu0  ;;  %v3318_v49 = vpop.f32.mrb[27].mxu1 }
 0x251   :  { %v4410_v50 = vpack.c.bf16 %v3663_v42, %v3662_v38  ;;  %v4411_v51 = vpack.c.bf16 %v3665_v43, %v3664_v39  ;;  %v3667_v52 = vmax.f32 %v2754_v48, 0.0  ;;  %v3669_v53 = vmax.f32 %v3318_v49, 0.0 }
 0x253   :  { %3978 = vst [vmem:[%s6247_s2 + $0xc0] sm:$0xff] %v4410_v50  ;;  %3979 = vst [vmem:[%s6247_s2 + $0xc8] sm:$0xff] %v4411_v51  ;;  %v4412_v54 = vpack.c.bf16 %v3667_v52, %v3666_v46  ;;  %v4413_v55 = vpack.c.bf16 %v3669_v53, %v3668_v47 }
 0x255   :  { %3980 = vst [vmem:[%s6247_s2 + $0xd0] sm:$0xff] %v4412_v54  ;;  %3981 = vst [vmem:[%s6247_s2 + $0xd8] sm:$0xff] %v4413_v55  ;;  %v2758_v56 = vpop.f32.mrb[28].mxu0  ;;  %v3322_v57 = vpop.f32.mrb[28].mxu1 }
 0x256   :  { %v3670_v58 = vmax.f32 %v2758_v56, 0.0  ;;  %v3672_v59 = vmax.f32 %v3322_v57, 0.0  ;;  %v2760_v60 = vpop.f32.mrb[29].mxu0  ;;  %v3324_v61 = vpop.f32.mrb[29].mxu1 }
 0x257   :  { %v3671_v62 = vmax.f32 %v2760_v60, 0.0  ;;  %v3673_v63 = vmax.f32 %v3324_v61, 0.0  ;;  %v2762_v0 = vpop.f32.mrb[30].mxu0  ;;  %v3326_v1 = vpop.f32.mrb[30].mxu1 }
 0x258   :  { %v3674_v2 = vmax.f32 %v2762_v0, 0.0  ;;  %v3676_v3 = vmax.f32 %v3326_v1, 0.0  ;;  %v2764_v4 = vpop.f32.mrb[31].mxu0  ;;  %v3328_v5 = vpop.f32.mrb[31].mxu1 }
 0x259   :  { %v4414_v6 = vpack.c.bf16 %v3671_v62, %v3670_v58  ;;  %v4415_v7 = vpack.c.bf16 %v3673_v63, %v3672_v59  ;;  %v3675_v8 = vmax.f32 %v2764_v4, 0.0  ;;  %v3677_v9 = vmax.f32 %v3328_v5, 0.0 }
 0x25b   :  { %3982 = vst [vmem:[%s6247_s2 + $0xe0] sm:$0xff] %v4414_v6  ;;  %3983 = vst [vmem:[%s6247_s2 + $0xe8] sm:$0xff] %v4415_v7  ;;  %v4416_v10 = vpack.c.bf16 %v3675_v8, %v3674_v2  ;;  %v4417_v11 = vpack.c.bf16 %v3677_v9, %v3676_v3 }
 0x25d   :  { %3984 = vst [vmem:[%s6247_s2 + $0xf0] sm:$0xff] %v4416_v10  ;;  %3985 = vst [vmem:[%s6247_s2 + $0xf8] sm:$0xff] %v4417_v11  ;;  %v2768_v12 = vpop.f32.mrb[32].mxu0  ;;  %v3332_v13 = vpop.f32.mrb[32].mxu1 }
 0x25e   :  { %v3678_v14 = vmax.f32 %v2768_v12, 0.0  ;;  %v3680_v15 = vmax.f32 %v3332_v13, 0.0  ;;  %v2770_v16 = vpop.f32.mrb[33].mxu0  ;;  %v3334_v17 = vpop.f32.mrb[33].mxu1 }
 0x25f   :  { %v3679_v18 = vmax.f32 %v2770_v16, 0.0  ;;  %v3681_v19 = vmax.f32 %v3334_v17, 0.0  ;;  %v2772_v20 = vpop.f32.mrb[34].mxu0  ;;  %v3336_v21 = vpop.f32.mrb[34].mxu1 }
 0x260   :  { %v3682_v22 = vmax.f32 %v2772_v20, 0.0  ;;  %v3684_v23 = vmax.f32 %v3336_v21, 0.0  ;;  %v2774_v24 = vpop.f32.mrb[35].mxu0  ;;  %v3338_v25 = vpop.f32.mrb[35].mxu1 }
 0x261   :  { %v4418_v26 = vpack.c.bf16 %v3679_v18, %v3678_v14  ;;  %v4419_v27 = vpack.c.bf16 %v3681_v19, %v3680_v15  ;;  %v3683_v28 = vmax.f32 %v2774_v24, 0.0  ;;  %v3685_v29 = vmax.f32 %v3338_v25, 0.0 }
 0x263   :  { %3986 = vst [vmem:[%s6247_s2 + $0x100] sm:$0xff] %v4418_v26  ;;  %3987 = vst [vmem:[%s6247_s2 + $0x108] sm:$0xff] %v4419_v27  ;;  %v4420_v30 = vpack.c.bf16 %v3683_v28, %v3682_v22  ;;  %v4421_v31 = vpack.c.bf16 %v3685_v29, %v3684_v23 }
 0x265   :  { %3988 = vst [vmem:[%s6247_s2 + $0x110] sm:$0xff] %v4420_v30  ;;  %3989 = vst [vmem:[%s6247_s2 + $0x118] sm:$0xff] %v4421_v31  ;;  %v2778_v32 = vpop.f32.mrb[36].mxu0  ;;  %v3342_v33 = vpop.f32.mrb[36].mxu1 }
 0x266   :  { %v3686_v34 = vmax.f32 %v2778_v32, 0.0  ;;  %v3688_v35 = vmax.f32 %v3342_v33, 0.0  ;;  %v2780_v36 = vpop.f32.mrb[37].mxu0  ;;  %v3344_v37 = vpop.f32.mrb[37].mxu1 }
 0x267   :  { %v3687_v38 = vmax.f32 %v2780_v36, 0.0  ;;  %v3689_v39 = vmax.f32 %v3344_v37, 0.0  ;;  %v2782_v40 = vpop.f32.mrb[38].mxu0  ;;  %v3346_v41 = vpop.f32.mrb[38].mxu1 }
 0x268   :  { %v3690_v42 = vmax.f32 %v2782_v40, 0.0  ;;  %v3692_v43 = vmax.f32 %v3346_v41, 0.0  ;;  %v2784_v44 = vpop.f32.mrb[39].mxu0  ;;  %v3348_v45 = vpop.f32.mrb[39].mxu1 }
 0x269   :  { %v4422_v46 = vpack.c.bf16 %v3687_v38, %v3686_v34  ;;  %v4423_v47 = vpack.c.bf16 %v3689_v39, %v3688_v35  ;;  %v3691_v48 = vmax.f32 %v2784_v44, 0.0  ;;  %v3693_v49 = vmax.f32 %v3348_v45, 0.0 }
 0x26b   :  { %3990 = vst [vmem:[%s6247_s2 + $0x120] sm:$0xff] %v4422_v46  ;;  %3991 = vst [vmem:[%s6247_s2 + $0x128] sm:$0xff] %v4423_v47  ;;  %v4424_v50 = vpack.c.bf16 %v3691_v48, %v3690_v42  ;;  %v4425_v51 = vpack.c.bf16 %v3693_v49, %v3692_v43 }
 0x26d   :  { %3992 = vst [vmem:[%s6247_s2 + $0x130] sm:$0xff] %v4424_v50  ;;  %3993 = vst [vmem:[%s6247_s2 + $0x138] sm:$0xff] %v4425_v51  ;;  %v2788_v52 = vpop.f32.mrb[40].mxu0  ;;  %v3352_v53 = vpop.f32.mrb[40].mxu1 }
 0x26e   :  { %v3694_v54 = vmax.f32 %v2788_v52, 0.0  ;;  %v3696_v55 = vmax.f32 %v3352_v53, 0.0  ;;  %v2790_v56 = vpop.f32.mrb[41].mxu0  ;;  %v3354_v57 = vpop.f32.mrb[41].mxu1 }
 0x26f   :  { %v3695_v58 = vmax.f32 %v2790_v56, 0.0  ;;  %v3697_v59 = vmax.f32 %v3354_v57, 0.0  ;;  %v2792_v60 = vpop.f32.mrb[42].mxu0  ;;  %v3356_v61 = vpop.f32.mrb[42].mxu1 }
 0x270   :  { %v2793_v62 = vpop.f32.mrb[43].mxu0  ;;  %v3357_v63 = vpop.f32.mrb[43].mxu1 }
 0x271   :  { %v4426_v0 = vpack.c.bf16 %v3695_v58, %v3694_v54  ;;  %v4427_v1 = vpack.c.bf16 %v3697_v59, %v3696_v55 }
 0x273   :  { %3994 = vst [vmem:[%s6247_s2 + $0x140] sm:$0xff] %v4426_v0  ;;  %3995 = vst [vmem:[%s6247_s2 + $0x148] sm:$0xff] %v4427_v1 }

// kernel: generator_forward.8
= control target key start
LH: loop header
LB: loop body
LE: loop exit
PB: predicated region body
PF: predicated region fallthrough
CT: control target
= control target key end

     0   :  { %s2912_s9 = smov 0   ;;  %s2914_s10 = smov 0   ;;  %s3259_s0 = inlined_call_operand.vmem [shape: bf16[592,512], index: 0, kind: input, shape index: {}]   ;;  %s3260_s1 = inlined_call_operand.vmem [shape: bf16[512,256], index: 1, kind: input, shape index: {}]   ;;  %s3261_s2 = inlined_call_operand.vmem [shape: bf16[592,256], index: 2, kind: output, shape index: {}]  }
   0x1   :  { %s2916_s11 = smov 0  }
   0x2 LB: > { %s31_s12 = sadd.s32 1, %s2891_s10  ;;  %p2344_p0 = scmp.ge.s32.totalorder %s2895_s11, 1  ;;  %s2895_s11 = sphi %s2916_s11, %s12_s11   ;;  %s2891_s10 = sphi %s2914_s10, %s3263_s10   ;;  %s2887_s9 = sphi %s2912_s9, %s3262_s9  }
   0x3   : > { %p33_p1 = scmp.ge.s32.totalorder %s31_s12, 2  ;;  %p161_p2 = scmp.lt.s32.totalorder %s2895_s11, 3 }
   0x5   : > { %s3265_s12 = smov (%p33_p1, %s31_s12), 0  ;;  %p162_p3 = pnand %p2344_p0, %p161_p2 }
   0x6   : > { %v2665_v0 = vld [vmem:[%s3260_s1 + $0x4] ss:$8 sps:$4 sm:$0xff] (!%p162_p3)   ;;  %v2669_v2 = vld [vmem:[%s3260_s1] ss:$8 sps:$4 sm:$0xff] (!%p162_p3)   ;;  %v2671_v4 = vld [vmem:[%s3260_s1 + $0x14] ss:$8 sps:$4 sm:$0xff] (!%p162_p3)  }
   0x7   : > { %165 = sbr.rel (%p162_p3) target bundleno = 436 (0x1b4), region = 28  ;;  %v2667_v1 = vld [vmem:[%s3260_s1 + $0x104] ss:$8 sps:$4 sm:$0xff] (!%p162_p3)   ;;  %1223 = vmatprep.subr.bf16.mxu1 (!%p162_p3), %v2665_v0  ;;  %v2670_v3 = vld [vmem:[%s3260_s1 + $0x100] ss:$8 sps:$4 sm:$0xff] (!%p162_p3)  }
   0x8   : > { %1444 = vmatprep.subr.bf16.mxu0 (!%p162_p3), %v2667_v1  ;;  %1224 = vmatpush1.bf16.msra.mxu1 (!%p162_p3), %v2669_v2  ;;  %v2673_v5 = vld [vmem:[%s3260_s1 + $0x114] ss:$8 sps:$4 sm:$0xff] (!%p162_p3)   ;;  %v2675_v6 = vld [vmem:[%s3260_s1 + $0x10] ss:$8 sps:$4 sm:$0xff] (!%p162_p3)   ;;  %v2677_v8 = vld [vmem:[%s3260_s1 + $0x24] ss:$8 sps:$4 sm:$0xff] (!%p162_p3)  }
   0x9   : > { %1445 = vmatpush1.bf16.msra.mxu0 (!%p162_p3), %v2670_v3  ;;  %1225 = vmatprep.subr.bf16.mxu1 (!%p162_p3), %v2671_v4  ;;  %v2676_v7 = vld [vmem:[%s3260_s1 + $0x110] ss:$8 sps:$4 sm:$0xff] (!%p162_p3)   ;;  %v2679_v9 = vld [vmem:[%s3260_s1 + $0x124] ss:$8 sps:$4 sm:$0xff] (!%p162_p3)   ;;  %v2681_v10 = vld [vmem:[%s3260_s1 + $0x20] ss:$8 sps:$4 sm:$0xff] (!%p162_p3)  }
   0xa   : > { %1446 = vmatprep.subr.bf16.mxu0 (!%p162_p3), %v2673_v5  ;;  %v2682_v11 = vld [vmem:[%s3260_s1 + $0x120] ss:$8 sps:$4 sm:$0xff] (!%p162_p3)   ;;  %v2683_v12 = vld [vmem:[%s3260_s1 + $0x34] ss:$8 sps:$4 sm:$0xff] (!%p162_p3)   ;;  %v2687_v14 = vld [vmem:[%s3260_s1 + $0x30] ss:$8 sps:$4 sm:$0xff] (!%p162_p3)  }
   0xb   : > { %v2685_v13 = vld [vmem:[%s3260_s1 + $0x134] ss:$8 sps:$4 sm:$0xff] (!%p162_p3)   ;;  %v2688_v15 = vld [vmem:[%s3260_s1 + $0x130] ss:$8 sps:$4 sm:$0xff] (!%p162_p3)   ;;  %v2689_v16 = vld [vmem:[%s3260_s1 + $0x44] ss:$8 sps:$4 sm:$0xff] (!%p162_p3)  }
   0xc   : > { %1226 = vmatpush1.bf16.msra.mxu1 (!%p162_p3), %v2675_v6  ;;  %v2691_v17 = vld [vmem:[%s3260_s1 + $0x144] ss:$8 sps:$4 sm:$0xff] (!%p162_p3)   ;;  %v2693_v18 = vld [vmem:[%s3260_s1 + $0x40] ss:$8 sps:$4 sm:$0xff] (!%p162_p3)   ;;  %v2695_v20 = vld [vmem:[%s3260_s1 + $0x54] ss:$8 sps:$4 sm:$0xff] (!%p162_p3)  }
   0xd   : > { %1447 = vmatpush1.bf16.msra.mxu0 (!%p162_p3), %v2676_v7  ;;  %1227 = vmatprep.subr.bf16.mxu1 (!%p162_p3), %v2677_v8  ;;  %v2694_v19 = vld [vmem:[%s3260_s1 + $0x140] ss:$8 sps:$4 sm:$0xff] (!%p162_p3)   ;;  %v2697_v21 = vld [vmem:[%s3260_s1 + $0x154] ss:$8 sps:$4 sm:$0xff] (!%p162_p3)   ;;  %v2699_v22 = vld [vmem:[%s3260_s1 + $0x50] ss:$8 sps:$4 sm:$0xff] (!%p162_p3)  }
   0xe   : > { %1448 = vmatprep.subr.bf16.mxu0 %v2679_v9  ;;  %v2700_v23 = vld [vmem:[%s3260_s1 + $0x150] ss:$8 sps:$4 sm:$0xff]   ;;  %v2701_v24 = vld [vmem:[%s3260_s1 + $0x64] ss:$8 sps:$4 sm:$0xff]   ;;  %v2705_v26 = vld [vmem:[%s3260_s1 + $0x60] ss:$8 sps:$4 sm:$0xff]  }
   0xf   : > { %v2703_v25 = vld [vmem:[%s3260_s1 + $0x164] ss:$8 sps:$4 sm:$0xff]   ;;  %v2706_v27 = vld [vmem:[%s3260_s1 + $0x160] ss:$8 sps:$4 sm:$0xff]   ;;  %v2707_v28 = vld [vmem:[%s3260_s1 + $0x74] ss:$8 sps:$4 sm:$0xff]  }
  0x10   : > { %1228 = vmatpush1.bf16.msra.mxu1 %v2681_v10  ;;  %v2709_v29 = vld [vmem:[%s3260_s1 + $0x174] ss:$8 sps:$4 sm:$0xff]   ;;  %s203_s25 = smul.u32 37, %s2887_s9  ;;  %v2711_v30 = vld [vmem:[%s3260_s1 + $0x70] ss:$8 sps:$4 sm:$0xff]  }
  0x11   : > { %1449 = vmatpush1.bf16.msra.mxu0 %v2682_v11  ;;  %1229 = vmatprep.subr.bf16.mxu1 %v2683_v12  ;;  %v2712_v31 = vld [vmem:[%s3260_s1 + $0x170] ss:$8 sps:$4 sm:$0xff]   ;;  %v2713_v32 = vld [vmem:[%s3260_s1 + $0x84] ss:$8 sps:$4 sm:$0xff]   ;;  %v2717_v34 = vld [vmem:[%s3260_s1 + $0x80] ss:$8 sps:$4 sm:$0xff]  }
  0x12   : > { %1450 = vmatprep.subr.bf16.mxu0 %v2685_v13  ;;  %v2715_v33 = vld [vmem:[%s3260_s1 + $0x184] ss:$8 sps:$4 sm:$0xff]   ;;  %p205_p4 = scmp.lt.s32.totalorder %s203_s25, 73  ;;  %v2718_v35 = vld [vmem:[%s3260_s1 + $0x180] ss:$8 sps:$4 sm:$0xff]  }
  0x13   : > { %v2719_v36 = vld [vmem:[%s3260_s1 + $0x94] ss:$8 sps:$4 sm:$0xff]   ;;  %v2723_v38 = vld [vmem:[%s3260_s1 + $0x90] ss:$8 sps:$4 sm:$0xff]   ;;  %v2725_v40 = vld [vmem:[%s3260_s1 + $0xa4] ss:$8 sps:$4 sm:$0xff]  }
  0x14   : > { %1230 = vmatpush1.bf16.msra.mxu1 %v2687_v14  ;;  %v2721_v37 = vld [vmem:[%s3260_s1 + $0x194] ss:$8 sps:$4 sm:$0xff]   ;;  %s3267_s25 = smov (!%p205_p4, %s203_s25), 73  ;;  %v2724_v39 = vld [vmem:[%s3260_s1 + $0x190] ss:$8 sps:$4 sm:$0xff]  }
  0x15   : > { %1451 = vmatpush1.bf16.msra.mxu0 %v2688_v15  ;;  %1231 = vmatprep.subr.bf16.mxu1 %v2689_v16  ;;  %v2727_v41 = vld [vmem:[%s3260_s1 + $0x1a4] ss:$8 sps:$4 sm:$0xff]   ;;  %s2528_s26 = sshll.u32 %s3267_s25, 4  ;;  %v2729_v42 = vld [vmem:[%s3260_s1 + $0xa0] ss:$8 sps:$4 sm:$0xff]   ;;  %s2529_s27 = sshll.u32 %s3267_s25, 3 }
  0x16   : > { %1452 = vmatprep.subr.bf16.mxu0 %v2691_v17  ;;  %v2730_v43 = vld [vmem:[%s3260_s1 + $0x1a0] ss:$8 sps:$4 sm:$0xff]   ;;  %v2731_v44 = vld [vmem:[%s3260_s1 + $0xb4] ss:$8 sps:$4 sm:$0xff]   ;;  %s3074_s6 = scalar_lea.vmem %s3259_s0, %s2528_s26  ;;  %v2735_v46 = vld [vmem:[%s3260_s1 + $0xb0] ss:$8 sps:$4 sm:$0xff]   ;;  %s3211_s29 = scalar_lea.vmem %s3261_s2, %s2529_s27 }
  0x17   : > { %v2733_v45 = vld [vmem:[%s3260_s1 + $0x1b4] ss:$8 sps:$4 sm:$0xff]   ;;  %v2736_v47 = vld [vmem:[%s3260_s1 + $0x1b0] ss:$8 sps:$4 sm:$0xff]   ;;  %v2737_v48 = vld [vmem:[%s3260_s1 + $0xc4] ss:$8 sps:$4 sm:$0xff]  }
  0x18   : > { %1232 = vmatpush1.bf16.msra.mxu1 %v2693_v18  ;;  %v2763_v49 = vld [vmem:[%s3074_s6 + $0x4] ss:$16 sps:$4 sm:$0xff]   ;;  %v2766_v51 = vld [vmem:[%s3074_s6 + $0xc] ss:$16 sps:$4 sm:$0xff]   ;;  %v2741_v52 = vld [vmem:[%s3260_s1 + $0xc0] ss:$8 sps:$4 sm:$0xff]  }
  0x19   : > { %1453 = vmatpush1.bf16.msra.mxu0 %v2694_v19  ;;  %1233 = vmatprep.subr.bf16.mxu1 %v2695_v20  ;;  %v2739_v50 = vld [vmem:[%s3260_s1 + $0x1c4] ss:$8 sps:$4 sm:$0xff]   ;;  %v2742_v53 = vld [vmem:[%s3260_s1 + $0x1c0] ss:$8 sps:$4 sm:$0xff]   ;;  %v2743_v54 = vld [vmem:[%s3260_s1 + $0xd4] ss:$8 sps:$4 sm:$0xff]  }
  0x1a   : > { %1454 = vmatprep.subr.bf16.mxu0 %v2697_v21  ;;  %1255 = vmatprep.mubr.bf16.mxu1 %v2763_v49  ;;  %v2745_v55 = vld [vmem:[%s3260_s1 + $0x1d4] ss:$8 sps:$4 sm:$0xff]   ;;  %v2747_v56 = vld [vmem:[%s3260_s1 + $0xd0] ss:$8 sps:$4 sm:$0xff]   ;;  %v2749_v58 = vld [vmem:[%s3260_s1 + $0xe4] ss:$8 sps:$4 sm:$0xff]  }
  0x1b   : > { %1476 = vmatprep.mubr.bf16.mxu0 %v2766_v51  ;;  %v2748_v57 = vld [vmem:[%s3260_s1 + $0x1d0] ss:$8 sps:$4 sm:$0xff]   ;;  %v2751_v59 = vld [vmem:[%s3260_s1 + $0x1e4] ss:$8 sps:$4 sm:$0xff]   ;;  %v2753_v60 = vld [vmem:[%s3260_s1 + $0xe0] ss:$8 sps:$4 sm:$0xff]  }
  0x1c   : > { %1234 = vmatpush1.bf16.msra.mxu1 %v2699_v22  ;;  %v2754_v61 = vld [vmem:[%s3260_s1 + $0x1e0] ss:$8 sps:$4 sm:$0xff]   ;;  %v2755_v62 = vld [vmem:[%s3260_s1 + $0xf4] ss:$8 sps:$4 sm:$0xff]   ;;  %v2759_v0 = vld [vmem:[%s3260_s1 + $0xf0] ss:$8 sps:$4 sm:$0xff]  }
  0x1d   : > { %1455 = vmatpush1.bf16.msra.mxu0 %v2700_v23  ;;  %1235 = vmatprep.subr.bf16.mxu1 %v2701_v24  ;;  %v2757_v63 = vld [vmem:[%s3260_s1 + $0x1f4] ss:$8 sps:$4 sm:$0xff]   ;;  %v2760_v1 = vld [vmem:[%s3260_s1 + $0x1f0] ss:$8 sps:$4 sm:$0xff]  }
  0x1e   : > { %1456 = vmatprep.subr.bf16.mxu0 %v2703_v25  ;;  %v2761_v2 = vld [vmem:[%s3074_s6] ss:$16 sps:$4 sm:$0xff]   ;;  %v2764_v3 = vld [vmem:[%s3074_s6 + $0x8] ss:$16 sps:$4 sm:$0xff]   ;;  %v2767_v4 = vld [vmem:[%s3074_s6 + $0x24] ss:$16 sps:$4 sm:$0xff]  }
  0x1f   : > { %v2769_v5 = vld [vmem:[%s3074_s6 + $0x2c] ss:$16 sps:$4 sm:$0xff]   ;;  %v2771_v6 = vld [vmem:[%s3074_s6 + $0x20] ss:$16 sps:$4 sm:$0xff]   ;;  %v2772_v7 = vld [vmem:[%s3074_s6 + $0x28] ss:$16 sps:$4 sm:$0xff]  }
  0x20   : > { %1236 = vmatpush1.bf16.msra.mxu1 %v2705_v26  ;;  %v2773_v8 = vld [vmem:[%s3074_s6 + $0x44] ss:$16 sps:$4 sm:$0xff]   ;;  %v2775_v9 = vld [vmem:[%s3074_s6 + $0x4c] ss:$16 sps:$4 sm:$0xff]   ;;  %v2777_v10 = vld [vmem:[%s3074_s6 + $0x40] ss:$16 sps:$4 sm:$0xff]  }
  0x21   : > { %1457 = vmatpush1.bf16.msra.mxu0 %v2706_v27  ;;  %1237 = vmatprep.subr.bf16.mxu1 %v2707_v28  ;;  %v2778_v11 = vld [vmem:[%s3074_s6 + $0x48] ss:$16 sps:$4 sm:$0xff]   ;;  %v2779_v12 = vld [vmem:[%s3074_s6 + $0x64] ss:$16 sps:$4 sm:$0xff]   ;;  %v2781_v13 = vld [vmem:[%s3074_s6 + $0x6c] ss:$16 sps:$4 sm:$0xff]  }
  0x22   : > { %1458 = vmatprep.subr.bf16.mxu0 %v2709_v29  ;;  %v2783_v14 = vld [vmem:[%s3074_s6 + $0x60] ss:$16 sps:$4 sm:$0xff]   ;;  %v2784_v15 = vld [vmem:[%s3074_s6 + $0x68] ss:$16 sps:$4 sm:$0xff]   ;;  %v2785_v16 = vld [vmem:[%s3074_s6 + $0x84] ss:$16 sps:$4 sm:$0xff]  }
  0x23   : > { %v2787_v17 = vld [vmem:[%s3074_s6 + $0x8c] ss:$16 sps:$4 sm:$0xff]   ;;  %v2789_v18 = vld [vmem:[%s3074_s6 + $0x80] ss:$16 sps:$4 sm:$0xff]   ;;  %v2790_v19 = vld [vmem:[%s3074_s6 + $0x88] ss:$16 sps:$4 sm:$0xff]  }
  0x24   : > { %1238 = vmatpush1.bf16.msra.mxu1 %v2711_v30  ;;  %v2791_v20 = vld [vmem:[%s3074_s6 + $0xa4] ss:$16 sps:$4 sm:$0xff]   ;;  %v2793_v21 = vld [vmem:[%s3074_s6 + $0xac] ss:$16 sps:$4 sm:$0xff]   ;;  %v2795_v22 = vld [vmem:[%s3074_s6 + $0xa0] ss:$16 sps:$4 sm:$0xff]  }
  0x25   : > { %1459 = vmatpush1.bf16.msra.mxu0 %v2712_v31  ;;  %1239 = vmatprep.subr.bf16.mxu1 %v2713_v32  ;;  %v2796_v23 = vld [vmem:[%s3074_s6 + $0xa8] ss:$16 sps:$4 sm:$0xff]   ;;  %v2797_v24 = vld [vmem:[%s3074_s6 + $0xc4] ss:$16 sps:$4 sm:$0xff]   ;;  %v2799_v25 = vld [vmem:[%s3074_s6 + $0xcc] ss:$16 sps:$4 sm:$0xff]  }
  0x26   : > { %1460 = vmatprep.subr.bf16.mxu0 %v2715_v33  ;;  %v2801_v26 = vld [vmem:[%s3074_s6 + $0xc0] ss:$16 sps:$4 sm:$0xff]   ;;  %v2802_v27 = vld [vmem:[%s3074_s6 + $0xc8] ss:$16 sps:$4 sm:$0xff]   ;;  %v2803_v28 = vld [vmem:[%s3074_s6 + $0xe4] ss:$16 sps:$4 sm:$0xff]  }
  0x27   : > { %v2805_v29 = vld [vmem:[%s3074_s6 + $0xec] ss:$16 sps:$4 sm:$0xff]   ;;  %v2807_v30 = vld [vmem:[%s3074_s6 + $0xe0] ss:$16 sps:$4 sm:$0xff]   ;;  %v2808_v31 = vld [vmem:[%s3074_s6 + $0xe8] ss:$16 sps:$4 sm:$0xff]  }
  0x28   : > { %1240 = vmatpush1.bf16.msra.mxu1 %v2717_v34  ;;  %v2809_v32 = vld [vmem:[%s3074_s6 + $0x104] ss:$16 sps:$4 sm:$0xff]   ;;  %v2811_v33 = vld [vmem:[%s3074_s6 + $0x10c] ss:$16 sps:$4 sm:$0xff]   ;;  %v2813_v34 = vld [vmem:[%s3074_s6 + $0x100] ss:$16 sps:$4 sm:$0xff]  }
  0x29   : > { %1461 = vmatpush1.bf16.msra.mxu0 %v2718_v35  ;;  %1241 = vmatprep.subr.bf16.mxu1 %v2719_v36  ;;  %v2814_v35 = vld [vmem:[%s3074_s6 + $0x108] ss:$16 sps:$4 sm:$0xff]   ;;  %v2815_v36 = vld [vmem:[%s3074_s6 + $0x124] ss:$16 sps:$4 sm:$0xff]   ;;  %v2835_v49 = vld [vmem:[%s3074_s6 + $0x18c] ss:$16 sps:$4 sm:$0xff]  }
  0x2a   : > { %1462 = vmatprep.subr.bf16.mxu0 %v2721_v37  ;;  %v2817_v37 = vld [vmem:[%s3074_s6 + $0x12c] ss:$16 sps:$4 sm:$0xff]   ;;  %v2838_v51 = vld [vmem:[%s3074_s6 + $0x188] ss:$16 sps:$4 sm:$0xff]  }
  0x2c   : > { %1242 = vmatpush1.bf16.msra.mxu1 %v2723_v38  ;;  %v2819_v38 = vld [vmem:[%s3074_s6 + $0x120] ss:$16 sps:$4 sm:$0xff]  }
  0x2d   : > { %1463 = vmatpush1.bf16.msra.mxu0 %v2724_v39  ;;  %1243 = vmatprep.subr.bf16.mxu1 %v2725_v40  ;;  %v2820_v39 = vld [vmem:[%s3074_s6 + $0x128] ss:$16 sps:$4 sm:$0xff]   ;;  %v2821_v40 = vld [vmem:[%s3074_s6 + $0x144] ss:$16 sps:$4 sm:$0xff]  }
  0x2e   : > { %1464 = vmatprep.subr.bf16.mxu0 %v2727_v41  ;;  %v2823_v41 = vld [vmem:[%s3074_s6 + $0x14c] ss:$16 sps:$4 sm:$0xff]  }
  0x30   : > { %1244 = vmatpush1.bf16.msra.mxu1 %v2729_v42  ;;  %v2825_v42 = vld [vmem:[%s3074_s6 + $0x140] ss:$16 sps:$4 sm:$0xff]  }
  0x31   : > { %1465 = vmatpush1.bf16.msra.mxu0 %v2730_v43  ;;  %1245 = vmatprep.subr.bf16.mxu1 %v2731_v44  ;;  %v2826_v43 = vld [vmem:[%s3074_s6 + $0x148] ss:$16 sps:$4 sm:$0xff]   ;;  %v2827_v44 = vld [vmem:[%s3074_s6 + $0x164] ss:$16 sps:$4 sm:$0xff]  }
  0x32   : > { %1466 = vmatprep.subr.bf16.mxu0 %v2733_v45  ;;  %v2829_v45 = vld [vmem:[%s3074_s6 + $0x16c] ss:$16 sps:$4 sm:$0xff]  }
  0x34   : > { %1246 = vmatpush1.bf16.msra.mxu1 %v2735_v46  ;;  %v2831_v46 = vld [vmem:[%s3074_s6 + $0x160] ss:$16 sps:$4 sm:$0xff]  }
  0x35   : > { %1467 = vmatpush1.bf16.msra.mxu0 %v2736_v47  ;;  %1247 = vmatprep.subr.bf16.mxu1 %v2737_v48  ;;  %v2832_v47 = vld [vmem:[%s3074_s6 + $0x168] ss:$16 sps:$4 sm:$0xff]   ;;  %v2833_v48 = vld [vmem:[%s3074_s6 + $0x184] ss:$16 sps:$4 sm:$0xff]  }
  0x36   : > { %1468 = vmatprep.subr.bf16.mxu0 %v2739_v50  ;;  %v2837_v50 = vld [vmem:[%s3074_s6 + $0x180] ss:$16 sps:$4 sm:$0xff]  }
  0x38   : > { %1248 = vmatpush1.bf16.msra.mxu1 %v2741_v52  ;;  %v2839_v52 = vld [vmem:[%s3074_s6 + $0x1a4] ss:$16 sps:$4 sm:$0xff]  }
  0x39   : > { %1469 = vmatpush1.bf16.msra.mxu0 %v2742_v53  ;;  %1249 = vmatprep.subr.bf16.mxu1 %v2743_v54  ;;  %v2841_v53 = vld [vmem:[%s3074_s6 + $0x1ac] ss:$16 sps:$4 sm:$0xff]   ;;  %v2843_v54 = vld [vmem:[%s3074_s6 + $0x1a0] ss:$16 sps:$4 sm:$0xff]  }
  0x3a   : > { %1470 = vmatprep.subr.bf16.mxu0 %v2745_v55  ;;  %v2844_v55 = vld [vmem:[%s3074_s6 + $0x1a8] ss:$16 sps:$4 sm:$0xff]  }
  0x3c   : > { %1250 = vmatpush1.bf16.msra.mxu1 %v2747_v56  ;;  %v2845_v56 = vld [vmem:[%s3074_s6 + $0x1c4] ss:$16 sps:$4 sm:$0xff]  }
  0x3d   : > { %1471 = vmatpush1.bf16.msra.mxu0 %v2748_v57  ;;  %1251 = vmatprep.subr.bf16.mxu1 %v2749_v58  ;;  %v2847_v57 = vld [vmem:[%s3074_s6 + $0x1cc] ss:$16 sps:$4 sm:$0xff]   ;;  %v2849_v58 = vld [vmem:[%s3074_s6 + $0x1c0] ss:$16 sps:$4 sm:$0xff]  }
  0x3e   : > { %1472 = vmatprep.subr.bf16.mxu0 %v2751_v59  ;;  %v2850_v59 = vld [vmem:[%s3074_s6 + $0x1c8] ss:$16 sps:$4 sm:$0xff]  }
  0x40   : > { %1252 = vmatpush1.bf16.msra.mxu1 %v2753_v60  ;;  %v2851_v60 = vld [vmem:[%s3074_s6 + $0x1e4] ss:$16 sps:$4 sm:$0xff]  }
  0x41   : > { %1473 = vmatpush1.bf16.msra.mxu0 %v2754_v61  ;;  %1253 = vmatprep.subr.bf16.mxu1 %v2755_v62  ;;  %v2853_v61 = vld [vmem:[%s3074_s6 + $0x1ec] ss:$16 sps:$4 sm:$0xff]   ;;  %v2855_v62 = vld [vmem:[%s3074_s6 + $0x1e0] ss:$16 sps:$4 sm:$0xff]  }
  0x42   : > { %1474 = vmatprep.subr.bf16.mxu0 %v2757_v63  ;;  %v2856_v63 = vld [vmem:[%s3074_s6 + $0x1e8] ss:$16 sps:$4 sm:$0xff]  }
  0x44   : > { %1254 = vmatpush1.bf16.msra.mxu1 %v2759_v0  ;;  %v2857_v0 = vld [vmem:[%s3074_s6 + $0x204] ss:$16 sps:$4 sm:$0xff]  }
  0x45   : > { %1475 = vmatpush1.bf16.msra.mxu0 %v2760_v1  ;;  %v2859_v1 = vld [vmem:[%s3074_s6 + $0x20c] ss:$16 sps:$4 sm:$0xff]  }
  0x47   : > { %1256 = vmatmul.mubr.bf16.vlgmr.msra.gmra.mrb[0].mxu1 %v2761_v2  ;;  %v2861_v2 = vld [vmem:[%s3074_s6 + $0x200] ss:$16 sps:$4 sm:$0xff]  }
  0x48   : > { %1477 = vmatmul.mubr.bf16.vlgmr.msra.gmra.mrb[0].mxu0 %v2764_v3  ;;  %1265 = vmatprep.mubr.bf16.mxu1 %v2767_v4  ;;  %v2862_v3 = vld [vmem:[%s3074_s6 + $0x208] ss:$16 sps:$4 sm:$0xff]   ;;  %v2863_v4 = vld [vmem:[%s3074_s6 + $0x224] ss:$16 sps:$4 sm:$0xff]  }
  0x49   : > { %1486 = vmatprep.mubr.bf16.mxu0 %v2769_v5  ;;  %v2865_v5 = vld [vmem:[%s3074_s6 + $0x22c] ss:$16 sps:$4 sm:$0xff]  }
  0x4f   : > { %1266 = vmatmul.mubr.bf16.gmra.mrb[4].mxu1 %v2771_v6  ;;  %v463_v6 = vld [vmem:[%s3074_s6 + $0x240] sm:$0xff] }
  0x50   : > { %1487 = vmatmul.mubr.bf16.gmra.mrb[4].mxu0 %v2772_v7  ;;  %1275 = vmatprep.mubr.bf16.mxu1 %v2773_v8  ;;  %v464_v7 = vld [vmem:[%s3074_s6 + $0x248] sm:$0xff]  ;;  %v2867_v8 = vld [vmem:[%s3074_s6 + $0x220] ss:$16 sps:$4 sm:$0xff]  }
  0x51   : > { %1496 = vmatprep.mubr.bf16.mxu0 %v2775_v9  ;;  %v2868_v9 = vld [vmem:[%s3074_s6 + $0x228] ss:$16 sps:$4 sm:$0xff]  }
  0x57   : > { %1276 = vmatmul.mubr.bf16.gmra.mrb[8].mxu1 %v2777_v10  ;;  %v2422_v10 = vcombine.high %v463_v6, %v463_v6 }
  0x58   : > { %1497 = vmatmul.mubr.bf16.gmra.mrb[8].mxu0 %v2778_v11  ;;  %1285 = vmatprep.mubr.bf16.mxu1 %v2779_v12  ;;  %v2424_v11 = vcombine.high %v464_v7, %v464_v7  ;;  %v2421_v12 = vcombine.low %v463_v6, %v463_v6 }
  0x59   : > { %1506 = vmatprep.mubr.bf16.mxu0 %v2781_v13  ;;  %v2423_v13 = vcombine.low %v464_v7, %v464_v7 }
  0x5f   : > { %1286 = vmatmul.mubr.bf16.gmra.mrb[12].mxu1 %v2783_v14 }
  0x60   : > { %1507 = vmatmul.mubr.bf16.gmra.mrb[12].mxu0 %v2784_v15  ;;  %1295 = vmatprep.mubr.bf16.mxu1 %v2785_v16 }
  0x61   : > { %1516 = vmatprep.mubr.bf16.mxu0 %v2787_v17 }
  0x67   : > { %1296 = vmatmul.mubr.bf16.gmra.mrb[16].mxu1 %v2789_v18 }
  0x68   : > { %1517 = vmatmul.mubr.bf16.gmra.mrb[16].mxu0 %v2790_v19  ;;  %1305 = vmatprep.mubr.bf16.mxu1 %v2791_v20 }
  0x69   : > { %1526 = vmatprep.mubr.bf16.mxu0 %v2793_v21 }
  0x6f   : > { %1306 = vmatmul.mubr.bf16.gmra.mrb[20].mxu1 %v2795_v22 }
  0x70   : > { %1527 = vmatmul.mubr.bf16.gmra.mrb[20].mxu0 %v2796_v23  ;;  %1315 = vmatprep.mubr.bf16.mxu1 %v2797_v24 }
  0x71   : > { %1536 = vmatprep.mubr.bf16.mxu0 %v2799_v25 }
  0x77   : > { %1316 = vmatmul.mubr.bf16.gmra.mrb[24].mxu1 %v2801_v26 }
  0x78   : > { %1537 = vmatmul.mubr.bf16.gmra.mrb[24].mxu0 %v2802_v27  ;;  %1325 = vmatprep.mubr.bf16.mxu1 %v2803_v28 }
  0x79   : > { %1546 = vmatprep.mubr.bf16.mxu0 %v2805_v29 }
  0x7f   : > { %1326 = vmatmul.mubr.bf16.gmra.mrb[28].mxu1 %v2807_v30 }
  0x80   : > { %1547 = vmatmul.mubr.bf16.gmra.mrb[28].mxu0 %v2808_v31  ;;  %1335 = vmatprep.mubr.bf16.mxu1 %v2809_v32 }
  0x81   : > { %1556 = vmatprep.mubr.bf16.mxu0 %v2811_v33 }
  0x87   : > { %1336 = vmatmul.mubr.bf16.gmra.mrb[32].mxu1 %v2813_v34 }
  0x88   : > { %1557 = vmatmul.mubr.bf16.gmra.mrb[32].mxu0 %v2814_v35  ;;  %1345 = vmatprep.mubr.bf16.mxu1 %v2815_v36 }
  0x89   : > { %1566 = vmatprep.mubr.bf16.mxu0 %v2817_v37 }
  0x8f   : > { %1346 = vmatmul.mubr.bf16.gmra.mrb[36].mxu1 %v2819_v38 }
  0x90   : > { %1567 = vmatmul.mubr.bf16.gmra.mrb[36].mxu0 %v2820_v39  ;;  %1355 = vmatprep.mubr.bf16.mxu1 %v2821_v40 }
  0x91   : > { %1576 = vmatprep.mubr.bf16.mxu0 %v2823_v41 }
  0x97   : > { %1356 = vmatmul.mubr.bf16.gmra.mrb[40].mxu1 %v2825_v42 }
  0x98   : > { %1577 = vmatmul.mubr.bf16.gmra.mrb[40].mxu0 %v2826_v43  ;;  %1365 = vmatprep.mubr.bf16.mxu1 %v2827_v44 }
  0x99   : > { %1586 = vmatprep.mubr.bf16.mxu0 %v2829_v45 }
  0x9f   : > { %1366 = vmatmul.mubr.bf16.gmra.mrb[44].mxu1 %v2831_v46 }
  0xa0   : > { %1587 = vmatmul.mubr.bf16.gmra.mrb[44].mxu0 %v2832_v47  ;;  %1375 = vmatprep.mubr.bf16.mxu1 %v2833_v48 }
  0xa1   : > { %1596 = vmatprep.mubr.bf16.mxu0 %v2835_v49 }
  0xa7   : > { %1376 = vmatmul.mubr.bf16.gmra.mrb[48].mxu1 %v2837_v50 }
  0xa8   : > { %1597 = vmatmul.mubr.bf16.gmra.mrb[48].mxu0 %v2838_v51  ;;  %1385 = vmatprep.mubr.bf16.mxu1 %v2839_v52 }
  0xa9   : > { %1606 = vmatprep.mubr.bf16.mxu0 %v2841_v53 }
  0xaf   : > { %1386 = vmatmul.mubr.bf16.gmra.mrb[52].mxu1 %v2843_v54 }
  0xb0   : > { %1607 = vmatmul.mubr.bf16.gmra.mrb[52].mxu0 %v2844_v55  ;;  %1395 = vmatprep.mubr.bf16.mxu1 %v2845_v56 }
  0xb1   : > { %1616 = vmatprep.mubr.bf16.mxu0 %v2847_v57 }
  0xb7   : > { %1396 = vmatmul.mubr.bf16.gmra.mrb[56].mxu1 %v2849_v58 }
  0xb8   : > { %1617 = vmatmul.mubr.bf16.gmra.mrb[56].mxu0 %v2850_v59  ;;  %1405 = vmatprep.mubr.bf16.mxu1 %v2851_v60 }
  0xb9   : > { %1626 = vmatprep.mubr.bf16.mxu0 %v2853_v61 }
  0xbf   : > { %1406 = vmatmul.mubr.bf16.gmra.mrb[60].mxu1 %v2855_v62 }
  0xc0   : > { %1627 = vmatmul.mubr.bf16.gmra.mrb[60].mxu0 %v2856_v63  ;;  %1415 = vmatprep.mubr.bf16.mxu1 %v2857_v0 }
  0xc1   : > { %1636 = vmatprep.mubr.bf16.mxu0 %v2859_v1 }
  0xc7   : > { %1416 = vmatmul.mubr.bf16.gmra.mrb[64].mxu1 %v2861_v2 }
  0xc8   : > { %1637 = vmatmul.mubr.bf16.gmra.mrb[64].mxu0 %v2862_v3  ;;  %1425 = vmatprep.mubr.bf16.mxu1 %v2863_v4 }
  0xc9   : > { %1646 = vmatprep.mubr.bf16.mxu0 %v2865_v5 }
  0xcf   : > { %1426 = vmatmul.mubr.bf16.gmra.mrb[68].mxu1 %v2867_v8 }
  0xd0   : > { %1647 = vmatmul.mubr.bf16.gmra.mrb[68].mxu0 %v2868_v9  ;;  %1435 = vmatprep.mubr.bf16.mxu1 %v2422_v10 }
  0xd1   : > { %1656 = vmatprep.mubr.bf16.mxu0 %v2424_v11 }
  0xd7   : > { %1436 = vmatmul.mubr.bf16.gmra.mrb[72].mxu1 %v2421_v12 }
  0xd8   : > { %1657 = vmatmul.mubr.bf16.gmra.mrb[72].mxu0 %v2423_v13 }
 0x11a   : > { %v1257_v14 = vpop.f32.mrb[0].mxu1 }
 0x11b   : > { %v1478_v15 = vpop.f32.mrb[0].mxu0  ;;  %v1259_v17 = vpop.f32.mrb[1].mxu1 }
 0x11c   : > { %v1479_v16 = vadd.f32 %v1478_v15, %v1257_v14  ;;  %v1480_v18 = vpop.f32.mrb[1].mxu0  ;;  %v1261_v20 = vpop.f32.mrb[2].mxu1 }
 0x11d   : > { %v1481_v19 = vadd.f32 %v1480_v18, %v1259_v17  ;;  %v1482_v21 = vpop.f32.mrb[2].mxu0  ;;  %v1263_v24 = vpop.f32.mrb[3].mxu1 }
 0x11e   : > { %v1890_v22 = vmax.f32 %v1479_v16, 0.0  ;;  %v1483_v23 = vadd.f32 %v1482_v21, %v1261_v20  ;;  %v1484_v25 = vpop.f32.mrb[3].mxu0 }
 0x11f   : > { %v1891_v26 = vmax.f32 %v1481_v19, 0.0  ;;  %v1485_v27 = vadd.f32 %v1484_v25, %v1263_v24 }
 0x120   : > { %v1892_v28 = vmax.f32 %v1483_v23, 0.0 }
 0x121   : > { %v2530_v29 = vpack.c.bf16 %v1891_v26, %v1890_v22  ;;  %v1893_v30 = vmax.f32 %v1485_v27, 0.0 }
 0x122   : > { %v1267_v32 = vpop.f32.mrb[4].mxu1 }
 0x123   : > { %2188 = vst [vmem:[%s3211_s29] sm:$0xff] %v2530_v29  ;;  %v2531_v31 = vpack.c.bf16 %v1893_v30, %v1892_v28  ;;  %v1488_v33 = vpop.f32.mrb[4].mxu0  ;;  %v1269_v35 = vpop.f32.mrb[5].mxu1 }
 0x124   : > { %v1489_v34 = vadd.f32 %v1488_v33, %v1267_v32  ;;  %v1490_v36 = vpop.f32.mrb[5].mxu0  ;;  %v1271_v38 = vpop.f32.mrb[6].mxu1 }
 0x125   : > { %2189 = vst [vmem:[%s3211_s29 + $0x8] sm:$0xff] %v2531_v31  ;;  %v1491_v37 = vadd.f32 %v1490_v36, %v1269_v35  ;;  %v1492_v39 = vpop.f32.mrb[6].mxu0  ;;  %v1273_v42 = vpop.f32.mrb[7].mxu1 }
 0x126   : > { %v1894_v40 = vmax.f32 %v1489_v34, 0.0  ;;  %v1493_v41 = vadd.f32 %v1492_v39, %v1271_v38  ;;  %v1494_v43 = vpop.f32.mrb[7].mxu0 }
 0x127   : > { %v1895_v44 = vmax.f32 %v1491_v37, 0.0  ;;  %v1495_v45 = vadd.f32 %v1494_v43, %v1273_v42 }
 0x128   : > { %v1896_v46 = vmax.f32 %v1493_v41, 0.0 }
 0x129   : > { %v2532_v47 = vpack.c.bf16 %v1895_v44, %v1894_v40  ;;  %v1897_v48 = vmax.f32 %v1495_v45, 0.0 }
 0x12a   : > { %v1277_v50 = vpop.f32.mrb[8].mxu1 }
 0x12b   : > { %2190 = vst [vmem:[%s3211_s29 + $0x10] sm:$0xff] %v2532_v47  ;;  %v2533_v49 = vpack.c.bf16 %v1897_v48, %v1896_v46  ;;  %v1498_v51 = vpop.f32.mrb[8].mxu0  ;;  %v1279_v53 = vpop.f32.mrb[9].mxu1 }
 0x12c   : > { %v1499_v52 = vadd.f32 %v1498_v51, %v1277_v50  ;;  %v1500_v54 = vpop.f32.mrb[9].mxu0  ;;  %v1281_v56 = vpop.f32.mrb[10].mxu1 }
 0x12d   : > { %2191 = vst [vmem:[%s3211_s29 + $0x18] sm:$0xff] %v2533_v49  ;;  %v1501_v55 = vadd.f32 %v1500_v54, %v1279_v53  ;;  %v1502_v57 = vpop.f32.mrb[10].mxu0  ;;  %v1283_v60 = vpop.f32.mrb[11].mxu1 }
 0x12e   : > { %v1898_v58 = vmax.f32 %v1499_v52, 0.0  ;;  %v1503_v59 = vadd.f32 %v1502_v57, %v1281_v56  ;;  %v1504_v61 = vpop.f32.mrb[11].mxu0 }
 0x12f   : > { %v1899_v62 = vmax.f32 %v1501_v55, 0.0  ;;  %v1505_v63 = vadd.f32 %v1504_v61, %v1283_v60 }
 0x130   : > { %v1900_v0 = vmax.f32 %v1503_v59, 0.0 }
 0x131   : > { %v2534_v1 = vpack.c.bf16 %v1899_v62, %v1898_v58  ;;  %v1901_v2 = vmax.f32 %v1505_v63, 0.0 }
 0x132   : > { %v1287_v4 = vpop.f32.mrb[12].mxu1 }
 0x133   : > { %2192 = vst [vmem:[%s3211_s29 + $0x20] sm:$0xff] %v2534_v1  ;;  %v2535_v3 = vpack.c.bf16 %v1901_v2, %v1900_v0  ;;  %v1508_v5 = vpop.f32.mrb[12].mxu0  ;;  %v1289_v7 = vpop.f32.mrb[13].mxu1 }
 0x134   : > { %v1509_v6 = vadd.f32 %v1508_v5, %v1287_v4  ;;  %v1510_v8 = vpop.f32.mrb[13].mxu0  ;;  %v1291_v10 = vpop.f32.mrb[14].mxu1 }
 0x135   : > { %2193 = vst [vmem:[%s3211_s29 + $0x28] sm:$0xff] %v2535_v3  ;;  %v1511_v9 = vadd.f32 %v1510_v8, %v1289_v7  ;;  %v1512_v11 = vpop.f32.mrb[14].mxu0  ;;  %v1293_v14 = vpop.f32.mrb[15].mxu1 }
 0x136   : > { %v1902_v12 = vmax.f32 %v1509_v6, 0.0  ;;  %v1513_v13 = vadd.f32 %v1512_v11, %v1291_v10  ;;  %v1514_v15 = vpop.f32.mrb[15].mxu0 }
 0x137   : > { %v1903_v16 = vmax.f32 %v1511_v9, 0.0  ;;  %v1515_v17 = vadd.f32 %v1514_v15, %v1293_v14 }
 0x138   : > { %v1904_v18 = vmax.f32 %v1513_v13, 0.0 }
 0x139   : > { %v2536_v19 = vpack.c.bf16 %v1903_v16, %v1902_v12  ;;  %v1905_v20 = vmax.f32 %v1515_v17, 0.0 }
 0x13a   : > { %v1297_v22 = vpop.f32.mrb[16].mxu1 }
 0x13b   : > { %2194 = vst [vmem:[%s3211_s29 + $0x30] sm:$0xff] %v2536_v19  ;;  %v2537_v21 = vpack.c.bf16 %v1905_v20, %v1904_v18  ;;  %v1518_v23 = vpop.f32.mrb[16].mxu0  ;;  %v1299_v25 = vpop.f32.mrb[17].mxu1 }
 0x13c   : > { %v1519_v24 = vadd.f32 %v1518_v23, %v1297_v22  ;;  %v1520_v26 = vpop.f32.mrb[17].mxu0  ;;  %v1301_v28 = vpop.f32.mrb[18].mxu1 }
 0x13d   : > { %2195 = vst [vmem:[%s3211_s29 + $0x38] sm:$0xff] %v2537_v21  ;;  %v1521_v27 = vadd.f32 %v1520_v26, %v1299_v25  ;;  %v1522_v29 = vpop.f32.mrb[18].mxu0  ;;  %v1303_v32 = vpop.f32.mrb[19].mxu1 }
 0x13e   : > { %v1906_v30 = vmax.f32 %v1519_v24, 0.0  ;;  %v1523_v31 = vadd.f32 %v1522_v29, %v1301_v28  ;;  %v1524_v33 = vpop.f32.mrb[19].mxu0 }
 0x13f   : > { %v1907_v34 = vmax.f32 %v1521_v27, 0.0  ;;  %v1525_v35 = vadd.f32 %v1524_v33, %v1303_v32 }
 0x140   : > { %v1908_v36 = vmax.f32 %v1523_v31, 0.0 }
 0x141   : > { %v2538_v37 = vpack.c.bf16 %v1907_v34, %v1906_v30  ;;  %v1909_v38 = vmax.f32 %v1525_v35, 0.0 }
 0x142   : > { %v1307_v40 = vpop.f32.mrb[20].mxu1 }
 0x143   : > { %2196 = vst [vmem:[%s3211_s29 + $0x40] sm:$0xff] %v2538_v37  ;;  %v2539_v39 = vpack.c.bf16 %v1909_v38, %v1908_v36  ;;  %v1528_v41 = vpop.f32.mrb[20].mxu0  ;;  %v1309_v43 = vpop.f32.mrb[21].mxu1 }
 0x144   : > { %v1529_v42 = vadd.f32 %v1528_v41, %v1307_v40  ;;  %v1530_v44 = vpop.f32.mrb[21].mxu0  ;;  %v1311_v46 = vpop.f32.mrb[22].mxu1 }
 0x145   : > { %2197 = vst [vmem:[%s3211_s29 + $0x48] sm:$0xff] %v2539_v39  ;;  %v1531_v45 = vadd.f32 %v1530_v44, %v1309_v43  ;;  %v1532_v47 = vpop.f32.mrb[22].mxu0  ;;  %v1313_v50 = vpop.f32.mrb[23].mxu1 }
 0x146   : > { %v1910_v48 = vmax.f32 %v1529_v42, 0.0  ;;  %v1533_v49 = vadd.f32 %v1532_v47, %v1311_v46  ;;  %v1534_v51 = vpop.f32.mrb[23].mxu0 }
 0x147   : > { %v1911_v52 = vmax.f32 %v1531_v45, 0.0  ;;  %v1535_v53 = vadd.f32 %v1534_v51, %v1313_v50 }
 0x148   : > { %v1912_v54 = vmax.f32 %v1533_v49, 0.0 }
 0x149   : > { %v2540_v55 = vpack.c.bf16 %v1911_v52, %v1910_v48  ;;  %v1913_v56 = vmax.f32 %v1535_v53, 0.0 }
 0x14a   : > { %v1317_v58 = vpop.f32.mrb[24].mxu1 }
 0x14b   : > { %2198 = vst [vmem:[%s3211_s29 + $0x50] sm:$0xff] %v2540_v55  ;;  %v2541_v57 = vpack.c.bf16 %v1913_v56, %v1912_v54  ;;  %v1538_v59 = vpop.f32.mrb[24].mxu0  ;;  %v1319_v61 = vpop.f32.mrb[25].mxu1 }
 0x14c   : > { %v1539_v60 = vadd.f32 %v1538_v59, %v1317_v58  ;;  %v1540_v62 = vpop.f32.mrb[25].mxu0  ;;  %v1321_v0 = vpop.f32.mrb[26].mxu1 }
 0x14d   : > { %2199 = vst [vmem:[%s3211_s29 + $0x58] sm:$0xff] %v2541_v57  ;;  %v1541_v63 = vadd.f32 %v1540_v62, %v1319_v61  ;;  %v1542_v1 = vpop.f32.mrb[26].mxu0  ;;  %v1323_v4 = vpop.f32.mrb[27].mxu1 }
 0x14e   : > { %v1914_v2 = vmax.f32 %v1539_v60, 0.0  ;;  %v1543_v3 = vadd.f32 %v1542_v1, %v1321_v0  ;;  %v1544_v5 = vpop.f32.mrb[27].mxu0 }
 0x14f   : > { %v1915_v6 = vmax.f32 %v1541_v63, 0.0  ;;  %v1545_v7 = vadd.f32 %v1544_v5, %v1323_v4 }
 0x150   : > { %v1916_v8 = vmax.f32 %v1543_v3, 0.0 }
 0x151   : > { %v2542_v9 = vpack.c.bf16 %v1915_v6, %v1914_v2  ;;  %v1917_v10 = vmax.f32 %v1545_v7, 0.0 }
 0x152   : > { %v1327_v12 = vpop.f32.mrb[28].mxu1 }
 0x153   : > { %2200 = vst [vmem:[%s3211_s29 + $0x60] sm:$0xff] %v2542_v9  ;;  %v2543_v11 = vpack.c.bf16 %v1917_v10, %v1916_v8  ;;  %v1548_v13 = vpop.f32.mrb[28].mxu0  ;;  %v1329_v15 = vpop.f32.mrb[29].mxu1 }
 0x154   : > { %v1549_v14 = vadd.f32 %v1548_v13, %v1327_v12  ;;  %v1550_v16 = vpop.f32.mrb[29].mxu0  ;;  %v1331_v18 = vpop.f32.mrb[30].mxu1 }
 0x155   : > { %2201 = vst [vmem:[%s3211_s29 + $0x68] sm:$0xff] %v2543_v11  ;;  %v1551_v17 = vadd.f32 %v1550_v16, %v1329_v15  ;;  %v1552_v19 = vpop.f32.mrb[30].mxu0  ;;  %v1333_v22 = vpop.f32.mrb[31].mxu1 }
 0x156   : > { %v1918_v20 = vmax.f32 %v1549_v14, 0.0  ;;  %v1553_v21 = vadd.f32 %v1552_v19, %v1331_v18  ;;  %v1554_v23 = vpop.f32.mrb[31].mxu0 }
 0x157   : > { %v1919_v24 = vmax.f32 %v1551_v17, 0.0  ;;  %v1555_v25 = vadd.f32 %v1554_v23, %v1333_v22 }
 0x158   : > { %v1920_v26 = vmax.f32 %v1553_v21, 0.0 }
 0x159   : > { %v2544_v27 = vpack.c.bf16 %v1919_v24, %v1918_v20  ;;  %v1921_v28 = vmax.f32 %v1555_v25, 0.0 }
 0x15a   : > { %v1337_v30 = vpop.f32.mrb[32].mxu1 }
 0x15b   : > { %2202 = vst [vmem:[%s3211_s29 + $0x70] sm:$0xff] %v2544_v27  ;;  %v2545_v29 = vpack.c.bf16 %v1921_v28, %v1920_v26  ;;  %v1558_v31 = vpop.f32.mrb[32].mxu0  ;;  %v1339_v33 = vpop.f32.mrb[33].mxu1 }
 0x15c   : > { %v1559_v32 = vadd.f32 %v1558_v31, %v1337_v30  ;;  %v1560_v34 = vpop.f32.mrb[33].mxu0  ;;  %v1341_v36 = vpop.f32.mrb[34].mxu1 }
 0x15d   : > { %2203 = vst [vmem:[%s3211_s29 + $0x78] sm:$0xff] %v2545_v29  ;;  %v1561_v35 = vadd.f32 %v1560_v34, %v1339_v33  ;;  %v1562_v37 = vpop.f32.mrb[34].mxu0  ;;  %v1343_v40 = vpop.f32.mrb[35].mxu1 }
 0x15e   : > { %v1922_v38 = vmax.f32 %v1559_v32, 0.0  ;;  %v1563_v39 = vadd.f32 %v1562_v37, %v1341_v36  ;;  %v1564_v41 = vpop.f32.mrb[35].mxu0 }
 0x15f   : > { %v1923_v42 = vmax.f32 %v1561_v35, 0.0  ;;  %v1565_v43 = vadd.f32 %v1564_v41, %v1343_v40 }
 0x160   : > { %v1924_v44 = vmax.f32 %v1563_v39, 0.0 }
 0x161   : > { %v2546_v45 = vpack.c.bf16 %v1923_v42, %v1922_v38  ;;  %v1925_v46 = vmax.f32 %v1565_v43, 0.0 }
 0x162   : > { %v1347_v48 = vpop.f32.mrb[36].mxu1 }
 0x163   : > { %2204 = vst [vmem:[%s3211_s29 + $0x80] sm:$0xff] %v2546_v45  ;;  %v2547_v47 = vpack.c.bf16 %v1925_v46, %v1924_v44  ;;  %v1568_v49 = vpop.f32.mrb[36].mxu0  ;;  %v1349_v51 = vpop.f32.mrb[37].mxu1 }
 0x164   : > { %v1569_v50 = vadd.f32 %v1568_v49, %v1347_v48  ;;  %v1570_v52 = vpop.f32.mrb[37].mxu0  ;;  %v1351_v54 = vpop.f32.mrb[38].mxu1 }
 0x165   : > { %2205 = vst [vmem:[%s3211_s29 + $0x88] sm:$0xff] %v2547_v47  ;;  %v1571_v53 = vadd.f32 %v1570_v52, %v1349_v51  ;;  %v1572_v55 = vpop.f32.mrb[38].mxu0  ;;  %v1353_v58 = vpop.f32.mrb[39].mxu1 }
 0x166   : > { %v1926_v56 = vmax.f32 %v1569_v50, 0.0  ;;  %v1573_v57 = vadd.f32 %v1572_v55, %v1351_v54  ;;  %v1574_v59 = vpop.f32.mrb[39].mxu0 }
 0x167   : > { %v1927_v60 = vmax.f32 %v1571_v53, 0.0  ;;  %v1575_v61 = vadd.f32 %v1574_v59, %v1353_v58 }
 0x168   : > { %v1928_v62 = vmax.f32 %v1573_v57, 0.0 }
 0x169   : > { %v2548_v63 = vpack.c.bf16 %v1927_v60, %v1926_v56  ;;  %v1929_v0 = vmax.f32 %v1575_v61, 0.0 }
 0x16a   : > { %v1357_v2 = vpop.f32.mrb[40].mxu1 }
 0x16b   : > { %2206 = vst [vmem:[%s3211_s29 + $0x90] sm:$0xff] %v2548_v63  ;;  %v2549_v1 = vpack.c.bf16 %v1929_v0, %v1928_v62  ;;  %v1578_v3 = vpop.f32.mrb[40].mxu0  ;;  %v1359_v5 = vpop.f32.mrb[41].mxu1 }
 0x16c   : > { %v1579_v4 = vadd.f32 %v1578_v3, %v1357_v2  ;;  %v1580_v6 = vpop.f32.mrb[41].mxu0  ;;  %v1361_v8 = vpop.f32.mrb[42].mxu1 }
 0x16d   : > { %2207 = vst [vmem:[%s3211_s29 + $0x98] sm:$0xff] %v2549_v1  ;;  %v1581_v7 = vadd.f32 %v1580_v6, %v1359_v5  ;;  %v1582_v9 = vpop.f32.mrb[42].mxu0  ;;  %v1363_v12 = vpop.f32.mrb[43].mxu1 }
 0x16e   : > { %v1930_v10 = vmax.f32 %v1579_v4, 0.0  ;;  %v1583_v11 = vadd.f32 %v1582_v9, %v1361_v8  ;;  %v1584_v13 = vpop.f32.mrb[43].mxu0 }
 0x16f   : > { %v1931_v14 = vmax.f32 %v1581_v7, 0.0  ;;  %v1585_v15 = vadd.f32 %v1584_v13, %v1363_v12 }
 0x170   : > { %v1932_v16 = vmax.f32 %v1583_v11, 0.0 }
 0x171   : > { %v2550_v17 = vpack.c.bf16 %v1931_v14, %v1930_v10  ;;  %v1933_v18 = vmax.f32 %v1585_v15, 0.0 }
 0x172   : > { %v1367_v20 = vpop.f32.mrb[44].mxu1 }
 0x173   : > { %2208 = vst [vmem:[%s3211_s29 + $0xa0] sm:$0xff] %v2550_v17  ;;  %v2551_v19 = vpack.c.bf16 %v1933_v18, %v1932_v16  ;;  %v1588_v21 = vpop.f32.mrb[44].mxu0  ;;  %v1369_v23 = vpop.f32.mrb[45].mxu1 }
 0x174   : > { %v1589_v22 = vadd.f32 %v1588_v21, %v1367_v20  ;;  %v1590_v24 = vpop.f32.mrb[45].mxu0  ;;  %v1371_v26 = vpop.f32.mrb[46].mxu1 }
 0x175   : > { %2209 = vst [vmem:[%s3211_s29 + $0xa8] sm:$0xff] %v2551_v19  ;;  %v1591_v25 = vadd.f32 %v1590_v24, %v1369_v23  ;;  %v1592_v27 = vpop.f32.mrb[46].mxu0  ;;  %v1373_v30 = vpop.f32.mrb[47].mxu1 }
 0x176   : > { %v1934_v28 = vmax.f32 %v1589_v22, 0.0  ;;  %v1593_v29 = vadd.f32 %v1592_v27, %v1371_v26  ;;  %v1594_v31 = vpop.f32.mrb[47].mxu0 }
 0x177   : > { %v1935_v32 = vmax.f32 %v1591_v25, 0.0  ;;  %v1595_v33 = vadd.f32 %v1594_v31, %v1373_v30 }
 0x178   : > { %v1936_v34 = vmax.f32 %v1593_v29, 0.0 }
 0x179   : > { %v2552_v35 = vpack.c.bf16 %v1935_v32, %v1934_v28  ;;  %v1937_v36 = vmax.f32 %v1595_v33, 0.0 }
 0x17a   : > { %v1377_v38 = vpop.f32.mrb[48].mxu1 }
 0x17b   : > { %2210 = vst [vmem:[%s3211_s29 + $0xb0] sm:$0xff] %v2552_v35  ;;  %v2553_v37 = vpack.c.bf16 %v1937_v36, %v1936_v34  ;;  %v1598_v39 = vpop.f32.mrb[48].mxu0  ;;  %v1379_v41 = vpop.f32.mrb[49].mxu1 }
 0x17c   : > { %v1599_v40 = vadd.f32 %v1598_v39, %v1377_v38  ;;  %v1600_v42 = vpop.f32.mrb[49].mxu0  ;;  %v1381_v44 = vpop.f32.mrb[50].mxu1 }
 0x17d   : > { %2211 = vst [vmem:[%s3211_s29 + $0xb8] sm:$0xff] %v2553_v37  ;;  %v1601_v43 = vadd.f32 %v1600_v42, %v1379_v41  ;;  %v1602_v45 = vpop.f32.mrb[50].mxu0  ;;  %v1383_v48 = vpop.f32.mrb[51].mxu1 }
 0x17e   : > { %v1938_v46 = vmax.f32 %v1599_v40, 0.0  ;;  %v1603_v47 = vadd.f32 %v1602_v45, %v1381_v44  ;;  %v1604_v49 = vpop.f32.mrb[51].mxu0 }
 0x17f   : > { %v1939_v50 = vmax.f32 %v1601_v43, 0.0  ;;  %v1605_v51 = vadd.f32 %v1604_v49, %v1383_v48 }
 0x180   : > { %v1940_v52 = vmax.f32 %v1603_v47, 0.0 }
 0x181   : > { %v2554_v53 = vpack.c.bf16 %v1939_v50, %v1938_v46  ;;  %v1941_v54 = vmax.f32 %v1605_v51, 0.0 }
 0x182   : > { %v1387_v56 = vpop.f32.mrb[52].mxu1 }
 0x183   : > { %2212 = vst [vmem:[%s3211_s29 + $0xc0] sm:$0xff] %v2554_v53  ;;  %v2555_v55 = vpack.c.bf16 %v1941_v54, %v1940_v52  ;;  %v1608_v57 = vpop.f32.mrb[52].mxu0  ;;  %v1389_v59 = vpop.f32.mrb[53].mxu1 }
 0x184   : > { %v1609_v58 = vadd.f32 %v1608_v57, %v1387_v56  ;;  %v1610_v60 = vpop.f32.mrb[53].mxu0  ;;  %v1391_v62 = vpop.f32.mrb[54].mxu1 }
 0x185   : > { %2213 = vst [vmem:[%s3211_s29 + $0xc8] sm:$0xff] %v2555_v55  ;;  %v1611_v61 = vadd.f32 %v1610_v60, %v1389_v59  ;;  %v1612_v63 = vpop.f32.mrb[54].mxu0  ;;  %v1393_v2 = vpop.f32.mrb[55].mxu1 }
 0x186   : > { %v1942_v0 = vmax.f32 %v1609_v58, 0.0  ;;  %v1613_v1 = vadd.f32 %v1612_v63, %v1391_v62  ;;  %v1614_v3 = vpop.f32.mrb[55].mxu0 }
 0x187   : > { %v1943_v4 = vmax.f32 %v1611_v61, 0.0  ;;  %v1615_v5 = vadd.f32 %v1614_v3, %v1393_v2 }
 0x188   : > { %v1944_v6 = vmax.f32 %v1613_v1, 0.0 }
 0x189   : > { %v2556_v7 = vpack.c.bf16 %v1943_v4, %v1942_v0  ;;  %v1945_v8 = vmax.f32 %v1615_v5, 0.0 }
 0x18a   : > { %v1397_v10 = vpop.f32.mrb[56].mxu1 }
 0x18b   : > { %2214 = vst [vmem:[%s3211_s29 + $0xd0] sm:$0xff] %v2556_v7  ;;  %v2557_v9 = vpack.c.bf16 %v1945_v8, %v1944_v6  ;;  %v1618_v11 = vpop.f32.mrb[56].mxu0  ;;  %v1399_v13 = vpop.f32.mrb[57].mxu1 }
 0x18c   : > { %v1619_v12 = vadd.f32 %v1618_v11, %v1397_v10  ;;  %v1620_v14 = vpop.f32.mrb[57].mxu0  ;;  %v1401_v16 = vpop.f32.mrb[58].mxu1 }
 0x18d   : > { %2215 = vst [vmem:[%s3211_s29 + $0xd8] sm:$0xff] %v2557_v9  ;;  %v1621_v15 = vadd.f32 %v1620_v14, %v1399_v13  ;;  %v1622_v17 = vpop.f32.mrb[58].mxu0  ;;  %v1403_v20 = vpop.f32.mrb[59].mxu1 }
 0x18e   : > { %v1946_v18 = vmax.f32 %v1619_v12, 0.0  ;;  %v1623_v19 = vadd.f32 %v1622_v17, %v1401_v16  ;;  %v1624_v21 = vpop.f32.mrb[59].mxu0 }
 0x18f   : > { %v1947_v22 = vmax.f32 %v1621_v15, 0.0  ;;  %v1625_v23 = vadd.f32 %v1624_v21, %v1403_v20 }
 0x190   : > { %v1948_v24 = vmax.f32 %v1623_v19, 0.0 }
 0x191   : > { %v2558_v25 = vpack.c.bf16 %v1947_v22, %v1946_v18  ;;  %v1949_v26 = vmax.f32 %v1625_v23, 0.0 }
 0x192   : > { %v1407_v28 = vpop.f32.mrb[60].mxu1 }
 0x193   : > { %2216 = vst [vmem:[%s3211_s29 + $0xe0] sm:$0xff] %v2558_v25  ;;  %v2559_v27 = vpack.c.bf16 %v1949_v26, %v1948_v24  ;;  %v1628_v29 = vpop.f32.mrb[60].mxu0  ;;  %v1409_v31 = vpop.f32.mrb[61].mxu1 }
 0x194   : > { %v1629_v30 = vadd.f32 %v1628_v29, %v1407_v28  ;;  %v1630_v32 = vpop.f32.mrb[61].mxu0  ;;  %v1411_v34 = vpop.f32.mrb[62].mxu1 }
 0x195   : > { %2217 = vst [vmem:[%s3211_s29 + $0xe8] sm:$0xff] %v2559_v27  ;;  %v1631_v33 = vadd.f32 %v1630_v32, %v1409_v31  ;;  %v1632_v35 = vpop.f32.mrb[62].mxu0  ;;  %v1413_v38 = vpop.f32.mrb[63].mxu1 }
 0x196   : > { %v1950_v36 = vmax.f32 %v1629_v30, 0.0  ;;  %v1633_v37 = vadd.f32 %v1632_v35, %v1411_v34  ;;  %v1634_v39 = vpop.f32.mrb[63].mxu0 }
 0x197   : > { %v1951_v40 = vmax.f32 %v1631_v33, 0.0  ;;  %v1635_v41 = vadd.f32 %v1634_v39, %v1413_v38 }
 0x198   : > { %v1952_v42 = vmax.f32 %v1633_v37, 0.0 }
 0x199   : > { %v2560_v43 = vpack.c.bf16 %v1951_v40, %v1950_v36  ;;  %v1953_v44 = vmax.f32 %v1635_v41, 0.0 }
 0x19a   : > { %v1417_v46 = vpop.f32.mrb[64].mxu1 }
 0x19b   : > { %2218 = vst [vmem:[%s3211_s29 + $0xf0] sm:$0xff] %v2560_v43  ;;  %v2561_v45 = vpack.c.bf16 %v1953_v44, %v1952_v42  ;;  %v1638_v47 = vpop.f32.mrb[64].mxu0  ;;  %v1419_v49 = vpop.f32.mrb[65].mxu1 }
 0x19c   : > { %v1639_v48 = vadd.f32 %v1638_v47, %v1417_v46  ;;  %v1640_v50 = vpop.f32.mrb[65].mxu0  ;;  %v1421_v52 = vpop.f32.mrb[66].mxu1 }
 0x19d   : > { %2219 = vst [vmem:[%s3211_s29 + $0xf8] sm:$0xff] %v2561_v45  ;;  %v1641_v51 = vadd.f32 %v1640_v50, %v1419_v49  ;;  %v1642_v53 = vpop.f32.mrb[66].mxu0  ;;  %v1423_v56 = vpop.f32.mrb[67].mxu1 }
 0x19e   : > { %v1954_v54 = vmax.f32 %v1639_v48, 0.0  ;;  %v1643_v55 = vadd.f32 %v1642_v53, %v1421_v52  ;;  %v1644_v57 = vpop.f32.mrb[67].mxu0 }
 0x19f   : > { %v1955_v58 = vmax.f32 %v1641_v51, 0.0  ;;  %v1645_v59 = vadd.f32 %v1644_v57, %v1423_v56 }
 0x1a0   : > { %v1956_v60 = vmax.f32 %v1643_v55, 0.0 }
 0x1a1   : > { %v2562_v61 = vpack.c.bf16 %v1955_v58, %v1954_v54  ;;  %v1957_v62 = vmax.f32 %v1645_v59, 0.0 }
 0x1a2   : > { %v1427_v0 = vpop.f32.mrb[68].mxu1 }
 0x1a3   : > { %2220 = vst [vmem:[%s3211_s29 + $0x100] sm:$0xff] %v2562_v61  ;;  %v2563_v63 = vpack.c.bf16 %v1957_v62, %v1956_v60  ;;  %v1648_v1 = vpop.f32.mrb[68].mxu0  ;;  %v1429_v3 = vpop.f32.mrb[69].mxu1 }
 0x1a4   : > { %v1649_v2 = vadd.f32 %v1648_v1, %v1427_v0  ;;  %v1650_v4 = vpop.f32.mrb[69].mxu0  ;;  %v1431_v6 = vpop.f32.mrb[70].mxu1 }
 0x1a5   : > { %2221 = vst [vmem:[%s3211_s29 + $0x108] sm:$0xff] %v2563_v63  ;;  %v1651_v5 = vadd.f32 %v1650_v4, %v1429_v3  ;;  %v1652_v7 = vpop.f32.mrb[70].mxu0  ;;  %v1433_v10 = vpop.f32.mrb[71].mxu1 }
 0x1a6   : > { %v1958_v8 = vmax.f32 %v1649_v2, 0.0  ;;  %v1653_v9 = vadd.f32 %v1652_v7, %v1431_v6  ;;  %v1654_v11 = vpop.f32.mrb[71].mxu0 }
 0x1a7   : > { %v1959_v12 = vmax.f32 %v1651_v5, 0.0  ;;  %v1655_v13 = vadd.f32 %v1654_v11, %v1433_v10 }
 0x1a8   : > { %v1960_v14 = vmax.f32 %v1653_v9, 0.0 }
 0x1a9   : > { %v2564_v15 = vpack.c.bf16 %v1959_v12, %v1958_v8  ;;  %v1961_v16 = vmax.f32 %v1655_v13, 0.0 }
 0x1aa   : > { %v1437_v18 = vpop.f32.mrb[72].mxu1 }
 0x1ab   : > { %2222 = vst [vmem:[%s3211_s29 + $0x110] sm:$0xff] %v2564_v15  ;;  %v2565_v17 = vpack.c.bf16 %v1961_v16, %v1960_v14  ;;  %v1658_v19 = vpop.f32.mrb[72].mxu0  ;;  %v1439_v21 = vpop.f32.mrb[73].mxu1 }
 0x1ac   : > { %v1659_v20 = vadd.f32 %v1658_v19, %v1437_v18  ;;  %v1660_v22 = vpop.f32.mrb[73].mxu0  ;;  %v1441_v24 = vpop.f32.mrb[74].mxu1 }
 0x1ad   : > { %2223 = vst [vmem:[%s3211_s29 + $0x118] sm:$0xff] %v2565_v17  ;;  %v1661_v23 = vadd.f32 %v1660_v22, %v1439_v21  ;;  %v1662_v25 = vpop.f32.mrb[74].mxu0  ;;  %v1442_v27 = vpop.f32.mrb[75].mxu1 }
 0x1ae   : > { %v1962_v26 = vmax.f32 %v1659_v20, 0.0  ;;  %v1663_v28 = vpop.f32.mrb[75].mxu0 }
 0x1af   : > { %v1963_v29 = vmax.f32 %v1661_v23, 0.0 }
 0x1b1   : > { %v2566_v30 = vpack.c.bf16 %v1963_v29, %v1962_v26 }
 0x1b3   : > { %2224 = vst [vmem:[%s3211_s29 + $0x120] sm:$0xff] %v2566_v30 }
 0x1b4 PF: > { %s12_s11 = sadd.s32 1, %s2895_s11   ;;  %s3262_s9 = smov %s2891_s10 }
 0x1b5   : > { %p9_p5 = scmp.ge.s32.totalorder %s12_s11, 4   ;;  %s3263_s10 = smov %s3265_s12 }
 0x1b7   :  { %11 = sbr.rel (!%p9_p5) target bundleno = 2 (0x2), region = 69 }

// kernel: generator_forward.9
= control target key start
LH: loop header
LB: loop body
LE: loop exit
PB: predicated region body
PF: predicated region fallthrough
CT: control target
= control target key end

     0   :  { %s1827_s9 = smov 0   ;;  %s1829_s10 = smov 0   ;;  %s2061_s0 = inlined_call_operand.vmem [shape: bf16[2200,256], index: 0, kind: input, shape index: {}]   ;;  %s2062_s1 = inlined_call_operand.vmem [shape: bf16[256,128], index: 1, kind: input, shape index: {}]   ;;  %s2063_s2 = inlined_call_operand.vmem [shape: f32[2200,128], index: 2, kind: output, shape index: {}]  }
   0x1   :  { %s1831_s11 = smov 0  }
   0x2 LB: > { %s31_s12 = sadd.s32 1, %s1805_s10  ;;  %p1442_p0 = scmp.ge.s32.totalorder %s1809_s11, 1  ;;  %s1809_s11 = sphi %s1831_s11, %s12_s11   ;;  %s1805_s10 = sphi %s1829_s10, %s2065_s10   ;;  %s1801_s9 = sphi %s1827_s9, %s2064_s9  }
   0x3   : > { %p33_p1 = scmp.ge.s32.totalorder %s31_s12, 5  ;;  %p158_p2 = scmp.lt.s32.totalorder %s1809_s11, 6 }
   0x5   : > { %s2067_s12 = smov (%p33_p1, %s31_s12), 0  ;;  %p159_p3 = pnand %p1442_p0, %p158_p2 }
   0x6   : > { %v1578_v0 = vld [vmem:[%s2062_s1] sm:$0xff] (!%p159_p3)   ;;  %v1811_v1 = vmov (!%p159_p3), 0   ;;  %s196_s15 = smul.u32 (!%p159_p3), 55, %s1801_s9  ;;  %v1579_v2 = vld [vmem:[%s2062_s1 + $0x8] sm:$0xff] (!%p159_p3)   ;;  %v1580_v3 = vld [vmem:[%s2062_s1 + $0x10] sm:$0xff] (!%p159_p3)  }
   0x7   : > { %162 = sbr.rel (%p159_p3) target bundleno = 401 (0x191), region = 28  ;;  %801 = vmatprep.subr.bf16.mxu0 (!%p159_p3), %v1811_v1  ;;  %1521 = vmatprep.subr.bf16.mxu1 (!%p159_p3), %v1811_v1  ;;  %v1581_v4 = vld [vmem:[%s2062_s1 + $0x18] sm:$0xff] (!%p159_p3)   ;;  %v1582_v5 = vld [vmem:[%s2062_s1 + $0x20] sm:$0xff] (!%p159_p3)   ;;  %v1583_v7 = vld [vmem:[%s2062_s1 + $0x28] sm:$0xff] (!%p159_p3)  }
   0x8   : > { %802 = vmatpush1.bf16.msra.mxu0 (!%p159_p3), %v1578_v0  ;;  %1537 = vmatpush1.bf16.msra.mxu1 (!%p159_p3), %v1578_v0  ;;  %p198_p4 = scmp.lt.s32.totalorder (!%p159_p3), %s196_s15, 274  ;;  %v1584_v9 = vld [vmem:[%s2062_s1 + $0x30] sm:$0xff] (!%p159_p3)   ;;  %v1585_v10 = vld [vmem:[%s2062_s1 + $0x38] sm:$0xff] (!%p159_p3)   ;;  %v1586_v11 = vld [vmem:[%s2062_s1 + $0x40] sm:$0xff] (!%p159_p3)  }
   0x9   : > { %803 = vmatprep.subr.bf16.mxu0 (!%p159_p3), %v1811_v1  ;;  %1522 = vmatprep.subr.bf16.mxu1 (!%p159_p3), %v1811_v1  ;;  %v1587_v12 = vld [vmem:[%s2062_s1 + $0x48] sm:$0xff] (!%p159_p3)   ;;  %v1588_v13 = vld [vmem:[%s2062_s1 + $0x50] sm:$0xff] (!%p159_p3)   ;;  %v1589_v14 = vld [vmem:[%s2062_s1 + $0x58] sm:$0xff] (!%p159_p3)  }
   0xa   : > { %v1590_v15 = vld [vmem:[%s2062_s1 + $0x60] sm:$0xff] (!%p159_p3)   ;;  %v1591_v16 = vld [vmem:[%s2062_s1 + $0x68] sm:$0xff] (!%p159_p3)   ;;  %v1592_v17 = vld [vmem:[%s2062_s1 + $0x70] sm:$0xff] (!%p159_p3)  }
   0xb   : > { %v1593_v18 = vld [vmem:[%s2062_s1 + $0x78] sm:$0xff] (!%p159_p3)  }
   0xc   : > { %804 = vmatpush1.bf16.msra.mxu0 (!%p159_p3), %v1579_v2  ;;  %1538 = vmatpush1.bf16.msra.mxu1 (!%p159_p3), %v1579_v2 }
   0xd   : > { %805 = vmatprep.subr.bf16.mxu0 (!%p159_p3), %v1811_v1  ;;  %1523 = vmatprep.subr.bf16.mxu1 (!%p159_p3), %v1811_v1 }
   0xe   : > { %s2069_s15 = smov (!%p198_p4, %s196_s15), 274 }
   0xf   : > { %s1520_s22 = sshll.u32 %s2069_s15, 3 }
  0x10   : > { %806 = vmatpush1.bf16.msra.mxu0 %v1580_v3  ;;  %1539 = vmatpush1.bf16.msra.mxu1 %v1580_v3  ;;  %s1876_s27 = scalar_lea.vmem %s2061_s0, %s1520_s22  ;;  %s1995_s29 = scalar_lea.vmem %s2063_s2, %s1520_s22 }
  0x11   : > { %807 = vmatprep.subr.bf16.mxu0 %v1811_v1  ;;  %1524 = vmatprep.subr.bf16.mxu1 %v1811_v1  ;;  %v1596_v6 = vld [vmem:[%s1876_s27 + $0x4] ss:$8 sps:$4 sm:$0xff]   ;;  %v1594_v19 = vld [vmem:[%s1876_s27] ss:$8 sps:$4 sm:$0xff]   ;;  %v1600_v21 = vld [vmem:[%s1876_s27 + $0x14] ss:$8 sps:$4 sm:$0xff]  }
  0x12   : > { %v1599_v8 = vld [vmem:[%s1876_s27 + $0xe4] ss:$8 sps:$4 sm:$0xff]   ;;  %833 = vmatprep.mubr.bf16.mxu0 %v1596_v6  ;;  %v1597_v20 = vld [vmem:[%s1876_s27 + $0xe0] ss:$8 sps:$4 sm:$0xff]   ;;  %v1602_v22 = vld [vmem:[%s1876_s27 + $0xf4] ss:$8 sps:$4 sm:$0xff]  }
  0x13   : > { %945 = vmatprep.mubr.bf16.mxu1 %v1599_v8  ;;  %v1604_v23 = vld [vmem:[%s1876_s27 + $0x10] ss:$8 sps:$4 sm:$0xff]   ;;  %v1606_v25 = vld [vmem:[%s1876_s27 + $0x24] ss:$8 sps:$4 sm:$0xff]   ;;  %v1610_v27 = vld [vmem:[%s1876_s27 + $0x20] ss:$8 sps:$4 sm:$0xff]  }
  0x14   : > { %808 = vmatpush1.bf16.msra.mxu0 %v1581_v4  ;;  %1540 = vmatpush1.bf16.msra.mxu1 %v1581_v4  ;;  %v1605_v24 = vld [vmem:[%s1876_s27 + $0xf0] ss:$8 sps:$4 sm:$0xff]   ;;  %v1608_v26 = vld [vmem:[%s1876_s27 + $0x104] ss:$8 sps:$4 sm:$0xff]   ;;  %v1611_v28 = vld [vmem:[%s1876_s27 + $0x100] ss:$8 sps:$4 sm:$0xff]  }
  0x15   : > { %809 = vmatprep.subr.bf16.mxu0 %v1811_v1  ;;  %1525 = vmatprep.subr.bf16.mxu1 %v1811_v1  ;;  %v1612_v29 = vld [vmem:[%s1876_s27 + $0x34] ss:$8 sps:$4 sm:$0xff]   ;;  %v1616_v31 = vld [vmem:[%s1876_s27 + $0x30] ss:$8 sps:$4 sm:$0xff]   ;;  %v1618_v33 = vld [vmem:[%s1876_s27 + $0x44] ss:$8 sps:$4 sm:$0xff]  }
  0x16   : > { %v1614_v30 = vld [vmem:[%s1876_s27 + $0x114] ss:$8 sps:$4 sm:$0xff]   ;;  %v1617_v32 = vld [vmem:[%s1876_s27 + $0x110] ss:$8 sps:$4 sm:$0xff]   ;;  %v1620_v34 = vld [vmem:[%s1876_s27 + $0x124] ss:$8 sps:$4 sm:$0xff]  }
  0x17   : > { %v1622_v35 = vld [vmem:[%s1876_s27 + $0x40] ss:$8 sps:$4 sm:$0xff]   ;;  %v1624_v37 = vld [vmem:[%s1876_s27 + $0x54] ss:$8 sps:$4 sm:$0xff]   ;;  %v1628_v39 = vld [vmem:[%s1876_s27 + $0x50] ss:$8 sps:$4 sm:$0xff]  }
  0x18   : > { %810 = vmatpush1.bf16.msra.mxu0 %v1582_v5  ;;  %1541 = vmatpush1.bf16.msra.mxu1 %v1582_v5  ;;  %v1623_v36 = vld [vmem:[%s1876_s27 + $0x120] ss:$8 sps:$4 sm:$0xff]   ;;  %v1626_v38 = vld [vmem:[%s1876_s27 + $0x134] ss:$8 sps:$4 sm:$0xff]   ;;  %v1629_v40 = vld [vmem:[%s1876_s27 + $0x130] ss:$8 sps:$4 sm:$0xff]  }
  0x19   : > { %811 = vmatprep.subr.bf16.mxu0 %v1811_v1  ;;  %1526 = vmatprep.subr.bf16.mxu1 %v1811_v1  ;;  %v1630_v41 = vld [vmem:[%s1876_s27 + $0x64] ss:$8 sps:$4 sm:$0xff]   ;;  %v1634_v43 = vld [vmem:[%s1876_s27 + $0x60] ss:$8 sps:$4 sm:$0xff]   ;;  %v1636_v45 = vld [vmem:[%s1876_s27 + $0x74] ss:$8 sps:$4 sm:$0xff]  }
  0x1a   : > { %v1632_v42 = vld [vmem:[%s1876_s27 + $0x144] ss:$8 sps:$4 sm:$0xff]   ;;  %v1635_v44 = vld [vmem:[%s1876_s27 + $0x140] ss:$8 sps:$4 sm:$0xff]   ;;  %v1638_v46 = vld [vmem:[%s1876_s27 + $0x154] ss:$8 sps:$4 sm:$0xff]  }
  0x1b   : > { %v1640_v47 = vld [vmem:[%s1876_s27 + $0x70] ss:$8 sps:$4 sm:$0xff]   ;;  %v1642_v49 = vld [vmem:[%s1876_s27 + $0x84] ss:$8 sps:$4 sm:$0xff]   ;;  %v1646_v51 = vld [vmem:[%s1876_s27 + $0x80] ss:$8 sps:$4 sm:$0xff]  }
  0x1c   : > { %812 = vmatpush1.bf16.msra.mxu0 %v1583_v7  ;;  %1542 = vmatpush1.bf16.msra.mxu1 %v1583_v7  ;;  %v1641_v48 = vld [vmem:[%s1876_s27 + $0x150] ss:$8 sps:$4 sm:$0xff]   ;;  %v1644_v50 = vld [vmem:[%s1876_s27 + $0x164] ss:$8 sps:$4 sm:$0xff]   ;;  %v1647_v52 = vld [vmem:[%s1876_s27 + $0x160] ss:$8 sps:$4 sm:$0xff]  }
  0x1d   : > { %813 = vmatprep.subr.bf16.mxu0 %v1811_v1  ;;  %1527 = vmatprep.subr.bf16.mxu1 %v1811_v1  ;;  %v1648_v53 = vld [vmem:[%s1876_s27 + $0x94] ss:$8 sps:$4 sm:$0xff]   ;;  %v1652_v55 = vld [vmem:[%s1876_s27 + $0x90] ss:$8 sps:$4 sm:$0xff]   ;;  %v1654_v57 = vld [vmem:[%s1876_s27 + $0xa4] ss:$8 sps:$4 sm:$0xff]  }
  0x1e   : > { %v1650_v54 = vld [vmem:[%s1876_s27 + $0x174] ss:$8 sps:$4 sm:$0xff]   ;;  %v1653_v56 = vld [vmem:[%s1876_s27 + $0x170] ss:$8 sps:$4 sm:$0xff]   ;;  %v1656_v58 = vld [vmem:[%s1876_s27 + $0x184] ss:$8 sps:$4 sm:$0xff]  }
  0x1f   : > { %v1658_v59 = vld [vmem:[%s1876_s27 + $0xa0] ss:$8 sps:$4 sm:$0xff]   ;;  %v1660_v61 = vld [vmem:[%s1876_s27 + $0xb4] ss:$8 sps:$4 sm:$0xff]   ;;  %v1664_v63 = vld [vmem:[%s1876_s27 + $0xb0] ss:$8 sps:$4 sm:$0xff]  }
  0x20   : > { %814 = vmatpush1.bf16.msra.mxu0 %v1584_v9  ;;  %1543 = vmatpush1.bf16.msra.mxu1 %v1584_v9  ;;  %v1659_v60 = vld [vmem:[%s1876_s27 + $0x180] ss:$8 sps:$4 sm:$0xff]   ;;  %v1662_v62 = vld [vmem:[%s1876_s27 + $0x194] ss:$8 sps:$4 sm:$0xff]   ;;  %v1665_v0 = vld [vmem:[%s1876_s27 + $0x190] ss:$8 sps:$4 sm:$0xff]  }
  0x21   : > { %815 = vmatprep.subr.bf16.mxu0 %v1811_v1  ;;  %1528 = vmatprep.subr.bf16.mxu1 %v1811_v1  ;;  %v1668_v2 = vld [vmem:[%s1876_s27 + $0x1a4] ss:$8 sps:$4 sm:$0xff]   ;;  %v395_v3 = vld [vmem:[%s1876_s27 + $0x1b0] sm:$0xff]  ;;  %v1670_v4 = vld [vmem:[%s1876_s27 + $0xc0] ss:$8 sps:$4 sm:$0xff]  }
  0x22   : > { %v1671_v5 = vld [vmem:[%s1876_s27 + $0x1a0] ss:$8 sps:$4 sm:$0xff]   ;;  %v1672_v6 = vld [vmem:[%s1876_s27 + $0xd4] ss:$8 sps:$4 sm:$0xff]   ;;  %v1501_v7 = vcombine.high %v395_v3, %v395_v3  ;;  %v1675_v8 = vld [vmem:[%s1876_s27 + $0xd0] ss:$8 sps:$4 sm:$0xff]   ;;  %v1500_v9 = vcombine.low %v395_v3, %v395_v3 }
  0x24   : > { %816 = vmatpush1.bf16.msra.mxu0 %v1585_v10  ;;  %1544 = vmatpush1.bf16.msra.mxu1 %v1585_v10 }
  0x25   : > { %817 = vmatprep.subr.bf16.mxu0 %v1811_v1  ;;  %1529 = vmatprep.subr.bf16.mxu1 %v1811_v1 }
  0x28   : > { %818 = vmatpush1.bf16.msra.mxu0 %v1586_v11  ;;  %1545 = vmatpush1.bf16.msra.mxu1 %v1586_v11 }
  0x29   : > { %819 = vmatprep.subr.bf16.mxu0 %v1811_v1  ;;  %1530 = vmatprep.subr.bf16.mxu1 %v1811_v1 }
  0x2c   : > { %820 = vmatpush1.bf16.msra.mxu0 %v1587_v12  ;;  %1546 = vmatpush1.bf16.msra.mxu1 %v1587_v12 }
  0x2d   : > { %821 = vmatprep.subr.bf16.mxu0 %v1811_v1  ;;  %1531 = vmatprep.subr.bf16.mxu1 %v1811_v1 }
  0x30   : > { %822 = vmatpush1.bf16.msra.mxu0 %v1588_v13  ;;  %1547 = vmatpush1.bf16.msra.mxu1 %v1588_v13 }
  0x31   : > { %823 = vmatprep.subr.bf16.mxu0 %v1811_v1  ;;  %1532 = vmatprep.subr.bf16.mxu1 %v1811_v1 }
  0x34   : > { %824 = vmatpush1.bf16.msra.mxu0 %v1589_v14  ;;  %1548 = vmatpush1.bf16.msra.mxu1 %v1589_v14 }
  0x35   : > { %825 = vmatprep.subr.bf16.mxu0 %v1811_v1  ;;  %1533 = vmatprep.subr.bf16.mxu1 %v1811_v1 }
  0x38   : > { %826 = vmatpush1.bf16.msra.mxu0 %v1590_v15  ;;  %1549 = vmatpush1.bf16.msra.mxu1 %v1590_v15 }
  0x39   : > { %827 = vmatprep.subr.bf16.mxu0 %v1811_v1  ;;  %1534 = vmatprep.subr.bf16.mxu1 %v1811_v1 }
  0x3c   : > { %828 = vmatpush1.bf16.msra.mxu0 %v1591_v16  ;;  %1550 = vmatpush1.bf16.msra.mxu1 %v1591_v16 }
  0x3d   : > { %829 = vmatprep.subr.bf16.mxu0 %v1811_v1  ;;  %1535 = vmatprep.subr.bf16.mxu1 %v1811_v1 }
  0x40   : > { %830 = vmatpush1.bf16.msra.mxu0 %v1592_v17  ;;  %1551 = vmatpush1.bf16.msra.mxu1 %v1592_v17 }
  0x41   : > { %831 = vmatprep.subr.bf16.mxu0 %v1811_v1  ;;  %1536 = vmatprep.subr.bf16.mxu1 %v1811_v1  ;;  %v1666_v1 = vld [vmem:[%s1876_s27 + $0xc4] ss:$8 sps:$4 sm:$0xff]  }
  0x44   : > { %832 = vmatpush1.bf16.msra.mxu0 %v1593_v18  ;;  %1552 = vmatpush1.bf16.msra.mxu1 %v1593_v18 }
  0x47   : > { %834 = vmatmul.mubr.bf16.vlgmr.msra.gmra.mrb[0].mxu0 %v1594_v19  ;;  %946 = vmatmul.mubr.bf16.vlgmr.msra.gmra.mrb[0].mxu1 %v1597_v20 }
  0x48   : > { %841 = vmatprep.mubr.bf16.mxu0 %v1600_v21  ;;  %953 = vmatprep.mubr.bf16.mxu1 %v1602_v22 }
  0x4f   : > { %842 = vmatmul.mubr.bf16.gmra.mrb[4].mxu0 %v1604_v23  ;;  %954 = vmatmul.mubr.bf16.gmra.mrb[4].mxu1 %v1605_v24 }
  0x50   : > { %849 = vmatprep.mubr.bf16.mxu0 %v1606_v25  ;;  %961 = vmatprep.mubr.bf16.mxu1 %v1608_v26 }
  0x57   : > { %850 = vmatmul.mubr.bf16.gmra.mrb[8].mxu0 %v1610_v27  ;;  %962 = vmatmul.mubr.bf16.gmra.mrb[8].mxu1 %v1611_v28 }
  0x58   : > { %857 = vmatprep.mubr.bf16.mxu0 %v1612_v29  ;;  %969 = vmatprep.mubr.bf16.mxu1 %v1614_v30 }
  0x5f   : > { %858 = vmatmul.mubr.bf16.gmra.mrb[12].mxu0 %v1616_v31  ;;  %970 = vmatmul.mubr.bf16.gmra.mrb[12].mxu1 %v1617_v32 }
  0x60   : > { %865 = vmatprep.mubr.bf16.mxu0 %v1618_v33  ;;  %977 = vmatprep.mubr.bf16.mxu1 %v1620_v34 }
  0x67   : > { %866 = vmatmul.mubr.bf16.gmra.mrb[16].mxu0 %v1622_v35  ;;  %978 = vmatmul.mubr.bf16.gmra.mrb[16].mxu1 %v1623_v36 }
  0x68   : > { %873 = vmatprep.mubr.bf16.mxu0 %v1624_v37  ;;  %985 = vmatprep.mubr.bf16.mxu1 %v1626_v38 }
  0x6f   : > { %874 = vmatmul.mubr.bf16.gmra.mrb[20].mxu0 %v1628_v39  ;;  %986 = vmatmul.mubr.bf16.gmra.mrb[20].mxu1 %v1629_v40 }
  0x70   : > { %881 = vmatprep.mubr.bf16.mxu0 %v1630_v41  ;;  %993 = vmatprep.mubr.bf16.mxu1 %v1632_v42 }
  0x77   : > { %882 = vmatmul.mubr.bf16.gmra.mrb[24].mxu0 %v1634_v43  ;;  %994 = vmatmul.mubr.bf16.gmra.mrb[24].mxu1 %v1635_v44 }
  0x78   : > { %889 = vmatprep.mubr.bf16.mxu0 %v1636_v45  ;;  %1001 = vmatprep.mubr.bf16.mxu1 %v1638_v46 }
  0x7f   : > { %890 = vmatmul.mubr.bf16.gmra.mrb[28].mxu0 %v1640_v47  ;;  %1002 = vmatmul.mubr.bf16.gmra.mrb[28].mxu1 %v1641_v48 }
  0x80   : > { %897 = vmatprep.mubr.bf16.mxu0 %v1642_v49  ;;  %1009 = vmatprep.mubr.bf16.mxu1 %v1644_v50 }
  0x87   : > { %898 = vmatmul.mubr.bf16.gmra.mrb[32].mxu0 %v1646_v51  ;;  %1010 = vmatmul.mubr.bf16.gmra.mrb[32].mxu1 %v1647_v52 }
  0x88   : > { %905 = vmatprep.mubr.bf16.mxu0 %v1648_v53  ;;  %1017 = vmatprep.mubr.bf16.mxu1 %v1650_v54 }
  0x8f   : > { %906 = vmatmul.mubr.bf16.gmra.mrb[36].mxu0 %v1652_v55  ;;  %1018 = vmatmul.mubr.bf16.gmra.mrb[36].mxu1 %v1653_v56 }
  0x90   : > { %913 = vmatprep.mubr.bf16.mxu0 %v1654_v57  ;;  %1025 = vmatprep.mubr.bf16.mxu1 %v1656_v58 }
  0x97   : > { %914 = vmatmul.mubr.bf16.gmra.mrb[40].mxu0 %v1658_v59  ;;  %1026 = vmatmul.mubr.bf16.gmra.mrb[40].mxu1 %v1659_v60 }
  0x98   : > { %921 = vmatprep.mubr.bf16.mxu0 %v1660_v61  ;;  %1033 = vmatprep.mubr.bf16.mxu1 %v1662_v62 }
  0x9f   : > { %922 = vmatmul.mubr.bf16.gmra.mrb[44].mxu0 %v1664_v63  ;;  %1034 = vmatmul.mubr.bf16.gmra.mrb[44].mxu1 %v1665_v0 }
  0xa0   : > { %929 = vmatprep.mubr.bf16.mxu0 %v1666_v1  ;;  %1041 = vmatprep.mubr.bf16.mxu1 %v1668_v2 }
  0xa7   : > { %930 = vmatmul.mubr.bf16.gmra.mrb[48].mxu0 %v1670_v4  ;;  %1042 = vmatmul.mubr.bf16.gmra.mrb[48].mxu1 %v1671_v5 }
  0xa8   : > { %937 = vmatprep.mubr.bf16.mxu0 %v1672_v6  ;;  %1049 = vmatprep.mubr.bf16.mxu1 %v1501_v7 }
  0xaf   : > { %938 = vmatmul.mubr.bf16.gmra.mrb[52].mxu0 %v1675_v8  ;;  %1050 = vmatmul.mubr.bf16.gmra.mrb[52].mxu1 %v1500_v9 }
 0x11a   : > { %v835_v10 = vpop.f32.mrb[0].mxu0  ;;  %v947_v11 = vpop.f32.mrb[0].mxu1 }
 0x11b   : > { %1677 = vtanh.f32 %v835_v10  ;;  %v837_v12 = vpop.f32.mrb[1].mxu0  ;;  %v949_v13 = vpop.f32.mrb[1].mxu1 }
 0x11c   : > { %1679 = vtanh.f32 %v947_v11  ;;  %v838_v14 = vpop.f32.mrb[2].mxu0  ;;  %v950_v15 = vpop.f32.mrb[2].mxu1 }
 0x11d   : > { %1681 = vtanh.f32 %v838_v14  ;;  %v840_v16 = vpop.f32.mrb[3].mxu0  ;;  %v952_v17 = vpop.f32.mrb[3].mxu1 }
 0x11e   : > { %1683 = vtanh.f32 %v950_v15 }
 0x122   : > { %v843_v18 = vpop.f32.mrb[4].mxu0  ;;  %v955_v19 = vpop.f32.mrb[4].mxu1 }
 0x123   : > { %1685 = vtanh.f32 %v843_v18  ;;  %v845_v20 = vpop.f32.mrb[5].mxu0  ;;  %v957_v21 = vpop.f32.mrb[5].mxu1 }
 0x124   : > { %1687 = vtanh.f32 %v955_v19  ;;  %v846_v22 = vpop.f32.mrb[6].mxu0  ;;  %v958_v23 = vpop.f32.mrb[6].mxu1 }
 0x125   : > { %v1678_v24 = vpop.eup %1677  ;;  %1689 = vtanh.f32 %v846_v22  ;;  %v848_v25 = vpop.f32.mrb[7].mxu0 }
 0x126   : > { %v960_v26 = vpop.f32.mrb[7].mxu1  ;;  %v1680_v27 = vpop.eup %1679  ;;  %1280 = vst [vmem:[%s1995_s29] sm:$0xff] %v1678_v24  ;;  %1691 = vtanh.f32 %v958_v23 }
 0x127   : > { %v1682_v28 = vpop.eup %1681  ;;  %1308 = vst [vmem:[%s1995_s29 + $0xe0] sm:$0xff] %v1680_v27 }
 0x128   : > { %v1684_v29 = vpop.eup %1683  ;;  %1281 = vst [vmem:[%s1995_s29 + $0x8] sm:$0xff] %v1682_v28 }
 0x129   : > { %1309 = vst [vmem:[%s1995_s29 + $0xe8] sm:$0xff] %v1684_v29 }
 0x12a   : > { %v851_v30 = vpop.f32.mrb[8].mxu0  ;;  %v963_v31 = vpop.f32.mrb[8].mxu1 }
 0x12b   : > { %1693 = vtanh.f32 %v851_v30  ;;  %v853_v32 = vpop.f32.mrb[9].mxu0  ;;  %v965_v33 = vpop.f32.mrb[9].mxu1 }
 0x12c   : > { %1695 = vtanh.f32 %v963_v31  ;;  %v854_v34 = vpop.f32.mrb[10].mxu0  ;;  %v966_v35 = vpop.f32.mrb[10].mxu1 }
 0x12d   : > { %v1686_v36 = vpop.eup %1685  ;;  %1697 = vtanh.f32 %v854_v34  ;;  %v856_v37 = vpop.f32.mrb[11].mxu0 }
 0x12e   : > { %v968_v38 = vpop.f32.mrb[11].mxu1  ;;  %v1688_v39 = vpop.eup %1687  ;;  %1282 = vst [vmem:[%s1995_s29 + $0x10] sm:$0xff] %v1686_v36  ;;  %1699 = vtanh.f32 %v966_v35 }
 0x12f   : > { %v1690_v40 = vpop.eup %1689  ;;  %1310 = vst [vmem:[%s1995_s29 + $0xf0] sm:$0xff] %v1688_v39 }
 0x130   : > { %v1692_v41 = vpop.eup %1691  ;;  %1283 = vst [vmem:[%s1995_s29 + $0x18] sm:$0xff] %v1690_v40 }
 0x131   : > { %1311 = vst [vmem:[%s1995_s29 + $0xf8] sm:$0xff] %v1692_v41 }
 0x132   : > { %v859_v42 = vpop.f32.mrb[12].mxu0  ;;  %v971_v43 = vpop.f32.mrb[12].mxu1 }
 0x133   : > { %1701 = vtanh.f32 %v859_v42  ;;  %v861_v44 = vpop.f32.mrb[13].mxu0  ;;  %v973_v45 = vpop.f32.mrb[13].mxu1 }
 0x134   : > { %1703 = vtanh.f32 %v971_v43  ;;  %v862_v46 = vpop.f32.mrb[14].mxu0  ;;  %v974_v47 = vpop.f32.mrb[14].mxu1 }
 0x135   : > { %v1694_v48 = vpop.eup %1693  ;;  %1705 = vtanh.f32 %v862_v46  ;;  %v864_v49 = vpop.f32.mrb[15].mxu0 }
 0x136   : > { %v976_v50 = vpop.f32.mrb[15].mxu1  ;;  %v1696_v51 = vpop.eup %1695  ;;  %1284 = vst [vmem:[%s1995_s29 + $0x20] sm:$0xff] %v1694_v48  ;;  %1707 = vtanh.f32 %v974_v47 }
 0x137   : > { %v1698_v52 = vpop.eup %1697  ;;  %1312 = vst [vmem:[%s1995_s29 + $0x100] sm:$0xff] %v1696_v51 }
 0x138   : > { %v1700_v53 = vpop.eup %1699  ;;  %1285 = vst [vmem:[%s1995_s29 + $0x28] sm:$0xff] %v1698_v52 }
 0x139   : > { %1313 = vst [vmem:[%s1995_s29 + $0x108] sm:$0xff] %v1700_v53 }
 0x13a   : > { %v867_v54 = vpop.f32.mrb[16].mxu0  ;;  %v979_v55 = vpop.f32.mrb[16].mxu1 }
 0x13b   : > { %1709 = vtanh.f32 %v867_v54  ;;  %v869_v56 = vpop.f32.mrb[17].mxu0  ;;  %v981_v57 = vpop.f32.mrb[17].mxu1 }
 0x13c   : > { %1711 = vtanh.f32 %v979_v55  ;;  %v870_v58 = vpop.f32.mrb[18].mxu0  ;;  %v982_v59 = vpop.f32.mrb[18].mxu1 }
 0x13d   : > { %v1702_v60 = vpop.eup %1701  ;;  %1713 = vtanh.f32 %v870_v58  ;;  %v872_v61 = vpop.f32.mrb[19].mxu0 }
 0x13e   : > { %v984_v62 = vpop.f32.mrb[19].mxu1  ;;  %v1704_v63 = vpop.eup %1703  ;;  %1286 = vst [vmem:[%s1995_s29 + $0x30] sm:$0xff] %v1702_v60  ;;  %1715 = vtanh.f32 %v982_v59 }
 0x13f   : > { %v1706_v0 = vpop.eup %1705  ;;  %1314 = vst [vmem:[%s1995_s29 + $0x110] sm:$0xff] %v1704_v63 }
 0x140   : > { %v1708_v1 = vpop.eup %1707  ;;  %1287 = vst [vmem:[%s1995_s29 + $0x38] sm:$0xff] %v1706_v0 }
 0x141   : > { %1315 = vst [vmem:[%s1995_s29 + $0x118] sm:$0xff] %v1708_v1 }
 0x142   : > { %v875_v2 = vpop.f32.mrb[20].mxu0  ;;  %v987_v3 = vpop.f32.mrb[20].mxu1 }
 0x143   : > { %1717 = vtanh.f32 %v875_v2  ;;  %v877_v4 = vpop.f32.mrb[21].mxu0  ;;  %v989_v5 = vpop.f32.mrb[21].mxu1 }
 0x144   : > { %1719 = vtanh.f32 %v987_v3  ;;  %v878_v6 = vpop.f32.mrb[22].mxu0  ;;  %v990_v7 = vpop.f32.mrb[22].mxu1 }
 0x145   : > { %v1710_v8 = vpop.eup %1709  ;;  %1721 = vtanh.f32 %v878_v6  ;;  %v880_v9 = vpop.f32.mrb[23].mxu0 }
 0x146   : > { %v992_v10 = vpop.f32.mrb[23].mxu1  ;;  %v1712_v11 = vpop.eup %1711  ;;  %1288 = vst [vmem:[%s1995_s29 + $0x40] sm:$0xff] %v1710_v8  ;;  %1723 = vtanh.f32 %v990_v7 }
 0x147   : > { %v1714_v12 = vpop.eup %1713  ;;  %1316 = vst [vmem:[%s1995_s29 + $0x120] sm:$0xff] %v1712_v11 }
 0x148   : > { %v1716_v13 = vpop.eup %1715  ;;  %1289 = vst [vmem:[%s1995_s29 + $0x48] sm:$0xff] %v1714_v12 }
 0x149   : > { %1317 = vst [vmem:[%s1995_s29 + $0x128] sm:$0xff] %v1716_v13 }
 0x14a   : > { %v883_v14 = vpop.f32.mrb[24].mxu0  ;;  %v995_v15 = vpop.f32.mrb[24].mxu1 }
 0x14b   : > { %1725 = vtanh.f32 %v883_v14  ;;  %v885_v16 = vpop.f32.mrb[25].mxu0  ;;  %v997_v17 = vpop.f32.mrb[25].mxu1 }
 0x14c   : > { %1727 = vtanh.f32 %v995_v15  ;;  %v886_v18 = vpop.f32.mrb[26].mxu0  ;;  %v998_v19 = vpop.f32.mrb[26].mxu1 }
 0x14d   : > { %v1718_v20 = vpop.eup %1717  ;;  %1729 = vtanh.f32 %v886_v18  ;;  %v888_v21 = vpop.f32.mrb[27].mxu0 }
 0x14e   : > { %v1000_v22 = vpop.f32.mrb[27].mxu1  ;;  %v1720_v23 = vpop.eup %1719  ;;  %1290 = vst [vmem:[%s1995_s29 + $0x50] sm:$0xff] %v1718_v20  ;;  %1731 = vtanh.f32 %v998_v19 }
 0x14f   : > { %v1722_v24 = vpop.eup %1721  ;;  %1318 = vst [vmem:[%s1995_s29 + $0x130] sm:$0xff] %v1720_v23 }
 0x150   : > { %v1724_v25 = vpop.eup %1723  ;;  %1291 = vst [vmem:[%s1995_s29 + $0x58] sm:$0xff] %v1722_v24 }
 0x151   : > { %1319 = vst [vmem:[%s1995_s29 + $0x138] sm:$0xff] %v1724_v25 }
 0x152   : > { %v891_v26 = vpop.f32.mrb[28].mxu0  ;;  %v1003_v27 = vpop.f32.mrb[28].mxu1 }
 0x153   : > { %1733 = vtanh.f32 %v891_v26  ;;  %v893_v28 = vpop.f32.mrb[29].mxu0  ;;  %v1005_v29 = vpop.f32.mrb[29].mxu1 }
 0x154   : > { %1735 = vtanh.f32 %v1003_v27  ;;  %v894_v30 = vpop.f32.mrb[30].mxu0  ;;  %v1006_v31 = vpop.f32.mrb[30].mxu1 }
 0x155   : > { %v1726_v32 = vpop.eup %1725  ;;  %1737 = vtanh.f32 %v894_v30  ;;  %v896_v33 = vpop.f32.mrb[31].mxu0 }
 0x156   : > { %v1008_v34 = vpop.f32.mrb[31].mxu1  ;;  %v1728_v35 = vpop.eup %1727  ;;  %1292 = vst [vmem:[%s1995_s29 + $0x60] sm:$0xff] %v1726_v32  ;;  %1739 = vtanh.f32 %v1006_v31 }
 0x157   : > { %v1730_v36 = vpop.eup %1729  ;;  %1320 = vst [vmem:[%s1995_s29 + $0x140] sm:$0xff] %v1728_v35 }
 0x158   : > { %v1732_v37 = vpop.eup %1731  ;;  %1293 = vst [vmem:[%s1995_s29 + $0x68] sm:$0xff] %v1730_v36 }
 0x159   : > { %1321 = vst [vmem:[%s1995_s29 + $0x148] sm:$0xff] %v1732_v37 }
 0x15a   : > { %v899_v38 = vpop.f32.mrb[32].mxu0  ;;  %v1011_v39 = vpop.f32.mrb[32].mxu1 }
 0x15b   : > { %1741 = vtanh.f32 %v899_v38  ;;  %v901_v40 = vpop.f32.mrb[33].mxu0  ;;  %v1013_v41 = vpop.f32.mrb[33].mxu1 }
 0x15c   : > { %1743 = vtanh.f32 %v1011_v39  ;;  %v902_v42 = vpop.f32.mrb[34].mxu0  ;;  %v1014_v43 = vpop.f32.mrb[34].mxu1 }
 0x15d   : > { %v1734_v44 = vpop.eup %1733  ;;  %1745 = vtanh.f32 %v902_v42  ;;  %v904_v45 = vpop.f32.mrb[35].mxu0 }
 0x15e   : > { %v1016_v46 = vpop.f32.mrb[35].mxu1  ;;  %v1736_v47 = vpop.eup %1735  ;;  %1294 = vst [vmem:[%s1995_s29 + $0x70] sm:$0xff] %v1734_v44  ;;  %1747 = vtanh.f32 %v1014_v43 }
 0x15f   : > { %v1738_v48 = vpop.eup %1737  ;;  %1322 = vst [vmem:[%s1995_s29 + $0x150] sm:$0xff] %v1736_v47 }
 0x160   : > { %v1740_v49 = vpop.eup %1739  ;;  %1295 = vst [vmem:[%s1995_s29 + $0x78] sm:$0xff] %v1738_v48 }
 0x161   : > { %1323 = vst [vmem:[%s1995_s29 + $0x158] sm:$0xff] %v1740_v49 }
 0x162   : > { %v907_v50 = vpop.f32.mrb[36].mxu0  ;;  %v1019_v51 = vpop.f32.mrb[36].mxu1 }
 0x163   : > { %1749 = vtanh.f32 %v907_v50  ;;  %v909_v52 = vpop.f32.mrb[37].mxu0  ;;  %v1021_v53 = vpop.f32.mrb[37].mxu1 }
 0x164   : > { %1751 = vtanh.f32 %v1019_v51  ;;  %v910_v54 = vpop.f32.mrb[38].mxu0  ;;  %v1022_v55 = vpop.f32.mrb[38].mxu1 }
 0x165   : > { %v1742_v56 = vpop.eup %1741  ;;  %1753 = vtanh.f32 %v910_v54  ;;  %v912_v57 = vpop.f32.mrb[39].mxu0 }
 0x166   : > { %v1024_v58 = vpop.f32.mrb[39].mxu1  ;;  %v1744_v59 = vpop.eup %1743  ;;  %1296 = vst [vmem:[%s1995_s29 + $0x80] sm:$0xff] %v1742_v56  ;;  %1755 = vtanh.f32 %v1022_v55 }
 0x167   : > { %v1746_v60 = vpop.eup %1745  ;;  %1324 = vst [vmem:[%s1995_s29 + $0x160] sm:$0xff] %v1744_v59 }
 0x168   : > { %v1748_v61 = vpop.eup %1747  ;;  %1297 = vst [vmem:[%s1995_s29 + $0x88] sm:$0xff] %v1746_v60 }
 0x169   : > { %1325 = vst [vmem:[%s1995_s29 + $0x168] sm:$0xff] %v1748_v61 }
 0x16a   : > { %v915_v62 = vpop.f32.mrb[40].mxu0  ;;  %v1027_v63 = vpop.f32.mrb[40].mxu1 }
 0x16b   : > { %1757 = vtanh.f32 %v915_v62  ;;  %v917_v0 = vpop.f32.mrb[41].mxu0  ;;  %v1029_v1 = vpop.f32.mrb[41].mxu1 }
 0x16c   : > { %1759 = vtanh.f32 %v1027_v63  ;;  %v918_v2 = vpop.f32.mrb[42].mxu0  ;;  %v1030_v3 = vpop.f32.mrb[42].mxu1 }
 0x16d   : > { %v1750_v4 = vpop.eup %1749  ;;  %1761 = vtanh.f32 %v918_v2  ;;  %v920_v5 = vpop.f32.mrb[43].mxu0 }
 0x16e   : > { %v1032_v6 = vpop.f32.mrb[43].mxu1  ;;  %v1752_v7 = vpop.eup %1751  ;;  %1298 = vst [vmem:[%s1995_s29 + $0x90] sm:$0xff] %v1750_v4  ;;  %1763 = vtanh.f32 %v1030_v3 }
 0x16f   : > { %v1754_v8 = vpop.eup %1753  ;;  %1326 = vst [vmem:[%s1995_s29 + $0x170] sm:$0xff] %v1752_v7 }
 0x170   : > { %v1756_v9 = vpop.eup %1755  ;;  %1299 = vst [vmem:[%s1995_s29 + $0x98] sm:$0xff] %v1754_v8 }
 0x171   : > { %1327 = vst [vmem:[%s1995_s29 + $0x178] sm:$0xff] %v1756_v9 }
 0x172   : > { %v923_v10 = vpop.f32.mrb[44].mxu0  ;;  %v1035_v11 = vpop.f32.mrb[44].mxu1 }
 0x173   : > { %1765 = vtanh.f32 %v923_v10  ;;  %v925_v12 = vpop.f32.mrb[45].mxu0  ;;  %v1037_v13 = vpop.f32.mrb[45].mxu1 }
 0x174   : > { %1767 = vtanh.f32 %v1035_v11  ;;  %v926_v14 = vpop.f32.mrb[46].mxu0  ;;  %v1038_v15 = vpop.f32.mrb[46].mxu1 }
 0x175   : > { %v1758_v16 = vpop.eup %1757  ;;  %1769 = vtanh.f32 %v926_v14  ;;  %v928_v17 = vpop.f32.mrb[47].mxu0 }
 0x176   : > { %v1040_v18 = vpop.f32.mrb[47].mxu1  ;;  %v1760_v19 = vpop.eup %1759  ;;  %1300 = vst [vmem:[%s1995_s29 + $0xa0] sm:$0xff] %v1758_v16  ;;  %1771 = vtanh.f32 %v1038_v15 }
 0x177   : > { %v1762_v20 = vpop.eup %1761  ;;  %1328 = vst [vmem:[%s1995_s29 + $0x180] sm:$0xff] %v1760_v19 }
 0x178   : > { %v1764_v21 = vpop.eup %1763  ;;  %1301 = vst [vmem:[%s1995_s29 + $0xa8] sm:$0xff] %v1762_v20 }
 0x179   : > { %1329 = vst [vmem:[%s1995_s29 + $0x188] sm:$0xff] %v1764_v21 }
 0x17a   : > { %v931_v22 = vpop.f32.mrb[48].mxu0  ;;  %v1043_v23 = vpop.f32.mrb[48].mxu1 }
 0x17b   : > { %1773 = vtanh.f32 %v931_v22  ;;  %v933_v24 = vpop.f32.mrb[49].mxu0  ;;  %v1045_v25 = vpop.f32.mrb[49].mxu1 }
 0x17c   : > { %1775 = vtanh.f32 %v1043_v23  ;;  %v934_v26 = vpop.f32.mrb[50].mxu0  ;;  %v1046_v27 = vpop.f32.mrb[50].mxu1 }
 0x17d   : > { %v1766_v28 = vpop.eup %1765  ;;  %1777 = vtanh.f32 %v934_v26  ;;  %v936_v29 = vpop.f32.mrb[51].mxu0 }
 0x17e   : > { %v1048_v30 = vpop.f32.mrb[51].mxu1  ;;  %v1768_v31 = vpop.eup %1767  ;;  %1302 = vst [vmem:[%s1995_s29 + $0xb0] sm:$0xff] %v1766_v28  ;;  %1779 = vtanh.f32 %v1046_v27 }
 0x17f   : > { %v1770_v32 = vpop.eup %1769  ;;  %1330 = vst [vmem:[%s1995_s29 + $0x190] sm:$0xff] %v1768_v31 }
 0x180   : > { %v1772_v33 = vpop.eup %1771  ;;  %1303 = vst [vmem:[%s1995_s29 + $0xb8] sm:$0xff] %v1770_v32 }
 0x181   : > { %1331 = vst [vmem:[%s1995_s29 + $0x198] sm:$0xff] %v1772_v33 }
 0x182   : > { %v939_v34 = vpop.f32.mrb[52].mxu0  ;;  %v1051_v35 = vpop.f32.mrb[52].mxu1 }
 0x183   : > { %1781 = vtanh.f32 %v939_v34  ;;  %v941_v36 = vpop.f32.mrb[53].mxu0  ;;  %v1053_v37 = vpop.f32.mrb[53].mxu1 }
 0x184   : > { %1783 = vtanh.f32 %v1051_v35  ;;  %v942_v38 = vpop.f32.mrb[54].mxu0  ;;  %v1054_v39 = vpop.f32.mrb[54].mxu1 }
 0x185   : > { %v1774_v40 = vpop.eup %1773  ;;  %1785 = vtanh.f32 %v942_v38  ;;  %v944_v41 = vpop.f32.mrb[55].mxu0 }
 0x186   : > { %v1055_v42 = vpop.f32.mrb[55].mxu1  ;;  %v1776_v43 = vpop.eup %1775  ;;  %1304 = vst [vmem:[%s1995_s29 + $0xc0] sm:$0xff] %v1774_v40 }
 0x187   : > { %v1778_v44 = vpop.eup %1777  ;;  %1332 = vst [vmem:[%s1995_s29 + $0x1a0] sm:$0xff] %v1776_v43 }
 0x188   : > { %v1780_v45 = vpop.eup %1779  ;;  %1305 = vst [vmem:[%s1995_s29 + $0xc8] sm:$0xff] %v1778_v44 }
 0x189   : > { %1333 = vst [vmem:[%s1995_s29 + $0x1a8] sm:$0xff] %v1780_v45 }
 0x18d   : > { %v1782_v46 = vpop.eup %1781 }
 0x18e   : > { %v1784_v47 = vpop.eup %1783  ;;  %1306 = vst [vmem:[%s1995_s29 + $0xd0] sm:$0xff] %v1782_v46 }
 0x18f   : > { %v1786_v48 = vpop.eup %1785  ;;  %1334 = vst [vmem:[%s1995_s29 + $0x1b0] sm:$0xff] %v1784_v47 }
 0x190   : > { %1307 = vst [vmem:[%s1995_s29 + $0xd8] sm:$0xff] %v1786_v48 }
 0x191 PF: > { %s12_s11 = sadd.s32 1, %s1809_s11   ;;  %s2064_s9 = smov %s1805_s10 }
 0x192   : > { %p9_p5 = scmp.ge.s32.totalorder %s12_s11, 7   ;;  %s2065_s10 = smov %s2067_s12 }
 0x194   :  { %11 = sbr.rel (!%p9_p5) target bundleno = 2 (0x2), region = 69 }

</bundles_post_ra>
